<compile_context>
chip_gen: v5e
topology: v5e:2x2
jax: 0.10.0
libtpu: 0.0.40
codegen_flags: <defaults>
</compile_context>

<pallas_src>
import jax
import jax.numpy as jnp
from jax.experimental import pallas as pl
from jax.experimental.pallas import tpu as pltpu

NUM_CLASSES = 10
INPUT_PIXELS = 28 * 28          # 784
PADDED_PIXELS = 7 * 128         # 896, lane-aligned K for layer 1
PADDED_CLASSES = 128            # lane-dense output width
_NEG_BIG = -1e30                # masks padded logit columns in log_softmax

H1, H2 = 512, 256


def _fcn_kernel(x_ref, w1_ref, b1_ref, w2_ref, b2_ref, w3_ref, b3_ref, out_ref):
    # Layer 1: [TB, 896](bf16) @ [896, 512](bf16) -> f32, + bias, ReLU (f32)
    h1 = jnp.dot(x_ref[...], w1_ref[...], preferred_element_type=jnp.float32)
    h1 = jnp.maximum(h1 + b1_ref[...], 0.0)

    # Layer 2: [TB, 512] @ [512, 256] -> f32, + bias, ReLU (f32)
    h2 = jnp.dot(h1.astype(jnp.bfloat16), w2_ref[...],
                 preferred_element_type=jnp.float32)
    h2 = jnp.maximum(h2 + b2_ref[...], 0.0)

    # Layer 3: [TB, 256] @ [256, 128] -> f32, + bias.
    # Padded classes (cols 10..127) have zero weight columns and a -1e30 bias,
    # so they contribute exp(-huge) = 0 to the normalizer below.
    logits = jnp.dot(h2.astype(jnp.bfloat16), w3_ref[...],
                     preferred_element_type=jnp.float32)
    logits = logits + b3_ref[...]

    # Numerically stable log_softmax over the (padded) class dimension.
    m = jnp.max(logits, axis=-1, keepdims=True)
    shifted = logits - m
    lse = jnp.log(jnp.sum(jnp.exp(shifted), axis=-1, keepdims=True))
    out_ref[...] = (shifted - lse).astype(out_ref.dtype)


def prepare_params(params):
    """One-time parameter prep (pad + bf16 cast). Call once, reuse every step.

    params = (w1 [784,512], b1 [1,512], w2 [512,256], b2 [1,256],
              w3 [256,10],  b3 [1,10])   (weights = nn.Linear.weight.T)
    """
    w1, b1, w2, b2, w3, b3 = params
    w1p = jnp.pad(w1.astype(jnp.float32),
                  ((0, PADDED_PIXELS - INPUT_PIXELS), (0, 0))).astype(jnp.bfloat16)
    w2p = w2.astype(jnp.bfloat16)
    w3p = jnp.pad(w3.astype(jnp.float32),
                  ((0, 0), (0, PADDED_CLASSES - NUM_CLASSES))).astype(jnp.bfloat16)
    b1p = b1.reshape(1, -1).astype(jnp.float32)
    b2p = b2.reshape(1, -1).astype(jnp.float32)
    b3p = jnp.pad(b3.reshape(1, -1).astype(jnp.float32),
                  ((0, 0), (0, PADDED_CLASSES - NUM_CLASSES)),
                  constant_values=_NEG_BIG)
    return (w1p, b1p, w2p, b2p, w3p, b3p)


def prepare_inputs(x):
    """One-time input prep: flatten, zero-pad 784 -> 896, cast to bf16.

    For the memorization setting the dataset is fixed, so do this once outside
    the training loop (removes a per-call pad+cast HBM pass of ~2-3x the
    kernel's own x traffic).
    """
    x2d = x.reshape(-1, INPUT_PIXELS).astype(jnp.float32)
    return jnp.pad(
        x2d, ((0, 0), (0, PADDED_PIXELS - INPUT_PIXELS))).astype(jnp.bfloat16)


def _choose_batch_tile(B):
    """Adaptive batch tile.

    * B <= 256: single grid step, batch rounded up to the 8-row sublane only
      (no dead 256-row tile for inference-sized batches).
    * Large B: biggest of {1024, 512, 256} that still gives >= 4 grid steps
      (>= 2 per TensorCore on v7x), capped at 1024 to stay comfortably inside
      v7x's 64 MiB VMEM / 32 MiB scoped limit on every generation.
    """
    if B <= 256:
        return max(8, ((B + 7) // 8) * 8)
    for tile in (1024, 512, 256):
        if B >= 4 * tile:
            return tile
    return 256


def memorization_fcn_forward(x_prepped, prepped_params, *, batch_tile=None,
                             return_padded=False):
    """x_prepped: bf16 [B, 896] from prepare_inputs.
    prepped_params: output of prepare_params.
    Returns [B, NUM_CLASSES] f32 log-probs (or padded [padded_B, 128] if
    return_padded=True; columns >= 10 are ~-1e30 and must not be reduced over).
    """
    w1p, b1p, w2p, b2p, w3p, b3p = prepped_params
    B = x_prepped.shape[0]
    if batch_tile is None:
        batch_tile = _choose_batch_tile(B)

    padded_B = ((B + batch_tile - 1) // batch_tile) * batch_tile
    xk = x_prepped
    if padded_B != B:
        xk = jnp.pad(x_prepped, ((0, padded_B - B), (0, 0)))

    grid = (padded_B // batch_tile,)
    full = lambda shape: pl.BlockSpec(shape, lambda i: (0, 0))

    flops = 2 * padded_B * (PADDED_PIXELS * H1 + H1 * H2 + H2 * PADDED_CLASSES)
    bytes_accessed = (
        padded_B * PADDED_PIXELS * 2                                  # x (bf16)
        + (PADDED_PIXELS * H1 + H1 * H2 + H2 * PADDED_CLASSES) * 2    # weights
        + (H1 + H2 + PADDED_CLASSES) * 4                              # biases
        + padded_B * PADDED_CLASSES * 4)                              # output
    transcendentals = padded_B * PADDED_CLASSES                       # exp in LSE

    out = pl.pallas_call(
        _fcn_kernel,
        out_shape=jax.ShapeDtypeStruct((padded_B, PADDED_CLASSES), jnp.float32),
        grid_spec=pltpu.PrefetchScalarGridSpec(
            num_scalar_prefetch=0,
            grid=grid,
            in_specs=[
                pl.BlockSpec((batch_tile, PADDED_PIXELS), lambda i: (i, 0)),  # x
                full(w1p.shape), full(b1p.shape),                             # fc1
                full(w2p.shape), full(b2p.shape),                             # fc2
                full(w3p.shape), full(b3p.shape),                             # fc3
            ],
            out_specs=pl.BlockSpec((batch_tile, PADDED_CLASSES),
                                   lambda i: (i, 0)),
        ),
        compiler_params=pltpu.CompilerParams(
            dimension_semantics=("parallel",),
            vmem_limit_bytes=32 * 1024 * 1024,
        ),
        cost_estimate=pl.CostEstimate(
            flops=flops,
            transcendentals=transcendentals,
            bytes_accessed=bytes_accessed,
        ),
    )(xk, w1p, b1p, w2p, b2p, w3p, b3p)

    if return_padded:
        return out
    # Keep this slice in the same jit as the consumer so XLA fuses it (or use
    # return_padded=True and gather the label column downstream).
    return out[:B, :NUM_CLASSES]


def init_params(key):
    """Deterministic small-scale init (shapes match the PyTorch module)."""
    k1, k2, k3 = jax.random.split(key, 3)
    scale = 0.05
    w1 = scale * jax.random.normal(k1, (INPUT_PIXELS, H1), jnp.float32)
    b1 = jnp.zeros((1, H1), jnp.float32)
    w2 = scale * jax.random.normal(k2, (H1, H2), jnp.float32)
    b2 = jnp.zeros((1, H2), jnp.float32)
    w3 = scale * jax.random.normal(k3, (H2, NUM_CLASSES), jnp.float32)
    b3 = jnp.zeros((1, NUM_CLASSES), jnp.float32)
    return (w1, b1, w2, b2, w3, b3)


def _reference(x, params):
    """Pure f32 JAX reference matching the PyTorch module."""
    w1, b1, w2, b2, w3, b3 = params
    x2d = x.reshape(-1, INPUT_PIXELS)
    h1 = jax.nn.relu(x2d @ w1 + b1)
    h2 = jax.nn.relu(h1 @ w2 + b2)
    return jax.nn.log_softmax(h2 @ w3 + b3, axis=1)


if __name__ == "__main__":
    key = jax.random.PRNGKey(0)
    kx, kp = jax.random.split(key)
    params = init_params(kp)

    # One-time prep (hoisted out of the per-step hot path per perf review).
    prepped_params = prepare_params(params)
    fwd = jax.jit(memorization_fcn_forward)

    # Training-sized batch: B=512 -> batch_tile=256, 2-step parallel grid
    # (one step per TensorCore on v7x).
    B = 512
    x = jax.random.normal(kx, (B, 1, 28, 28), jnp.float32)
    x_prep = prepare_inputs(x)
    out = jax.block_until_ready(fwd(x_prep, prepped_params))
    ref = _reference(x, params)
    assert out.shape == (B, NUM_CLASSES)
    max_err = float(jnp.max(jnp.abs(out - ref)))
    # bf16 matmul operands (f32 accumulation) vs pure-f32 reference:
    # intentional precision trade-off; largest abs error sits on the most
    # negative log-probs of near-zero-probability classes.
    assert max_err < 5e-2, f"mismatch vs reference (B=512): {max_err}"

    # Small/inference-sized batch: exercises the adaptive single-step path
    # (tile = 40 rows, no dead 256-row tile).
    B_small = 37
    x_small = jax.random.normal(jax.random.PRNGKey(1),
                                (B_small, 1, 28, 28), jnp.float32)
    out_small = jax.block_until_ready(
        fwd(prepare_inputs(x_small), prepped_params))
    ref_small = _reference(x_small, params)
    assert out_small.shape == (B_small, NUM_CLASSES)
    max_err_small = float(jnp.max(jnp.abs(out_small - ref_small)))
    assert max_err_small < 5e-2, f"mismatch vs reference (B=37): {max_err_small}"

    print("KERNEL_OK")
</pallas_src>

<mosaic_0001>
module attributes {stable_mosaic.version = 11 : i64} {
  func.func @_fcn_kernel(%arg0: i32, %arg1: memref<256x896xbf16, #tpu.memory_space<vmem>>, %arg2: memref<896x512xbf16, #tpu.memory_space<vmem>>, %arg3: memref<1x512xf32, #tpu.memory_space<vmem>>, %arg4: memref<512x256xbf16, #tpu.memory_space<vmem>>, %arg5: memref<1x256xf32, #tpu.memory_space<vmem>>, %arg6: memref<256x128xbf16, #tpu.memory_space<vmem>>, %arg7: memref<1x128xf32, #tpu.memory_space<vmem>>, %arg8: memref<256x128xf32, #tpu.memory_space<vmem>>) attributes {dimension_semantics = [#tpu.dimension_semantics<parallel>], iteration_bounds = array<i64: 2>, scalar_prefetch = 0 : i64, scratch_operands = 0 : i64, tpu.core_type = #tpu.core_type<tc>, window_params = [{transform_indices = @transform_0, window_bounds = array<i64: 256, 896>}, {pipeline_mode = #tpu.pipeline_mode<synchronous>, transform_indices = @transform_1, window_bounds = array<i64: 896, 512>}, {pipeline_mode = #tpu.pipeline_mode<synchronous>, transform_indices = @transform_2, window_bounds = array<i64: 1, 512>}, {pipeline_mode = #tpu.pipeline_mode<synchronous>, transform_indices = @transform_3, window_bounds = array<i64: 512, 256>}, {pipeline_mode = #tpu.pipeline_mode<synchronous>, transform_indices = @transform_4, window_bounds = array<i64: 1, 256>}, {pipeline_mode = #tpu.pipeline_mode<synchronous>, transform_indices = @transform_5, window_bounds = array<i64: 256, 128>}, {pipeline_mode = #tpu.pipeline_mode<synchronous>, transform_indices = @transform_6, window_bounds = array<i64: 1, 128>}, {transform_indices = @transform_7, window_bounds = array<i64: 256, 128>}]} {
    %c0 = arith.constant 0 : index
    %c0_0 = arith.constant 0 : index
    %0 = vector.load %arg1[%c0, %c0_0] : memref<256x896xbf16, #tpu.memory_space<vmem>>, vector<256x896xbf16>
    %c0_1 = arith.constant 0 : index
    %c0_2 = arith.constant 0 : index
    %1 = vector.load %arg2[%c0_1, %c0_2] : memref<896x512xbf16, #tpu.memory_space<vmem>>, vector<896x512xbf16>
    %cst = arith.constant dense<0.000000e+00> : vector<256x512xf32>
    %2 = tpu.matmul %0, %1, %cst {dimension_numbers = #tpu.dot_dimension_numbers<[1], [0], [0], [1], [0, 0, 1, 1], [], []>} : vector<256x896xbf16>, vector<896x512xbf16>, vector<256x512xf32> -> vector<256x512xf32>
    %c0_3 = arith.constant 0 : index
    %c0_4 = arith.constant 0 : index
    %3 = vector.load %arg3[%c0_3, %c0_4] : memref<1x512xf32, #tpu.memory_space<vmem>>, vector<1x512xf32>
    %4 = vector.broadcast %3 : vector<1x512xf32> to vector<256x512xf32>
    %5 = arith.addf %2, %4 : vector<256x512xf32>
    %cst_5 = arith.constant 0.000000e+00 : f32
    %6 = vector.broadcast %cst_5 : f32 to vector<256x512xf32>
    %7 = arith.maximumf %5, %6 : vector<256x512xf32>
    %8 = arith.truncf %7 : vector<256x512xf32> to vector<256x512xbf16>
    %c0_6 = arith.constant 0 : index
    %c0_7 = arith.constant 0 : index
    %9 = vector.load %arg4[%c0_6, %c0_7] : memref<512x256xbf16, #tpu.memory_space<vmem>>, vector<512x256xbf16>
    %cst_8 = arith.constant dense<0.000000e+00> : vector<256x256xf32>
    %10 = tpu.matmul %8, %9, %cst_8 {dimension_numbers = #tpu.dot_dimension_numbers<[1], [0], [0], [1], [0, 0, 1, 1], [], []>} : vector<256x512xbf16>, vector<512x256xbf16>, vector<256x256xf32> -> vector<256x256xf32>
    %c0_9 = arith.constant 0 : index
    %c0_10 = arith.constant 0 : index
    %11 = vector.load %arg5[%c0_9, %c0_10] : memref<1x256xf32, #tpu.memory_space<vmem>>, vector<1x256xf32>
    %12 = vector.broadcast %11 : vector<1x256xf32> to vector<256x256xf32>
    %13 = arith.addf %10, %12 : vector<256x256xf32>
    %cst_11 = arith.constant 0.000000e+00 : f32
    %14 = vector.broadcast %cst_11 : f32 to vector<256x256xf32>
    %15 = arith.maximumf %13, %14 : vector<256x256xf32>
    %16 = arith.truncf %15 : vector<256x256xf32> to vector<256x256xbf16>
    %c0_12 = arith.constant 0 : index
    %c0_13 = arith.constant 0 : index
    %17 = vector.load %arg6[%c0_12, %c0_13] : memref<256x128xbf16, #tpu.memory_space<vmem>>, vector<256x128xbf16>
    %cst_14 = arith.constant dense<0.000000e+00> : vector<256x128xf32>
    %18 = tpu.matmul %16, %17, %cst_14 {dimension_numbers = #tpu.dot_dimension_numbers<[1], [0], [0], [1], [0, 0, 1, 1], [], []>} : vector<256x256xbf16>, vector<256x128xbf16>, vector<256x128xf32> -> vector<256x128xf32>
    %c0_15 = arith.constant 0 : index
    %c0_16 = arith.constant 0 : index
    %19 = vector.load %arg7[%c0_15, %c0_16] : memref<1x128xf32, #tpu.memory_space<vmem>>, vector<1x128xf32>
    %20 = vector.broadcast %19 : vector<1x128xf32> to vector<256x128xf32>
    %21 = arith.addf %18, %20 : vector<256x128xf32>
    %cst_17 = arith.constant dense<0xFF800000> : vector<256xf32>
    %22 = vector.multi_reduction <maximumf>, %21, %cst_17 [1] : vector<256x128xf32> to vector<256xf32>
    %23 = vector.shape_cast %22 : vector<256xf32> to vector<256x1xf32>
    %24 = vector.broadcast %23 : vector<256x1xf32> to vector<256x128xf32>
    %25 = arith.subf %21, %24 : vector<256x128xf32>
    %26 = math.exp %25 : vector<256x128xf32>
    %cst_18 = arith.constant dense<0.000000e+00> : vector<256xf32>
    %27 = vector.multi_reduction <add>, %26, %cst_18 [1] : vector<256x128xf32> to vector<256xf32>
    %28 = vector.shape_cast %27 : vector<256xf32> to vector<256x1xf32>
    %29 = math.log %28 : vector<256x1xf32>
    %30 = vector.broadcast %29 : vector<256x1xf32> to vector<256x128xf32>
    %31 = arith.subf %25, %30 : vector<256x128xf32>
    %c0_19 = arith.constant 0 : index
    %c0_20 = arith.constant 0 : index
    %32 = vector.load %arg8[%c0_19, %c0_20] : memref<256x128xf32, #tpu.memory_space<vmem>>, vector<256x128xf32>
    tpu.vector_store %arg8[%c0_19, %c0_20], %31 {strides = array<i32>} : memref<256x128xf32, #tpu.memory_space<vmem>>, vector<256x128xf32>,
    return
  }
  func.func @transform_0(%arg0: i32) -> (i32, i32) {
    %c0_i32 = arith.constant 0 : i32
    %c0_i32_0 = arith.constant 0 : i32
    return %arg0, %c0_i32 : i32, i32
  }
  func.func @transform_1(%arg0: i32) -> (i32, i32) {
    %c0_i32 = arith.constant 0 : i32
    %c0_i32_0 = arith.constant 0 : i32
    %c0_i32_1 = arith.constant 0 : i32
    return %c0_i32, %c0_i32_0 : i32, i32
  }
  func.func @transform_2(%arg0: i32) -> (i32, i32) {
    %c0_i32 = arith.constant 0 : i32
    %c0_i32_0 = arith.constant 0 : i32
    %c0_i32_1 = arith.constant 0 : i32
    return %c0_i32, %c0_i32_0 : i32, i32
  }
  func.func @transform_3(%arg0: i32) -> (i32, i32) {
    %c0_i32 = arith.constant 0 : i32
    %c0_i32_0 = arith.constant 0 : i32
    %c0_i32_1 = arith.constant 0 : i32
    return %c0_i32, %c0_i32_0 : i32, i32
  }
  func.func @transform_4(%arg0: i32) -> (i32, i32) {
    %c0_i32 = arith.constant 0 : i32
    %c0_i32_0 = arith.constant 0 : i32
    %c0_i32_1 = arith.constant 0 : i32
    return %c0_i32, %c0_i32_0 : i32, i32
  }
  func.func @transform_5(%arg0: i32) -> (i32, i32) {
    %c0_i32 = arith.constant 0 : i32
    %c0_i32_0 = arith.constant 0 : i32
    %c0_i32_1 = arith.constant 0 : i32
    return %c0_i32, %c0_i32_0 : i32, i32
  }
  func.func @transform_6(%arg0: i32) -> (i32, i32) {
    %c0_i32 = arith.constant 0 : i32
    %c0_i32_0 = arith.constant 0 : i32
    %c0_i32_1 = arith.constant 0 : i32
    return %c0_i32, %c0_i32_0 : i32, i32
  }
  func.func @transform_7(%arg0: i32) -> (i32, i32) {
    %c0_i32 = arith.constant 0 : i32
    %c0_i32_0 = arith.constant 0 : i32
    return %arg0, %c0_i32 : i32, i32
  }
}

</mosaic_0001>

<bundles_post_ra>
// kernel: memorization_fcn_forward.1
= control target key start
LH: loop header
LB: loop body
LE: loop exit
PB: predicated region body
PF: predicated region fallthrough
CT: control target
= control target key end

     0   :  { %12 = vsyncpa [#allocation3], 0  ;;  %s12368_s0 = inlined_call_operand.hbm [shape: bf16[512,896], index: 0, kind: input, shape index: {}]   ;;  %s12369_s1 = inlined_call_operand.hbm [shape: bf16[896,512], index: 1, kind: input, shape index: {}]   ;;  %s12370_s2 = inlined_call_operand.hbm [shape: f32[1,512], index: 2, kind: input, shape index: {}]   ;;  %s12371_s3 = inlined_call_operand.hbm [shape: bf16[512,256], index: 3, kind: input, shape index: {}]   ;;  %s12372_s4 = inlined_call_operand.vmem [shape: f32[1,256], index: 4, kind: input, shape index: {}]   ;;  %s12373_s5 = inlined_call_operand.hbm [shape: bf16[256,128], index: 5, kind: input, shape index: {}]   ;;  %s12374_s6 = inlined_call_operand.vmem [shape: f32[1,128], index: 6, kind: input, shape index: {}]   ;;  %s12375_s7 = inlined_call_operand.vmem [shape: f32[512,128], index: 7, kind: output, shape index: {}]  }
   0x1   :  { %14 = vsyncpa [#allocation3 + $0x1], 0 }
   0x2   :  { %15 = vsyncpa [#allocation5], 0 }
   0x3   :  { %16 = vsyncpa [#allocation8], 0  ;;  %s9660_s24 = smov 0   ;;  %s9662_s25 = smov 0  }
   0x4   :  { %s9664_s26 = smov 0   ;;  %s9666_s27 = smov 0  }
   0x5 LB: > { %s12376_s28 = sadd.s32 4294967295, %s9606_s27   ;;  %p42_p0 = scmp.ne.s32.totalorder %s9598_s25, %s9594_s24  ;;  %s9606_s27 = sphi %s9666_s27, %s13284_s27   ;;  %s9602_s26 = sphi %s9664_s26, %s13283_s26   ;;  %s9598_s25 = sphi %s9662_s25, %s13282_s25   ;;  %s9594_s24 = sphi %s9660_s24, %s13281_s24  }
   0x6   : > { %p9682_p1 = scmp.eq.s32.totalorder %s12376_s28, 0  ;;  %p7077_p2 = scmp.ge.s32.totalorder %s9606_s27, 1 }
   0x7   : > { %p205_p3 = scmp.lt.s32.totalorder %s9606_s27, 3  ;;  %s216_s10 = sshll.u32 %s12369_s1, 4  ;;  %s217_s10 = int_to_ptr.hbm [resolvable:$true] %s216_s10 }
   0x8   : > { %p9690_p4 = por %p9682_p1, %p42_p0  ;;  %s9608_s12 = smov [#allocation4]  }
   0x9   : > { %p9697_p5 = pnand %p7077_p2, %p205_p3  ;;  %s218_s13 = sshll.u32 %s9608_s12, 4  ;;  %s219_s13 = int_to_ptr.vmem [resolvable:$true] %s218_s13 }
   0xa   : > { %s242_s17 = sshll.u32 %s12371_s3, 4  ;;  %s9609_s18 = smov 256   ;;  %s243_s17 = int_to_ptr.hbm [resolvable:$true] %s242_s17 }
   0xb   : > { %p9212_p6 = pneg %p9697_p5  ;;  %s9610_s19 = smov 16  }
   0xc   : > { %s9611_s20 = smov [#allocation7]   ;;  %s9612_s22 = smov 128  }
   0xd   : > { %p9705_p7 = pnand %p9212_p6, %p9682_p1  ;;  %s244_s21 = sshll.u32 %s9611_s20, 4  ;;  %s245_s21 = int_to_ptr.vmem [resolvable:$true] %s244_s21 }
   0xe   : > { %s9613_s23 = smov 8   ;;  %s231_s9 = sshll.u32 %s12370_s2, 4  ;;  %s232_s9 = int_to_ptr.hbm [resolvable:$true] %s231_s9 }
   0xf   : > { %9215 = dma.hbm_to_vmem [thread:$0]  (!%p9705_p7), %s217_s10, 28672, %s219_s13, [#allocation5], %s9609_s18, %s9609_s18, %s9610_s19  }
  0x10   : > { %9221 = dma.hbm_to_vmem [thread:$0]  (!%p9705_p7), %s243_s17, 8192, %s245_s21, [#allocation8], %s9612_s22, %s9612_s22, %s9613_s23  }
  0x11   : > { %s9614_s12 = smov [#allocation6]   ;;  %s259_s16 = sshll.u32 %s12373_s5, 4  ;;  %s260_s16 = int_to_ptr.hbm [resolvable:$true] %s259_s16 }
  0x12   : > { %s233_s10 = sshll.u32 %s9614_s12, 4  ;;  %s9615_s17 = smov [#allocation9]   ;;  %s234_s10 = int_to_ptr.vmem [resolvable:$true] %s233_s10 }
  0x13   : > { %9218 = dma.hbm_to_vmem [thread:$0]  (!%p9705_p7), %s232_s9, 64, %s234_s10, [#allocation5]  }
  0x14   : > { %s261_s18 = sshll.u32 %s9615_s17, 4  ;;  %s9616_s19 = smov 64   ;;  %s262_s18 = int_to_ptr.vmem [resolvable:$true] %s261_s18 }
  0x15   : > { %s9617_s20 = smov 4   ;;  %s9727_s21 = sadd.s32 1, %s9606_s27  }
  0x16   : > { %9224 = dma.hbm_to_vmem [thread:$0]  (!%p9705_p7), %s260_s16, 2048, %s262_s18, [#allocation8], %s9616_s19, %s9616_s19, %s9617_s20  }
  0x17   : > { %s26_s22 = ssub.s32 %s9606_s27, %s9727_s21  ;;  %s29_s23 = sadd.s32 1, %s9602_s26 }
  0x18   : > { %p27_p8 = scmp.eq.s32.totalorder %s26_s22, 0  ;;  %p36_p9 = scmp.ne.s32.totalorder %s9602_s26, %s9598_s25 }
  0x19   : > { %p37_p10 = scmp.eq.s32.totalorder %s9606_s27, 0  ;;  %p9233_p12 = scmp.lt.s32.totalorder %s9606_s27, 2 }
  0x1a   : > { %s9736_s24 = scalar_select %p27_p8, %s9602_s26, %s29_s23  }
  0x1b   : > { %p38_p11 = por %p37_p10, %p36_p9  ;;  %s278_s8 = sand.u32 1, %s9602_s26  }
  0x1c   : > { %s9192_s9 = smul.u32 896, %s9606_s27  ;;  %s279_s19 = scalar_lea.sflag [#allocation3], %s278_s8 }
  0x1d   : > { %s9191_s12 = smul.u32 896, %s278_s8  ;;  %p9744_p13 = pnand %p9233_p12, %p38_p11 }
  0x1e   : > { %s288_s14 = scalar_lea.hbm %s12368_s0, %s9192_s9  ;;  %s9541_s10 = scalar_lea.hbm %s12368_s0, 1792 }
  0x1f   : > { %s289_s16 = sshll.u32 %s288_s14, 4  ;;  %s282_s17 = scalar_lea.vmem [#allocation2], %s9191_s12  ;;  %s290_s16 = int_to_ptr.hbm [resolvable:$true] %s289_s16 }
  0x20   : > { %s291_s18 = sshll.u32 %s282_s17, 4  ;;  %s9534_s20 = sshra.s32 %s290_s16, 4  ;;  %s292_s18 = int_to_ptr.vmem [resolvable:$true] %s291_s18  ;;  %s9535_s20 = int_to_ptr.hbm [resolvable:$true] %s9534_s20 }
  0x21   : > { %s9536_s22 = scalar_lea.hbm %s9535_s20, 896  ;;  %p9538_p2 = pneg %p9744_p13 }
  0x22   : > { %p9537_p0 = scmp.ne.s32.totalorder %s9535_s20, %s9536_s22  ;;  %p9542_p7 = scmp.lt.s32.totalorder %s9535_s20, %s12368_s0 }
  0x23   : > { %p9543_p8 = scmp.lt.s32.totalorder %s9541_s10, %s9536_s22 }
  0x24   : > { %p9539_p3 = pnand %p9538_p2, %p9537_p0 }
  0x25   : > { %p9544_p9 = por %p9543_p8, %p9542_p7 }
  0x26   : > { %p9540_p6 = pneg %p9539_p3 }
  0x28   : > { %p9545_p10 = pnand %p9544_p9, %p9540_p6 }
  0x2a   : > { %9548 = shalt.err (!%p9545_p10)
}
  0x2b   : > { %s9618_s8 = smov 448   ;;  %s9619_s12 = smov 28  }
  0x2c   : > { %9228 = dma.hbm_to_vmem [thread:$0]  (!%p9744_p13), %s290_s16, 14336, %s292_s18, %s279_s19, %s9618_s8, %s9618_s8, %s9619_s12  }
  0x2d   : > { %303 = sbr.rel (%p9697_p5) target bundleno = 3049 (0xbe9), region = 48 }
  0x32   : > { %s305_s14 = sand.u32 1, %s9598_s25  }
  0x33   : > { %s9193_s17 = smul.u32 896, %s305_s14  ;;  %s306_s23 = scalar_lea.sflag [#allocation3], %s305_s14 }
  0x35   : > { %s9761_s9 = scalar_lea.vmem [#allocation2], %s9193_s17 }
  0x36   : > { %9581 = dma.done.wait (%p9690_p4), %s306_s23, 14336  }
  0x37   : > { %9583 = vsyncadd (%p9690_p4), %s306_s23, 4294952960 }
  0x38   : > { %9585 = dma.done.wait (%p9682_p1), [#allocation5], 28736  }
  0x39   : > { %9587 = vsyncadd (%p9682_p1), [#allocation5], 4294938560 }
  0x3a   : > { %9589 = dma.done.wait (%p9682_p1), [#allocation8], 10240  }
  0x3b   : > { %9591 = vsyncadd (%p9682_p1), [#allocation8], 4294957056  ;;  %v7655_v0 = vld [vmem:[#allocation4 + $0xe0] sm:$0xf]  ;;  %v8901_v1 = vld [vmem:[#allocation4 + $0xec] sm:$0xf0] }
  0x3c   : > { %v7783_v2 = vld [vmem:[#allocation4 + $0x1e0] sm:$0xf]  ;;  %v7656_v3 = vor.u32 %v8901_v1, %v7655_v0  ;;  %v8933_v4 = vld [vmem:[#allocation4 + $0x1ec] sm:$0xf0]  ;;  %v8762_v47 = vld [vmem:[%s9761_s9 + $0x18] sm:$0xf0] }
  0x3d   : > { %v7639_v5 = vld [vmem:[#allocation4 + $0xc0] sm:$0xf]  ;;  %v8897_v6 = vld [vmem:[#allocation4 + $0xcc] sm:$0xf0]  ;;  %v7784_v7 = vor.u32 %v8933_v4, %v7783_v2  ;;  %v8818_v54 = vld [vmem:[%s9761_s9 + $0x1d8] sm:$0xf0] }
  0x3e   : > { %v7767_v8 = vld [vmem:[#allocation4 + $0x1c0] sm:$0xf]  ;;  %v8929_v9 = vld [vmem:[#allocation4 + $0x1cc] sm:$0xf0]  ;;  %2426 = vmatpush.bf16.msra.mxu0 %v7656_v3  ;;  %9175 = vmatpush.bf16.msra.mxu2 %v7656_v3  ;;  %v7640_v10 = vor.u32 %v8897_v6, %v7639_v5  ;;  %v8759_v55 = vld [vmem:[%s9761_s9 + $0x4] sm:$0xf] }
  0x3f   : > { %2515 = vmatpush.bf16.msra.mxu1 %v7784_v7  ;;  %9183 = vmatpush.bf16.msra.mxu3 %v7784_v7  ;;  %v7768_v11 = vor.u32 %v8929_v9, %v7767_v8  ;;  %v7623_v12 = vld [vmem:[#allocation4 + $0xa0] sm:$0xf]  ;;  %v8893_v13 = vld [vmem:[#allocation4 + $0xac] sm:$0xf0]  ;;  %v8815_v58 = vld [vmem:[%s9761_s9 + $0x1c4] sm:$0xf] }
  0x40   : > { %v7751_v14 = vld [vmem:[#allocation4 + $0x1a0] sm:$0xf]  ;;  %v8925_v15 = vld [vmem:[#allocation4 + $0x1ac] sm:$0xf0]  ;;  %v7624_v16 = vor.u32 %v8893_v13, %v7623_v12  ;;  %s13279_s15 = sadd.s32 4294967295, %s9606_s27  }
  0x41   : > { %v7752_v17 = vor.u32 %v8925_v15, %v7751_v14  ;;  %v7607_v18 = vld [vmem:[#allocation4 + $0x80] sm:$0xf]  ;;  %v8889_v19 = vld [vmem:[#allocation4 + $0x8c] sm:$0xf0]  ;;  %v7123_v14 = vld [vmem:[%s9761_s9 + $0x38] sm:$0xf] }
  0x42   : > { %2427 = vmatpush.bf16.msra.mxu0 %v7640_v10  ;;  %9176 = vmatpush.bf16.msra.mxu2 %v7640_v10  ;;  %v7735_v20 = vld [vmem:[#allocation4 + $0x180] sm:$0xf]  ;;  %v8921_v21 = vld [vmem:[#allocation4 + $0x18c] sm:$0xf0]  ;;  %v7608_v22 = vor.u32 %v8889_v19, %v7607_v18  ;;  %v8769_v15 = vld [vmem:[%s9761_s9 + $0x50] sm:$0xf0] }
  0x43   : > { %2516 = vmatpush.bf16.msra.mxu1 %v7768_v11  ;;  %9184 = vmatpush.bf16.msra.mxu3 %v7768_v11  ;;  %v7736_v23 = vor.u32 %v8921_v21, %v7735_v20  ;;  %v7591_v24 = vld [vmem:[#allocation4 + $0x60] sm:$0xf]  ;;  %v8885_v25 = vld [vmem:[#allocation4 + $0x6c] sm:$0xf0]  ;;  %v8766_v18 = vld [vmem:[%s9761_s9 + $0x3c] sm:$0xf] }
  0x44   : > { %v7719_v26 = vld [vmem:[#allocation4 + $0x160] sm:$0xf]  ;;  %v8917_v27 = vld [vmem:[#allocation4 + $0x16c] sm:$0xf0]  ;;  %v7592_v28 = vor.u32 %v8885_v25, %v7591_v24  ;;  %v7125_v19 = vld [vmem:[%s9761_s9 + $0x54] sm:$0xf0] }
  0x45   : > { %v7720_v29 = vor.u32 %v8917_v27, %v7719_v26  ;;  %v7575_v30 = vld [vmem:[#allocation4 + $0x40] sm:$0xf]  ;;  %v8881_v31 = vld [vmem:[#allocation4 + $0x4c] sm:$0xf0]  ;;  %v8822_v20 = vld [vmem:[%s9761_s9 + $0x1fc] sm:$0xf]  ;;  %v9807_v24 = vor.u32 %v8766_v18, %v7125_v19 }
  0x46   : > { %2428 = vmatpush.bf16.msra.mxu0 %v7624_v16  ;;  %9177 = vmatpush.bf16.msra.mxu2 %v7624_v16  ;;  %v7703_v32 = vld [vmem:[#allocation4 + $0x140] sm:$0xf]  ;;  %v8913_v33 = vld [vmem:[#allocation4 + $0x14c] sm:$0xf0]  ;;  %v7576_v34 = vor.u32 %v8881_v31, %v7575_v30  ;;  %v7347_v16 = vld [vmem:[%s9761_s9 + $0x1f8] sm:$0xf] }
  0x47   : > { %2517 = vmatpush.bf16.msra.mxu1 %v7752_v17  ;;  %9185 = vmatpush.bf16.msra.mxu3 %v7752_v17  ;;  %v7704_v35 = vor.u32 %v8913_v33, %v7703_v32  ;;  %v7559_v36 = vld [vmem:[#allocation4 + $0x20] sm:$0xf]  ;;  %v8877_v37 = vld [vmem:[#allocation4 + $0x2c] sm:$0xf0]  ;;  %v8825_v17 = vld [vmem:[%s9761_s9 + $0x210] sm:$0xf0] }
  0x48   : > { %v7687_v38 = vld [vmem:[#allocation4 + $0x120] sm:$0xf]  ;;  %v8909_v39 = vld [vmem:[#allocation4 + $0x12c] sm:$0xf0]  ;;  %v7560_v40 = vor.u32 %v8877_v37, %v7559_v36  ;;  %v7349_v21 = vld [vmem:[%s9761_s9 + $0x214] sm:$0xf0] }
  0x49   : > { %v7543_v41 = vld [vmem:[#allocation4] sm:$0xf]  ;;  %v7688_v42 = vor.u32 %v8909_v39, %v7687_v38  ;;  %v8873_v43 = vld [vmem:[#allocation4 + $0xc] sm:$0xf0]  ;;  %12678 = vst [vmem:[#allocation19_spill] sm:$0xff] %v9807_v24  ;;  %v9809_v25 = vor.u32 %v8822_v20, %v7349_v21  ;;  %s7091_s16 = sshll.u32 %s13279_s15, 5 }
  0x4a   : > { %2429 = vmatpush.bf16.msra.mxu0 %v7608_v22  ;;  %9178 = vmatpush.bf16.msra.mxu2 %v7608_v22  ;;  %v7671_v44 = vld [vmem:[#allocation4 + $0x100] sm:$0xf]  ;;  %v8905_v45 = vld [vmem:[#allocation4 + $0x10c] sm:$0xf0]  ;;  %v7544_v52 = vor.u32 %v8873_v43, %v7543_v41  ;;  %v9803_v22 = vor.u32 %v8769_v15, %v7123_v14  ;;  %v8776_v33 = vld [vmem:[%s9761_s9 + $0x88] sm:$0xf0] }
  0x4b   : > { %2518 = vmatpush.bf16.msra.mxu1 %v7736_v23  ;;  %9186 = vmatpush.bf16.msra.mxu3 %v7736_v23  ;;  %v7095_v46 = vld [vmem:[%s9761_s9] sm:$0xf]  ;;  %v8965_v49 = vld [vmem:[#allocation4 + $0x2ec] sm:$0xf0]  ;;  %v7672_v56 = vor.u32 %v8905_v45, %v7671_v44  ;;  %v9805_v23 = vor.u32 %v8825_v17, %v7347_v16  ;;  %12679 = vst [vmem:[#allocation20_spill] sm:$0xff] %v9809_v25  ;;  %p363_p1 = scmp.lt.s32.totalorder %s7091_s16, 63 }
  0x4c   : > { %v7911_v48 = vld [vmem:[#allocation4 + $0x2e0] sm:$0xf]  ;;  %v8997_v51 = vld [vmem:[#allocation4 + $0x3ec] sm:$0xf0]  ;;  %v9783_v63 = vor.u32 %v8762_v47, %v7095_v46  ;;  %12676 = vst [vmem:[#allocation17_spill] sm:$0xff] %v9803_v22 }
  0x4d   : > { %v8039_v50 = vld [vmem:[#allocation4 + $0x3e0] sm:$0xf]  ;;  %v7912_v60 = vor.u32 %v8965_v49, %v7911_v48  ;;  %v8961_v1 = vld [vmem:[#allocation4 + $0x2cc] sm:$0xf0]  ;;  %12677 = vst [vmem:[#allocation18_spill] sm:$0xff] %v9805_v23  ;;  %s13286_s16 = smov (!%p363_p1, %s7091_s16), 63 }
  0x4e   : > { %2430 = vmatpush.bf16.msra.mxu0 %v7592_v28  ;;  %9179 = vmatpush.bf16.msra.mxu2 %v7592_v28  ;;  %v7319_v53 = vld [vmem:[%s9761_s9 + $0x1c0] sm:$0xf]  ;;  %v8040_v61 = vor.u32 %v8997_v51, %v8039_v50  ;;  %12672 = vst [vmem:[#allocation13_spill] sm:$0xff] %v9783_v63  ;;  %v8993_v3 = vld [vmem:[#allocation4 + $0x3cc] sm:$0xf0]  ;;  %s7092_s27 = sshll.u32 %s13286_s16, 3 }
  0x4f   : > { %2519 = vmatpush.bf16.msra.mxu1 %v7720_v29  ;;  %9187 = vmatpush.bf16.msra.mxu3 %v7720_v29  ;;  %v7097_v57 = vld [vmem:[%s9761_s9 + $0x1c] sm:$0xf0]  ;;  %v9785_v0 = vor.u32 %v8818_v54, %v7319_v53  ;;  %v8957_v9 = vld [vmem:[#allocation4 + $0x2ac] sm:$0xf0]  ;;  %v8773_v36 = vld [vmem:[%s9761_s9 + $0x74] sm:$0xf]  ;;  %s12228_s20 = scalar_lea.vmem %s12375_s7, %s7092_s27 }
  0x50   : > { %v7321_v59 = vld [vmem:[%s9761_s9 + $0x1dc] sm:$0xf0]  ;;  %v9787_v4 = vor.u32 %v8759_v55, %v7097_v57  ;;  %v8989_v11 = vld [vmem:[#allocation4 + $0x3ac] sm:$0xf0]  ;;  %v8829_v38 = vld [vmem:[%s9761_s9 + $0x234] sm:$0xf] }
  0x51   : > { %v7895_v62 = vld [vmem:[#allocation4 + $0x2c0] sm:$0xf]  ;;  %12673 = vst [vmem:[#allocation14_spill] sm:$0xff] %v9785_v0  ;;  %v9789_v5 = vor.u32 %v8815_v58, %v7321_v59  ;;  %v8953_v27 = vld [vmem:[#allocation4 + $0x28c] sm:$0xf0] }
  0x52   : > { %2431 = vmatpush.bf16.msra.mxu0 %v7576_v34  ;;  %9180 = vmatpush.bf16.msra.mxu2 %v7576_v34  ;;  %v8023_v2 = vld [vmem:[#allocation4 + $0x3c0] sm:$0xf]  ;;  %12674 = vst [vmem:[#allocation15_spill] sm:$0xff] %v9787_v4  ;;  %v7896_v6 = vor.u32 %v8961_v1, %v7895_v62  ;;  %v8985_v30 = vld [vmem:[#allocation4 + $0x38c] sm:$0xf0] }
  0x53   : > { %2520 = vmatpush.bf16.msra.mxu1 %v7704_v35  ;;  %9188 = vmatpush.bf16.msra.mxu3 %v7704_v35  ;;  %12675 = vst [vmem:[#allocation16_spill] sm:$0xff] %v9789_v5  ;;  %v8024_v7 = vor.u32 %v8993_v3, %v8023_v2  ;;  %v7879_v8 = vld [vmem:[#allocation4 + $0x2a0] sm:$0xf]  ;;  %v7151_v32 = vld [vmem:[%s9761_s9 + $0x70] sm:$0xf] }
  0x54   : > { %v8007_v10 = vld [vmem:[#allocation4 + $0x3a0] sm:$0xf]  ;;  %v7880_v12 = vor.u32 %v8957_v9, %v7879_v8  ;;  %v7375_v34 = vld [vmem:[%s9761_s9 + $0x230] sm:$0xf]  ;;  %v8832_v35 = vld [vmem:[%s9761_s9 + $0x248] sm:$0xf0] }
  0x55   : > { %v8008_v13 = vor.u32 %v8989_v11, %v8007_v10  ;;  %v7863_v26 = vld [vmem:[#allocation4 + $0x280] sm:$0xf]  ;;  %v7153_v37 = vld [vmem:[%s9761_s9 + $0x8c] sm:$0xf0]  ;;  %v9825_v41 = vor.u32 %v8832_v35, %v7375_v34  ;;  %v7179_v50 = vld [vmem:[%s9761_s9 + $0xa8] sm:$0xf] }
  0x56   : > { %2432 = vmatpush.bf16.msra.mxu0 %v7560_v40  ;;  %9181 = vmatpush.bf16.msra.mxu2 %v7560_v40  ;;  %v7991_v28 = vld [vmem:[#allocation4 + $0x380] sm:$0xf]  ;;  %v7864_v29 = vor.u32 %v8953_v27, %v7863_v26  ;;  %v7377_v39 = vld [vmem:[%s9761_s9 + $0x24c] sm:$0xf0]  ;;  %v9823_v40 = vor.u32 %v8776_v33, %v7151_v32  ;;  %v8783_v51 = vld [vmem:[%s9761_s9 + $0xc0] sm:$0xf0] }
  0x57   : > { %2521 = vmatpush.bf16.msra.mxu1 %v7688_v42  ;;  %9189 = vmatpush.bf16.msra.mxu3 %v7688_v42  ;;  %v7992_v31 = vor.u32 %v8985_v30, %v7991_v28  ;;  %12681 = vst [vmem:[#allocation22_spill] sm:$0xff] %v9825_v41  ;;  %v9827_v42 = vor.u32 %v8773_v36, %v7153_v37  ;;  %v7847_v44 = vld [vmem:[#allocation4 + $0x260] sm:$0xf]  ;;  %v8949_v45 = vld [vmem:[#allocation4 + $0x26c] sm:$0xf0] }
  0x58   : > { %12680 = vst [vmem:[#allocation21_spill] sm:$0xff] %v9823_v40  ;;  %v9829_v43 = vor.u32 %v8829_v38, %v7377_v39  ;;  %v7975_v46 = vld [vmem:[#allocation4 + $0x360] sm:$0xf]  ;;  %v7848_v47 = vor.u32 %v8949_v45, %v7847_v44  ;;  %v8981_v48 = vld [vmem:[#allocation4 + $0x36c] sm:$0xf0]  ;;  %v9843_v58 = vor.u32 %v8783_v51, %v7179_v50 }
  0x59   : > { %12682 = vst [vmem:[#allocation23_spill] sm:$0xff] %v9827_v42  ;;  %v7976_v49 = vor.u32 %v8981_v48, %v7975_v46  ;;  %v8839_v53 = vld [vmem:[%s9761_s9 + $0x280] sm:$0xf0]  ;;  %v8780_v54 = vld [vmem:[%s9761_s9 + $0xac] sm:$0xf] }
  0x5a   : > { %2433 = vmatpush.bf16.msra.mxu0 %v7544_v52  ;;  %9182 = vmatpush.bf16.msra.mxu2 %v7544_v52  ;;  %12683 = vst [vmem:[#allocation24_spill] sm:$0xff] %v9829_v43  ;;  %v7403_v52 = vld [vmem:[%s9761_s9 + $0x268] sm:$0xf]  ;;  %v7831_v62 = vld [vmem:[#allocation4 + $0x240] sm:$0xf] }
  0x5b   : > { %2522 = vmatpush.bf16.msra.mxu1 %v7672_v56  ;;  %9190 = vmatpush.bf16.msra.mxu3 %v7672_v56  ;;  %v7181_v55 = vld [vmem:[%s9761_s9 + $0xc4] sm:$0xf0]  ;;  %v8836_v56 = vld [vmem:[%s9761_s9 + $0x26c] sm:$0xf]  ;;  %12684 = vst [vmem:[#allocation25_spill] sm:$0xff] %v9843_v58  ;;  %v9845_v59 = vor.u32 %v8839_v53, %v7403_v52 }
  0x5c   : > { %v7405_v57 = vld [vmem:[%s9761_s9 + $0x284] sm:$0xf0]  ;;  %v8945_v1 = vld [vmem:[#allocation4 + $0x24c] sm:$0xf0]  ;;  %v7959_v2 = vld [vmem:[#allocation4 + $0x340] sm:$0xf] }
  0x5d   : > { %2434 = vmatmul.bf16.vlgmr.msra.gmra.mxu0 %v9783_v63  ;;  %2474 = vmatmul.bf16.vlgmr.msra.gmra.mxu2 %v9785_v0  ;;  %12685 = vst [vmem:[#allocation26_spill] sm:$0xff] %v9845_v59  ;;  %v7832_v3 = vor.u32 %v8945_v1, %v7831_v62  ;;  %v7207_v8 = vld [vmem:[%s9761_s9 + $0xe0] sm:$0xf]  ;;  %v8790_v9 = vld [vmem:[%s9761_s9 + $0xf8] sm:$0xf0] }
  0x5e   : > { %2604 = vmatpush.bf16.msrb.mxu2 %v7912_v60  ;;  %2523 = vmatmul.bf16.vlgmr.msra.gmra.mxu1 %v9787_v4  ;;  %v9847_v60 = vor.u32 %v8780_v54, %v7181_v55  ;;  %v7431_v10 = vld [vmem:[%s9761_s9 + $0x2a0] sm:$0xf]  ;;  %v8846_v11 = vld [vmem:[%s9761_s9 + $0x2b8] sm:$0xf0]  ;;  %v8843_v14 = vld [vmem:[%s9761_s9 + $0x2a4] sm:$0xf]  ;;  %v9863_v16 = vor.u32 %v8790_v9, %v7207_v8 }
  0x5f   : > { %2693 = vmatpush.bf16.msrb.mxu3 %v8040_v61  ;;  %v9849_v61 = vor.u32 %v8836_v56, %v7405_v57  ;;  %v7433_v15 = vld [vmem:[%s9761_s9 + $0x2bc] sm:$0xf0]  ;;  %v9865_v17 = vor.u32 %v8846_v11, %v7431_v10  ;;  %v9029_v21 = vld [vmem:[#allocation4 + $0x4ec] sm:$0xf0]  ;;  %v7235_v50 = vld [vmem:[%s9761_s9 + $0x118] sm:$0xf] }
  0x60   : > { %2563 = vmatmul.bf16.vlgmr.msra.gmra.mxu3 %v9789_v5  ;;  %12686 = vst [vmem:[#allocation27_spill] sm:$0xff] %v9847_v60  ;;  %v9869_v19 = vor.u32 %v8843_v14, %v7433_v15  ;;  %v8167_v20 = vld [vmem:[#allocation4 + $0x4e0] sm:$0xf]  ;;  %v8941_v28 = vld [vmem:[#allocation4 + $0x22c] sm:$0xf0] }
  0x61   : > { %12687 = vst [vmem:[#allocation28_spill] sm:$0xff] %v9849_v61  ;;  %v8295_v26 = vld [vmem:[#allocation4 + $0x5e0] sm:$0xf]  ;;  %v9061_v30 = vld [vmem:[#allocation4 + $0x5ec] sm:$0xf0] }
  0x62   : > { %2605 = vmatpush.bf16.msrb.mxu2 %v7896_v6  ;;  %v8977_v6 = vld [vmem:[#allocation4 + $0x34c] sm:$0xf0]  ;;  %12688 = vst [vmem:[#allocation29_spill] sm:$0xff] %v9863_v16  ;;  %v7815_v27 = vld [vmem:[#allocation4 + $0x220] sm:$0xf]  ;;  %v8296_v32 = vor.u32 %v9061_v30, %v8295_v26 }
  0x63   : > { %2694 = vmatpush.bf16.msrb.mxu3 %v8024_v7  ;;  %v7960_v7 = vor.u32 %v8977_v6, %v7959_v2  ;;  %12689 = vst [vmem:[#allocation30_spill] sm:$0xff] %v9865_v17  ;;  %v7943_v33 = vld [vmem:[#allocation4 + $0x320] sm:$0xf]  ;;  %v8973_v34 = vld [vmem:[#allocation4 + $0x32c] sm:$0xf0] }
  0x64   : > { %12691 = vst [vmem:[#allocation32_spill] sm:$0xff] %v9869_v19  ;;  %v8151_v35 = vld [vmem:[#allocation4 + $0x4c0] sm:$0xf]  ;;  %v7944_v36 = vor.u32 %v8973_v34, %v7943_v33  ;;  %v9025_v37 = vld [vmem:[#allocation4 + $0x4cc] sm:$0xf0]  ;;  %2871 = vmatpush.bf16.msrb.mxu1 %v8296_v32 }
  0x65   : > { %v8279_v38 = vld [vmem:[#allocation4 + $0x5c0] sm:$0xf]  ;;  %v9057_v39 = vld [vmem:[#allocation4 + $0x5cc] sm:$0xf0]  ;;  %v8152_v44 = vor.u32 %v9025_v37, %v8151_v35  ;;  %v8797_v52 = vld [vmem:[%s9761_s9 + $0x130] sm:$0xf0] }
  0x66   : > { %2606 = vmatpush.bf16.msrb.mxu2 %v7880_v12  ;;  %v8787_v12 = vld [vmem:[%s9761_s9 + $0xe4] sm:$0xf]  ;;  %v8280_v45 = vor.u32 %v9057_v39, %v8279_v38  ;;  %v8135_v46 = vld [vmem:[#allocation4 + $0x4a0] sm:$0xf]  ;;  %v9017_v55 = vld [vmem:[#allocation4 + $0x48c] sm:$0xf0]  ;;  %v9883_v9 = vor.u32 %v8797_v52, %v7235_v50 }
  0x67   : > { %2695 = vmatpush.bf16.msrb.mxu3 %v8008_v13  ;;  %v7209_v13 = vld [vmem:[%s9761_s9 + $0xfc] sm:$0xf0]  ;;  %v7459_v56 = vld [vmem:[%s9761_s9 + $0x2d8] sm:$0xf]  ;;  %v8853_v57 = vld [vmem:[%s9761_s9 + $0x2f0] sm:$0xf0] }
  0x68   : > { %v9867_v18 = vor.u32 %v8787_v12, %v7209_v13  ;;  %v8263_v48 = vld [vmem:[#allocation4 + $0x5a0] sm:$0xf]  ;;  %2872 = vmatpush.bf16.msrb.mxu1 %v8280_v45  ;;  %v8794_v62 = vld [vmem:[%s9761_s9 + $0x11c] sm:$0xf]  ;;  %v7237_v1 = vld [vmem:[%s9761_s9 + $0x134] sm:$0xf0]  ;;  %v9885_v10 = vor.u32 %v8853_v57, %v7459_v56 }
  0x69   : > { %v8119_v54 = vld [vmem:[#allocation4 + $0x480] sm:$0xf]  ;;  %v8850_v2 = vld [vmem:[%s9761_s9 + $0x2dc] sm:$0xf]  ;;  %v9049_v8 = vld [vmem:[#allocation4 + $0x58c] sm:$0xf0]  ;;  %v9887_v11 = vor.u32 %v8794_v62, %v7237_v1 }
  0x6a   : > { %2607 = vmatpush.bf16.msrb.mxu2 %v7864_v29  ;;  %12690 = vst [vmem:[#allocation31_spill] sm:$0xff] %v9867_v18  ;;  %v8168_v29 = vor.u32 %v9029_v21, %v8167_v20  ;;  %v8120_v6 = vor.u32 %v9017_v55, %v8119_v54  ;;  %v8103_v14 = vld [vmem:[#allocation4 + $0x460] sm:$0xf]  ;;  %v9013_v15 = vld [vmem:[#allocation4 + $0x46c] sm:$0xf0] }
  0x6b   : > { %2696 = vmatpush.bf16.msrb.mxu3 %v7992_v31  ;;  %v7816_v31 = vor.u32 %v8941_v28, %v7815_v27  ;;  %12692 = vst [vmem:[#allocation33_spill] sm:$0xff] %v9883_v9  ;;  %v8231_v20 = vld [vmem:[#allocation4 + $0x560] sm:$0xf]  ;;  %v8937_v26 = vld [vmem:[#allocation4 + $0x20c] sm:$0xf0]  ;;  %v8104_v27 = vor.u32 %v9013_v15, %v8103_v14 }
  0x6c   : > { %2782 = vmatpush.bf16.msrb.mxu0 %v8168_v29  ;;  %12693 = vst [vmem:[#allocation34_spill] sm:$0xff] %v9885_v10  ;;  %v7799_v21 = vld [vmem:[#allocation4 + $0x200] sm:$0xf]  ;;  %v9045_v28 = vld [vmem:[#allocation4 + $0x56c] sm:$0xf0] }
  0x6d   : > { %2439 = vmatmul.bf16.gmra.mxu0 %v9803_v22  ;;  %2479 = vmatmul.bf16.gmra.mxu2 %v9805_v23  ;;  %12694 = vst [vmem:[#allocation35_spill] sm:$0xff] %v9887_v11  ;;  %v7800_v29 = vor.u32 %v8937_v26, %v7799_v21  ;;  %v8232_v30 = vor.u32 %v9045_v28, %v8231_v20  ;;  %v8969_v32 = vld [vmem:[#allocation4 + $0x30c] sm:$0xf0]  ;;  %v8087_v33 = vld [vmem:[#allocation4 + $0x440] sm:$0xf] }
  0x6e   : > { %2528 = vmatmul.bf16.gmra.mxu1 %v9807_v24  ;;  %2608 = vmatpush.bf16.msrb.mxu2 %v7848_v47  ;;  %v9021_v47 = vld [vmem:[#allocation4 + $0x4ac] sm:$0xf0]  ;;  %v8071_v39 = vld [vmem:[#allocation4 + $0x420] sm:$0xf]  ;;  %v8804_v50 = vld [vmem:[%s9761_s9 + $0x168] sm:$0xf0] }
  0x6f   : > { %2697 = vmatpush.bf16.msrb.mxu3 %v7976_v49  ;;  %v9053_v49 = vld [vmem:[#allocation4 + $0x5ac] sm:$0xf0]  ;;  %v8136_v51 = vor.u32 %v9021_v47, %v8135_v46  ;;  %v8199_v47 = vld [vmem:[#allocation4 + $0x520] sm:$0xf]  ;;  %v8860_v52 = vld [vmem:[%s9761_s9 + $0x328] sm:$0xf0] }
  0x70   : > { %2568 = vmatmul.bf16.gmra.mxu3 %v9809_v25  ;;  %2783 = vmatpush.bf16.msrb.mxu0 %v8152_v44  ;;  %v8264_v53 = vor.u32 %v9053_v49, %v8263_v48  ;;  %v9009_v35 = vld [vmem:[#allocation4 + $0x44c] sm:$0xf0]  ;;  %v8857_v55 = vld [vmem:[%s9761_s9 + $0x314] sm:$0xf]  ;;  %v8055_v62 = vld [vmem:[#allocation4 + $0x400] sm:$0xf] }
  0x71   : > { %v9041_v37 = vld [vmem:[#allocation4 + $0x54c] sm:$0xf0]  ;;  %v8088_v38 = vor.u32 %v9009_v35, %v8087_v33  ;;  %v8423_v20 = vld [vmem:[#allocation4 + $0x6e0] sm:$0xf]  ;;  %v8899_v26 = vld [vmem:[#allocation4 + $0xe4] sm:$0xf] }
  0x72   : > { %2609 = vmatpush.bf16.msrb.mxu2 %v7832_v3  ;;  %v7461_v3 = vld [vmem:[%s9761_s9 + $0x2f4] sm:$0xf0]  ;;  %2873 = vmatpush.bf16.msrb.mxu1 %v8264_v53  ;;  %v9005_v44 = vld [vmem:[#allocation4 + $0x42c] sm:$0xf0]  ;;  %v8801_v53 = vld [vmem:[%s9761_s9 + $0x154] sm:$0xf] }
  0x73   : > { %2698 = vmatpush.bf16.msrb.mxu3 %v7960_v7  ;;  %v8247_v7 = vld [vmem:[#allocation4 + $0x580] sm:$0xf]  ;;  %v9889_v12 = vor.u32 %v8850_v2, %v7461_v3  ;;  %v8072_v46 = vor.u32 %v9005_v44, %v8071_v39  ;;  %v9037_v48 = vld [vmem:[#allocation4 + $0x52c] sm:$0xf0]  ;;  %v7657_v28 = vld [vmem:[#allocation4 + $0xf0] sm:$0xf0] }
  0x74   : > { %2784 = vmatpush.bf16.msrb.mxu0 %v8136_v51  ;;  %v8248_v13 = vor.u32 %v9049_v8, %v8247_v7  ;;  %v7263_v49 = vld [vmem:[%s9761_s9 + $0x150] sm:$0xf]  ;;  %v8200_v57 = vor.u32 %v9037_v48, %v8199_v47  ;;  %v8183_v2 = vld [vmem:[#allocation4 + $0x500] sm:$0xf]  ;;  %v8867_v33 = vld [vmem:[%s9761_s9 + $0x360] sm:$0xf0] }
  0x75   : > { %12695 = vst [vmem:[#allocation36_spill] sm:$0xff] %v9889_v12  ;;  %v7487_v51 = vld [vmem:[%s9761_s9 + $0x310] sm:$0xf]  ;;  %v9903_v3 = vor.u32 %v8804_v50, %v7263_v49  ;;  %v7293_v35 = vld [vmem:[%s9761_s9 + $0x1a4] sm:$0xf0] }
  0x76   : > { %2610 = vmatpush.bf16.msrb.mxu2 %v7816_v31  ;;  %2874 = vmatpush.bf16.msrb.mxu1 %v8248_v13  ;;  %v7927_v31 = vld [vmem:[#allocation4 + $0x300] sm:$0xf]  ;;  %v7265_v54 = vld [vmem:[%s9761_s9 + $0x16c] sm:$0xf0]  ;;  %v7103_v47 = vld [vmem:[%s9761_s9 + $0x8] sm:$0xf] }
  0x77   : > { %2699 = vmatpush.bf16.msrb.mxu3 %v7944_v36  ;;  %v7928_v34 = vor.u32 %v8969_v32, %v7927_v31  ;;  %v8215_v36 = vld [vmem:[#allocation4 + $0x540] sm:$0xf]  ;;  %v7489_v56 = vld [vmem:[%s9761_s9 + $0x32c] sm:$0xf0]  ;;  %12696 = vst [vmem:[#allocation37_spill] sm:$0xff] %v9903_v3  ;;  %v9907_v13 = vor.u32 %v8801_v53, %v7265_v54 }
  0x78   : > { %2785 = vmatpush.bf16.msrb.mxu0 %v8120_v6  ;;  %v8216_v45 = vor.u32 %v9041_v37, %v8215_v36  ;;  %v9001_v1 = vld [vmem:[#allocation4 + $0x40c] sm:$0xf0]  ;;  %v9905_v6 = vor.u32 %v8860_v52, %v7487_v51  ;;  %v9909_v14 = vor.u32 %v8857_v55, %v7489_v56  ;;  %v8811_v31 = vld [vmem:[%s9761_s9 + $0x1a0] sm:$0xf0]  ;;  %v7515_v32 = vld [vmem:[%s9761_s9 + $0x348] sm:$0xf] }
  0x79   : > { %v8056_v7 = vor.u32 %v9001_v1, %v8055_v62  ;;  %v9033_v8 = vld [vmem:[#allocation4 + $0x50c] sm:$0xf0]  ;;  %12698 = vst [vmem:[#allocation39_spill] sm:$0xff] %v9907_v13  ;;  %v8864_v36 = vld [vmem:[%s9761_s9 + $0x34c] sm:$0xf]  ;;  %v9925_v39 = vor.u32 %v8867_v33, %v7515_v32 }
  0x7a   : > { %2611 = vmatpush.bf16.msrb.mxu2 %v7800_v29  ;;  %2875 = vmatpush.bf16.msrb.mxu1 %v8232_v30  ;;  %12697 = vst [vmem:[#allocation38_spill] sm:$0xff] %v9905_v6  ;;  %v8184_v15 = vor.u32 %v9033_v8, %v8183_v2  ;;  %v9093_v21 = vld [vmem:[#allocation4 + $0x6ec] sm:$0xf0]  ;;  %v7660_v29 = vor.u32 %v8899_v26, %v7657_v28  ;;  %v7291_v30 = vld [vmem:[%s9761_s9 + $0x188] sm:$0xf] }
  0x7b   : > { %2700 = vmatpush.bf16.msrb.mxu3 %v7928_v34  ;;  %12699 = vst [vmem:[#allocation40_spill] sm:$0xff] %v9909_v14  ;;  %v8808_v34 = vld [vmem:[%s9761_s9 + $0x18c] sm:$0xf]  ;;  %v7517_v37 = vld [vmem:[%s9761_s9 + $0x364] sm:$0xf0] }
  0x7c   : > { %2786 = vmatpush.bf16.msrb.mxu0 %v8104_v27  ;;  %v8424_v27 = vor.u32 %v9093_v21, %v8423_v20  ;;  %12701 = vst [vmem:[#allocation42_spill] sm:$0xff] %v9925_v39  ;;  %v9927_v44 = vor.u32 %v8808_v34, %v7293_v35  ;;  %v8763_v48 = vld [vmem:[%s9761_s9 + $0x20] sm:$0xf0]  ;;  %v8760_v49 = vld [vmem:[%s9761_s9 + $0xc] sm:$0xf] }
  0x7d   : > { %2444 = vmatmul.bf16.gmra.mxu0 %v9823_v40  ;;  %2484 = vmatmul.bf16.gmra.mxu2 %v9825_v41  ;;  %v7111_v50 = vld [vmem:[%s9761_s9 + $0x10] sm:$0xf]  ;;  %v8764_v51 = vld [vmem:[%s9761_s9 + $0x28] sm:$0xf0]  ;;  %v7105_v52 = vld [vmem:[%s9761_s9 + $0x24] sm:$0xf0]  ;;  %v9945_v56 = vor.u32 %v8763_v48, %v7103_v47 }
  0x7e   : > { %2533 = vmatmul.bf16.gmra.mxu1 %v9827_v42  ;;  %2960 = vmatpush.bf16.msra.mxu2 %v8424_v27  ;;  %12702 = vst [vmem:[#allocation43_spill] sm:$0xff] %v9927_v44  ;;  %v8761_v53 = vld [vmem:[%s9761_s9 + $0x14] sm:$0xf]  ;;  %v7113_v54 = vld [vmem:[%s9761_s9 + $0x2c] sm:$0xf0]  ;;  %v9949_v1 = vor.u32 %v8760_v49, %v7105_v52 }
  0x7f   : > { %2876 = vmatpush.bf16.msrb.mxu1 %v8216_v45  ;;  %3049 = vmatpush.bf16.msra.mxu3 %v7660_v29  ;;  %v9929_v45 = vor.u32 %v8864_v36, %v7517_v37  ;;  %12704 = vst [vmem:[#allocation45_spill] sm:$0xff] %v9945_v56  ;;  %v9951_v2 = vor.u32 %v8761_v53, %v7113_v54  ;;  %v8407_v20 = vld [vmem:[#allocation4 + $0x6c0] sm:$0xf]  ;;  %v9089_v21 = vld [vmem:[#allocation4 + $0x6cc] sm:$0xf0] }
  0x80   : > { %2573 = vmatmul.bf16.gmra.mxu3 %v9829_v43  ;;  %2787 = vmatpush.bf16.msrb.mxu0 %v8088_v38  ;;  %v9923_v38 = vor.u32 %v8811_v31, %v7291_v30  ;;  %12706 = vst [vmem:[#allocation47_spill] sm:$0xff] %v9949_v1  ;;  %v8895_v26 = vld [vmem:[#allocation4 + $0xc4] sm:$0xf]  ;;  %v8408_v27 = vor.u32 %v9089_v21, %v8407_v20  ;;  %v7641_v28 = vld [vmem:[#allocation4 + $0xd0] sm:$0xf0] }
  0x81   : > { %12703 = vst [vmem:[#allocation44_spill] sm:$0xff] %v9929_v45  ;;  %v7644_v30 = vor.u32 %v8895_v26, %v7641_v28  ;;  %v8770_v47 = vld [vmem:[%s9761_s9 + $0x58] sm:$0xf0]  ;;  %v8767_v48 = vld [vmem:[%s9761_s9 + $0x44] sm:$0xf] }
  0x82   : > { %12700 = vst [vmem:[#allocation41_spill] sm:$0xff] %v9923_v38  ;;  %2961 = vmatpush.bf16.msra.mxu2 %v8408_v27  ;;  %v7139_v49 = vld [vmem:[%s9761_s9 + $0x48] sm:$0xf]  ;;  %v8768_v52 = vld [vmem:[%s9761_s9 + $0x4c] sm:$0xf] }
  0x83   : > { %2877 = vmatpush.bf16.msrb.mxu1 %v8200_v57  ;;  %v9947_v57 = vor.u32 %v8764_v51, %v7111_v50  ;;  %12707 = vst [vmem:[#allocation48_spill] sm:$0xff] %v9951_v2  ;;  %3050 = vmatpush.bf16.msra.mxu3 %v7644_v30  ;;  %v8771_v50 = vld [vmem:[%s9761_s9 + $0x60] sm:$0xf0]  ;;  %v7133_v51 = vld [vmem:[%s9761_s9 + $0x5c] sm:$0xf0] }
  0x84   : > { %2788 = vmatpush.bf16.msrb.mxu0 %v8072_v46  ;;  %v720_v46 = vld [vmem:[#allocation6] sm:$0xf]  ;;  %v7141_v53 = vld [vmem:[%s9761_s9 + $0x64] sm:$0xf0]  ;;  %v9977_v20 = vor.u32 %v8771_v50, %v7139_v49  ;;  %v9979_v26 = vor.u32 %v8767_v48, %v7133_v51  ;;  %v7159_v50 = vld [vmem:[%s9761_s9 + $0x78] sm:$0xf] }
  0x85   : > { %v9943_v55 = vperm.slane %v720_v46, 0  ;;  %12705 = vst [vmem:[#allocation46_spill] sm:$0xff] %v9947_v57  ;;  %v7131_v46 = vld [vmem:[%s9761_s9 + $0x40] sm:$0xf]  ;;  %v9981_v27 = vor.u32 %v8768_v52, %v7141_v53  ;;  %v8777_v51 = vld [vmem:[%s9761_s9 + $0x90] sm:$0xf0] }
  0x86   : > { %12709 = vst [vmem:[#allocation50_spill] sm:$0xff] %v9977_v20  ;;  %v8774_v52 = vld [vmem:[%s9761_s9 + $0x7c] sm:$0xf]  ;;  %v7167_v53 = vld [vmem:[%s9761_s9 + $0x80] sm:$0xf] }
  0x87   : > { %2878 = vmatpush.bf16.msrb.mxu1 %v8184_v15  ;;  %12710 = vst [vmem:[#allocation51_spill] sm:$0xff] %v9979_v26 }
  0x88   : > { %2789 = vmatpush.bf16.msrb.mxu0 %v8056_v7  ;;  %12711 = vst [vmem:[#allocation52_spill] sm:$0xff] %v9981_v27 }
  0x8d   : > { %2449 = vmatmul.bf16.gmra.mxu0 %v9843_v58  ;;  %2489 = vmatmul.bf16.gmra.mxu2 %v9845_v59 }
  0x8e   : > { %2538 = vmatmul.bf16.gmra.mxu1 %v9847_v60 }
  0x90   : > { %2578 = vmatmul.bf16.gmra.mxu3 %v9849_v61 }
  0x9d   : > { %2454 = vmatmul.bf16.gmra.mxu0 %v9863_v16  ;;  %2494 = vmatmul.bf16.gmra.mxu2 %v9865_v17 }
  0x9e   : > { %2543 = vmatmul.bf16.gmra.mxu1 %v9867_v18 }
  0xa0   : > { %2583 = vmatmul.bf16.gmra.mxu3 %v9869_v19 }
  0xad   : > { %2459 = vmatmul.bf16.gmra.mxu0 %v9883_v9  ;;  %2499 = vmatmul.bf16.gmra.mxu2 %v9885_v10 }
  0xae   : > { %2548 = vmatmul.bf16.gmra.mxu1 %v9887_v11 }
  0xb0   : > { %2588 = vmatmul.bf16.gmra.mxu3 %v9889_v12 }
  0xbd   : > { %2464 = vmatmul.bf16.gmra.mxu0 %v9903_v3  ;;  %2504 = vmatmul.bf16.gmra.mxu2 %v9905_v6 }
  0xbe   : > { %2553 = vmatmul.bf16.gmra.mxu1 %v9907_v13 }
  0xc0   : > { %2593 = vmatmul.bf16.gmra.mxu3 %v9909_v14 }
  0xcd   : > { %2469 = vmatmul.bf16.gmra.mxu0 %v9923_v38  ;;  %2509 = vmatmul.bf16.gmra.mxu2 %v9925_v39 }
  0xce   : > { %2558 = vmatmul.bf16.gmra.mxu1 %v9927_v44 }
  0xd0   : > { %2598 = vmatmul.bf16.gmra.mxu3 %v9929_v45 }
  0xda   : > { %v2435_v62 = vpop.f32.mrf.mxu0 }
  0xdb   : > { %v2436_v7 = vadd.f32 %v2435_v62, %v9943_v55  ;;  %v2524_v8 = vpop.f32.mrf.mxu1 }
  0xdd   : > { %v9954_v15 = vadd.f32 %v2524_v8, %v2436_v7  ;;  %2612 = vmatmul.bf16.vlgmr.msrb.gmra.mxu2 %v9945_v56  ;;  %2790 = vmatmul.bf16.vlgmr.msrb.gmra.mxu0 %v9947_v57  ;;  %v9975_v8 = vor.u32 %v8770_v47, %v7131_v46 }
  0xde   : > { %2879 = vmatmul.bf16.vlgmr.msrb.gmra.mxu1 %v9951_v2 }
  0xdf   : > { %12708 = vst [vmem:[#allocation49_spill] sm:$0xff] %v9975_v8 }
  0xe0   : > { %2701 = vmatmul.bf16.vlgmr.msrb.gmra.mxu3 %v9949_v1  ;;  %v2475_v29 = vpop.f32.mrf.mxu2 }
  0xe1   : > { %v2476_v31 = vadd.f32 %v2475_v29, %v9943_v55 }
  0xe2   : > { %v2437_v33 = vpop.f32.mrf.mxu0 }
  0xe3   : > { %v2564_v32 = vpop.f32.mrf.mxu3  ;;  %v2438_v35 = vadd.f32 %v2437_v33, %v9943_v55  ;;  %v2526_v36 = vpop.f32.mrf.mxu1 }
  0xe4   : > { %v9961_v34 = vadd.f32 %v2564_v32, %v2476_v31 }
  0xe5   : > { %v9964_v37 = vadd.f32 %v2526_v36, %v2438_v35 }
  0xe8   : > { %v2477_v54 = vpop.f32.mrf.mxu2 }
  0xe9   : > { %v2478_v62 = vadd.f32 %v2477_v54, %v9943_v55  ;;  %v8778_v54 = vld [vmem:[%s9761_s9 + $0x98] sm:$0xf0] }
  0xea   : > { %v2440_v21 = vpop.f32.mrf.mxu0 }
  0xeb   : > { %v2566_v7 = vpop.f32.mrf.mxu3  ;;  %v2441_v29 = vadd.f32 %v2440_v21, %v9943_v55  ;;  %v2529_v30 = vpop.f32.mrf.mxu1  ;;  %v7169_v21 = vld [vmem:[%s9761_s9 + $0x9c] sm:$0xf0] }
  0xec   : > { %v9983_v28 = vadd.f32 %v2566_v7, %v2478_v62  ;;  %v7161_v62 = vld [vmem:[%s9761_s9 + $0x94] sm:$0xf0]  ;;  %v8775_v7 = vld [vmem:[%s9761_s9 + $0x84] sm:$0xf] }
  0xed   : > { %v9986_v31 = vadd.f32 %v2529_v30, %v2441_v29  ;;  %2617 = vmatmul.bf16.gmra.mxu2 %v9975_v8  ;;  %2795 = vmatmul.bf16.gmra.mxu0 %v9977_v20  ;;  %v10007_v20 = vor.u32 %v8777_v51, %v7159_v50  ;;  %v8391_v50 = vld [vmem:[#allocation4 + $0x6a0] sm:$0xf]  ;;  %v9085_v51 = vld [vmem:[#allocation4 + $0x6ac] sm:$0xf0] }
  0xee   : > { %2884 = vmatmul.bf16.gmra.mxu1 %v9981_v27 }
  0xef   : > { %12712 = vst [vmem:[#allocation53_spill] sm:$0xff] %v10007_v20 }
  0xf0   : > { %2706 = vmatmul.bf16.gmra.mxu3 %v9979_v26  ;;  %v2480_v32 = vpop.f32.mrf.mxu2 }
  0xf1   : > { %v2481_v33 = vadd.f32 %v2480_v32, %v9943_v55 }
  0xf2   : > { %v2442_v36 = vpop.f32.mrf.mxu0 }
  0xf3   : > { %v2569_v35 = vpop.f32.mrf.mxu3  ;;  %v2443_v47 = vadd.f32 %v2442_v36, %v9943_v55  ;;  %v2531_v48 = vpop.f32.mrf.mxu1  ;;  %v10011_v36 = vor.u32 %v8774_v52, %v7161_v62  ;;  %v8891_v52 = vld [vmem:[#allocation4 + $0xa4] sm:$0xf] }
  0xf4   : > { %v9993_v46 = vadd.f32 %v2569_v35, %v2481_v33  ;;  %v10009_v33 = vor.u32 %v8778_v54, %v7167_v53  ;;  %v8392_v53 = vor.u32 %v9085_v51, %v8391_v50  ;;  %v7625_v54 = vld [vmem:[#allocation4 + $0xb0] sm:$0xf0]  ;;  %v7187_v50 = vld [vmem:[%s9761_s9 + $0xb0] sm:$0xf]  ;;  %v8784_v51 = vld [vmem:[%s9761_s9 + $0xc8] sm:$0xf0] }
  0xf5   : > { %v9996_v49 = vadd.f32 %v2531_v48, %v2443_v47  ;;  %12714 = vst [vmem:[#allocation55_spill] sm:$0xff] %v10011_v36  ;;  %v10013_v47 = vor.u32 %v8775_v7, %v7169_v21 }
  0xf6   : > { %12713 = vst [vmem:[#allocation54_spill] sm:$0xff] %v10009_v33  ;;  %2962 = vmatpush.bf16.msra.mxu2 %v8392_v53 }
  0xf7   : > { %12715 = vst [vmem:[#allocation56_spill] sm:$0xff] %v10013_v47 }
  0xf8   : > { %v2482_v29 = vpop.f32.mrf.mxu2 }
  0xf9   : > { %v2483_v30 = vadd.f32 %v2482_v29, %v9943_v55 }
  0xfa   : > { %v2445_v35 = vpop.f32.mrf.mxu0 }
  0xfb   : > { %v2571_v32 = vpop.f32.mrf.mxu3  ;;  %v2446_v27 = vadd.f32 %v2445_v35, %v9943_v55  ;;  %v2534_v26 = vpop.f32.mrf.mxu1 }
  0xfc   : > { %v10015_v48 = vadd.f32 %v2571_v32, %v2483_v30 }
  0xfd   : > { %v10018_v57 = vadd.f32 %v2534_v26, %v2446_v27  ;;  %2622 = vmatmul.bf16.gmra.mxu2 %v10007_v20  ;;  %2800 = vmatmul.bf16.gmra.mxu0 %v10009_v33  ;;  %v7628_v27 = vor.u32 %v8891_v52, %v7625_v54  ;;  %v8781_v33 = vld [vmem:[%s9761_s9 + $0xb4] sm:$0xf]  ;;  %v7189_v54 = vld [vmem:[%s9761_s9 + $0xcc] sm:$0xf0] }
  0xfe   : > { %2889 = vmatmul.bf16.gmra.mxu1 %v10013_v47  ;;  %v7195_v47 = vld [vmem:[%s9761_s9 + $0xb8] sm:$0xf]  ;;  %v8785_v52 = vld [vmem:[%s9761_s9 + $0xd0] sm:$0xf0] }
  0xff   : > { %3051 = vmatpush.bf16.msra.mxu3 %v7628_v27  ;;  %v10039_v27 = vor.u32 %v8784_v51, %v7187_v50  ;;  %v7215_v51 = vld [vmem:[%s9761_s9 + $0xe8] sm:$0xf] }
 0x100   : > { %2711 = vmatmul.bf16.gmra.mxu3 %v10011_v36  ;;  %v2485_v26 = vpop.f32.mrf.mxu2  ;;  %v8782_v36 = vld [vmem:[%s9761_s9 + $0xbc] sm:$0xf] }
 0x101   : > { %v2486_v62 = vadd.f32 %v2485_v26, %v9943_v55  ;;  %v7197_v26 = vld [vmem:[%s9761_s9 + $0xd4] sm:$0xf0]  ;;  %12716 = vst [vmem:[#allocation57_spill] sm:$0xff] %v10039_v27 }
 0x102   : > { %v2447_v21 = vpop.f32.mrf.mxu0 }
 0x103   : > { %v2574_v7 = vpop.f32.mrf.mxu3  ;;  %v2448_v30 = vadd.f32 %v2447_v21, %v9943_v55  ;;  %v2536_v32 = vpop.f32.mrf.mxu1  ;;  %v10043_v21 = vor.u32 %v8781_v33, %v7189_v54  ;;  %v8788_v54 = vld [vmem:[%s9761_s9 + $0xec] sm:$0xf] }
 0x104   : > { %v10025_v29 = vadd.f32 %v2574_v7, %v2486_v62  ;;  %v10041_v62 = vor.u32 %v8785_v52, %v7195_v47  ;;  %v8791_v52 = vld [vmem:[%s9761_s9 + $0x100] sm:$0xf0] }
 0x105   : > { %v10028_v35 = vadd.f32 %v2536_v32, %v2448_v30  ;;  %12718 = vst [vmem:[#allocation59_spill] sm:$0xff] %v10043_v21  ;;  %v10045_v30 = vor.u32 %v8782_v36, %v7197_v26  ;;  %v7223_v26 = vld [vmem:[%s9761_s9 + $0xf0] sm:$0xf]  ;;  %v10071_v10 = vor.u32 %v8791_v52, %v7215_v51 }
 0x106   : > { %12717 = vst [vmem:[#allocation58_spill] sm:$0xff] %v10041_v62  ;;  %v9081_v51 = vld [vmem:[#allocation4 + $0x68c] sm:$0xf0] }
 0x107   : > { %12719 = vst [vmem:[#allocation60_spill] sm:$0xff] %v10045_v30 }
 0x108   : > { %v2487_v2 = vpop.f32.mrf.mxu2  ;;  %12720 = vst [vmem:[#allocation61_spill] sm:$0xff] %v10071_v10 }
 0x109   : > { %v2488_v53 = vadd.f32 %v2487_v2, %v9943_v55 }
 0x10a   : > { %v2450_v7 = vpop.f32.mrf.mxu0 }
 0x10b   : > { %v2576_v1 = vpop.f32.mrf.mxu3  ;;  %v2451_v39 = vadd.f32 %v2450_v7, %v9943_v55  ;;  %v2539_v45 = vpop.f32.mrf.mxu1  ;;  %v7217_v7 = vld [vmem:[%s9761_s9 + $0x104] sm:$0xf0] }
 0x10c   : > { %v10047_v32 = vadd.f32 %v2576_v1, %v2488_v53  ;;  %v8792_v53 = vld [vmem:[%s9761_s9 + $0x108] sm:$0xf0] }
 0x10d   : > { %v10050_v6 = vadd.f32 %v2539_v45, %v2451_v39  ;;  %2627 = vmatmul.bf16.gmra.mxu2 %v10039_v27  ;;  %2805 = vmatmul.bf16.gmra.mxu0 %v10041_v62  ;;  %v8789_v62 = vld [vmem:[%s9761_s9 + $0xf4] sm:$0xf] }
 0x10e   : > { %2894 = vmatmul.bf16.gmra.mxu1 %v10045_v30  ;;  %v7225_v30 = vld [vmem:[%s9761_s9 + $0x10c] sm:$0xf0] }
 0x110   : > { %2716 = vmatmul.bf16.gmra.mxu3 %v10043_v21  ;;  %v2490_v1 = vpop.f32.mrf.mxu2 }
 0x111   : > { %v2491_v2 = vadd.f32 %v2490_v1, %v9943_v55 }
 0x112   : > { %v2452_v36 = vpop.f32.mrf.mxu0 }
 0x113   : > { %v2579_v33 = vpop.f32.mrf.mxu3  ;;  %v2453_v45 = vadd.f32 %v2452_v36, %v9943_v55  ;;  %v2541_v47 = vpop.f32.mrf.mxu1  ;;  %v10075_v36 = vor.u32 %v8788_v54, %v7217_v7 }
 0x114   : > { %v10057_v39 = vadd.f32 %v2579_v33, %v2491_v2  ;;  %v10073_v2 = vor.u32 %v8792_v53, %v7223_v26 }
 0x115   : > { %v10060_v50 = vadd.f32 %v2541_v47, %v2453_v45  ;;  %12722 = vst [vmem:[#allocation63_spill] sm:$0xff] %v10075_v36  ;;  %v10077_v45 = vor.u32 %v8789_v62, %v7225_v30  ;;  %v8887_v62 = vld [vmem:[#allocation4 + $0x84] sm:$0xf]  ;;  %v7609_v30 = vld [vmem:[#allocation4 + $0x90] sm:$0xf0] }
 0x116   : > { %12721 = vst [vmem:[#allocation62_spill] sm:$0xff] %v10073_v2 }
 0x117   : > { %12723 = vst [vmem:[#allocation64_spill] sm:$0xff] %v10077_v45 }
 0x118   : > { %v2492_v21 = vpop.f32.mrf.mxu2 }
 0x119   : > { %v2493_v1 = vadd.f32 %v2492_v21, %v9943_v55  ;;  %v8375_v21 = vld [vmem:[#allocation4 + $0x680] sm:$0xf] }
 0x11a   : > { %v2455_v33 = vpop.f32.mrf.mxu0 }
 0x11b   : > { %v2581_v14 = vpop.f32.mrf.mxu3  ;;  %v2456_v12 = vadd.f32 %v2455_v33, %v9943_v55  ;;  %v2544_v17 = vpop.f32.mrf.mxu1 }
 0x11c   : > { %v10079_v47 = vadd.f32 %v2581_v14, %v2493_v1  ;;  %v8376_v14 = vor.u32 %v9081_v51, %v8375_v21  ;;  %v7243_v21 = vld [vmem:[%s9761_s9 + $0x120] sm:$0xf]  ;;  %v8798_v51 = vld [vmem:[%s9761_s9 + $0x138] sm:$0xf0] }
 0x11d   : > { %v10082_v19 = vadd.f32 %v2544_v17, %v2456_v12  ;;  %2632 = vmatmul.bf16.gmra.mxu2 %v10071_v10  ;;  %2810 = vmatmul.bf16.gmra.mxu0 %v10073_v2  ;;  %v7612_v12 = vor.u32 %v8887_v62, %v7609_v30  ;;  %v8795_v2 = vld [vmem:[%s9761_s9 + $0x124] sm:$0xf]  ;;  %v7245_v30 = vld [vmem:[%s9761_s9 + $0x13c] sm:$0xf0] }
 0x11e   : > { %2899 = vmatmul.bf16.gmra.mxu1 %v10077_v45  ;;  %2963 = vmatpush.bf16.msra.mxu2 %v8376_v14  ;;  %v7251_v45 = vld [vmem:[%s9761_s9 + $0x128] sm:$0xf]  ;;  %v8799_v62 = vld [vmem:[%s9761_s9 + $0x140] sm:$0xf0] }
 0x11f   : > { %3052 = vmatpush.bf16.msra.mxu3 %v7612_v12  ;;  %v10103_v12 = vor.u32 %v8798_v51, %v7243_v21  ;;  %v7271_v51 = vld [vmem:[%s9761_s9 + $0x158] sm:$0xf] }
 0x120   : > { %2721 = vmatmul.bf16.gmra.mxu3 %v10075_v36  ;;  %v2495_v17 = vpop.f32.mrf.mxu2  ;;  %v8796_v36 = vld [vmem:[%s9761_s9 + $0x12c] sm:$0xf] }
 0x121   : > { %v2496_v52 = vadd.f32 %v2495_v17, %v9943_v55  ;;  %v7253_v17 = vld [vmem:[%s9761_s9 + $0x144] sm:$0xf0]  ;;  %12724 = vst [vmem:[#allocation65_spill] sm:$0xff] %v10103_v12 }
 0x122   : > { %v2457_v26 = vpop.f32.mrf.mxu0 }
 0x123   : > { %v2584_v54 = vpop.f32.mrf.mxu3  ;;  %v2458_v7 = vadd.f32 %v2457_v26, %v9943_v55  ;;  %v2546_v1 = vpop.f32.mrf.mxu1  ;;  %v10107_v26 = vor.u32 %v8795_v2, %v7245_v30  ;;  %v8802_v30 = vld [vmem:[%s9761_s9 + $0x15c] sm:$0xf] }
 0x124   : > { %v10089_v53 = vadd.f32 %v2584_v54, %v2496_v52  ;;  %v10105_v52 = vor.u32 %v8799_v62, %v7251_v45  ;;  %v8805_v62 = vld [vmem:[%s9761_s9 + $0x170] sm:$0xf0] }
 0x125   : > { %v10092_v33 = vadd.f32 %v2546_v1, %v2458_v7  ;;  %12726 = vst [vmem:[#allocation67_spill] sm:$0xff] %v10107_v26  ;;  %v10109_v7 = vor.u32 %v8796_v36, %v7253_v17  ;;  %v7279_v17 = vld [vmem:[%s9761_s9 + $0x160] sm:$0xf]  ;;  %v10135_v0 = vor.u32 %v8805_v62, %v7271_v51  ;;  %v9077_v51 = vld [vmem:[#allocation4 + $0x66c] sm:$0xf0] }
 0x126   : > { %12725 = vst [vmem:[#allocation66_spill] sm:$0xff] %v10105_v52 }
 0x127   : > { %12727 = vst [vmem:[#allocation68_spill] sm:$0xff] %v10109_v7 }
 0x128   : > { %v2497_v59 = vpop.f32.mrf.mxu2  ;;  %12729 = vst [vmem:[#allocation70_spill] sm:$0xff] %v10135_v0 }
 0x129   : > { %v2498_v14 = vadd.f32 %v2497_v59, %v9943_v55 }
 0x12a   : > { %v2460_v54 = vpop.f32.mrf.mxu0 }
 0x12b   : > { %v2586_v61 = vpop.f32.mrf.mxu3  ;;  %v2461_v41 = vadd.f32 %v2460_v54, %v9943_v55  ;;  %v2549_v43 = vpop.f32.mrf.mxu1  ;;  %v7273_v54 = vld [vmem:[%s9761_s9 + $0x174] sm:$0xf0] }
 0x12c   : > { %v10111_v1 = vadd.f32 %v2586_v61, %v2498_v14  ;;  %v8806_v14 = vld [vmem:[%s9761_s9 + $0x178] sm:$0xf0] }
 0x12d   : > { %v10114_v23 = vadd.f32 %v2549_v43, %v2461_v41  ;;  %2637 = vmatmul.bf16.gmra.mxu2 %v10103_v12  ;;  %2815 = vmatmul.bf16.gmra.mxu0 %v10105_v52  ;;  %v8803_v52 = vld [vmem:[%s9761_s9 + $0x164] sm:$0xf] }
 0x12e   : > { %2904 = vmatmul.bf16.gmra.mxu1 %v10109_v7  ;;  %v7281_v7 = vld [vmem:[%s9761_s9 + $0x17c] sm:$0xf0] }
 0x130   : > { %2726 = vmatmul.bf16.gmra.mxu3 %v10107_v26  ;;  %v2500_v59 = vpop.f32.mrf.mxu2 }
 0x131   : > { %v2501_v61 = vadd.f32 %v2500_v59, %v9943_v55 }
 0x132   : > { %v2462_v36 = vpop.f32.mrf.mxu0 }
 0x133   : > { %v2589_v2 = vpop.f32.mrf.mxu3  ;;  %v2463_v43 = vadd.f32 %v2462_v36, %v9943_v55  ;;  %v2551_v45 = vpop.f32.mrf.mxu1  ;;  %v10139_v36 = vor.u32 %v8802_v30, %v7273_v54 }
 0x134   : > { %v10121_v41 = vadd.f32 %v2589_v2, %v2501_v61  ;;  %v10137_v61 = vor.u32 %v8806_v14, %v7279_v17 }
 0x135   : > { %v10124_v21 = vadd.f32 %v2551_v45, %v2463_v43  ;;  %12731 = vst [vmem:[#allocation72_spill] sm:$0xff] %v10139_v36  ;;  %v10141_v43 = vor.u32 %v8803_v52, %v7281_v7  ;;  %v8883_v52 = vld [vmem:[#allocation4 + $0x64] sm:$0xf]  ;;  %v7593_v7 = vld [vmem:[#allocation4 + $0x70] sm:$0xf0] }
 0x136   : > { %12728 = vst [vmem:[#allocation69_spill] sm:$0xff] %v10121_v41 }
 0x137   : > { %12730 = vst [vmem:[#allocation71_spill] sm:$0xff] %v10137_v61 }
 0x138   : > { %v2502_v26 = vpop.f32.mrf.mxu2  ;;  %12732 = vst [vmem:[#allocation73_spill] sm:$0xff] %v10141_v43 }
 0x139   : > { %v2503_v59 = vadd.f32 %v2502_v26, %v9943_v55  ;;  %v8359_v26 = vld [vmem:[#allocation4 + $0x660] sm:$0xf] }
 0x13a   : > { %v2465_v2 = vpop.f32.mrf.mxu0 }
 0x13b   : > { %v2591_v25 = vpop.f32.mrf.mxu3  ;;  %v2466_v5 = vadd.f32 %v2465_v2, %v9943_v55  ;;  %v2554_v38 = vpop.f32.mrf.mxu1 }
 0x13c   : > { %v10143_v45 = vadd.f32 %v2591_v25, %v2503_v59  ;;  %v8360_v25 = vor.u32 %v9077_v51, %v8359_v26  ;;  %v7299_v26 = vld [vmem:[%s9761_s9 + $0x190] sm:$0xf]  ;;  %v8812_v51 = vld [vmem:[%s9761_s9 + $0x1a8] sm:$0xf0] }
 0x13d   : > { %v10146_v44 = vadd.f32 %v2554_v38, %v2466_v5  ;;  %2642 = vmatmul.bf16.gmra.mxu2 %v10135_v0  ;;  %2820 = vmatmul.bf16.gmra.mxu0 %v10137_v61  ;;  %v7596_v38 = vor.u32 %v8883_v52, %v7593_v7  ;;  %v8809_v61 = vld [vmem:[%s9761_s9 + $0x194] sm:$0xf]  ;;  %v7301_v7 = vld [vmem:[%s9761_s9 + $0x1ac] sm:$0xf0] }
 0x13e   : > { %12733 = vst [vmem:[#allocation74_spill] sm:$0xff] %v10143_v45  ;;  %2909 = vmatmul.bf16.gmra.mxu1 %v10141_v43  ;;  %2964 = vmatpush.bf16.msra.mxu2 %v8360_v25  ;;  %v7307_v43 = vld [vmem:[%s9761_s9 + $0x198] sm:$0xf]  ;;  %v8813_v52 = vld [vmem:[%s9761_s9 + $0x1b0] sm:$0xf0] }
 0x13f   : > { %3053 = vmatpush.bf16.msra.mxu3 %v7596_v38  ;;  %v10167_v38 = vor.u32 %v8812_v51, %v7299_v26 }
 0x140   : > { %2731 = vmatmul.bf16.gmra.mxu3 %v10139_v36  ;;  %v2505_v5 = vpop.f32.mrf.mxu2  ;;  %v8810_v36 = vld [vmem:[%s9761_s9 + $0x19c] sm:$0xf] }
 0x141   : > { %v2506_v62 = vadd.f32 %v2505_v5, %v9943_v55  ;;  %v7309_v5 = vld [vmem:[%s9761_s9 + $0x1b4] sm:$0xf0]  ;;  %12735 = vst [vmem:[#allocation76_spill] sm:$0xff] %v10167_v38 }
 0x142   : > { %v2467_v17 = vpop.f32.mrf.mxu0 }
 0x143   : > { %v2594_v30 = vpop.f32.mrf.mxu3  ;;  %v2468_v54 = vadd.f32 %v2467_v17, %v9943_v55  ;;  %v2556_v59 = vpop.f32.mrf.mxu1  ;;  %v10171_v17 = vor.u32 %v8809_v61, %v7301_v7  ;;  %v7785_v61 = vld [vmem:[#allocation4 + $0x1f0] sm:$0xf0]  ;;  %v7327_v7 = vld [vmem:[%s9761_s9 + $0x1c8] sm:$0xf] }
 0x144   : > { %v10153_v14 = vadd.f32 %v2594_v30, %v2506_v62  ;;  %v10169_v62 = vor.u32 %v8813_v52, %v7307_v43 }
 0x145   : > { %v10156_v2 = vadd.f32 %v2556_v59, %v2468_v54  ;;  %12737 = vst [vmem:[#allocation78_spill] sm:$0xff] %v10171_v17  ;;  %v10173_v54 = vor.u32 %v8810_v36, %v7309_v5 }
 0x146   : > { %12734 = vst [vmem:[#allocation75_spill] sm:$0xff] %v10153_v14 }
 0x147   : > { %12736 = vst [vmem:[#allocation77_spill] sm:$0xff] %v10169_v62 }
 0x148   : > { %v2507_v0 = vpop.f32.mrf.mxu2  ;;  %12738 = vst [vmem:[#allocation79_spill] sm:$0xff] %v10173_v54 }
 0x149   : > { %v2508_v25 = vadd.f32 %v2507_v0, %v9943_v55  ;;  %v8931_v0 = vld [vmem:[#allocation4 + $0x1e4] sm:$0xf] }
 0x14a   : > { %v2470_v30 = vpop.f32.mrf.mxu0 }
 0x14b   : > { %v2596_v3 = vpop.f32.mrf.mxu3  ;;  %v2471_v14 = vadd.f32 %v2470_v30, %v9943_v55  ;;  %v2559_v13 = vpop.f32.mrf.mxu1  ;;  %v8963_v30 = vld [vmem:[#allocation4 + $0x2e4] sm:$0xf] }
 0x14c   : > { %v10175_v59 = vadd.f32 %v2596_v3, %v2508_v25  ;;  %v7788_v3 = vor.u32 %v8931_v0, %v7785_v61  ;;  %v8819_v25 = vld [vmem:[%s9761_s9 + $0x1e0] sm:$0xf0]  ;;  %v7913_v0 = vld [vmem:[#allocation4 + $0x2f0] sm:$0xf0]  ;;  %v8816_v61 = vld [vmem:[%s9761_s9 + $0x1cc] sm:$0xf] }
 0x14d   : > { %v10178_v45 = vadd.f32 %v2559_v13, %v2471_v14  ;;  %2647 = vmatmul.bf16.gmra.mxu2 %v10167_v38  ;;  %2825 = vmatmul.bf16.gmra.mxu0 %v10169_v62  ;;  %v7335_v62 = vld [vmem:[%s9761_s9 + $0x1d0] sm:$0xf]  ;;  %v8817_v38 = vld [vmem:[%s9761_s9 + $0x1d4] sm:$0xf] }
 0x14e   : > { %12739 = vst [vmem:[#allocation80_spill] sm:$0xff] %v10175_v59  ;;  %2914 = vmatmul.bf16.gmra.mxu1 %v10173_v54  ;;  %3138 = vmatpush.bf16.msra.mxu0 %v7788_v3  ;;  %v7916_v54 = vor.u32 %v8963_v30, %v7913_v0  ;;  %v7337_v3 = vld [vmem:[%s9761_s9 + $0x1ec] sm:$0xf0] }
 0x14f   : > { %v10205_v41 = vor.u32 %v8817_v38, %v7337_v3 }
 0x150   : > { %2736 = vmatmul.bf16.gmra.mxu3 %v10171_v17  ;;  %v2510_v36 = vpop.f32.mrf.mxu2  ;;  %v7329_v17 = vld [vmem:[%s9761_s9 + $0x1e4] sm:$0xf0]  ;;  %3227 = vmatpush.bf16.msra.mxu1 %v7916_v54  ;;  %v7577_v54 = vld [vmem:[#allocation4 + $0x50] sm:$0xf0] }
 0x151   : > { %v2511_v13 = vadd.f32 %v2510_v36, %v9943_v55  ;;  %v8820_v36 = vld [vmem:[%s9761_s9 + $0x1e8] sm:$0xf0]  ;;  %12744 = vst [vmem:[#allocation85_spill] sm:$0xff] %v10205_v41 }
 0x152   : > { %v2472_v14 = vpop.f32.mrf.mxu0 }
 0x153   : > { %v2599_v43 = vpop.f32.mrf.mxu3  ;;  %v2473_v51 = vadd.f32 %v2472_v14, %v9943_v55  ;;  %v2561_v52 = vpop.f32.mrf.mxu1  ;;  %v10199_v14 = vor.u32 %v8819_v25, %v7327_v7 }
 0x154   : > { %v10185_v26 = vadd.f32 %v2599_v43, %v2511_v13 }
 0x155   : > { %v10189_v5 = vadd.f32 %v2561_v52, %v2473_v51  ;;  %12741 = vst [vmem:[#allocation82_spill] sm:$0xff] %v10199_v14  ;;  %v10203_v52 = vor.u32 %v8816_v61, %v7329_v17  ;;  %v8879_v17 = vld [vmem:[#allocation4 + $0x44] sm:$0xf] }
 0x156   : > { %12740 = vst [vmem:[#allocation81_spill] sm:$0xff] %v10185_v26  ;;  %v10201_v26 = vor.u32 %v8820_v36, %v7335_v62  ;;  %v9073_v62 = vld [vmem:[#allocation4 + $0x64c] sm:$0xf0]  ;;  %v7580_v7 = vor.u32 %v8879_v17, %v7577_v54 }
 0x157   : > { %12743 = vst [vmem:[#allocation84_spill] sm:$0xff] %v10203_v52 }
 0x158   : > { %v2512_v59 = vpop.f32.mrf.mxu2  ;;  %12742 = vst [vmem:[#allocation83_spill] sm:$0xff] %v10201_v26  ;;  %3054 = vmatpush.bf16.msra.mxu3 %v7580_v7 }
 0x159   : > { %v2513_v13 = vadd.f32 %v2512_v59, %v9943_v55  ;;  %v8343_v55 = vld [vmem:[#allocation4 + $0x640] sm:$0xf] }
 0x15a   : > { %v2791_v51 = vpop.f32.mrf.mxu0  ;;  %v8344_v38 = vor.u32 %v9073_v62, %v8343_v55  ;;  %v7363_v55 = vld [vmem:[%s9761_s9 + $0x208] sm:$0xf]  ;;  %v8827_v62 = vld [vmem:[%s9761_s9 + $0x220] sm:$0xf0] }
 0x15b   : > { %v2601_v43 = vpop.f32.mrf.mxu3  ;;  %v2880_v30 = vpop.f32.mrf.mxu1 }
 0x15c   : > { %v10207_v12 = vadd.f32 %v2601_v43, %v2513_v13  ;;  %2965 = vmatpush.bf16.msra.mxu2 %v8344_v38  ;;  %v7355_v43 = vld [vmem:[%s9761_s9 + $0x200] sm:$0xf] }
 0x15d   : > { %2652 = vmatmul.bf16.gmra.mxu2 %v10199_v14  ;;  %2830 = vmatmul.bf16.gmra.mxu0 %v10201_v26  ;;  %v8826_v26 = vld [vmem:[%s9761_s9 + $0x218] sm:$0xf0]  ;;  %v8824_v14 = vld [vmem:[%s9761_s9 + $0x20c] sm:$0xf] }
 0x15e   : > { %12745 = vst [vmem:[#allocation86_spill] sm:$0xff] %v10207_v12  ;;  %2919 = vmatmul.bf16.gmra.mxu1 %v10205_v41  ;;  %v8823_v41 = vld [vmem:[%s9761_s9 + $0x204] sm:$0xf]  ;;  %v7365_v12 = vld [vmem:[%s9761_s9 + $0x224] sm:$0xf0]  ;;  %v10225_v38 = vor.u32 %v8826_v26, %v7355_v43 }
 0x15f   : > { %v7769_v26 = vld [vmem:[#allocation4 + $0x1d0] sm:$0xf0] }
 0x160   : > { %2741 = vmatmul.bf16.gmra.mxu3 %v10203_v52  ;;  %v2613_v59 = vpop.f32.mrf.mxu2  ;;  %v7357_v52 = vld [vmem:[%s9761_s9 + $0x21c] sm:$0xf0]  ;;  %12746 = vst [vmem:[#allocation87_spill] sm:$0xff] %v10225_v38 }
 0x161   : > { %v2614_v25 = vadd.f32 %v2613_v59, %v9954_v15  ;;  %v10227_v59 = vor.u32 %v8827_v62, %v7363_v55  ;;  %v7383_v55 = vld [vmem:[%s9761_s9 + $0x238] sm:$0xf] }
 0x162   : > { %v2793_v61 = vpop.f32.mrf.mxu0 }
 0x163   : > { %v2702_v0 = vpop.f32.mrf.mxu3  ;;  %v2882_v3 = vpop.f32.mrf.mxu1  ;;  %12747 = vst [vmem:[#allocation88_spill] sm:$0xff] %v10227_v59 }
 0x164   : > { %v2703_v36 = vadd.f32 %v2702_v0, %v2614_v25  ;;  %v10231_v25 = vor.u32 %v8824_v14, %v7365_v12 }
 0x166   : > { %v2792_v13 = vadd.f32 %v2791_v51, %v2703_v36  ;;  %v10229_v51 = vor.u32 %v8823_v41, %v7357_v52  ;;  %12749 = vst [vmem:[#allocation90_spill] sm:$0xff] %v10231_v25 }
 0x168   : > { %v10222_v9 = vadd.f32 %v2880_v30, %v2792_v13  ;;  %v2615_v17 = vpop.f32.mrf.mxu2  ;;  %12748 = vst [vmem:[#allocation89_spill] sm:$0xff] %v10229_v51 }
 0x169   : > { %v2616_v15 = vadd.f32 %v2615_v17, %v9964_v37  ;;  %v8927_v37 = vld [vmem:[#allocation4 + $0x1c4] sm:$0xf]  ;;  %v8833_v17 = vld [vmem:[%s9761_s9 + $0x250] sm:$0xf0] }
 0x16a   : > { %v2796_v7 = vpop.f32.mrf.mxu0  ;;  %v7772_v41 = vor.u32 %v8927_v37, %v7769_v26  ;;  %v7391_v37 = vld [vmem:[%s9761_s9 + $0x240] sm:$0xf]  ;;  %v7385_v26 = vld [vmem:[%s9761_s9 + $0x254] sm:$0xf0] }
 0x16b   : > { %v2704_v54 = vpop.f32.mrf.mxu3  ;;  %v2885_v36 = vpop.f32.mrf.mxu1 }
 0x16c   : > { %v2705_v0 = vadd.f32 %v2704_v54, %v2616_v15  ;;  %3139 = vmatpush.bf16.msra.mxu0 %v7772_v41  ;;  %v8959_v15 = vld [vmem:[#allocation4 + $0x2c4] sm:$0xf]  ;;  %v7897_v54 = vld [vmem:[#allocation4 + $0x2d0] sm:$0xf0] }
 0x16d   : > { %2657 = vmatmul.bf16.gmra.mxu2 %v10225_v38  ;;  %2835 = vmatmul.bf16.gmra.mxu0 %v10227_v59  ;;  %v8831_v59 = vld [vmem:[%s9761_s9 + $0x244] sm:$0xf] }
 0x16e   : > { %v2794_v11 = vadd.f32 %v2793_v61, %v2705_v0  ;;  %2924 = vmatmul.bf16.gmra.mxu1 %v10231_v25  ;;  %v8830_v0 = vld [vmem:[%s9761_s9 + $0x23c] sm:$0xf]  ;;  %v7393_v25 = vld [vmem:[%s9761_s9 + $0x25c] sm:$0xf0] }
 0x16f   : > { %v10257_v38 = vor.u32 %v8831_v59, %v7393_v25  ;;  %v7561_v59 = vld [vmem:[#allocation4 + $0x30] sm:$0xf0] }
 0x170   : > { %2746 = vmatmul.bf16.gmra.mxu3 %v10229_v51  ;;  %v10237_v12 = vadd.f32 %v2882_v3, %v2794_v11  ;;  %v2618_v14 = vpop.f32.mrf.mxu2  ;;  %v8834_v11 = vld [vmem:[%s9761_s9 + $0x258] sm:$0xf0]  ;;  %v7900_v3 = vor.u32 %v8959_v15, %v7897_v54  ;;  %v10255_v51 = vor.u32 %v8830_v0, %v7385_v26 }
 0x171   : > { %v2619_v52 = vadd.f32 %v2618_v14, %v9986_v31  ;;  %12754 = vst [vmem:[#allocation95_spill] sm:$0xff] %v10257_v38 }
 0x172   : > { %12750 = vst [vmem:[#allocation91_spill] sm:$0xff] %v10237_v12  ;;  %v2798_v61 = vpop.f32.mrf.mxu0  ;;  %3228 = vmatpush.bf16.msra.mxu1 %v7900_v3 }
 0x173   : > { %v2707_v30 = vpop.f32.mrf.mxu3  ;;  %v2887_v43 = vpop.f32.mrf.mxu1  ;;  %12753 = vst [vmem:[#allocation94_spill] sm:$0xff] %v10255_v51 }
 0x174   : > { %v2708_v13 = vadd.f32 %v2707_v30, %v2619_v52  ;;  %v10251_v30 = vor.u32 %v8833_v17, %v7383_v55  ;;  %v8875_v55 = vld [vmem:[#allocation4 + $0x24] sm:$0xf] }
 0x175   : > { %v7564_v17 = vor.u32 %v8875_v55, %v7561_v59 }
 0x176   : > { %v2797_v62 = vadd.f32 %v2796_v7, %v2708_v13  ;;  %12751 = vst [vmem:[#allocation92_spill] sm:$0xff] %v10251_v30  ;;  %v10253_v7 = vor.u32 %v8834_v11, %v7391_v37 }
 0x177   : > { %3055 = vmatpush.bf16.msra.mxu3 %v7564_v17 }
 0x178   : > { %v10248_v31 = vadd.f32 %v2885_v36, %v2797_v62  ;;  %v2620_v14 = vpop.f32.mrf.mxu2  ;;  %12752 = vst [vmem:[#allocation93_spill] sm:$0xff] %v10253_v7  ;;  %v9069_v36 = vld [vmem:[#allocation4 + $0x62c] sm:$0xf0] }
 0x179   : > { %v2621_v41 = vadd.f32 %v2620_v14, %v9996_v49  ;;  %v8327_v49 = vld [vmem:[#allocation4 + $0x620] sm:$0xf] }
 0x17a   : > { %v2801_v13 = vpop.f32.mrf.mxu0  ;;  %v8328_v62 = vor.u32 %v9069_v36, %v8327_v49  ;;  %v7419_v49 = vld [vmem:[%s9761_s9 + $0x278] sm:$0xf]  ;;  %v8838_v36 = vld [vmem:[%s9761_s9 + $0x27c] sm:$0xf] }
 0x17b   : > { %v2709_v52 = vpop.f32.mrf.mxu3  ;;  %v2890_v54 = vpop.f32.mrf.mxu1 }
 0x17c   : > { %v2710_v15 = vadd.f32 %v2709_v52, %v2621_v41  ;;  %2966 = vmatpush.bf16.msra.mxu2 %v8328_v62  ;;  %v7411_v41 = vld [vmem:[%s9761_s9 + $0x270] sm:$0xf]  ;;  %v8840_v52 = vld [vmem:[%s9761_s9 + $0x288] sm:$0xf0] }
 0x17d   : > { %2662 = vmatmul.bf16.gmra.mxu2 %v10251_v30  ;;  %2840 = vmatmul.bf16.gmra.mxu0 %v10253_v7  ;;  %v7421_v7 = vld [vmem:[%s9761_s9 + $0x294] sm:$0xf0]  ;;  %v10277_v62 = vor.u32 %v8840_v52, %v7411_v41 }
 0x17e   : > { %v2799_v12 = vadd.f32 %v2798_v61, %v2710_v15  ;;  %2929 = vmatmul.bf16.gmra.mxu1 %v10257_v38  ;;  %v8837_v15 = vld [vmem:[%s9761_s9 + $0x274] sm:$0xf] }
 0x17f   : > { %12755 = vst [vmem:[#allocation96_spill] sm:$0xff] %v10277_v62 }
 0x180   : > { %2751 = vmatmul.bf16.gmra.mxu3 %v10255_v51  ;;  %v10263_v25 = vadd.f32 %v2887_v43, %v2799_v12  ;;  %v2623_v61 = vpop.f32.mrf.mxu2  ;;  %v8841_v12 = vld [vmem:[%s9761_s9 + $0x290] sm:$0xf0]  ;;  %v7413_v43 = vld [vmem:[%s9761_s9 + $0x28c] sm:$0xf0] }
 0x181   : > { %v2624_v0 = vadd.f32 %v2623_v61, %v10018_v57  ;;  %v10279_v61 = vor.u32 %v8841_v12, %v7419_v49 }
 0x182   : > { %v2803_v11 = vpop.f32.mrf.mxu0 }
 0x183   : > { %v2712_v37 = vpop.f32.mrf.mxu3  ;;  %v2892_v26 = vpop.f32.mrf.mxu1  ;;  %12756 = vst [vmem:[#allocation97_spill] sm:$0xff] %v10279_v61 }
 0x184   : > { %v2713_v3 = vadd.f32 %v2712_v37, %v2624_v0  ;;  %v10283_v0 = vor.u32 %v8838_v36, %v7421_v7 }
 0x186   : > { %v2802_v14 = vadd.f32 %v2801_v13, %v2713_v3  ;;  %v10281_v13 = vor.u32 %v8837_v15, %v7413_v43  ;;  %12758 = vst [vmem:[#allocation99_spill] sm:$0xff] %v10283_v0  ;;  %v7439_v43 = vld [vmem:[%s9761_s9 + $0x2a8] sm:$0xf] }
 0x188   : > { %v10274_v38 = vadd.f32 %v2890_v54, %v2802_v14  ;;  %v2625_v55 = vpop.f32.mrf.mxu2  ;;  %12757 = vst [vmem:[#allocation98_spill] sm:$0xff] %v10281_v13  ;;  %v7753_v54 = vld [vmem:[#allocation4 + $0x1b0] sm:$0xf0] }
 0x189   : > { %v2626_v57 = vadd.f32 %v2625_v55, %v10028_v35  ;;  %v8923_v35 = vld [vmem:[#allocation4 + $0x1a4] sm:$0xf] }
 0x18a   : > { %v2806_v17 = vpop.f32.mrf.mxu0  ;;  %v7756_v14 = vor.u32 %v8923_v35, %v7753_v54  ;;  %v8847_v55 = vld [vmem:[%s9761_s9 + $0x2c0] sm:$0xf0]  ;;  %v7447_v35 = vld [vmem:[%s9761_s9 + $0x2b0] sm:$0xf]  ;;  %v7441_v54 = vld [vmem:[%s9761_s9 + $0x2c4] sm:$0xf0] }
 0x18b   : > { %v2714_v59 = vpop.f32.mrf.mxu3  ;;  %v2895_v3 = vpop.f32.mrf.mxu1 }
 0x18c   : > { %v2715_v37 = vadd.f32 %v2714_v59, %v2626_v57  ;;  %3140 = vmatpush.bf16.msra.mxu0 %v7756_v14  ;;  %v8955_v57 = vld [vmem:[#allocation4 + $0x2a4] sm:$0xf]  ;;  %v7881_v59 = vld [vmem:[#allocation4 + $0x2b0] sm:$0xf0] }
 0x18d   : > { %2667 = vmatmul.bf16.gmra.mxu2 %v10277_v62  ;;  %2845 = vmatmul.bf16.gmra.mxu0 %v10279_v61  ;;  %v8845_v61 = vld [vmem:[%s9761_s9 + $0x2b4] sm:$0xf] }
 0x18e   : > { %v2804_v51 = vadd.f32 %v2803_v11, %v2715_v37  ;;  %2934 = vmatmul.bf16.gmra.mxu1 %v10283_v0  ;;  %v8844_v37 = vld [vmem:[%s9761_s9 + $0x2ac] sm:$0xf]  ;;  %v7449_v0 = vld [vmem:[%s9761_s9 + $0x2cc] sm:$0xf0] }
 0x18f   : > { %v10309_v62 = vor.u32 %v8845_v61, %v7449_v0  ;;  %v7545_v61 = vld [vmem:[#allocation4 + $0x10] sm:$0xf0] }
 0x190   : > { %2756 = vmatmul.bf16.gmra.mxu3 %v10281_v13  ;;  %v10289_v7 = vadd.f32 %v2892_v26, %v2804_v51  ;;  %v2628_v41 = vpop.f32.mrf.mxu2  ;;  %v8848_v51 = vld [vmem:[%s9761_s9 + $0x2c8] sm:$0xf0]  ;;  %v7884_v26 = vor.u32 %v8955_v57, %v7881_v59  ;;  %v10307_v13 = vor.u32 %v8844_v37, %v7441_v54 }
 0x191   : > { %v2629_v11 = vadd.f32 %v2628_v41, %v10050_v6  ;;  %12764 = vst [vmem:[#allocation105_spill] sm:$0xff] %v10309_v62 }
 0x192   : > { %12759 = vst [vmem:[#allocation100_spill] sm:$0xff] %v10289_v7  ;;  %v2808_v15 = vpop.f32.mrf.mxu0  ;;  %3229 = vmatpush.bf16.msra.mxu1 %v7884_v26 }
 0x193   : > { %v2717_v52 = vpop.f32.mrf.mxu3  ;;  %v2897_v12 = vpop.f32.mrf.mxu1  ;;  %12763 = vst [vmem:[#allocation104_spill] sm:$0xff] %v10307_v13 }
 0x194   : > { %v2718_v49 = vadd.f32 %v2717_v52, %v2629_v11  ;;  %v10303_v52 = vor.u32 %v8847_v55, %v7439_v43  ;;  %v8871_v43 = vld [vmem:[#allocation4 + $0x4] sm:$0xf] }
 0x195   : > { %v7548_v55 = vor.u32 %v8871_v43, %v7545_v61  ;;  %v8919_v61 = vld [vmem:[#allocation4 + $0x184] sm:$0xf] }
 0x196   : > { %v2807_v36 = vadd.f32 %v2806_v17, %v2718_v49  ;;  %12761 = vst [vmem:[#allocation102_spill] sm:$0xff] %v10303_v52  ;;  %v10305_v17 = vor.u32 %v8848_v51, %v7447_v35 }
 0x197   : > { %3056 = vmatpush.bf16.msra.mxu3 %v7548_v55 }
 0x198   : > { %v10300_v6 = vadd.f32 %v2895_v3, %v2807_v36  ;;  %v2630_v41 = vpop.f32.mrf.mxu2  ;;  %12762 = vst [vmem:[#allocation103_spill] sm:$0xff] %v10305_v17  ;;  %v9065_v3 = vld [vmem:[#allocation4 + $0x60c] sm:$0xf0] }
 0x199   : > { %v2631_v14 = vadd.f32 %v2630_v41, %v10060_v50  ;;  %v8311_v50 = vld [vmem:[#allocation4 + $0x600] sm:$0xf] }
 0x19a   : > { %12760 = vst [vmem:[#allocation101_spill] sm:$0xff] %v10300_v6  ;;  %v2811_v49 = vpop.f32.mrf.mxu0  ;;  %v8312_v36 = vor.u32 %v9065_v3, %v8311_v50  ;;  %v7475_v50 = vld [vmem:[%s9761_s9 + $0x2e8] sm:$0xf]  ;;  %v8852_v3 = vld [vmem:[%s9761_s9 + $0x2ec] sm:$0xf] }
 0x19b   : > { %v2719_v11 = vpop.f32.mrf.mxu3  ;;  %v2900_v59 = vpop.f32.mrf.mxu1 }
 0x19c   : > { %v2720_v57 = vadd.f32 %v2719_v11, %v2631_v14  ;;  %2967 = vmatpush.bf16.msra.mxu2 %v8312_v36  ;;  %v7467_v14 = vld [vmem:[%s9761_s9 + $0x2e0] sm:$0xf]  ;;  %v8854_v11 = vld [vmem:[%s9761_s9 + $0x2f8] sm:$0xf0] }
 0x19d   : > { %2672 = vmatmul.bf16.gmra.mxu2 %v10303_v52  ;;  %2850 = vmatmul.bf16.gmra.mxu0 %v10305_v17  ;;  %v7477_v17 = vld [vmem:[%s9761_s9 + $0x304] sm:$0xf0] }
 0x19e   : > { %v2809_v7 = vadd.f32 %v2808_v15, %v2720_v57  ;;  %2939 = vmatmul.bf16.gmra.mxu1 %v10309_v62  ;;  %v8851_v57 = vld [vmem:[%s9761_s9 + $0x2e4] sm:$0xf] }
 0x1a0   : > { %2761 = vmatmul.bf16.gmra.mxu3 %v10307_v13  ;;  %v10315_v0 = vadd.f32 %v2897_v12, %v2809_v7  ;;  %v2633_v15 = vpop.f32.mrf.mxu2  ;;  %v8855_v7 = vld [vmem:[%s9761_s9 + $0x300] sm:$0xf0]  ;;  %v7469_v12 = vld [vmem:[%s9761_s9 + $0x2fc] sm:$0xf0] }
 0x1a1   : > { %v2634_v37 = vadd.f32 %v2633_v15, %v10082_v19  ;;  %v7737_v19 = vld [vmem:[#allocation4 + $0x190] sm:$0xf0]  ;;  %v8951_v15 = vld [vmem:[#allocation4 + $0x284] sm:$0xf]  ;;  %v10333_v52 = vor.u32 %v8851_v57, %v7469_v12 }
 0x1a2   : > { %12765 = vst [vmem:[#allocation106_spill] sm:$0xff] %v10315_v0  ;;  %v2813_v51 = vpop.f32.mrf.mxu0  ;;  %v10335_v0 = vor.u32 %v8852_v3, %v7477_v17  ;;  %v7849_v57 = vld [vmem:[#allocation4 + $0x270] sm:$0xf0]  ;;  %v8911_v3 = vld [vmem:[#allocation4 + $0x144] sm:$0xf] }
 0x1a3   : > { %v2722_v35 = vpop.f32.mrf.mxu3  ;;  %v2902_v54 = vpop.f32.mrf.mxu1  ;;  %12769 = vst [vmem:[#allocation110_spill] sm:$0xff] %v10333_v52 }
 0x1a4   : > { %v2723_v26 = vadd.f32 %v2722_v35, %v2634_v37  ;;  %v10329_v37 = vor.u32 %v8854_v11, %v7467_v14  ;;  %v7740_v35 = vor.u32 %v8919_v61, %v7737_v19  ;;  %12770 = vst [vmem:[#allocation111_spill] sm:$0xff] %v10335_v0  ;;  %v7721_v14 = vld [vmem:[#allocation4 + $0x170] sm:$0xf0]  ;;  %v8947_v11 = vld [vmem:[#allocation4 + $0x264] sm:$0xf] }
 0x1a6   : > { %v2812_v41 = vadd.f32 %v2811_v49, %v2723_v26  ;;  %12767 = vst [vmem:[#allocation108_spill] sm:$0xff] %v10329_v37  ;;  %v10331_v49 = vor.u32 %v8855_v7, %v7475_v50  ;;  %v7865_v26 = vld [vmem:[#allocation4 + $0x290] sm:$0xf0]  ;;  %3141 = vmatpush.bf16.msra.mxu0 %v7740_v35  ;;  %v7852_v50 = vor.u32 %v8947_v11, %v7849_v57 }
 0x1a7   : > { %v7817_v57 = vld [vmem:[#allocation4 + $0x230] sm:$0xf0] }
 0x1a8   : > { %v10326_v62 = vadd.f32 %v2900_v59, %v2812_v41  ;;  %v2635_v43 = vpop.f32.mrf.mxu2  ;;  %12768 = vst [vmem:[#allocation109_spill] sm:$0xff] %v10331_v49  ;;  %v7868_v59 = vor.u32 %v8951_v15, %v7865_v26  ;;  %v8907_v26 = vld [vmem:[#allocation4 + $0x124] sm:$0xf] }
 0x1a9   : > { %v2636_v36 = vadd.f32 %v2635_v43, %v10092_v33  ;;  %v8915_v33 = vld [vmem:[#allocation4 + $0x164] sm:$0xf]  ;;  %v7705_v43 = vld [vmem:[#allocation4 + $0x150] sm:$0xf0] }
 0x1aa   : > { %12766 = vst [vmem:[#allocation107_spill] sm:$0xff] %v10326_v62  ;;  %v2816_v13 = vpop.f32.mrf.mxu0  ;;  %3230 = vmatpush.bf16.msra.mxu1 %v7868_v59  ;;  %v7724_v17 = vor.u32 %v8915_v33, %v7721_v14  ;;  %v7708_v15 = vor.u32 %v8911_v3, %v7705_v43  ;;  %v7689_v59 = vld [vmem:[#allocation4 + $0x130] sm:$0xf0]  ;;  %v7497_v43 = vld [vmem:[%s9761_s9 + $0x334] sm:$0xf0] }
 0x1ab   : > { %v2724_v55 = vpop.f32.mrf.mxu3  ;;  %v2905_v62 = vpop.f32.mrf.mxu1  ;;  %v8861_v14 = vld [vmem:[%s9761_s9 + $0x330] sm:$0xf0]  ;;  %v7692_v11 = vor.u32 %v8907_v26, %v7689_v59 }
 0x1ac   : > { %v2725_v41 = vadd.f32 %v2724_v55, %v2636_v36  ;;  %3142 = vmatpush.bf16.msra.mxu0 %v7724_v17  ;;  %v7833_v36 = vld [vmem:[#allocation4 + $0x250] sm:$0xf0]  ;;  %v8858_v17 = vld [vmem:[%s9761_s9 + $0x31c] sm:$0xf] }
 0x1ad   : > { %2677 = vmatmul.bf16.gmra.mxu2 %v10329_v37  ;;  %2855 = vmatmul.bf16.gmra.mxu0 %v10331_v49  ;;  %v8903_v49 = vld [vmem:[#allocation4 + $0x104] sm:$0xf]  ;;  %v7801_v26 = vld [vmem:[#allocation4 + $0x210] sm:$0xf0] }
 0x1ae   : > { %v2814_v6 = vadd.f32 %v2813_v51, %v2725_v41  ;;  %2944 = vmatmul.bf16.gmra.mxu1 %v10335_v0  ;;  %v8943_v51 = vld [vmem:[#allocation4 + $0x244] sm:$0xf]  ;;  %v7673_v0 = vld [vmem:[#allocation4 + $0x110] sm:$0xf0] }
 0x1af   : > { %3231 = vmatpush.bf16.msra.mxu1 %v7852_v50  ;;  %v7836_v35 = vor.u32 %v8943_v51, %v7833_v36  ;;  %v8939_v41 = vld [vmem:[#allocation4 + $0x224] sm:$0xf]  ;;  %v7503_v50 = vld [vmem:[%s9761_s9 + $0x320] sm:$0xf] }
 0x1b0   : > { %2766 = vmatmul.bf16.gmra.mxu3 %v10333_v52  ;;  %v10341_v7 = vadd.f32 %v2902_v54, %v2814_v6  ;;  %v2638_v12 = vpop.f32.mrf.mxu2  ;;  %3143 = vmatpush.bf16.msra.mxu0 %v7708_v15  ;;  %v7820_v3 = vor.u32 %v8939_v41, %v7817_v57  ;;  %v8859_v51 = vld [vmem:[%s9761_s9 + $0x324] sm:$0xf]  ;;  %v10359_v41 = vor.u32 %v8858_v17, %v7497_v43 }
 0x1b1   : > { %v2639_v61 = vadd.f32 %v2638_v12, %v10114_v23  ;;  %v7495_v23 = vld [vmem:[%s9761_s9 + $0x318] sm:$0xf]  ;;  %v8862_v12 = vld [vmem:[%s9761_s9 + $0x338] sm:$0xf0]  ;;  %v8935_v52 = vld [vmem:[#allocation4 + $0x204] sm:$0xf] }
 0x1b2   : > { %12771 = vst [vmem:[#allocation112_spill] sm:$0xff] %v10341_v7  ;;  %v2818_v55 = vpop.f32.mrf.mxu0  ;;  %v10355_v15 = vor.u32 %v8861_v14, %v7495_v23  ;;  %v7804_v37 = vor.u32 %v8935_v52, %v7801_v26  ;;  %v8041_v23 = vld [vmem:[#allocation4 + $0x3f0] sm:$0xf0]  ;;  %v9027_v14 = vld [vmem:[#allocation4 + $0x4e4] sm:$0xf] }
 0x1b3   : > { %v2727_v19 = vpop.f32.mrf.mxu3  ;;  %v2907_v54 = vpop.f32.mrf.mxu1  ;;  %3232 = vmatpush.bf16.msra.mxu1 %v7836_v35  ;;  %v10357_v35 = vor.u32 %v8862_v12, %v7503_v50  ;;  %12775 = vst [vmem:[#allocation116_spill] sm:$0xff] %v10359_v41  ;;  %v8169_v52 = vld [vmem:[#allocation4 + $0x4f0] sm:$0xf0] }
 0x1b4   : > { %v2728_v6 = vadd.f32 %v2727_v19, %v2639_v61  ;;  %v7505_v61 = vld [vmem:[%s9761_s9 + $0x33c] sm:$0xf0]  ;;  %12773 = vst [vmem:[#allocation114_spill] sm:$0xff] %v10355_v15  ;;  %3144 = vmatpush.bf16.msra.mxu0 %v7692_v11 }
 0x1b5   : > { %12774 = vst [vmem:[#allocation115_spill] sm:$0xff] %v10357_v35  ;;  %v10361_v57 = vor.u32 %v8859_v51, %v7505_v61  ;;  %v7523_v51 = vld [vmem:[%s9761_s9 + $0x350] sm:$0xf]  ;;  %v8868_v61 = vld [vmem:[%s9761_s9 + $0x368] sm:$0xf0] }
 0x1b6   : > { %v2817_v33 = vadd.f32 %v2816_v13, %v2728_v6 }
 0x1b7   : > { %3233 = vmatpush.bf16.msra.mxu1 %v7820_v3  ;;  %12776 = vst [vmem:[#allocation117_spill] sm:$0xff] %v10361_v57 }
 0x1b8   : > { %v10352_v19 = vadd.f32 %v2905_v62, %v2817_v33  ;;  %v2640_v36 = vpop.f32.mrf.mxu2 }
 0x1b9   : > { %v2641_v13 = vadd.f32 %v2640_v36, %v10124_v21  ;;  %v8995_v21 = vld [vmem:[#allocation4 + $0x3e4] sm:$0xf]  ;;  %v7531_v36 = vld [vmem:[%s9761_s9 + $0x358] sm:$0xf] }
 0x1ba   : > { %12772 = vst [vmem:[#allocation113_spill] sm:$0xff] %v10352_v19  ;;  %v2821_v59 = vpop.f32.mrf.mxu0  ;;  %v7676_v19 = vor.u32 %v8903_v49, %v7673_v0  ;;  %v8044_v11 = vor.u32 %v8995_v21, %v8041_v23  ;;  %v10381_v23 = vor.u32 %v8868_v61, %v7523_v51 }
 0x1bb   : > { %v2729_v6 = vpop.f32.mrf.mxu3  ;;  %v2910_v33 = vpop.f32.mrf.mxu1  ;;  %3234 = vmatpush.bf16.msra.mxu1 %v7804_v37 }
 0x1bc   : > { %v2730_v62 = vadd.f32 %v2729_v6, %v2641_v13  ;;  %3145 = vmatpush.bf16.msra.mxu0 %v7676_v19  ;;  %3316 = vmatpush.bf16.msrb.mxu2 %v8044_v11  ;;  %v8865_v19 = vld [vmem:[%s9761_s9 + $0x354] sm:$0xf]  ;;  %v8866_v13 = vld [vmem:[%s9761_s9 + $0x35c] sm:$0xf]  ;;  %v7533_v6 = vld [vmem:[%s9761_s9 + $0x374] sm:$0xf0] }
 0x1bd   : > { %2682 = vmatmul.bf16.gmra.mxu2 %v10355_v15  ;;  %2860 = vmatmul.bf16.gmra.mxu0 %v10357_v35  ;;  %12777 = vst [vmem:[#allocation118_spill] sm:$0xff] %v10381_v23  ;;  %v8849_v35 = vld [vmem:[%s9761_s9 + $0x2d0] sm:$0xf0] }
 0x1be   : > { %v2819_v7 = vadd.f32 %v2818_v55, %v2730_v62  ;;  %2949 = vmatmul.bf16.gmra.mxu1 %v10361_v57  ;;  %v8172_v55 = vor.u32 %v9027_v14, %v8169_v52  ;;  %v10387_v52 = vor.u32 %v8866_v13, %v7533_v6 }
 0x1c0   : > { %2771 = vmatmul.bf16.gmra.mxu3 %v10359_v41  ;;  %v10367_v0 = vadd.f32 %v2907_v54, %v2819_v7  ;;  %v2643_v49 = vpop.f32.mrf.mxu2  ;;  %v8869_v7 = vld [vmem:[%s9761_s9 + $0x370] sm:$0xf0]  ;;  %v7525_v54 = vld [vmem:[%s9761_s9 + $0x36c] sm:$0xf0]  ;;  %12780 = vst [vmem:[#allocation121_spill] sm:$0xff] %v10387_v52 }
 0x1c1   : > { %v2644_v17 = vadd.f32 %v2643_v49, %v10146_v44  ;;  %3405 = vmatpush.bf16.msrb.mxu3 %v8172_v55  ;;  %v10383_v14 = vor.u32 %v8869_v7, %v7531_v36  ;;  %v7119_v36 = vld [vmem:[%s9761_s9 + $0x18] sm:$0xf] }
 0x1c2   : > { %v2823_v12 = vpop.f32.mrf.mxu0 }
 0x1c3   : > { %v2732_v50 = vpop.f32.mrf.mxu3  ;;  %v2912_v37 = vpop.f32.mrf.mxu1  ;;  %12778 = vst [vmem:[#allocation119_spill] sm:$0xff] %v10383_v14 }
 0x1c4   : > { %v2733_v3 = vadd.f32 %v2732_v50, %v2644_v17 }
 0x1c6   : > { %v2822_v43 = vadd.f32 %v2821_v59, %v2733_v3  ;;  %v10385_v59 = vor.u32 %v8865_v19, %v7525_v54 }
 0x1c8   : > { %v10378_v26 = vadd.f32 %v2910_v33, %v2822_v43  ;;  %v2645_v62 = vpop.f32.mrf.mxu2  ;;  %12779 = vst [vmem:[#allocation120_spill] sm:$0xff] %v10385_v59 }
 0x1c9   : > { %v2646_v44 = vadd.f32 %v2645_v62, %v10156_v2 }
 0x1ca   : > { %v2826_v11 = vpop.f32.mrf.mxu0 }
 0x1cb   : > { %v2734_v21 = vpop.f32.mrf.mxu3  ;;  %v2915_v55 = vpop.f32.mrf.mxu1 }
 0x1cc   : > { %v2735_v49 = vadd.f32 %v2734_v21, %v2646_v44 }
 0x1cd   : > { %2687 = vmatmul.bf16.gmra.mxu2 %v10381_v23  ;;  %2865 = vmatmul.bf16.gmra.mxu0 %v10383_v14 }
 0x1ce   : > { %v2824_v17 = vadd.f32 %v2823_v12, %v2735_v49  ;;  %2954 = vmatmul.bf16.gmra.mxu1 %v10387_v52  ;;  %v8765_v12 = vld [vmem:[%s9761_s9 + $0x30] sm:$0xf0] }
 0x1cf   : > { %v10401_v62 = vor.u32 %v8765_v12, %v7119_v36 }
 0x1d0   : > { %2776 = vmatmul.bf16.gmra.mxu3 %v10385_v59  ;;  %v10393_v2 = vadd.f32 %v2912_v37, %v2824_v17  ;;  %v2648_v33 = vpop.f32.mrf.mxu2  ;;  %v8153_v17 = vld [vmem:[#allocation4 + $0x4d0] sm:$0xf0] }
 0x1d1   : > { %v2649_v50 = vadd.f32 %v2648_v33, %v10178_v45  ;;  %12781 = vst [vmem:[#allocation122_spill] sm:$0xff] %v10401_v62  ;;  %v8991_v45 = vld [vmem:[#allocation4 + $0x3c4] sm:$0xf] }
 0x1d2   : > { %v2828_v43 = vpop.f32.mrf.mxu0 }
 0x1d3   : > { %v2737_v3 = vpop.f32.mrf.mxu3  ;;  %v2917_v61 = vpop.f32.mrf.mxu1 }
 0x1d4   : > { %v2738_v51 = vadd.f32 %v2737_v3, %v2649_v50 }
 0x1d6   : > { %v2827_v19 = vadd.f32 %v2826_v11, %v2738_v51  ;;  %v8025_v11 = vld [vmem:[#allocation4 + $0x3d0] sm:$0xf0] }
 0x1d8   : > { %v10398_v7 = vadd.f32 %v2915_v55, %v2827_v19  ;;  %v2650_v54 = vpop.f32.mrf.mxu2  ;;  %v8028_v55 = vor.u32 %v8991_v45, %v8025_v11 }
 0x1d9   : > { %v2651_v13 = vadd.f32 %v2650_v54, %v10189_v5  ;;  %v9023_v5 = vld [vmem:[#allocation4 + $0x4c4] sm:$0xf] }
 0x1da   : > { %v2831_v37 = vpop.f32.mrf.mxu0  ;;  %v8156_v3 = vor.u32 %v9023_v5, %v8153_v17  ;;  %3317 = vmatpush.bf16.msrb.mxu2 %v8028_v55 }
 0x1db   : > { %v2739_v6 = vpop.f32.mrf.mxu3  ;;  %v2920_v21 = vpop.f32.mrf.mxu1 }
 0x1dc   : > { %v2740_v44 = vadd.f32 %v2739_v6, %v2651_v13  ;;  %3406 = vmatpush.bf16.msrb.mxu3 %v8156_v3  ;;  %v7147_v13 = vld [vmem:[%s9761_s9 + $0x50] sm:$0xf]  ;;  %v8772_v6 = vld [vmem:[%s9761_s9 + $0x68] sm:$0xf0] }
 0x1dd   : > { %2968 = vmatmul.bf16.vlgmr.msra.gmra.mxu2 %v10401_v62  ;;  %3146 = vmatmul.bf16.vlgmr.msra.gmra.mxu0 %v9787_v4 }
 0x1de   : > { %v2829_v49 = vadd.f32 %v2828_v43, %v2740_v44  ;;  %3235 = vmatmul.bf16.vlgmr.msra.gmra.mxu1 %v9945_v56  ;;  %v8828_v56 = vld [vmem:[%s9761_s9 + $0x228] sm:$0xf0] }
 0x1e0   : > { %3057 = vmatmul.bf16.vlgmr.msra.gmra.mxu3 %v9783_v63  ;;  %v10407_v33 = vadd.f32 %v2917_v61, %v2829_v49  ;;  %v2653_v50 = vpop.f32.mrf.mxu2  ;;  %v10415_v49 = vor.u32 %v8772_v6, %v7147_v13 }
 0x1e1   : > { %v2654_v43 = vadd.f32 %v2653_v50, %v9961_v34 }
 0x1e2   : > { %v2833_v19 = vpop.f32.mrf.mxu0  ;;  %12782 = vst [vmem:[#allocation123_spill] sm:$0xff] %v10415_v49 }
 0x1e3   : > { %v2742_v51 = vpop.f32.mrf.mxu3  ;;  %v2922_v12 = vpop.f32.mrf.mxu1 }
 0x1e4   : > { %v2743_v36 = vadd.f32 %v2742_v51, %v2654_v43  ;;  %v7175_v51 = vld [vmem:[%s9761_s9 + $0x88] sm:$0xf] }
 0x1e6   : > { %v2832_v54 = vadd.f32 %v2831_v37, %v2743_v36 }
 0x1e8   : > { %v10412_v44 = vadd.f32 %v2920_v21, %v2832_v54  ;;  %v2655_v4 = vpop.f32.mrf.mxu2 }
 0x1e9   : > { %v2656_v45 = vadd.f32 %v2655_v4, %v9983_v28 }
 0x1ea   : > { %v2836_v11 = vpop.f32.mrf.mxu0 }
 0x1eb   : > { %v2744_v61 = vpop.f32.mrf.mxu3  ;;  %v2925_v5 = vpop.f32.mrf.mxu1 }
 0x1ec   : > { %v2745_v34 = vadd.f32 %v2744_v61, %v2656_v45 }
 0x1ed   : > { %2973 = vmatmul.bf16.gmra.mxu2 %v10415_v49  ;;  %3151 = vmatmul.bf16.gmra.mxu0 %v9807_v24  ;;  %v8821_v24 = vld [vmem:[%s9761_s9 + $0x1f0] sm:$0xf0] }
 0x1ee   : > { %v2834_v55 = vadd.f32 %v2833_v19, %v2745_v34  ;;  %3240 = vmatmul.bf16.gmra.mxu1 %v9975_v8  ;;  %v8779_v19 = vld [vmem:[%s9761_s9 + $0xa0] sm:$0xf0] }
 0x1ef   : > { %v10429_v45 = vor.u32 %v8779_v19, %v7175_v51 }
 0x1f0   : > { %3062 = vmatmul.bf16.gmra.mxu3 %v9803_v22  ;;  %v10421_v37 = vadd.f32 %v2922_v12, %v2834_v55  ;;  %v2658_v4 = vpop.f32.mrf.mxu2 }
 0x1f1   : > { %v2659_v28 = vadd.f32 %v2658_v4, %v9993_v46  ;;  %12783 = vst [vmem:[#allocation124_spill] sm:$0xff] %v10429_v45  ;;  %v8987_v46 = vld [vmem:[#allocation4 + $0x3a4] sm:$0xf]  ;;  %v8137_v4 = vld [vmem:[#allocation4 + $0x4b0] sm:$0xf0] }
 0x1f2   : > { %v2838_v17 = vpop.f32.mrf.mxu0 }
 0x1f3   : > { %v2747_v21 = vpop.f32.mrf.mxu3  ;;  %v2927_v3 = vpop.f32.mrf.mxu1 }
 0x1f4   : > { %v2748_v50 = vadd.f32 %v2747_v21, %v2659_v28 }
 0x1f6   : > { %v2837_v43 = vadd.f32 %v2836_v11, %v2748_v50  ;;  %v8009_v11 = vld [vmem:[#allocation4 + $0x3b0] sm:$0xf0] }
 0x1f8   : > { %v10426_v36 = vadd.f32 %v2925_v5, %v2837_v43  ;;  %v2660_v54 = vpop.f32.mrf.mxu2  ;;  %v8012_v5 = vor.u32 %v8987_v46, %v8009_v11 }
 0x1f9   : > { %v2661_v13 = vadd.f32 %v2660_v54, %v10015_v48  ;;  %v9019_v48 = vld [vmem:[#allocation4 + $0x4a4] sm:$0xf] }
 0x1fa   : > { %v2841_v12 = vpop.f32.mrf.mxu0  ;;  %v8140_v50 = vor.u32 %v9019_v48, %v8137_v4  ;;  %3318 = vmatpush.bf16.msrb.mxu2 %v8012_v5 }
 0x1fb   : > { %v2749_v6 = vpop.f32.mrf.mxu3  ;;  %v2930_v34 = vpop.f32.mrf.mxu1 }
 0x1fc   : > { %v2750_v61 = vadd.f32 %v2749_v6, %v2661_v13  ;;  %3407 = vmatpush.bf16.msrb.mxu3 %v8140_v50  ;;  %v7203_v6 = vld [vmem:[%s9761_s9 + $0xc0] sm:$0xf] }
 0x1fd   : > { %2978 = vmatmul.bf16.gmra.mxu2 %v10429_v45  ;;  %3156 = vmatmul.bf16.gmra.mxu0 %v9827_v42 }
 0x1fe   : > { %v2839_v55 = vadd.f32 %v2838_v17, %v2750_v61  ;;  %3245 = vmatmul.bf16.gmra.mxu1 %v10007_v20  ;;  %v8786_v61 = vld [vmem:[%s9761_s9 + $0xd8] sm:$0xf0] }
 0x200   : > { %3067 = vmatmul.bf16.gmra.mxu3 %v9823_v40  ;;  %v10435_v28 = vadd.f32 %v2927_v3, %v2839_v55  ;;  %v2663_v21 = vpop.f32.mrf.mxu2  ;;  %v10443_v55 = vor.u32 %v8786_v61, %v7203_v6 }
 0x201   : > { %v2664_v17 = vadd.f32 %v2663_v21, %v10025_v29 }
 0x202   : > { %v2843_v51 = vpop.f32.mrf.mxu0  ;;  %12784 = vst [vmem:[#allocation125_spill] sm:$0xff] %v10443_v55 }
 0x203   : > { %v2752_v43 = vpop.f32.mrf.mxu3  ;;  %v2932_v54 = vpop.f32.mrf.mxu1 }
 0x204   : > { %v2753_v19 = vadd.f32 %v2752_v43, %v2664_v17  ;;  %v7231_v43 = vld [vmem:[%s9761_s9 + $0xf8] sm:$0xf] }
 0x206   : > { %v2842_v13 = vadd.f32 %v2841_v12, %v2753_v19 }
 0x208   : > { %v10440_v42 = vadd.f32 %v2930_v34, %v2842_v13  ;;  %v2665_v20 = vpop.f32.mrf.mxu2 }
 0x209   : > { %v2666_v46 = vadd.f32 %v2665_v20, %v10047_v32 }
 0x20a   : > { %v2846_v11 = vpop.f32.mrf.mxu0 }
 0x20b   : > { %v2754_v3 = vpop.f32.mrf.mxu3  ;;  %v2935_v48 = vpop.f32.mrf.mxu1 }
 0x20c   : > { %v2755_v29 = vadd.f32 %v2754_v3, %v2666_v46 }
 0x20d   : > { %2983 = vmatmul.bf16.gmra.mxu2 %v10443_v55  ;;  %3161 = vmatmul.bf16.gmra.mxu0 %v9847_v60 }
 0x20e   : > { %v2844_v5 = vadd.f32 %v2843_v51, %v2755_v29  ;;  %3250 = vmatmul.bf16.gmra.mxu1 %v10039_v27  ;;  %v8793_v51 = vld [vmem:[%s9761_s9 + $0x110] sm:$0xf0]  ;;  %v8814_v27 = vld [vmem:[%s9761_s9 + $0x1b8] sm:$0xf0] }
 0x20f   : > { %v10457_v46 = vor.u32 %v8793_v51, %v7231_v43 }
 0x210   : > { %3072 = vmatmul.bf16.gmra.mxu3 %v9843_v58  ;;  %v10449_v12 = vadd.f32 %v2932_v54, %v2844_v5  ;;  %v2668_v20 = vpop.f32.mrf.mxu2 }
 0x211   : > { %v2669_v32 = vadd.f32 %v2668_v20, %v10057_v39  ;;  %12785 = vst [vmem:[#allocation126_spill] sm:$0xff] %v10457_v46  ;;  %v8983_v39 = vld [vmem:[#allocation4 + $0x384] sm:$0xf]  ;;  %v8121_v20 = vld [vmem:[#allocation4 + $0x490] sm:$0xf0] }
 0x212   : > { %v2848_v4 = vpop.f32.mrf.mxu0 }
 0x213   : > { %v2757_v34 = vpop.f32.mrf.mxu3  ;;  %v2937_v50 = vpop.f32.mrf.mxu1 }
 0x214   : > { %v2758_v21 = vadd.f32 %v2757_v34, %v2669_v32 }
 0x216   : > { %v2847_v17 = vadd.f32 %v2846_v11, %v2758_v21  ;;  %v7993_v11 = vld [vmem:[#allocation4 + $0x390] sm:$0xf0] }
 0x218   : > { %v10454_v19 = vadd.f32 %v2935_v48, %v2847_v17  ;;  %v2670_v13 = vpop.f32.mrf.mxu2  ;;  %v7996_v48 = vor.u32 %v8983_v39, %v7993_v11 }
 0x219   : > { %v2671_v6 = vadd.f32 %v2670_v13, %v10079_v47  ;;  %v9015_v47 = vld [vmem:[#allocation4 + $0x484] sm:$0xf] }
 0x21a   : > { %v2851_v54 = vpop.f32.mrf.mxu0  ;;  %v8124_v21 = vor.u32 %v9015_v47, %v8121_v20  ;;  %3319 = vmatpush.bf16.msrb.mxu2 %v7996_v48  ;;  %v12787_v20 = vld [vmem:[#allocation35_spill] sm:$0xff] }
 0x21b   : > { %v2759_v61 = vpop.f32.mrf.mxu3  ;;  %v2940_v29 = vpop.f32.mrf.mxu1 }
 0x21c   : > { %v2760_v3 = vadd.f32 %v2759_v61, %v2671_v6  ;;  %3408 = vmatpush.bf16.msrb.mxu3 %v8124_v21  ;;  %v7259_v61 = vld [vmem:[%s9761_s9 + $0x130] sm:$0xf] }
 0x21d   : > { %2988 = vmatmul.bf16.gmra.mxu2 %v10457_v46  ;;  %3166 = vmatmul.bf16.gmra.mxu0 %v9867_v18 }
 0x21e   : > { %v2849_v5 = vadd.f32 %v2848_v4, %v2760_v3  ;;  %3255 = vmatmul.bf16.gmra.mxu1 %v10071_v10  ;;  %v8800_v3 = vld [vmem:[%s9761_s9 + $0x148] sm:$0xf0] }
 0x220   : > { %3077 = vmatmul.bf16.gmra.mxu3 %v9863_v16  ;;  %v10463_v32 = vadd.f32 %v2937_v50, %v2849_v5  ;;  %v2673_v34 = vpop.f32.mrf.mxu2  ;;  %v10471_v5 = vor.u32 %v8800_v3, %v7259_v61  ;;  %v7287_v3 = vld [vmem:[%s9761_s9 + $0x168] sm:$0xf] }
 0x221   : > { %v2674_v4 = vadd.f32 %v2673_v34, %v10089_v53 }
 0x222   : > { %v2853_v43 = vpop.f32.mrf.mxu0  ;;  %12786 = vst [vmem:[#allocation127_spill] sm:$0xff] %v10471_v5 }
 0x223   : > { %v2762_v17 = vpop.f32.mrf.mxu3  ;;  %v2942_v13 = vpop.f32.mrf.mxu1 }
 0x224   : > { %v2763_v51 = vadd.f32 %v2762_v17, %v2674_v4 }
 0x226   : > { %v2852_v6 = vadd.f32 %v2851_v54, %v2763_v51  ;;  %v12788_v54 = vld [vmem:[#allocation33_spill] sm:$0xff] }
 0x228   : > { %v10468_v18 = vadd.f32 %v2940_v29, %v2852_v6  ;;  %v2675_v10 = vpop.f32.mrf.mxu2  ;;  %v12789_v29 = vld [vmem:[#allocation65_spill] sm:$0xff] }
 0x229   : > { %v2676_v39 = vadd.f32 %v2675_v10, %v10111_v1  ;;  %v12790_v1 = vld [vmem:[#allocation69_spill] sm:$0xff] }
 0x22a   : > { %v2856_v11 = vpop.f32.mrf.mxu0 }
 0x22b   : > { %v2764_v50 = vpop.f32.mrf.mxu3  ;;  %v2945_v47 = vpop.f32.mrf.mxu1 }
 0x22c   : > { %v2765_v53 = vadd.f32 %v2764_v50, %v2676_v39 }
 0x22d   : > { %2993 = vmatmul.bf16.gmra.mxu2 %v10471_v5  ;;  %3171 = vmatmul.bf16.gmra.mxu0 %v12787_v20 }
 0x22e   : > { %v2854_v48 = vadd.f32 %v2853_v43, %v2765_v53  ;;  %3260 = vmatmul.bf16.gmra.mxu1 %v12789_v29  ;;  %v8807_v43 = vld [vmem:[%s9761_s9 + $0x180] sm:$0xf0]  ;;  %v12791_v53 = vld [vmem:[#allocation74_spill] sm:$0xff] }
 0x22f   : > { %v10485_v16 = vor.u32 %v8807_v43, %v7287_v3 }
 0x230   : > { %3082 = vmatmul.bf16.gmra.mxu3 %v12788_v54  ;;  %v10477_v34 = vadd.f32 %v2942_v13, %v2854_v48  ;;  %v2678_v10 = vpop.f32.mrf.mxu2 }
 0x231   : > { %v2679_v21 = vadd.f32 %v2678_v10, %v12790_v1  ;;  %12792 = vst [vmem:[#allocation69_spill] sm:$0xff] %v10485_v16  ;;  %v12793_v10 = vld [vmem:[#allocation39_spill] sm:$0xff]  ;;  %v12794_v1 = vld [vmem:[#allocation37_spill] sm:$0xff] }
 0x232   : > { %v2858_v17 = vpop.f32.mrf.mxu0 }
 0x233   : > { %v2767_v4 = vpop.f32.mrf.mxu3  ;;  %v2947_v6 = vpop.f32.mrf.mxu1 }
 0x234   : > { %v2768_v51 = vadd.f32 %v2767_v4, %v2679_v21  ;;  %v7977_v21 = vld [vmem:[#allocation4 + $0x370] sm:$0xf0]  ;;  %v9011_v4 = vld [vmem:[#allocation4 + $0x464] sm:$0xf] }
 0x236   : > { %v2857_v61 = vadd.f32 %v2856_v11, %v2768_v51  ;;  %v12795_v11 = vld [vmem:[#allocation70_spill] sm:$0xff] }
 0x238   : > { %v10482_v39 = vadd.f32 %v2945_v47, %v2857_v61  ;;  %v2680_v50 = vpop.f32.mrf.mxu2  ;;  %v8979_v47 = vld [vmem:[#allocation4 + $0x364] sm:$0xf]  ;;  %v8105_v61 = vld [vmem:[#allocation4 + $0x470] sm:$0xf0] }
 0x239   : > { %v2681_v20 = vadd.f32 %v2680_v50, %v12791_v53  ;;  %v7980_v51 = vor.u32 %v8979_v47, %v7977_v21  ;;  %v12797_v47 = vld [vmem:[#allocation80_spill] sm:$0xff] }
 0x23a   : > { %v2861_v13 = vpop.f32.mrf.mxu0 }
 0x23b   : > { %v2769_v54 = vpop.f32.mrf.mxu3  ;;  %v2950_v29 = vpop.f32.mrf.mxu1  ;;  %3320 = vmatpush.bf16.msrb.mxu2 %v7980_v51  ;;  %v12799_v51 = vld [vmem:[#allocation43_spill] sm:$0xff] }
 0x23c   : > { %v2770_v48 = vadd.f32 %v2769_v54, %v2681_v20  ;;  %v8108_v54 = vor.u32 %v9011_v4, %v8105_v61 }
 0x23d   : > { %2998 = vmatmul.bf16.gmra.mxu2 %v10485_v16  ;;  %3176 = vmatmul.bf16.gmra.mxu0 %v12793_v10 }
 0x23e   : > { %v2859_v60 = vadd.f32 %v2858_v17, %v2770_v48  ;;  %3265 = vmatmul.bf16.gmra.mxu1 %v12795_v11  ;;  %v12796_v17 = vld [vmem:[#allocation75_spill] sm:$0xff]  ;;  %3409 = vmatpush.bf16.msrb.mxu3 %v8108_v54  ;;  %v12800_v54 = vld [vmem:[#allocation41_spill] sm:$0xff] }
 0x240   : > { %3087 = vmatmul.bf16.gmra.mxu3 %v12794_v1  ;;  %v10491_v3 = vadd.f32 %v2947_v6, %v2859_v60  ;;  %v2683_v20 = vpop.f32.mrf.mxu2  ;;  %v7315_v1 = vld [vmem:[%s9761_s9 + $0x1a0] sm:$0xf] }
 0x241   : > { %v2684_v43 = vadd.f32 %v2683_v20, %v12796_v17  ;;  %v10499_v6 = vor.u32 %v8814_v27, %v7315_v1  ;;  %v12802_v1 = vld [vmem:[#allocation81_spill] sm:$0xff] }
 0x242   : > { %v2863_v53 = vpop.f32.mrf.mxu0 }
 0x243   : > { %v2772_v50 = vpop.f32.mrf.mxu3  ;;  %v2952_v10 = vpop.f32.mrf.mxu1  ;;  %12798 = vst [vmem:[#allocation74_spill] sm:$0xff] %v10499_v6 }
 0x244   : > { %v2773_v48 = vadd.f32 %v2772_v50, %v2684_v43 }
 0x246   : > { %v2862_v11 = vadd.f32 %v2861_v13, %v2773_v48  ;;  %v12801_v13 = vld [vmem:[#allocation76_spill] sm:$0xff] }
 0x248   : > { %v10496_v58 = vadd.f32 %v2950_v29, %v2862_v11  ;;  %v2685_v40 = vpop.f32.mrf.mxu2  ;;  %v9059_v29 = vld [vmem:[#allocation4 + $0x5e4] sm:$0xf]  ;;  %v8297_v11 = vld [vmem:[#allocation4 + $0x5f0] sm:$0xf0] }
 0x249   : > { %v2686_v21 = vadd.f32 %v2685_v40, %v12797_v47  ;;  %v8300_v40 = vor.u32 %v9059_v29, %v8297_v11 }
 0x24a   : > { %v2866_v4 = vpop.f32.mrf.mxu0 }
 0x24b   : > { %v2774_v60 = vpop.f32.mrf.mxu3  ;;  %v2955_v20 = vpop.f32.mrf.mxu1  ;;  %3494 = vmatpush.bf16.msrb.mxu0 %v8300_v40 }
 0x24c   : > { %v2775_v61 = vadd.f32 %v2774_v60, %v2686_v21  ;;  %v9091_v60 = vld [vmem:[#allocation4 + $0x6e4] sm:$0xf] }
 0x24d   : > { %3003 = vmatmul.bf16.gmra.mxu2 %v10499_v6  ;;  %3181 = vmatmul.bf16.gmra.mxu0 %v12799_v51 }
 0x24e   : > { %v2864_v17 = vadd.f32 %v2863_v53, %v2775_v61  ;;  %3270 = vmatmul.bf16.gmra.mxu1 %v12801_v13  ;;  %v8425_v61 = vld [vmem:[#allocation4 + $0x6f0] sm:$0xf0]  ;;  %v7343_v13 = vld [vmem:[%s9761_s9 + $0x1d8] sm:$0xf] }
 0x24f   : > { %v10513_v22 = vor.u32 %v8821_v24, %v7343_v13  ;;  %v9007_v24 = vld [vmem:[#allocation4 + $0x444] sm:$0xf] }
 0x250   : > { %3092 = vmatmul.bf16.gmra.mxu3 %v12800_v54  ;;  %v10505_v43 = vadd.f32 %v2952_v10, %v2864_v17  ;;  %v2688_v27 = vpop.f32.mrf.mxu2  ;;  %v8428_v54 = vor.u32 %v9091_v60, %v8425_v61  ;;  %v12803_v10 = vld [vmem:[#allocation86_spill] sm:$0xff]  ;;  %v7961_v60 = vld [vmem:[#allocation4 + $0x350] sm:$0xf0] }
 0x251   : > { %v2689_v50 = vadd.f32 %v2688_v27, %v12802_v1  ;;  %12804 = vst [vmem:[#allocation75_spill] sm:$0xff] %v10513_v22  ;;  %v8089_v61 = vld [vmem:[#allocation4 + $0x450] sm:$0xf0] }
 0x252   : > { %v2868_v53 = vpop.f32.mrf.mxu0  ;;  %3583 = vmatpush.bf16.msrb.mxu1 %v8428_v54  ;;  %v12806_v54 = vld [vmem:[#allocation14_spill] sm:$0xff] }
 0x253   : > { %v2777_v48 = vpop.f32.mrf.mxu3  ;;  %v2957_v21 = vpop.f32.mrf.mxu1 }
 0x254   : > { %v2778_v47 = vadd.f32 %v2777_v48, %v2689_v50  ;;  %v12805_v48 = vld [vmem:[#allocation16_spill] sm:$0xff] }
 0x256   : > { %v2867_v51 = vadd.f32 %v2866_v4, %v2778_v47  ;;  %v9411_v4 = vld [vmem:[#allocation6] sm:$0xf] }
 0x257   : > { %v10517_v47 = vperm.slane %v9411_v4, 1 }
 0x258   : > { %v10510_v8 = vadd.f32 %v2955_v20, %v2867_v51  ;;  %v2690_v29 = vpop.f32.mrf.mxu2  ;;  %v12807_v20 = vld [vmem:[#allocation82_spill] sm:$0xff]  ;;  %v8975_v51 = vld [vmem:[#allocation4 + $0x344] sm:$0xf] }
 0x259   : > { %v2691_v17 = vadd.f32 %v2690_v29, %v12803_v10  ;;  %v7964_v13 = vor.u32 %v8975_v51, %v7961_v60  ;;  %v8092_v10 = vor.u32 %v9007_v24, %v8089_v61  ;;  %v12808_v60 = vld [vmem:[#allocation91_spill] sm:$0xff] }
 0x25a   : > { %v3147_v27 = vpop.f32.mrf.mxu0 }
 0x25b   : > { %v2779_v11 = vpop.f32.mrf.mxu3  ;;  %v3236_v1 = vpop.f32.mrf.mxu1  ;;  %3321 = vmatpush.bf16.msrb.mxu2 %v7964_v13  ;;  %3410 = vmatpush.bf16.msrb.mxu3 %v8092_v10 }
 0x25c   : > { %v2780_v40 = vadd.f32 %v2779_v11, %v2691_v17 }
 0x25d   : > { %3008 = vmatmul.bf16.gmra.mxu2 %v10513_v22  ;;  %3186 = vmatmul.bf16.gmra.mxu0 %v12805_v48 }
 0x25e   : > { %v2869_v50 = vadd.f32 %v2868_v53, %v2780_v40  ;;  %3275 = vmatmul.bf16.gmra.mxu1 %v12807_v20 }
 0x260   : > { %3097 = vmatmul.bf16.gmra.mxu3 %v12806_v54  ;;  %v10521_v29 = vadd.f32 %v2957_v21, %v2869_v50  ;;  %v2969_v53 = vpop.f32.mrf.mxu2  ;;  %v7371_v54 = vld [vmem:[%s9761_s9 + $0x210] sm:$0xf] }
 0x261   : > { %v2970_v17 = vadd.f32 %v2969_v53, %v10222_v9  ;;  %v10530_v14 = vor.u32 %v8828_v56, %v7371_v54  ;;  %v9055_v56 = vld [vmem:[#allocation4 + $0x5c4] sm:$0xf]  ;;  %v8281_v54 = vld [vmem:[#allocation4 + $0x5d0] sm:$0xf0] }
 0x262   : > { %v3149_v4 = vpop.f32.mrf.mxu0 }
 0x263   : > { %v3058_v11 = vpop.f32.mrf.mxu3  ;;  %v3238_v48 = vpop.f32.mrf.mxu1  ;;  %12809 = vst [vmem:[#allocation80_spill] sm:$0xff] %v10530_v14  ;;  %v4918_v13 = vmax.f32 %v2970_v17, 0.0  ;;  %v8284_v17 = vor.u32 %v9055_v56, %v8281_v54 }
 0x264   : > { %v3059_v40 = vadd.f32 %v3058_v11, %v10517_v47 }
 0x265   : > { %3495 = vmatpush.bf16.msrb.mxu0 %v8284_v17 }
 0x266   : > { %v3148_v20 = vadd.f32 %v3147_v27, %v3059_v40  ;;  %v12811_v27 = vld [vmem:[#allocation20_spill] sm:$0xff] }
 0x268   : > { %v10527_v63 = vadd.f32 %v3236_v1, %v3148_v20  ;;  %v2971_v51 = vpop.f32.mrf.mxu2  ;;  %v12812_v1 = vld [vmem:[#allocation18_spill] sm:$0xff]  ;;  %v12813_v20 = vld [vmem:[#allocation87_spill] sm:$0xff] }
 0x269   : > { %v2972_v21 = vadd.f32 %v2971_v51, %v12808_v60 }
 0x26a   : > { %v3152_v24 = vpop.f32.mrf.mxu0 }
 0x26b   : > { %v3060_v50 = vpop.f32.mrf.mxu3  ;;  %v4922_v61 = vmax.f32 %v2972_v21, 0.0  ;;  %v3241_v53 = vpop.f32.mrf.mxu1 }
 0x26c   : > { %v3061_v9 = vadd.f32 %v3060_v50, %v10517_v47 }
 0x26d   : > { %v10533_v10 = vpack.c.bf16 %v4922_v61, %v4918_v13  ;;  %3013 = vmatmul.bf16.gmra.mxu2 %v10530_v14  ;;  %3191 = vmatmul.bf16.gmra.mxu0 %v12811_v27  ;;  %v9087_v61 = vld [vmem:[#allocation4 + $0x6c4] sm:$0xf] }
 0x26e   : > { %v3150_v11 = vadd.f32 %v3149_v4, %v3061_v9  ;;  %3280 = vmatmul.bf16.gmra.mxu1 %v12813_v20  ;;  %v7399_v20 = vld [vmem:[%s9761_s9 + $0x248] sm:$0xf] }
 0x26f   : > { %12810 = vst [vmem:[#allocation81_spill] sm:$0xff] %v10533_v10  ;;  %v8409_v10 = vld [vmem:[#allocation4 + $0x6d0] sm:$0xf0] }
 0x270   : > { %3102 = vmatmul.bf16.gmra.mxu3 %v12812_v1  ;;  %v10539_v40 = vadd.f32 %v3238_v48, %v3150_v11  ;;  %v2974_v51 = vpop.f32.mrf.mxu2  ;;  %v8412_v27 = vor.u32 %v9087_v61, %v8409_v10  ;;  %v8835_v1 = vld [vmem:[%s9761_s9 + $0x260] sm:$0xf0]  ;;  %v12815_v10 = vld [vmem:[#allocation24_spill] sm:$0xff]  ;;  %v8073_v61 = vld [vmem:[#allocation4 + $0x430] sm:$0xf0] }
 0x271   : > { %v2975_v4 = vadd.f32 %v2974_v51, %v10248_v31  ;;  %v10548_v31 = vor.u32 %v8835_v1, %v7399_v20  ;;  %v7945_v1 = vld [vmem:[#allocation4 + $0x330] sm:$0xf0]  ;;  %v9003_v20 = vld [vmem:[#allocation4 + $0x424] sm:$0xf] }
 0x272   : > { %v3154_v50 = vpop.f32.mrf.mxu0  ;;  %3584 = vmatpush.bf16.msrb.mxu1 %v8412_v27  ;;  %v12817_v27 = vld [vmem:[#allocation22_spill] sm:$0xff] }
 0x273   : > { %v3063_v60 = vpop.f32.mrf.mxu3  ;;  %v3243_v9 = vpop.f32.mrf.mxu1  ;;  %12814 = vst [vmem:[#allocation86_spill] sm:$0xff] %v10548_v31  ;;  %v4926_v51 = vmax.f32 %v2975_v4, 0.0 }
 0x274   : > { %v3064_v21 = vadd.f32 %v3063_v60, %v10517_v47 }
 0x276   : > { %v3153_v13 = vadd.f32 %v3152_v24, %v3064_v21 }
 0x278   : > { %v10545_v52 = vadd.f32 %v3241_v53, %v3153_v13  ;;  %v2976_v48 = vpop.f32.mrf.mxu2 }
 0x279   : > { %v2977_v11 = vadd.f32 %v2976_v48, %v10263_v25  ;;  %v8971_v25 = vld [vmem:[#allocation4 + $0x324] sm:$0xf]  ;;  %v8076_v48 = vor.u32 %v9003_v20, %v8073_v61 }
 0x27a   : > { %v3157_v17 = vpop.f32.mrf.mxu0  ;;  %v7948_v4 = vor.u32 %v8971_v25, %v7945_v1 }
 0x27b   : > { %v3065_v56 = vpop.f32.mrf.mxu3  ;;  %v4930_v60 = vmax.f32 %v2977_v11, 0.0  ;;  %v3246_v24 = vpop.f32.mrf.mxu1  ;;  %3411 = vmatpush.bf16.msrb.mxu3 %v8076_v48 }
 0x27c   : > { %v3066_v54 = vadd.f32 %v3065_v56, %v10517_v47  ;;  %3322 = vmatpush.bf16.msrb.mxu2 %v7948_v4 }
 0x27d   : > { %3018 = vmatmul.bf16.gmra.mxu2 %v10548_v31  ;;  %3196 = vmatmul.bf16.gmra.mxu0 %v12815_v10  ;;  %v10553_v53 = vpack.c.bf16 %v4930_v60, %v4926_v51  ;;  %v7427_v10 = vld [vmem:[%s9761_s9 + $0x280] sm:$0xf] }
 0x27e   : > { %v3155_v21 = vadd.f32 %v3154_v50, %v3066_v54  ;;  %3285 = vmatmul.bf16.gmra.mxu1 %v10251_v30  ;;  %v8842_v30 = vld [vmem:[%s9761_s9 + $0x298] sm:$0xf0] }
 0x27f   : > { %12816 = vst [vmem:[#allocation91_spill] sm:$0xff] %v10553_v53  ;;  %v10566_v59 = vor.u32 %v8842_v30, %v7427_v10  ;;  %v9051_v30 = vld [vmem:[#allocation4 + $0x5a4] sm:$0xf]  ;;  %v8265_v10 = vld [vmem:[#allocation4 + $0x5b0] sm:$0xf0] }
 0x280   : > { %3107 = vmatmul.bf16.gmra.mxu3 %v12817_v27  ;;  %v10557_v13 = vadd.f32 %v3243_v9, %v3155_v21  ;;  %v2979_v50 = vpop.f32.mrf.mxu2  ;;  %v12819_v21 = vld [vmem:[#allocation100_spill] sm:$0xff] }
 0x281   : > { %v2980_v11 = vadd.f32 %v2979_v50, %v10274_v38  ;;  %12820 = vst [vmem:[#allocation100_spill] sm:$0xff] %v10566_v59 }
 0x282   : > { %v3159_v51 = vpop.f32.mrf.mxu0 }
 0x283   : > { %v3068_v56 = vpop.f32.mrf.mxu3  ;;  %v3248_v60 = vpop.f32.mrf.mxu1  ;;  %v4934_v4 = vmax.f32 %v2980_v11, 0.0  ;;  %v8268_v11 = vor.u32 %v9051_v30, %v8265_v10 }
 0x284   : > { %v3069_v54 = vadd.f32 %v3068_v56, %v10517_v47 }
 0x285   : > { %3496 = vmatpush.bf16.msrb.mxu0 %v8268_v11 }
 0x286   : > { %v3158_v53 = vadd.f32 %v3157_v17, %v3069_v54  ;;  %v12821_v17 = vld [vmem:[#allocation28_spill] sm:$0xff] }
 0x288   : > { %v10563_v27 = vadd.f32 %v3246_v24, %v3158_v53  ;;  %v2981_v9 = vpop.f32.mrf.mxu2  ;;  %v12823_v24 = vld [vmem:[#allocation26_spill] sm:$0xff]  ;;  %v12824_v53 = vld [vmem:[#allocation96_spill] sm:$0xff] }
 0x289   : > { %v2982_v25 = vadd.f32 %v2981_v9, %v12819_v21  ;;  %v12826_v21 = vld [vmem:[#allocation101_spill] sm:$0xff] }
 0x28a   : > { %12818 = vst [vmem:[#allocation128_spill] sm:$0xff] %v10563_v27  ;;  %v3162_v20 = vpop.f32.mrf.mxu0  ;;  %v9075_v27 = vld [vmem:[#allocation4 + $0x664] sm:$0xf] }
 0x28b   : > { %v3070_v1 = vpop.f32.mrf.mxu3  ;;  %v4938_v61 = vmax.f32 %v2982_v25, 0.0  ;;  %v3251_v50 = vpop.f32.mrf.mxu1 }
 0x28c   : > { %v3071_v38 = vadd.f32 %v3070_v1, %v10517_v47 }
 0x28d   : > { %3023 = vmatmul.bf16.gmra.mxu2 %v10566_v59  ;;  %3201 = vmatmul.bf16.gmra.mxu0 %v12821_v17  ;;  %v10571_v48 = vpack.c.bf16 %v4938_v61, %v4934_v4  ;;  %v8393_v17 = vld [vmem:[#allocation4 + $0x6b0] sm:$0xf0] }
 0x28e   : > { %v3160_v56 = vadd.f32 %v3159_v51, %v3071_v38  ;;  %3290 = vmatmul.bf16.gmra.mxu1 %v12824_v53 }
 0x28f   : > { %12822 = vst [vmem:[#allocation129_spill] sm:$0xff] %v10571_v48  ;;  %v9083_v48 = vld [vmem:[#allocation4 + $0x6a4] sm:$0xf] }
 0x290   : > { %3112 = vmatmul.bf16.gmra.mxu3 %v12823_v24  ;;  %v10575_v54 = vadd.f32 %v3248_v60, %v3160_v56  ;;  %v2984_v9 = vpop.f32.mrf.mxu2  ;;  %v8396_v53 = vor.u32 %v9083_v48, %v8393_v17  ;;  %v7455_v24 = vld [vmem:[%s9761_s9 + $0x2b8] sm:$0xf]  ;;  %v12828_v56 = vld [vmem:[#allocation106_spill] sm:$0xff]  ;;  %v12830_v17 = vld [vmem:[#allocation32_spill] sm:$0xff] }
 0x291   : > { %v2985_v51 = vadd.f32 %v2984_v9, %v12826_v21  ;;  %v10584_v9 = vor.u32 %v8849_v35, %v7455_v24  ;;  %v12832_v48 = vld [vmem:[#allocation30_spill] sm:$0xff]  ;;  %v7929_v35 = vld [vmem:[#allocation4 + $0x310] sm:$0xf0]  ;;  %v8999_v24 = vld [vmem:[#allocation4 + $0x404] sm:$0xf] }
 0x292   : > { %12825 = vst [vmem:[#allocation130_spill] sm:$0xff] %v10575_v54  ;;  %v3164_v38 = vpop.f32.mrf.mxu0  ;;  %3585 = vmatpush.bf16.msrb.mxu1 %v8396_v53  ;;  %v12833_v53 = vld [vmem:[#allocation102_spill] sm:$0xff] }
 0x293   : > { %v3073_v25 = vpop.f32.mrf.mxu3  ;;  %v3253_v4 = vpop.f32.mrf.mxu1  ;;  %12829 = vst [vmem:[#allocation106_spill] sm:$0xff] %v10584_v9 }
 0x294   : > { %v3074_v1 = vadd.f32 %v3073_v25, %v10517_v47  ;;  %v4942_v25 = vmax.f32 %v2985_v51, 0.0 }
 0x296   : > { %v3163_v61 = vadd.f32 %v3162_v20, %v3074_v1 }
 0x298   : > { %v10581_v57 = vadd.f32 %v3251_v50, %v3163_v61  ;;  %v2986_v60 = vpop.f32.mrf.mxu2  ;;  %v8967_v61 = vld [vmem:[#allocation4 + $0x304] sm:$0xf] }
 0x299   : > { %v2987_v30 = vadd.f32 %v2986_v60, %v12828_v56  ;;  %v7932_v51 = vor.u32 %v8967_v61, %v7929_v35  ;;  %v8057_v56 = vld [vmem:[#allocation4 + $0x410] sm:$0xf0]  ;;  %v9079_v35 = vld [vmem:[#allocation4 + $0x684] sm:$0xf] }
 0x29a   : > { %12827 = vst [vmem:[#allocation101_spill] sm:$0xff] %v10581_v57  ;;  %v3167_v21 = vpop.f32.mrf.mxu0  ;;  %v8249_v61 = vld [vmem:[#allocation4 + $0x590] sm:$0xf0] }
 0x29b   : > { %v3075_v10 = vpop.f32.mrf.mxu3  ;;  %v4946_v41 = vmax.f32 %v2987_v30, 0.0  ;;  %v3256_v20 = vpop.f32.mrf.mxu1  ;;  %v8060_v30 = vor.u32 %v8999_v24, %v8057_v56  ;;  %3323 = vmatpush.bf16.msrb.mxu2 %v7932_v51 }
 0x29c   : > { %v3076_v11 = vadd.f32 %v3075_v10, %v10517_v47  ;;  %v12835_v10 = vld [vmem:[#allocation107_spill] sm:$0xff] }
 0x29d   : > { %3028 = vmatmul.bf16.gmra.mxu2 %v10584_v9  ;;  %3206 = vmatmul.bf16.gmra.mxu0 %v12830_v17  ;;  %v10589_v50 = vpack.c.bf16 %v4946_v41, %v4942_v25  ;;  %v8856_v9 = vld [vmem:[%s9761_s9 + $0x308] sm:$0xf0] }
 0x29e   : > { %v3165_v1 = vadd.f32 %v3164_v38, %v3076_v11  ;;  %3295 = vmatmul.bf16.gmra.mxu1 %v12833_v53  ;;  %3412 = vmatpush.bf16.msrb.mxu3 %v8060_v30 }
 0x29f   : > { %12831 = vst [vmem:[#allocation131_spill] sm:$0xff] %v10589_v50 }
 0x2a0   : > { %3117 = vmatmul.bf16.gmra.mxu3 %v12832_v48  ;;  %v10593_v60 = vadd.f32 %v3253_v4, %v3165_v1  ;;  %v2989_v38 = vpop.f32.mrf.mxu2  ;;  %v7483_v48 = vld [vmem:[%s9761_s9 + $0x2f0] sm:$0xf]  ;;  %v9047_v1 = vld [vmem:[#allocation4 + $0x584] sm:$0xf] }
 0x2a1   : > { %v2990_v11 = vadd.f32 %v2989_v38, %v12835_v10  ;;  %v10602_v38 = vor.u32 %v8856_v9, %v7483_v48  ;;  %v8252_v51 = vor.u32 %v9047_v1, %v8249_v61  ;;  %v8377_v10 = vld [vmem:[#allocation4 + $0x690] sm:$0xf0]  ;;  %v12841_v1 = vld [vmem:[#allocation34_spill] sm:$0xff]  ;;  %v12842_v61 = vld [vmem:[#allocation108_spill] sm:$0xff] }
 0x2a2   : > { %12834 = vst [vmem:[#allocation132_spill] sm:$0xff] %v10593_v60  ;;  %v3169_v25 = vpop.f32.mrf.mxu0  ;;  %v12837_v60 = vld [vmem:[#allocation112_spill] sm:$0xff]  ;;  %v8380_v59 = vor.u32 %v9079_v35, %v8377_v10  ;;  %v8361_v48 = vld [vmem:[#allocation4 + $0x670] sm:$0xf0] }
 0x2a3   : > { %v3078_v17 = vpop.f32.mrf.mxu3  ;;  %v3258_v50 = vpop.f32.mrf.mxu1  ;;  %12838 = vst [vmem:[#allocation112_spill] sm:$0xff] %v10602_v38  ;;  %3497 = vmatpush.bf16.msrb.mxu0 %v8252_v51  ;;  %v12843_v51 = vld [vmem:[#allocation113_spill] sm:$0xff] }
 0x2a4   : > { %v3079_v41 = vadd.f32 %v3078_v17, %v10517_v47  ;;  %3586 = vmatpush.bf16.msrb.mxu1 %v8380_v59 }
 0x2a6   : > { %v3168_v53 = vadd.f32 %v3167_v21, %v3079_v41  ;;  %v4950_v21 = vmax.f32 %v2990_v11, 0.0  ;;  %v8364_v11 = vor.u32 %v9075_v27, %v8361_v48  ;;  %v9067_v48 = vld [vmem:[#allocation4 + $0x624] sm:$0xf] }
 0x2a8   : > { %v10599_v57 = vadd.f32 %v3256_v20, %v3168_v53  ;;  %v2991_v4 = vpop.f32.mrf.mxu2  ;;  %v9043_v53 = vld [vmem:[#allocation4 + $0x564] sm:$0xf]  ;;  %3587 = vmatpush.bf16.msrb.mxu1 %v8364_v11 }
 0x2a9   : > { %v2992_v24 = vadd.f32 %v2991_v4, %v12837_v60  ;;  %v12839_v60 = vld [vmem:[#allocation36_spill] sm:$0xff] }
 0x2aa   : > { %12836 = vst [vmem:[#allocation107_spill] sm:$0xff] %v10599_v57  ;;  %v3172_v30 = vpop.f32.mrf.mxu0  ;;  %v8233_v57 = vld [vmem:[#allocation4 + $0x570] sm:$0xf0] }
 0x2ab   : > { %v3080_v56 = vpop.f32.mrf.mxu3  ;;  %v4954_v41 = vmax.f32 %v2992_v24, 0.0  ;;  %v3261_v54 = vpop.f32.mrf.mxu1  ;;  %v8236_v9 = vor.u32 %v9043_v53, %v8233_v57  ;;  %v8217_v24 = vld [vmem:[#allocation4 + $0x550] sm:$0xf0] }
 0x2ac   : > { %v3081_v17 = vadd.f32 %v3080_v56, %v10517_v47  ;;  %v9071_v56 = vld [vmem:[#allocation4 + $0x644] sm:$0xf] }
 0x2ad   : > { %3033 = vmatmul.bf16.gmra.mxu2 %v10602_v38  ;;  %3211 = vmatmul.bf16.gmra.mxu0 %v12839_v60  ;;  %v10607_v4 = vpack.c.bf16 %v4954_v41, %v4950_v21  ;;  %v8345_v21 = vld [vmem:[#allocation4 + $0x650] sm:$0xf0] }
 0x2ae   : > { %v3170_v20 = vadd.f32 %v3169_v25, %v3081_v17  ;;  %3300 = vmatmul.bf16.gmra.mxu1 %v12842_v61  ;;  %3498 = vmatpush.bf16.msrb.mxu0 %v8236_v9  ;;  %v9039_v25 = vld [vmem:[#allocation4 + $0x544] sm:$0xf]  ;;  %v8201_v9 = vld [vmem:[#allocation4 + $0x530] sm:$0xf0]  ;;  %v7511_v61 = vld [vmem:[%s9761_s9 + $0x328] sm:$0xf] }
 0x2af   : > { %12840 = vst [vmem:[#allocation133_spill] sm:$0xff] %v10607_v4  ;;  %v8220_v17 = vor.u32 %v9039_v25, %v8217_v24  ;;  %v8348_v4 = vor.u32 %v9071_v56, %v8345_v21  ;;  %v8329_v60 = vld [vmem:[#allocation4 + $0x630] sm:$0xf0]  ;;  %v9031_v24 = vld [vmem:[#allocation4 + $0x504] sm:$0xf] }
 0x2b0   : > { %3122 = vmatmul.bf16.gmra.mxu3 %v12841_v1  ;;  %v10611_v35 = vadd.f32 %v3258_v50, %v3170_v20  ;;  %v2994_v59 = vpop.f32.mrf.mxu2  ;;  %v9035_v20 = vld [vmem:[#allocation4 + $0x524] sm:$0xf] }
 0x2b1   : > { %v2995_v10 = vadd.f32 %v2994_v59, %v12843_v51  ;;  %3588 = vmatpush.bf16.msrb.mxu1 %v8348_v4  ;;  %v8204_v11 = vor.u32 %v9035_v20, %v8201_v9  ;;  %v8863_v59 = vld [vmem:[%s9761_s9 + $0x340] sm:$0xf0]  ;;  %v8332_v51 = vor.u32 %v9067_v48, %v8329_v60 }
 0x2b2   : > { %v3174_v53 = vpop.f32.mrf.mxu0  ;;  %3499 = vmatpush.bf16.msrb.mxu0 %v8220_v17  ;;  %v9063_v56 = vld [vmem:[#allocation4 + $0x604] sm:$0xf]  ;;  %v10620_v4 = vor.u32 %v8863_v59, %v7511_v61  ;;  %v12846_v61 = vld [vmem:[#allocation38_spill] sm:$0xff]  ;;  %v7663_v59 = vld [vmem:[#allocation4 + $0xe8] sm:$0xf] }
 0x2b3   : > { %v3083_v57 = vpop.f32.mrf.mxu3  ;;  %v3263_v27 = vpop.f32.mrf.mxu1  ;;  %v4958_v60 = vmax.f32 %v2995_v10, 0.0  ;;  %v7791_v10 = vld [vmem:[#allocation4 + $0x1e8] sm:$0xf] }
 0x2b4   : > { %v3084_v41 = vadd.f32 %v3083_v57, %v10517_v47  ;;  %v8185_v57 = vld [vmem:[#allocation4 + $0x510] sm:$0xf0] }
 0x2b5   : > { %3589 = vmatpush.bf16.msrb.mxu1 %v8332_v51  ;;  %v8188_v21 = vor.u32 %v9031_v24, %v8185_v57  ;;  %v8902_v51 = vld [vmem:[#allocation4 + $0xf4] sm:$0xf0] }
 0x2b6   : > { %v3173_v50 = vadd.f32 %v3172_v30, %v3084_v41  ;;  %3500 = vmatpush.bf16.msrb.mxu0 %v8204_v11  ;;  %v8313_v41 = vld [vmem:[#allocation4 + $0x610] sm:$0xf0]  ;;  %v12844_v11 = vld [vmem:[#allocation40_spill] sm:$0xff]  ;;  %v7664_v24 = vor.u32 %v8902_v51, %v7663_v59 }
 0x2b7   : > { %v8316_v38 = vor.u32 %v9063_v56, %v8313_v41 }
 0x2b8   : > { %v10617_v1 = vadd.f32 %v3261_v54, %v3173_v50  ;;  %v2996_v25 = vpop.f32.mrf.mxu2  ;;  %3672 = vmatpush.bf16.msra.mxu2 %v7664_v24 }
 0x2b9   : > { %v2997_v17 = vadd.f32 %v2996_v25, %v10367_v0  ;;  %3590 = vmatpush.bf16.msrb.mxu1 %v8316_v38 }
 0x2ba   : > { %v3177_v9 = vpop.f32.mrf.mxu0  ;;  %3501 = vmatpush.bf16.msrb.mxu0 %v8188_v21 }
 0x2bb   : > { %v3085_v30 = vpop.f32.mrf.mxu3  ;;  %v4962_v54 = vmax.f32 %v2997_v17, 0.0  ;;  %v3266_v50 = vpop.f32.mrf.mxu1 }
 0x2bc   : > { %v3086_v20 = vadd.f32 %v3085_v30, %v10517_v47 }
 0x2bd   : > { %3038 = vmatmul.bf16.gmra.mxu2 %v10620_v4  ;;  %3216 = vmatmul.bf16.gmra.mxu0 %v12844_v11  ;;  %v10625_v0 = vpack.c.bf16 %v4962_v54, %v4958_v60  ;;  %v7539_v60 = vld [vmem:[%s9761_s9 + $0x360] sm:$0xf]  ;;  %v8870_v54 = vld [vmem:[%s9761_s9 + $0x378] sm:$0xf0] }
 0x2be   : > { %v3175_v48 = vadd.f32 %v3174_v53, %v3086_v20  ;;  %3305 = vmatmul.bf16.gmra.mxu1 %v10355_v15  ;;  %v8934_v53 = vld [vmem:[#allocation4 + $0x1f4] sm:$0xf0]  ;;  %v10638_v51 = vor.u32 %v8870_v54, %v7539_v60 }
 0x2bf   : > { %12845 = vst [vmem:[#allocation113_spill] sm:$0xff] %v10625_v0  ;;  %v7792_v57 = vor.u32 %v8934_v53, %v7791_v10 }
 0x2c0   : > { %3127 = vmatmul.bf16.gmra.mxu3 %v12846_v61  ;;  %v10629_v25 = vadd.f32 %v3263_v27, %v3175_v48  ;;  %v2999_v38 = vpop.f32.mrf.mxu2 }
 0x2c1   : > { %v3000_v56 = vadd.f32 %v2999_v38, %v10378_v26  ;;  %3761 = vmatpush.bf16.msra.mxu3 %v7792_v57 }
 0x2c2   : > { %v3179_v21 = vpop.f32.mrf.mxu0 }
 0x2c3   : > { %v3088_v17 = vpop.f32.mrf.mxu3  ;;  %v3268_v41 = vpop.f32.mrf.mxu1  ;;  %v4966_v24 = vmax.f32 %v3000_v56, 0.0 }
 0x2c4   : > { %v3089_v30 = vadd.f32 %v3088_v17, %v10517_v47 }
 0x2c6   : > { %v3178_v20 = vadd.f32 %v3177_v9, %v3089_v30  ;;  %v12847_v9 = vld [vmem:[#allocation44_spill] sm:$0xff] }
 0x2c8   : > { %v10635_v0 = vadd.f32 %v3266_v50, %v3178_v20  ;;  %v3001_v27 = vpop.f32.mrf.mxu2  ;;  %v12849_v50 = vld [vmem:[#allocation42_spill] sm:$0xff] }
 0x2c9   : > { %v3002_v48 = vadd.f32 %v3001_v27, %v10393_v2 }
 0x2ca   : > { %v3182_v10 = vpop.f32.mrf.mxu0 }
 0x2cb   : > { %v3090_v59 = vpop.f32.mrf.mxu3  ;;  %v4970_v53 = vmax.f32 %v3002_v48, 0.0  ;;  %v3271_v38 = vpop.f32.mrf.mxu1 }
 0x2cc   : > { %v3091_v26 = vadd.f32 %v3090_v59, %v10517_v47 }
 0x2cd   : > { %3043 = vmatmul.bf16.gmra.mxu2 %v10638_v51  ;;  %3221 = vmatmul.bf16.gmra.mxu0 %v12847_v9  ;;  %v10643_v57 = vpack.c.bf16 %v4970_v53, %v4966_v24 }
 0x2ce   : > { %v3180_v17 = vadd.f32 %v3179_v21, %v3091_v26  ;;  %3310 = vmatmul.bf16.gmra.mxu1 %v10381_v23 }
 0x2cf   : > { %12848 = vst [vmem:[#allocation38_spill] sm:$0xff] %v10643_v57 }
 0x2d0   : > { %3132 = vmatmul.bf16.gmra.mxu3 %v12849_v50  ;;  %v10647_v2 = vadd.f32 %v3268_v41, %v3180_v17  ;;  %v3004_v30 = vpop.f32.mrf.mxu2 }
 0x2d1   : > { %v3005_v20 = vadd.f32 %v3004_v30, %v10398_v7  ;;  %v12850_v7 = vld [vmem:[#allocation47_spill] sm:$0xff]  ;;  %v12851_v30 = vld [vmem:[#allocation48_spill] sm:$0xff] }
 0x2d2   : > { %v3184_v54 = vpop.f32.mrf.mxu0 }
 0x2d3   : > { %v3093_v60 = vpop.f32.mrf.mxu3  ;;  %v3273_v21 = vpop.f32.mrf.mxu1  ;;  %v4974_v41 = vmax.f32 %v3005_v20, 0.0  ;;  %v8930_v20 = vld [vmem:[#allocation4 + $0x1d4] sm:$0xf0] }
 0x2d4   : > { %v3094_v56 = vadd.f32 %v3093_v60, %v10517_v47 }
 0x2d6   : > { %v3183_v27 = vadd.f32 %v3182_v10, %v3094_v56  ;;  %v12853_v10 = vld [vmem:[#allocation46_spill] sm:$0xff]  ;;  %v7775_v56 = vld [vmem:[#allocation4 + $0x1c8] sm:$0xf] }
 0x2d8   : > { %v10651_v48 = vadd.f32 %v3271_v38, %v3183_v27  ;;  %v3006_v59 = vpop.f32.mrf.mxu2  ;;  %v7647_v38 = vld [vmem:[#allocation4 + $0xc8] sm:$0xf] }
 0x2d9   : > { %v3007_v26 = vadd.f32 %v3006_v59, %v10407_v33  ;;  %v8898_v33 = vld [vmem:[#allocation4 + $0xd4] sm:$0xf0] }
 0x2da   : > { %v3187_v57 = vpop.f32.mrf.mxu0  ;;  %v7648_v59 = vor.u32 %v8898_v33, %v7647_v38 }
 0x2db   : > { %v3095_v24 = vpop.f32.mrf.mxu3  ;;  %v4978_v17 = vmax.f32 %v3007_v26, 0.0  ;;  %v3276_v9 = vpop.f32.mrf.mxu1 }
 0x2dc   : > { %v3096_v53 = vadd.f32 %v3095_v24, %v10517_v47  ;;  %v7776_v24 = vor.u32 %v8930_v20, %v7775_v56  ;;  %3673 = vmatpush.bf16.msra.mxu2 %v7648_v59  ;;  %v12854_v59 = vld [vmem:[#allocation51_spill] sm:$0xff] }
 0x2dd   : > { %3324 = vmatmul.bf16.vlgmr.msrb.gmra.mxu2 %v12850_v7  ;;  %3502 = vmatmul.bf16.vlgmr.msrb.gmra.mxu0 %v12851_v30  ;;  %v10657_v60 = vpack.c.bf16 %v4978_v17, %v4974_v41 }
 0x2de   : > { %v3185_v23 = vadd.f32 %v3184_v54, %v3096_v53  ;;  %3591 = vmatmul.bf16.vlgmr.msrb.gmra.mxu1 %v10401_v62  ;;  %3762 = vmatpush.bf16.msra.mxu3 %v7776_v24 }
 0x2df   : > { %12852 = vst [vmem:[#allocation134_spill] sm:$0xff] %v10657_v60 }
 0x2e0   : > { %3413 = vmatmul.bf16.vlgmr.msrb.gmra.mxu3 %v12853_v10  ;;  %v10661_v27 = vadd.f32 %v3273_v21, %v3185_v23  ;;  %v3009_v26 = vpop.f32.mrf.mxu2 }
 0x2e1   : > { %v3010_v54 = vadd.f32 %v3009_v26, %v10412_v44 }
 0x2e2   : > { %v3189_v17 = vpop.f32.mrf.mxu0 }
 0x2e3   : > { %v3098_v53 = vpop.f32.mrf.mxu3  ;;  %v3278_v60 = vpop.f32.mrf.mxu1  ;;  %v4982_v56 = vmax.f32 %v3010_v54, 0.0 }
 0x2e4   : > { %v3099_v41 = vadd.f32 %v3098_v53, %v10517_v47  ;;  %v12855_v53 = vld [vmem:[#allocation52_spill] sm:$0xff] }
 0x2e6   : > { %v3188_v30 = vadd.f32 %v3187_v57, %v3099_v41  ;;  %v12857_v57 = vld [vmem:[#allocation50_spill] sm:$0xff] }
 0x2e8   : > { %v10665_v62 = vadd.f32 %v3276_v9, %v3188_v30  ;;  %v3011_v10 = vpop.f32.mrf.mxu2 }
 0x2e9   : > { %v3012_v23 = vadd.f32 %v3011_v10, %v10421_v37 }
 0x2ea   : > { %v3192_v33 = vpop.f32.mrf.mxu0 }
 0x2eb   : > { %v3100_v21 = vpop.f32.mrf.mxu3  ;;  %v4986_v20 = vmax.f32 %v3012_v23, 0.0  ;;  %v3281_v44 = vpop.f32.mrf.mxu1 }
 0x2ec   : > { %v3101_v38 = vadd.f32 %v3100_v21, %v10517_v47 }
 0x2ed   : > { %3329 = vmatmul.bf16.gmra.mxu2 %v12854_v59  ;;  %3507 = vmatmul.bf16.gmra.mxu0 %v12855_v53  ;;  %v10671_v24 = vpack.c.bf16 %v4986_v20, %v4982_v56 }
 0x2ee   : > { %v3190_v26 = vadd.f32 %v3189_v17, %v3101_v38  ;;  %3596 = vmatmul.bf16.gmra.mxu1 %v10415_v49 }
 0x2ef   : > { %12856 = vst [vmem:[#allocation51_spill] sm:$0xff] %v10671_v24 }
 0x2f0   : > { %3418 = vmatmul.bf16.gmra.mxu3 %v12857_v57  ;;  %v10675_v9 = vadd.f32 %v3278_v60, %v3190_v26  ;;  %v3014_v37 = vpop.f32.mrf.mxu2 }
 0x2f1   : > { %v3015_v30 = vadd.f32 %v3014_v37, %v10426_v36  ;;  %v12858_v36 = vld [vmem:[#allocation55_spill] sm:$0xff]  ;;  %v12859_v37 = vld [vmem:[#allocation56_spill] sm:$0xff] }
 0x2f2   : > { %v3194_v41 = vpop.f32.mrf.mxu0 }
 0x2f3   : > { %v3103_v10 = vpop.f32.mrf.mxu3  ;;  %v3283_v17 = vpop.f32.mrf.mxu1  ;;  %v4990_v60 = vmax.f32 %v3015_v30, 0.0  ;;  %v8926_v30 = vld [vmem:[#allocation4 + $0x1b4] sm:$0xf0] }
 0x2f4   : > { %v3104_v54 = vadd.f32 %v3103_v10, %v10517_v47 }
 0x2f6   : > { %v3193_v23 = vadd.f32 %v3192_v33, %v3104_v54  ;;  %v12861_v33 = vld [vmem:[#allocation54_spill] sm:$0xff]  ;;  %v7759_v54 = vld [vmem:[#allocation4 + $0x1a8] sm:$0xf] }
 0x2f8   : > { %v10679_v21 = vadd.f32 %v3281_v44, %v3193_v23  ;;  %v3016_v38 = vpop.f32.mrf.mxu2  ;;  %v7631_v44 = vld [vmem:[#allocation4 + $0xa8] sm:$0xf] }
 0x2f9   : > { %v3017_v56 = vadd.f32 %v3016_v38, %v10435_v28  ;;  %v8894_v28 = vld [vmem:[#allocation4 + $0xb4] sm:$0xf0] }
 0x2fa   : > { %v3197_v53 = vpop.f32.mrf.mxu0  ;;  %v7632_v38 = vor.u32 %v8894_v28, %v7631_v44 }
 0x2fb   : > { %v3105_v20 = vpop.f32.mrf.mxu3  ;;  %v4994_v26 = vmax.f32 %v3017_v56, 0.0  ;;  %v3286_v49 = vpop.f32.mrf.mxu1 }
 0x2fc   : > { %v3106_v24 = vadd.f32 %v3105_v20, %v10517_v47  ;;  %v7760_v20 = vor.u32 %v8926_v30, %v7759_v54  ;;  %3674 = vmatpush.bf16.msra.mxu2 %v7632_v38  ;;  %v12862_v38 = vld [vmem:[#allocation59_spill] sm:$0xff] }
 0x2fd   : > { %3334 = vmatmul.bf16.gmra.mxu2 %v12858_v36  ;;  %3512 = vmatmul.bf16.gmra.mxu0 %v12859_v37  ;;  %v10685_v10 = vpack.c.bf16 %v4994_v26, %v4990_v60 }
 0x2fe   : > { %v3195_v57 = vadd.f32 %v3194_v41, %v3106_v24  ;;  %3601 = vmatmul.bf16.gmra.mxu1 %v10429_v45  ;;  %3763 = vmatpush.bf16.msra.mxu3 %v7760_v20 }
 0x2ff   : > { %12860 = vst [vmem:[#allocation135_spill] sm:$0xff] %v10685_v10 }
 0x300   : > { %3423 = vmatmul.bf16.gmra.mxu3 %v12861_v33  ;;  %v10689_v23 = vadd.f32 %v3283_v17, %v3195_v57  ;;  %v3019_v56 = vpop.f32.mrf.mxu2 }
 0x301   : > { %v3020_v24 = vadd.f32 %v3019_v56, %v10440_v42 }
 0x302   : > { %v3199_v26 = vpop.f32.mrf.mxu0 }
 0x303   : > { %v3108_v41 = vpop.f32.mrf.mxu3  ;;  %v3288_v10 = vpop.f32.mrf.mxu1  ;;  %v4998_v54 = vmax.f32 %v3020_v24, 0.0 }
 0x304   : > { %v3109_v60 = vadd.f32 %v3108_v41, %v10517_v47  ;;  %v12863_v41 = vld [vmem:[#allocation60_spill] sm:$0xff] }
 0x306   : > { %v3198_v37 = vadd.f32 %v3197_v53, %v3109_v60  ;;  %v12865_v53 = vld [vmem:[#allocation58_spill] sm:$0xff] }
 0x308   : > { %v10693_v45 = vadd.f32 %v3286_v49, %v3198_v37  ;;  %v3021_v33 = vpop.f32.mrf.mxu2 }
 0x309   : > { %v3022_v57 = vadd.f32 %v3021_v33, %v10449_v12 }
 0x30a   : > { %v3202_v28 = vpop.f32.mrf.mxu0 }
 0x30b   : > { %v3110_v17 = vpop.f32.mrf.mxu3  ;;  %v5002_v30 = vmax.f32 %v3022_v57, 0.0  ;;  %v3291_v42 = vpop.f32.mrf.mxu1 }
 0x30c   : > { %v3111_v44 = vadd.f32 %v3110_v17, %v10517_v47 }
 0x30d   : > { %3339 = vmatmul.bf16.gmra.mxu2 %v12862_v38  ;;  %3517 = vmatmul.bf16.gmra.mxu0 %v12863_v41  ;;  %v10699_v20 = vpack.c.bf16 %v5002_v30, %v4998_v54 }
 0x30e   : > { %v3200_v56 = vadd.f32 %v3199_v26, %v3111_v44  ;;  %3606 = vmatmul.bf16.gmra.mxu1 %v10443_v55 }
 0x30f   : > { %12864 = vst [vmem:[#allocation136_spill] sm:$0xff] %v10699_v20 }
 0x310   : > { %3428 = vmatmul.bf16.gmra.mxu3 %v12865_v53  ;;  %v10703_v49 = vadd.f32 %v3288_v10, %v3200_v56  ;;  %v3024_v12 = vpop.f32.mrf.mxu2 }
 0x311   : > { %v3025_v37 = vadd.f32 %v3024_v12, %v10454_v19  ;;  %v12866_v19 = vld [vmem:[#allocation63_spill] sm:$0xff]  ;;  %v12867_v12 = vld [vmem:[#allocation64_spill] sm:$0xff] }
 0x312   : > { %v3204_v60 = vpop.f32.mrf.mxu0 }
 0x313   : > { %v3113_v33 = vpop.f32.mrf.mxu3  ;;  %v3293_v26 = vpop.f32.mrf.mxu1  ;;  %v5006_v10 = vmax.f32 %v3025_v37, 0.0  ;;  %v8922_v37 = vld [vmem:[#allocation4 + $0x194] sm:$0xf0] }
 0x314   : > { %v3114_v24 = vadd.f32 %v3113_v33, %v10517_v47 }
 0x316   : > { %v3203_v57 = vadd.f32 %v3202_v28, %v3114_v24  ;;  %v12869_v28 = vld [vmem:[#allocation62_spill] sm:$0xff]  ;;  %v7743_v24 = vld [vmem:[#allocation4 + $0x188] sm:$0xf] }
 0x318   : > { %v10707_v17 = vadd.f32 %v3291_v42, %v3203_v57  ;;  %v3026_v44 = vpop.f32.mrf.mxu2  ;;  %v7615_v42 = vld [vmem:[#allocation4 + $0x88] sm:$0xf] }
 0x319   : > { %v3027_v54 = vadd.f32 %v3026_v44, %v10463_v32  ;;  %v8890_v32 = vld [vmem:[#allocation4 + $0x94] sm:$0xf0] }
 0x31a   : > { %v3207_v41 = vpop.f32.mrf.mxu0  ;;  %v7616_v44 = vor.u32 %v8890_v32, %v7615_v42 }
 0x31b   : > { %v3115_v30 = vpop.f32.mrf.mxu3  ;;  %v5010_v56 = vmax.f32 %v3027_v54, 0.0  ;;  %v3296_v55 = vpop.f32.mrf.mxu1 }
 0x31c   : > { %v3116_v20 = vadd.f32 %v3115_v30, %v10517_v47  ;;  %v7744_v30 = vor.u32 %v8922_v37, %v7743_v24  ;;  %3675 = vmatpush.bf16.msra.mxu2 %v7616_v44  ;;  %v12870_v44 = vld [vmem:[#allocation67_spill] sm:$0xff] }
 0x31d   : > { %3344 = vmatmul.bf16.gmra.mxu2 %v12866_v19  ;;  %3522 = vmatmul.bf16.gmra.mxu0 %v12867_v12  ;;  %v10713_v33 = vpack.c.bf16 %v5010_v56, %v5006_v10 }
 0x31e   : > { %v3205_v53 = vadd.f32 %v3204_v60, %v3116_v20  ;;  %3611 = vmatmul.bf16.gmra.mxu1 %v10457_v46  ;;  %3764 = vmatpush.bf16.msra.mxu3 %v7744_v30 }
 0x31f   : > { %12868 = vst [vmem:[#allocation137_spill] sm:$0xff] %v10713_v33 }
 0x320   : > { %3433 = vmatmul.bf16.gmra.mxu3 %v12869_v28  ;;  %v10717_v57 = vadd.f32 %v3293_v26, %v3205_v53  ;;  %v3029_v54 = vpop.f32.mrf.mxu2 }
 0x321   : > { %v3030_v20 = vadd.f32 %v3029_v54, %v10468_v18 }
 0x322   : > { %v3209_v56 = vpop.f32.mrf.mxu0 }
 0x323   : > { %v3118_v60 = vpop.f32.mrf.mxu3  ;;  %v3298_v33 = vpop.f32.mrf.mxu1  ;;  %v5014_v24 = vmax.f32 %v3030_v20, 0.0 }
 0x324   : > { %v3119_v10 = vadd.f32 %v3118_v60, %v10517_v47  ;;  %v12871_v60 = vld [vmem:[#allocation68_spill] sm:$0xff] }
 0x326   : > { %v3208_v12 = vadd.f32 %v3207_v41, %v3119_v10  ;;  %v12873_v41 = vld [vmem:[#allocation66_spill] sm:$0xff] }
 0x328   : > { %v10721_v46 = vadd.f32 %v3296_v55, %v3208_v12  ;;  %v3031_v28 = vpop.f32.mrf.mxu2 }
 0x329   : > { %v3032_v53 = vadd.f32 %v3031_v28, %v10477_v34 }
 0x32a   : > { %v3212_v32 = vpop.f32.mrf.mxu0 }
 0x32b   : > { %v3120_v26 = vpop.f32.mrf.mxu3  ;;  %v5018_v37 = vmax.f32 %v3032_v53, 0.0  ;;  %v3301_v18 = vpop.f32.mrf.mxu1 }
 0x32c   : > { %v3121_v42 = vadd.f32 %v3120_v26, %v10517_v47 }
 0x32d   : > { %3349 = vmatmul.bf16.gmra.mxu2 %v12870_v44  ;;  %3527 = vmatmul.bf16.gmra.mxu0 %v12871_v60  ;;  %v10727_v30 = vpack.c.bf16 %v5018_v37, %v5014_v24 }
 0x32e   : > { %v3210_v54 = vadd.f32 %v3209_v56, %v3121_v42  ;;  %3616 = vmatmul.bf16.gmra.mxu1 %v10471_v5 }
 0x32f   : > { %12872 = vst [vmem:[#allocation138_spill] sm:$0xff] %v10727_v30 }
 0x330   : > { %3438 = vmatmul.bf16.gmra.mxu3 %v12873_v41  ;;  %v10731_v55 = vadd.f32 %v3298_v33, %v3210_v54  ;;  %v3034_v34 = vpop.f32.mrf.mxu2 }
 0x331   : > { %v3035_v12 = vadd.f32 %v3034_v34, %v10482_v39  ;;  %v12874_v39 = vld [vmem:[#allocation72_spill] sm:$0xff]  ;;  %v12875_v34 = vld [vmem:[#allocation73_spill] sm:$0xff] }
 0x332   : > { %v3214_v10 = vpop.f32.mrf.mxu0 }
 0x333   : > { %v3123_v28 = vpop.f32.mrf.mxu3  ;;  %v3303_v56 = vpop.f32.mrf.mxu1  ;;  %v5022_v33 = vmax.f32 %v3035_v12, 0.0  ;;  %v8918_v12 = vld [vmem:[#allocation4 + $0x174] sm:$0xf0] }
 0x334   : > { %v3124_v20 = vadd.f32 %v3123_v28, %v10517_v47 }
 0x336   : > { %v3213_v53 = vadd.f32 %v3212_v32, %v3124_v20  ;;  %v12877_v32 = vld [vmem:[#allocation71_spill] sm:$0xff]  ;;  %v7727_v20 = vld [vmem:[#allocation4 + $0x168] sm:$0xf] }
 0x338   : > { %v10735_v26 = vadd.f32 %v3301_v18, %v3213_v53  ;;  %v3036_v42 = vpop.f32.mrf.mxu2  ;;  %v7599_v18 = vld [vmem:[#allocation4 + $0x68] sm:$0xf] }
 0x339   : > { %v3037_v24 = vadd.f32 %v3036_v42, %v10491_v3  ;;  %v8886_v3 = vld [vmem:[#allocation4 + $0x74] sm:$0xf0] }
 0x33a   : > { %v3217_v60 = vpop.f32.mrf.mxu0  ;;  %v7600_v42 = vor.u32 %v8886_v3, %v7599_v18 }
 0x33b   : > { %v3125_v37 = vpop.f32.mrf.mxu3  ;;  %v5026_v54 = vmax.f32 %v3037_v24, 0.0  ;;  %v3306_v5 = vpop.f32.mrf.mxu1 }
 0x33c   : > { %v3126_v30 = vadd.f32 %v3125_v37, %v10517_v47  ;;  %v7728_v37 = vor.u32 %v8918_v12, %v7727_v20  ;;  %3676 = vmatpush.bf16.msra.mxu2 %v7600_v42  ;;  %v12878_v42 = vld [vmem:[#allocation78_spill] sm:$0xff] }
 0x33d   : > { %3354 = vmatmul.bf16.gmra.mxu2 %v12874_v39  ;;  %3532 = vmatmul.bf16.gmra.mxu0 %v12875_v34  ;;  %v10741_v28 = vpack.c.bf16 %v5026_v54, %v5022_v33 }
 0x33e   : > { %v3215_v41 = vadd.f32 %v3214_v10, %v3126_v30  ;;  %3621 = vmatmul.bf16.gmra.mxu1 %v10485_v16  ;;  %3765 = vmatpush.bf16.msra.mxu3 %v7728_v37 }
 0x33f   : > { %12876 = vst [vmem:[#allocation139_spill] sm:$0xff] %v10741_v28 }
 0x340   : > { %3443 = vmatmul.bf16.gmra.mxu3 %v12877_v32  ;;  %v10745_v53 = vadd.f32 %v3303_v56, %v3215_v41  ;;  %v3039_v24 = vpop.f32.mrf.mxu2 }
 0x341   : > { %v3040_v30 = vadd.f32 %v3039_v24, %v10496_v58 }
 0x342   : > { %v3219_v54 = vpop.f32.mrf.mxu0 }
 0x343   : > { %v3128_v10 = vpop.f32.mrf.mxu3  ;;  %v3308_v28 = vpop.f32.mrf.mxu1  ;;  %v5030_v20 = vmax.f32 %v3040_v30, 0.0 }
 0x344   : > { %v3129_v33 = vadd.f32 %v3128_v10, %v10517_v47  ;;  %v12879_v10 = vld [vmem:[#allocation79_spill] sm:$0xff] }
 0x346   : > { %v3218_v34 = vadd.f32 %v3217_v60, %v3129_v33  ;;  %v12881_v60 = vld [vmem:[#allocation77_spill] sm:$0xff] }
 0x348   : > { %v10749_v16 = vadd.f32 %v3306_v5, %v3218_v34  ;;  %v3041_v32 = vpop.f32.mrf.mxu2 }
 0x349   : > { %v3042_v41 = vadd.f32 %v3041_v32, %v10505_v43 }
 0x34a   : > { %v3222_v3 = vpop.f32.mrf.mxu0 }
 0x34b   : > { %v3130_v56 = vpop.f32.mrf.mxu3  ;;  %v5034_v12 = vmax.f32 %v3042_v41, 0.0  ;;  %v3311_v58 = vpop.f32.mrf.mxu1  ;;  %v7919_v41 = vld [vmem:[#allocation4 + $0x2e8] sm:$0xf] }
 0x34c   : > { %v3131_v18 = vadd.f32 %v3130_v56, %v10517_v47  ;;  %v8966_v56 = vld [vmem:[#allocation4 + $0x2f4] sm:$0xf0] }
 0x34d   : > { %3359 = vmatmul.bf16.gmra.mxu2 %v12878_v42  ;;  %3537 = vmatmul.bf16.gmra.mxu0 %v12879_v10  ;;  %v10755_v37 = vpack.c.bf16 %v5034_v12, %v5030_v20  ;;  %v7920_v10 = vor.u32 %v8966_v56, %v7919_v41  ;;  %v8882_v41 = vld [vmem:[#allocation4 + $0x54] sm:$0xf0] }
 0x34e   : > { %v3220_v24 = vadd.f32 %v3219_v54, %v3131_v18  ;;  %3626 = vmatmul.bf16.gmra.mxu1 %v10499_v6  ;;  %v8998_v6 = vld [vmem:[#allocation4 + $0x3f4] sm:$0xf0] }
 0x34f   : > { %12880 = vst [vmem:[#allocation140_spill] sm:$0xff] %v10755_v37  ;;  %3850 = vmatpush.bf16.msra.mxu0 %v7920_v10  ;;  %v12883_v10 = vld [vmem:[#allocation85_spill] sm:$0xff]  ;;  %v8914_v56 = vld [vmem:[#allocation4 + $0x154] sm:$0xf0] }
 0x350   : > { %3448 = vmatmul.bf16.gmra.mxu3 %v12881_v60  ;;  %v10759_v5 = vadd.f32 %v3308_v28, %v3220_v24  ;;  %v3044_v43 = vpop.f32.mrf.mxu2  ;;  %v8047_v24 = vld [vmem:[#allocation4 + $0x3e8] sm:$0xf] }
 0x351   : > { %v3045_v34 = vadd.f32 %v3044_v43, %v10510_v8  ;;  %v8048_v60 = vor.u32 %v8998_v6, %v8047_v24  ;;  %v7711_v6 = vld [vmem:[#allocation4 + $0x148] sm:$0xf] }
 0x352   : > { %v3224_v33 = vpop.f32.mrf.mxu0 }
 0x353   : > { %v3133_v32 = vpop.f32.mrf.mxu3  ;;  %v3313_v54 = vpop.f32.mrf.mxu1  ;;  %3939 = vmatpush.bf16.msra.mxu1 %v8048_v60 }
 0x354   : > { %v3134_v30 = vadd.f32 %v3133_v32, %v10517_v47  ;;  %v5038_v32 = vmax.f32 %v3045_v34, 0.0 }
 0x356   : > { %v3223_v18 = vadd.f32 %v3222_v3, %v3134_v30  ;;  %v12882_v3 = vld [vmem:[#allocation84_spill] sm:$0xff]  ;;  %v12885_v30 = vld [vmem:[#allocation83_spill] sm:$0xff] }
 0x358   : > { %v10763_v20 = vadd.f32 %v3311_v58, %v3223_v18  ;;  %v3046_v12 = vpop.f32.mrf.mxu2  ;;  %v7712_v18 = vor.u32 %v8914_v56, %v7711_v6  ;;  %v12888_v6 = vld [vmem:[#allocation88_spill] sm:$0xff] }
 0x359   : > { %v3047_v37 = vadd.f32 %v3046_v12, %v10521_v29 }
 0x35a   : > { %v3503_v43 = vpop.f32.mrf.mxu0  ;;  %3766 = vmatpush.bf16.msra.mxu3 %v7712_v18 }
 0x35b   : > { %v3135_v28 = vpop.f32.mrf.mxu3  ;;  %v5042_v50 = vmax.f32 %v3047_v37, 0.0  ;;  %v3592_v11 = vpop.f32.mrf.mxu1 }
 0x35c   : > { %v3136_v8 = vadd.f32 %v3135_v28, %v10517_v47  ;;  %v7583_v47 = vld [vmem:[#allocation4 + $0x48] sm:$0xf] }
 0x35d   : > { %3364 = vmatmul.bf16.gmra.mxu2 %v12882_v3  ;;  %3542 = vmatmul.bf16.gmra.mxu0 %v12883_v10  ;;  %v10769_v58 = vpack.c.bf16 %v5042_v50, %v5038_v32  ;;  %v7584_v37 = vor.u32 %v8882_v41, %v7583_v47  ;;  %v12886_v41 = vld [vmem:[#allocation89_spill] sm:$0xff] }
 0x35e   : > { %v3225_v15 = vadd.f32 %v3224_v33, %v3136_v8  ;;  %3631 = vmatmul.bf16.gmra.mxu1 %v10513_v22 }
 0x35f   : > { %12884 = vst [vmem:[#allocation141_spill] sm:$0xff] %v10769_v58  ;;  %3677 = vmatpush.bf16.msra.mxu2 %v7584_v37  ;;  %v7903_v37 = vld [vmem:[#allocation4 + $0x2c8] sm:$0xf] }
 0x360   : > { %3453 = vmatmul.bf16.gmra.mxu3 %v12885_v30  ;;  %v10773_v29 = vadd.f32 %v3313_v54, %v3225_v15  ;;  %v3325_v34 = vpop.f32.mrf.mxu2  ;;  %v8954_v30 = vld [vmem:[#allocation4 + $0x294] sm:$0xf0] }
 0x361   : > { %v3326_v60 = vadd.f32 %v3325_v34, %v10527_v63  ;;  %v12887_v63 = vld [vmem:[#allocation90_spill] sm:$0xff] }
 0x362   : > { %v3505_v12 = vpop.f32.mrf.mxu0 }
 0x363   : > { %v3414_v33 = vpop.f32.mrf.mxu3  ;;  %v3594_v28 = vpop.f32.mrf.mxu1 }
 0x364   : > { %v3415_v50 = vadd.f32 %v3414_v33, %v3326_v60 }
 0x366   : > { %v3504_v24 = vadd.f32 %v3503_v43, %v3415_v50  ;;  %v8962_v43 = vld [vmem:[#allocation4 + $0x2d4] sm:$0xf0] }
 0x367   : > { %v7904_v56 = vor.u32 %v8962_v43, %v7903_v37 }
 0x368   : > { %v3593_v8 = vadd.f32 %v3592_v11, %v3504_v24  ;;  %v3327_v32 = vpop.f32.mrf.mxu2 }
 0x369   : > { %v3328_v15 = vadd.f32 %v3327_v32, %v10539_v40  ;;  %3851 = vmatpush.bf16.msra.mxu0 %v7904_v56  ;;  %v12891_v56 = vld [vmem:[#allocation95_spill] sm:$0xff] }
 0x36a   : > { %v3508_v58 = vpop.f32.mrf.mxu0  ;;  %v4919_v60 = vmax.f32 %v3593_v8, 0.0 }
 0x36b   : > { %v3416_v54 = vpop.f32.mrf.mxu3  ;;  %v3597_v22 = vpop.f32.mrf.mxu1 }
 0x36c   : > { %v3417_v10 = vadd.f32 %v3416_v54, %v3328_v15 }
 0x36d   : > { %3369 = vmatmul.bf16.gmra.mxu2 %v12886_v41  ;;  %3547 = vmatmul.bf16.gmra.mxu0 %v12887_v63  ;;  %v8031_v63 = vld [vmem:[#allocation4 + $0x3c8] sm:$0xf] }
 0x36e   : > { %v3506_v47 = vadd.f32 %v3505_v12, %v3417_v10  ;;  %3636 = vmatmul.bf16.gmra.mxu1 %v10530_v14  ;;  %v8994_v14 = vld [vmem:[#allocation4 + $0x3d4] sm:$0xf0] }
 0x36f   : > { %v8032_v8 = vor.u32 %v8994_v14, %v8031_v63  ;;  %v12893_v63 = vld [vmem:[#allocation128_spill] sm:$0xff] }
 0x370   : > { %3458 = vmatmul.bf16.gmra.mxu3 %v12888_v6  ;;  %v3595_v34 = vadd.f32 %v3594_v28, %v3506_v47  ;;  %v3330_v11 = vpop.f32.mrf.mxu2 }
 0x371   : > { %v3331_v33 = vadd.f32 %v3330_v11, %v10545_v52  ;;  %3940 = vmatpush.bf16.msra.mxu1 %v8032_v8  ;;  %v12890_v11 = vld [vmem:[#allocation94_spill] sm:$0xff] }
 0x372   : > { %v4923_v40 = vmax.f32 %v3595_v34, 0.0  ;;  %v3510_v50 = vpop.f32.mrf.mxu0 }
 0x373   : > { %v3419_v18 = vpop.f32.mrf.mxu3  ;;  %v3599_v24 = vpop.f32.mrf.mxu1 }
 0x374   : > { %v10782_v10 = vpack.c.bf16 %v4923_v40, %v4919_v60  ;;  %v3420_v12 = vadd.f32 %v3419_v18, %v3331_v33  ;;  %v12892_v60 = vld [vmem:[#allocation93_spill] sm:$0xff] }
 0x375   : > { %v7695_v40 = vld [vmem:[#allocation4 + $0x128] sm:$0xf] }
 0x376   : > { %12889 = vst [vmem:[#allocation142_spill] sm:$0xff] %v10782_v10  ;;  %v3509_v32 = vadd.f32 %v3508_v58, %v3420_v12  ;;  %v7567_v58 = vld [vmem:[#allocation4 + $0x28] sm:$0xf]  ;;  %v8910_v12 = vld [vmem:[#allocation4 + $0x134] sm:$0xf0] }
 0x378   : > { %v3598_v15 = vadd.f32 %v3597_v22, %v3509_v32  ;;  %v3332_v54 = vpop.f32.mrf.mxu2 }
 0x379   : > { %v3333_v28 = vadd.f32 %v3332_v54, %v10557_v13  ;;  %v8878_v13 = vld [vmem:[#allocation4 + $0x34] sm:$0xf0] }
 0x37a   : > { %v3513_v37 = vpop.f32.mrf.mxu0  ;;  %v7568_v18 = vor.u32 %v8878_v13, %v7567_v58  ;;  %v4927_v14 = vmax.f32 %v3598_v15, 0.0 }
 0x37b   : > { %v3421_v47 = vpop.f32.mrf.mxu3  ;;  %v3602_v43 = vpop.f32.mrf.mxu1 }
 0x37c   : > { %v3422_v34 = vadd.f32 %v3421_v47, %v3333_v28  ;;  %3678 = vmatpush.bf16.msra.mxu2 %v7568_v18  ;;  %v12899_v18 = vld [vmem:[#allocation100_spill] sm:$0xff] }
 0x37d   : > { %3374 = vmatmul.bf16.gmra.mxu2 %v12890_v11  ;;  %3552 = vmatmul.bf16.gmra.mxu0 %v12891_v56 }
 0x37e   : > { %v3511_v52 = vadd.f32 %v3510_v50, %v3422_v34  ;;  %3641 = vmatmul.bf16.gmra.mxu1 %v10548_v31  ;;  %v7696_v50 = vor.u32 %v8910_v12, %v7695_v40  ;;  %v12895_v31 = vld [vmem:[#allocation130_spill] sm:$0xff]  ;;  %v12898_v40 = vld [vmem:[#allocation97_spill] sm:$0xff] }
 0x380   : > { %3463 = vmatmul.bf16.gmra.mxu3 %v12892_v60  ;;  %v3600_v22 = vadd.f32 %v3599_v24, %v3511_v52  ;;  %v3335_v33 = vpop.f32.mrf.mxu2 }
 0x381   : > { %v3336_v32 = vadd.f32 %v3335_v33, %v12893_v63  ;;  %3767 = vmatpush.bf16.msra.mxu3 %v7696_v50  ;;  %v12896_v63 = vld [vmem:[#allocation98_spill] sm:$0xff] }
 0x382   : > { %v4931_v28 = vmax.f32 %v3600_v22, 0.0  ;;  %v3515_v47 = vpop.f32.mrf.mxu0  ;;  %v12897_v22 = vld [vmem:[#allocation99_spill] sm:$0xff] }
 0x383   : > { %v3424_v54 = vpop.f32.mrf.mxu3  ;;  %v3604_v34 = vpop.f32.mrf.mxu1 }
 0x384   : > { %v3425_v8 = vadd.f32 %v3424_v54, %v3336_v32  ;;  %v10790_v10 = vpack.c.bf16 %v4931_v28, %v4927_v14  ;;  %v7887_v14 = vld [vmem:[#allocation4 + $0x2a8] sm:$0xf] }
 0x386   : > { %12894 = vst [vmem:[#allocation128_spill] sm:$0xff] %v10790_v10  ;;  %v3514_v24 = vadd.f32 %v3513_v37, %v3425_v8  ;;  %v8958_v37 = vld [vmem:[#allocation4 + $0x2b4] sm:$0xf0] }
 0x387   : > { %v7888_v32 = vor.u32 %v8958_v37, %v7887_v14 }
 0x388   : > { %v3603_v52 = vadd.f32 %v3602_v43, %v3514_v24  ;;  %v3337_v56 = vpop.f32.mrf.mxu2 }
 0x389   : > { %v3338_v60 = vadd.f32 %v3337_v56, %v12895_v31  ;;  %v12900_v31 = vld [vmem:[#allocation101_spill] sm:$0xff]  ;;  %3852 = vmatpush.bf16.msra.mxu0 %v7888_v32 }
 0x38a   : > { %v3518_v13 = vpop.f32.mrf.mxu0  ;;  %v4935_v54 = vmax.f32 %v3603_v52, 0.0  ;;  %v12904_v32 = vld [vmem:[#allocation105_spill] sm:$0xff] }
 0x38b   : > { %v3426_v58 = vpop.f32.mrf.mxu3  ;;  %v3607_v6 = vpop.f32.mrf.mxu1 }
 0x38c   : > { %v3427_v15 = vadd.f32 %v3426_v58, %v3338_v60 }
 0x38d   : > { %3379 = vmatmul.bf16.gmra.mxu2 %v12896_v63  ;;  %3557 = vmatmul.bf16.gmra.mxu0 %v12897_v22  ;;  %v12902_v22 = vld [vmem:[#allocation132_spill] sm:$0xff] }
 0x38e   : > { %v3516_v33 = vadd.f32 %v3515_v47, %v3427_v15  ;;  %3646 = vmatmul.bf16.gmra.mxu1 %v12899_v18  ;;  %v8015_v18 = vld [vmem:[#allocation4 + $0x3a8] sm:$0xf] }
 0x390   : > { %3468 = vmatmul.bf16.gmra.mxu3 %v12898_v40  ;;  %v3605_v12 = vadd.f32 %v3604_v34, %v3516_v33  ;;  %v3340_v43 = vpop.f32.mrf.mxu2  ;;  %v8990_v40 = vld [vmem:[#allocation4 + $0x3b4] sm:$0xf0] }
 0x391   : > { %v3341_v56 = vadd.f32 %v3340_v43, %v12900_v31  ;;  %v8016_v52 = vor.u32 %v8990_v40, %v8015_v18  ;;  %v12903_v31 = vld [vmem:[#allocation104_spill] sm:$0xff]  ;;  %v12907_v18 = vld [vmem:[#allocation107_spill] sm:$0xff] }
 0x392   : > { %v4939_v60 = vmax.f32 %v3605_v12, 0.0  ;;  %v3520_v28 = vpop.f32.mrf.mxu0 }
 0x393   : > { %v3429_v50 = vpop.f32.mrf.mxu3  ;;  %v3609_v8 = vpop.f32.mrf.mxu1  ;;  %3941 = vmatpush.bf16.msra.mxu1 %v8016_v52 }
 0x394   : > { %v3430_v47 = vadd.f32 %v3429_v50, %v3341_v56  ;;  %v10798_v24 = vpack.c.bf16 %v4939_v60, %v4935_v54  ;;  %v12905_v54 = vld [vmem:[#allocation103_spill] sm:$0xff]  ;;  %v7551_v56 = vld [vmem:[#allocation4 + $0x8] sm:$0xf] }
 0x396   : > { %12901 = vst [vmem:[#allocation130_spill] sm:$0xff] %v10798_v24  ;;  %v3519_v58 = vadd.f32 %v3518_v13, %v3430_v47  ;;  %v12906_v13 = vld [vmem:[#allocation106_spill] sm:$0xff]  ;;  %v8906_v47 = vld [vmem:[#allocation4 + $0x114] sm:$0xf0] }
 0x398   : > { %v3608_v15 = vadd.f32 %v3607_v6, %v3519_v58  ;;  %v3342_v10 = vpop.f32.mrf.mxu2 }
 0x399   : > { %v3343_v34 = vadd.f32 %v3342_v10, %v12902_v22  ;;  %v8874_v10 = vld [vmem:[#allocation4 + $0x14] sm:$0xf0]  ;;  %v7679_v22 = vld [vmem:[#allocation4 + $0x108] sm:$0xf] }
 0x39a   : > { %v3523_v14 = vpop.f32.mrf.mxu0  ;;  %v7552_v60 = vor.u32 %v8874_v10, %v7551_v56  ;;  %v4943_v40 = vmax.f32 %v3608_v15, 0.0  ;;  %v7999_v56 = vld [vmem:[#allocation4 + $0x388] sm:$0xf] }
 0x39b   : > { %v3431_v33 = vpop.f32.mrf.mxu3  ;;  %v3612_v43 = vpop.f32.mrf.mxu1 }
 0x39c   : > { %v3432_v37 = vadd.f32 %v3431_v33, %v3343_v34  ;;  %3679 = vmatpush.bf16.msra.mxu2 %v7552_v60 }
 0x39d   : > { %3384 = vmatmul.bf16.gmra.mxu2 %v12903_v31  ;;  %3562 = vmatmul.bf16.gmra.mxu0 %v12904_v32 }
 0x39e   : > { %v3521_v12 = vadd.f32 %v3520_v28, %v3432_v37  ;;  %3651 = vmatmul.bf16.gmra.mxu1 %v12906_v13  ;;  %v7680_v28 = vor.u32 %v8906_v47, %v7679_v22 }
 0x3a0   : > { %3473 = vmatmul.bf16.gmra.mxu3 %v12905_v54  ;;  %v3610_v6 = vadd.f32 %v3609_v8, %v3521_v12  ;;  %v3345_v50 = vpop.f32.mrf.mxu2  ;;  %v7871_v54 = vld [vmem:[#allocation4 + $0x288] sm:$0xf] }
 0x3a1   : > { %v3346_v58 = vadd.f32 %v3345_v50, %v12907_v18  ;;  %3768 = vmatpush.bf16.msra.mxu3 %v7680_v28  ;;  %v7872_v50 = vor.u32 %v8954_v30, %v7871_v54  ;;  %v8986_v18 = vld [vmem:[#allocation4 + $0x394] sm:$0xf0]  ;;  %v12912_v30 = vld [vmem:[#allocation112_spill] sm:$0xff] }
 0x3a2   : > { %v4947_v33 = vmax.f32 %v3610_v6, 0.0  ;;  %v3525_v52 = vpop.f32.mrf.mxu0  ;;  %v8000_v6 = vor.u32 %v8986_v18, %v7999_v56  ;;  %v12910_v28 = vld [vmem:[#allocation111_spill] sm:$0xff]  ;;  %v7839_v56 = vld [vmem:[#allocation4 + $0x248] sm:$0xf] }
 0x3a3   : > { %v3434_v34 = vpop.f32.mrf.mxu3  ;;  %v3614_v24 = vpop.f32.mrf.mxu1  ;;  %3853 = vmatpush.bf16.msra.mxu0 %v7872_v50 }
 0x3a4   : > { %v3435_v37 = vadd.f32 %v3434_v34, %v3346_v58  ;;  %v10806_v32 = vpack.c.bf16 %v4947_v33, %v4943_v40  ;;  %3942 = vmatpush.bf16.msra.mxu1 %v8000_v6  ;;  %v7855_v58 = vld [vmem:[#allocation4 + $0x268] sm:$0xf]  ;;  %v8950_v40 = vld [vmem:[#allocation4 + $0x274] sm:$0xf0] }
 0x3a5   : > { %v7983_v34 = vld [vmem:[#allocation4 + $0x368] sm:$0xf]  ;;  %v7856_v33 = vor.u32 %v8950_v40, %v7855_v58 }
 0x3a6   : > { %12908 = vst [vmem:[#allocation101_spill] sm:$0xff] %v10806_v32  ;;  %v3524_v8 = vadd.f32 %v3523_v14, %v3435_v37  ;;  %v8982_v37 = vld [vmem:[#allocation4 + $0x374] sm:$0xf0] }
 0x3a7   : > { %v7984_v54 = vor.u32 %v8982_v37, %v7983_v34  ;;  %3854 = vmatpush.bf16.msra.mxu0 %v7856_v33  ;;  %v7951_v33 = vld [vmem:[#allocation4 + $0x328] sm:$0xf] }
 0x3a8   : > { %v3613_v12 = vadd.f32 %v3612_v43, %v3524_v8  ;;  %v3347_v13 = vpop.f32.mrf.mxu2  ;;  %v12909_v43 = vld [vmem:[#allocation110_spill] sm:$0xff] }
 0x3a9   : > { %v3348_v15 = vadd.f32 %v3347_v13, %v10611_v35  ;;  %v12911_v35 = vld [vmem:[#allocation109_spill] sm:$0xff]  ;;  %3943 = vmatpush.bf16.msra.mxu1 %v7984_v54 }
 0x3aa   : > { %v3528_v22 = vpop.f32.mrf.mxu0  ;;  %v4951_v50 = vmax.f32 %v3613_v12, 0.0  ;;  %v8974_v12 = vld [vmem:[#allocation4 + $0x334] sm:$0xf0] }
 0x3ab   : > { %v3436_v10 = vpop.f32.mrf.mxu3  ;;  %v3617_v60 = vpop.f32.mrf.mxu1 }
 0x3ac   : > { %v3437_v47 = vadd.f32 %v3436_v10, %v3348_v15  ;;  %v8946_v15 = vld [vmem:[#allocation4 + $0x254] sm:$0xf0]  ;;  %v7967_v10 = vld [vmem:[#allocation4 + $0x348] sm:$0xf] }
 0x3ad   : > { %3389 = vmatmul.bf16.gmra.mxu2 %v12909_v43  ;;  %3567 = vmatmul.bf16.gmra.mxu0 %v12910_v28  ;;  %v7840_v6 = vor.u32 %v8946_v15, %v7839_v56  ;;  %v8938_v56 = vld [vmem:[#allocation4 + $0x214] sm:$0xf0]  ;;  %v7935_v15 = vld [vmem:[#allocation4 + $0x308] sm:$0xf] }
 0x3ae   : > { %v3526_v14 = vadd.f32 %v3525_v52, %v3437_v47  ;;  %3656 = vmatmul.bf16.gmra.mxu1 %v12912_v30  ;;  %v8978_v47 = vld [vmem:[#allocation4 + $0x354] sm:$0xf0]  ;;  %v7952_v30 = vor.u32 %v8974_v12, %v7951_v33  ;;  %v8303_v33 = vld [vmem:[#allocation4 + $0x5e8] sm:$0xf] }
 0x3af   : > { %v7968_v32 = vor.u32 %v8978_v47, %v7967_v10  ;;  %3855 = vmatpush.bf16.msra.mxu0 %v7840_v6  ;;  %v9062_v12 = vld [vmem:[#allocation4 + $0x5f4] sm:$0xf0] }
 0x3b0   : > { %3478 = vmatmul.bf16.gmra.mxu3 %v12911_v35  ;;  %v3615_v13 = vadd.f32 %v3614_v24, %v3526_v14  ;;  %v3350_v8 = vpop.f32.mrf.mxu2  ;;  %v7823_v24 = vld [vmem:[#allocation4 + $0x228] sm:$0xf]  ;;  %v8942_v14 = vld [vmem:[#allocation4 + $0x234] sm:$0xf0] }
 0x3b1   : > { %v3351_v52 = vadd.f32 %v3350_v8, %v10617_v1  ;;  %3944 = vmatpush.bf16.msra.mxu1 %v7968_v32  ;;  %v7824_v54 = vor.u32 %v8942_v14, %v7823_v24  ;;  %v9030_v14 = vld [vmem:[#allocation4 + $0x4f4] sm:$0xf0] }
 0x3b2   : > { %v4955_v58 = vmax.f32 %v3615_v13, 0.0  ;;  %v3530_v40 = vpop.f32.mrf.mxu0  ;;  %v7807_v13 = vld [vmem:[#allocation4 + $0x208] sm:$0xf] }
 0x3b3   : > { %v3439_v18 = vpop.f32.mrf.mxu3  ;;  %v3619_v35 = vpop.f32.mrf.mxu1  ;;  %3856 = vmatpush.bf16.msra.mxu0 %v7824_v54 }
 0x3b4   : > { %v3440_v28 = vadd.f32 %v3439_v18, %v3351_v52  ;;  %v10814_v34 = vpack.c.bf16 %v4955_v58, %v4951_v50  ;;  %v7808_v50 = vor.u32 %v8938_v56, %v7807_v13  ;;  %v8970_v18 = vld [vmem:[#allocation4 + $0x314] sm:$0xf0] }
 0x3b5   : > { %3945 = vmatpush.bf16.msra.mxu1 %v7952_v30  ;;  %v7936_v6 = vor.u32 %v8970_v18, %v7935_v15  ;;  %v12916_v30 = vld [vmem:[#allocation115_spill] sm:$0xff] }
 0x3b6   : > { %12913 = vst [vmem:[#allocation132_spill] sm:$0xff] %v10814_v34  ;;  %v3529_v37 = vadd.f32 %v3528_v22, %v3440_v28  ;;  %v12914_v28 = vld [vmem:[#allocation116_spill] sm:$0xff] }
 0x3b7   : > { %3857 = vmatpush.bf16.msra.mxu0 %v7808_v50 }
 0x3b8   : > { %v3618_v1 = vadd.f32 %v3617_v60, %v3529_v37  ;;  %v3352_v8 = vpop.f32.mrf.mxu2  ;;  %v12915_v60 = vld [vmem:[#allocation117_spill] sm:$0xff] }
 0x3b9   : > { %v3353_v10 = vadd.f32 %v3352_v8, %v10629_v25  ;;  %3946 = vmatpush.bf16.msra.mxu1 %v7936_v6  ;;  %v8175_v25 = vld [vmem:[#allocation4 + $0x4e8] sm:$0xf] }
 0x3ba   : > { %v3533_v32 = vpop.f32.mrf.mxu0  ;;  %v8176_v54 = vor.u32 %v9030_v14, %v8175_v25  ;;  %v4959_v8 = vmax.f32 %v3618_v1, 0.0 }
 0x3bb   : > { %v3441_v52 = vpop.f32.mrf.mxu3  ;;  %v3622_v58 = vpop.f32.mrf.mxu1 }
 0x3bc   : > { %v3442_v47 = vadd.f32 %v3441_v52, %v3353_v10  ;;  %4028 = vmatpush.bf16.msrb.mxu2 %v8176_v54 }
 0x3bd   : > { %3394 = vmatmul.bf16.gmra.mxu2 %v12914_v28  ;;  %3572 = vmatmul.bf16.gmra.mxu0 %v12915_v60 }
 0x3be   : > { %v3531_v22 = vadd.f32 %v3530_v40, %v3442_v47  ;;  %3661 = vmatmul.bf16.gmra.mxu1 %v10620_v4  ;;  %v8304_v40 = vor.u32 %v9062_v12, %v8303_v33  ;;  %v12920_v33 = vld [vmem:[#allocation119_spill] sm:$0xff] }
 0x3c0   : > { %3483 = vmatmul.bf16.gmra.mxu3 %v12916_v30  ;;  %v3620_v24 = vadd.f32 %v3619_v35, %v3531_v22  ;;  %v3355_v37 = vpop.f32.mrf.mxu2 }
 0x3c1   : > { %v3356_v13 = vadd.f32 %v3355_v37, %v10635_v0  ;;  %4117 = vmatpush.bf16.msrb.mxu3 %v8304_v40  ;;  %v12918_v37 = vld [vmem:[#allocation120_spill] sm:$0xff] }
 0x3c2   : > { %v4963_v15 = vmax.f32 %v3620_v24, 0.0  ;;  %v3535_v10 = vpop.f32.mrf.mxu0  ;;  %v12919_v24 = vld [vmem:[#allocation121_spill] sm:$0xff] }
 0x3c3   : > { %v3444_v56 = vpop.f32.mrf.mxu3  ;;  %v3624_v50 = vpop.f32.mrf.mxu1 }
 0x3c4   : > { %v3445_v52 = vadd.f32 %v3444_v56, %v3356_v13  ;;  %v10822_v18 = vpack.c.bf16 %v4963_v15, %v4959_v8 }
 0x3c6   : > { %12917 = vst [vmem:[#allocation107_spill] sm:$0xff] %v10822_v18  ;;  %v3534_v35 = vadd.f32 %v3533_v32, %v3445_v52 }
 0x3c8   : > { %v3623_v6 = vadd.f32 %v3622_v58, %v3534_v35  ;;  %v3357_v47 = vpop.f32.mrf.mxu2 }
 0x3c9   : > { %v3358_v22 = vadd.f32 %v3357_v47, %v10647_v2 }
 0x3ca   : > { %v3538_v14 = vpop.f32.mrf.mxu0  ;;  %v4967_v32 = vmax.f32 %v3623_v6, 0.0  ;;  %v12922_v6 = vld [vmem:[#allocation13_spill] sm:$0xff] }
 0x3cb   : > { %v3446_v25 = vpop.f32.mrf.mxu3  ;;  %v3627_v34 = vpop.f32.mrf.mxu1 }
 0x3cc   : > { %v3447_v1 = vadd.f32 %v3446_v25, %v3358_v22 }
 0x3cd   : > { %3399 = vmatmul.bf16.gmra.mxu2 %v12918_v37  ;;  %3577 = vmatmul.bf16.gmra.mxu0 %v12919_v24 }
 0x3ce   : > { %v3536_v0 = vadd.f32 %v3535_v10, %v3447_v1  ;;  %3666 = vmatmul.bf16.gmra.mxu1 %v10638_v51 }
 0x3d0   : > { %3488 = vmatmul.bf16.gmra.mxu3 %v12920_v33  ;;  %v3625_v54 = vadd.f32 %v3624_v50, %v3536_v0  ;;  %v3360_v12 = vpop.f32.mrf.mxu2 }
 0x3d1   : > { %v3361_v58 = vadd.f32 %v3360_v12, %v10651_v48  ;;  %v12923_v48 = vld [vmem:[#allocation45_spill] sm:$0xff] }
 0x3d2   : > { %v4971_v2 = vmax.f32 %v3625_v54, 0.0  ;;  %v3540_v13 = vpop.f32.mrf.mxu0  ;;  %v12924_v54 = vld [vmem:[#allocation15_spill] sm:$0xff] }
 0x3d3   : > { %v3449_v8 = vpop.f32.mrf.mxu3  ;;  %v3629_v40 = vpop.f32.mrf.mxu1 }
 0x3d4   : > { %v3450_v56 = vadd.f32 %v3449_v8, %v3361_v58  ;;  %v10830_v15 = vpack.c.bf16 %v4971_v2, %v4967_v32  ;;  %v8159_v32 = vld [vmem:[#allocation4 + $0x4c8] sm:$0xf] }
 0x3d6   : > { %12921 = vst [vmem:[#allocation117_spill] sm:$0xff] %v10830_v15  ;;  %v3539_v10 = vadd.f32 %v3538_v14, %v3450_v56  ;;  %v9026_v14 = vld [vmem:[#allocation4 + $0x4d4] sm:$0xf0] }
 0x3d7   : > { %v8160_v8 = vor.u32 %v9026_v14, %v8159_v32 }
 0x3d8   : > { %v3628_v52 = vadd.f32 %v3627_v34, %v3539_v10  ;;  %v3362_v35 = vpop.f32.mrf.mxu2  ;;  %v8287_v34 = vld [vmem:[#allocation4 + $0x5c8] sm:$0xf] }
 0x3d9   : > { %v3363_v47 = vadd.f32 %v3362_v35, %v10661_v27  ;;  %v9058_v27 = vld [vmem:[#allocation4 + $0x5d4] sm:$0xf0]  ;;  %4029 = vmatpush.bf16.msrb.mxu2 %v8160_v8 }
 0x3da   : > { %v3543_v25 = vpop.f32.mrf.mxu0  ;;  %v4975_v2 = vmax.f32 %v3628_v52, 0.0 }
 0x3db   : > { %v3451_v22 = vpop.f32.mrf.mxu3  ;;  %v3632_v50 = vpop.f32.mrf.mxu1 }
 0x3dc   : > { %v3452_v1 = vadd.f32 %v3451_v22, %v3363_v47 }
 0x3dd   : > { %3680 = vmatmul.bf16.vlgmr.msra.gmra.mxu2 %v12922_v6  ;;  %3858 = vmatmul.bf16.vlgmr.msra.gmra.mxu0 %v12923_v48 }
 0x3de   : > { %v3541_v0 = vadd.f32 %v3540_v13, %v3452_v1  ;;  %3947 = vmatmul.bf16.vlgmr.msra.gmra.mxu1 %v12850_v7  ;;  %v8288_v13 = vor.u32 %v9058_v27, %v8287_v34  ;;  %v12928_v34 = vld [vmem:[#allocation19_spill] sm:$0xff] }
 0x3e0   : > { %3769 = vmatmul.bf16.vlgmr.msra.gmra.mxu3 %v12924_v54  ;;  %v3630_v12 = vadd.f32 %v3629_v40, %v3541_v0  ;;  %v3365_v58 = vpop.f32.mrf.mxu2 }
 0x3e1   : > { %v3366_v56 = vadd.f32 %v3365_v58, %v10665_v62  ;;  %4118 = vmatpush.bf16.msrb.mxu3 %v8288_v13  ;;  %v12926_v58 = vld [vmem:[#allocation17_spill] sm:$0xff] }
 0x3e2   : > { %v4979_v35 = vmax.f32 %v3630_v12, 0.0  ;;  %v3545_v47 = vpop.f32.mrf.mxu0  ;;  %v12927_v12 = vld [vmem:[#allocation49_spill] sm:$0xff] }
 0x3e3   : > { %v3454_v10 = vpop.f32.mrf.mxu3  ;;  %v3634_v1 = vpop.f32.mrf.mxu1 }
 0x3e4   : > { %v3455_v22 = vadd.f32 %v3454_v10, %v3366_v56  ;;  %v10838_v15 = vpack.c.bf16 %v4979_v35, %v4975_v2 }
 0x3e6   : > { %12925 = vst [vmem:[#allocation115_spill] sm:$0xff] %v10838_v15  ;;  %v3544_v40 = vadd.f32 %v3543_v25, %v3455_v22 }
 0x3e8   : > { %v3633_v0 = vadd.f32 %v3632_v50, %v3544_v40  ;;  %v3367_v18 = vpop.f32.mrf.mxu2 }
 0x3e9   : > { %v3368_v48 = vadd.f32 %v3367_v18, %v10675_v9 }
 0x3ea   : > { %v3548_v14 = vpop.f32.mrf.mxu0  ;;  %v4983_v25 = vmax.f32 %v3633_v0, 0.0  ;;  %v12930_v0 = vld [vmem:[#allocation21_spill] sm:$0xff] }
 0x3eb   : > { %v3456_v32 = vpop.f32.mrf.mxu3  ;;  %v3637_v7 = vpop.f32.mrf.mxu1 }
 0x3ec   : > { %v3457_v52 = vadd.f32 %v3456_v32, %v3368_v48 }
 0x3ed   : > { %3685 = vmatmul.bf16.gmra.mxu2 %v12926_v58  ;;  %3863 = vmatmul.bf16.gmra.mxu0 %v12927_v12 }
 0x3ee   : > { %v3546_v62 = vadd.f32 %v3545_v47, %v3457_v52  ;;  %3952 = vmatmul.bf16.gmra.mxu1 %v12854_v59 }
 0x3f0   : > { %3774 = vmatmul.bf16.gmra.mxu3 %v12928_v34  ;;  %v3635_v8 = vadd.f32 %v3634_v1, %v3546_v62  ;;  %v3370_v27 = vpop.f32.mrf.mxu2 }
 0x3f1   : > { %v3371_v50 = vadd.f32 %v3370_v27, %v10679_v21  ;;  %v12931_v21 = vld [vmem:[#allocation53_spill] sm:$0xff] }
 0x3f2   : > { %v4987_v9 = vmax.f32 %v3635_v8, 0.0  ;;  %v3550_v18 = vpop.f32.mrf.mxu0  ;;  %v12932_v8 = vld [vmem:[#allocation23_spill] sm:$0xff] }
 0x3f3   : > { %v3459_v2 = vpop.f32.mrf.mxu3  ;;  %v3639_v48 = vpop.f32.mrf.mxu1 }
 0x3f4   : > { %v3460_v56 = vadd.f32 %v3459_v2, %v3371_v50  ;;  %v10846_v10 = vpack.c.bf16 %v4987_v9, %v4983_v25  ;;  %v8143_v25 = vld [vmem:[#allocation4 + $0x4a8] sm:$0xf] }
 0x3f6   : > { %12929 = vst [vmem:[#allocation121_spill] sm:$0xff] %v10846_v10  ;;  %v3549_v13 = vadd.f32 %v3548_v14, %v3460_v56  ;;  %v9022_v14 = vld [vmem:[#allocation4 + $0x4b4] sm:$0xf0] }
 0x3f7   : > { %v8144_v2 = vor.u32 %v9022_v14, %v8143_v25 }
 0x3f8   : > { %v3638_v35 = vadd.f32 %v3637_v7, %v3549_v13  ;;  %v3372_v47 = vpop.f32.mrf.mxu2  ;;  %v8271_v7 = vld [vmem:[#allocation4 + $0x5a8] sm:$0xf] }
 0x3f9   : > { %v3373_v22 = vadd.f32 %v3372_v47, %v10689_v23  ;;  %v9054_v23 = vld [vmem:[#allocation4 + $0x5b4] sm:$0xf0]  ;;  %4030 = vmatpush.bf16.msrb.mxu2 %v8144_v2 }
 0x3fa   : > { %v3553_v32 = vpop.f32.mrf.mxu0  ;;  %v4991_v9 = vmax.f32 %v3638_v35, 0.0 }
 0x3fb   : > { %v3461_v40 = vpop.f32.mrf.mxu3  ;;  %v3642_v1 = vpop.f32.mrf.mxu1 }
 0x3fc   : > { %v3462_v52 = vadd.f32 %v3461_v40, %v3373_v22 }
 0x3fd   : > { %3690 = vmatmul.bf16.gmra.mxu2 %v12930_v0  ;;  %3868 = vmatmul.bf16.gmra.mxu0 %v12931_v21 }
 0x3fe   : > { %v3551_v62 = vadd.f32 %v3550_v18, %v3462_v52  ;;  %3957 = vmatmul.bf16.gmra.mxu1 %v12858_v36  ;;  %v8272_v18 = vor.u32 %v9054_v23, %v8271_v7  ;;  %v12936_v7 = vld [vmem:[#allocation27_spill] sm:$0xff] }
 0x400   : > { %3779 = vmatmul.bf16.gmra.mxu3 %v12932_v8  ;;  %v3640_v27 = vadd.f32 %v3639_v48, %v3551_v62  ;;  %v3375_v50 = vpop.f32.mrf.mxu2 }
 0x401   : > { %v3376_v56 = vadd.f32 %v3375_v50, %v10693_v45  ;;  %4119 = vmatpush.bf16.msrb.mxu3 %v8272_v18  ;;  %v12934_v50 = vld [vmem:[#allocation25_spill] sm:$0xff] }
 0x402   : > { %v4995_v47 = vmax.f32 %v3640_v27, 0.0  ;;  %v3555_v22 = vpop.f32.mrf.mxu0  ;;  %v12935_v27 = vld [vmem:[#allocation57_spill] sm:$0xff] }
 0x403   : > { %v3464_v13 = vpop.f32.mrf.mxu3  ;;  %v3644_v52 = vpop.f32.mrf.mxu1 }
 0x404   : > { %v3465_v40 = vadd.f32 %v3464_v13, %v3376_v56  ;;  %v10854_v10 = vpack.c.bf16 %v4995_v47, %v4991_v9 }
 0x406   : > { %12933 = vst [vmem:[#allocation119_spill] sm:$0xff] %v10854_v10  ;;  %v3554_v48 = vadd.f32 %v3553_v32, %v3465_v40 }
 0x408   : > { %v3643_v62 = vadd.f32 %v3642_v1, %v3554_v48  ;;  %v3377_v15 = vpop.f32.mrf.mxu2 }
 0x409   : > { %v3378_v21 = vadd.f32 %v3377_v15, %v10703_v49 }
 0x40a   : > { %v3558_v14 = vpop.f32.mrf.mxu0  ;;  %v4999_v32 = vmax.f32 %v3643_v62, 0.0  ;;  %v12938_v62 = vld [vmem:[#allocation29_spill] sm:$0xff] }
 0x40b   : > { %v3466_v25 = vpop.f32.mrf.mxu3  ;;  %v3647_v36 = vpop.f32.mrf.mxu1 }
 0x40c   : > { %v3467_v35 = vadd.f32 %v3466_v25, %v3378_v21 }
 0x40d   : > { %3695 = vmatmul.bf16.gmra.mxu2 %v12934_v50  ;;  %3873 = vmatmul.bf16.gmra.mxu0 %v12935_v27  ;;  %v8872_v27 = vld [vmem:[#allocation4 + $0xc] sm:$0xf] }
 0x40e   : > { %v3556_v45 = vadd.f32 %v3555_v22, %v3467_v35  ;;  %3962 = vmatmul.bf16.gmra.mxu1 %v12862_v38 }
 0x410   : > { %3784 = vmatmul.bf16.gmra.mxu3 %v12936_v7  ;;  %v3645_v2 = vadd.f32 %v3644_v52, %v3556_v45  ;;  %v3380_v23 = vpop.f32.mrf.mxu2 }
 0x411   : > { %v3381_v1 = vadd.f32 %v3380_v23, %v10707_v17  ;;  %v12939_v17 = vld [vmem:[#allocation61_spill] sm:$0xff] }
 0x412   : > { %v5003_v49 = vmax.f32 %v3645_v2, 0.0  ;;  %v3560_v15 = vpop.f32.mrf.mxu0  ;;  %v12940_v2 = vld [vmem:[#allocation31_spill] sm:$0xff] }
 0x413   : > { %v3469_v9 = vpop.f32.mrf.mxu3  ;;  %v3649_v21 = vpop.f32.mrf.mxu1 }
 0x414   : > { %v3470_v56 = vadd.f32 %v3469_v9, %v3381_v1  ;;  %v10862_v13 = vpack.c.bf16 %v5003_v49, %v4999_v32  ;;  %v8127_v32 = vld [vmem:[#allocation4 + $0x488] sm:$0xf] }
 0x416   : > { %12937 = vst [vmem:[#allocation13_spill] sm:$0xff] %v10862_v13  ;;  %v3559_v18 = vadd.f32 %v3558_v14, %v3470_v56  ;;  %v9018_v14 = vld [vmem:[#allocation4 + $0x494] sm:$0xf0] }
 0x417   : > { %v8128_v9 = vor.u32 %v9018_v14, %v8127_v32 }
 0x418   : > { %v3648_v47 = vadd.f32 %v3647_v36, %v3559_v18  ;;  %v3382_v22 = vpop.f32.mrf.mxu2  ;;  %v8255_v36 = vld [vmem:[#allocation4 + $0x588] sm:$0xf] }
 0x419   : > { %v3383_v40 = vadd.f32 %v3382_v22, %v10717_v57  ;;  %v9050_v57 = vld [vmem:[#allocation4 + $0x594] sm:$0xf0]  ;;  %4031 = vmatpush.bf16.msrb.mxu2 %v8128_v9 }
 0x41a   : > { %v3563_v25 = vpop.f32.mrf.mxu0  ;;  %v5007_v49 = vmax.f32 %v3648_v47, 0.0 }
 0x41b   : > { %v3471_v48 = vpop.f32.mrf.mxu3  ;;  %v3652_v52 = vpop.f32.mrf.mxu1 }
 0x41c   : > { %v3472_v35 = vadd.f32 %v3471_v48, %v3383_v40 }
 0x41d   : > { %3700 = vmatmul.bf16.gmra.mxu2 %v12938_v62  ;;  %3878 = vmatmul.bf16.gmra.mxu0 %v12939_v17 }
 0x41e   : > { %v3561_v45 = vadd.f32 %v3560_v15, %v3472_v35  ;;  %3967 = vmatmul.bf16.gmra.mxu1 %v12866_v19  ;;  %v8256_v15 = vor.u32 %v9050_v57, %v8255_v36  ;;  %v12944_v36 = vld [vmem:[#allocation35_spill] sm:$0xff] }
 0x420   : > { %3789 = vmatmul.bf16.gmra.mxu3 %v12940_v2  ;;  %v3650_v23 = vadd.f32 %v3649_v21, %v3561_v45  ;;  %v3385_v1 = vpop.f32.mrf.mxu2 }
 0x421   : > { %v3386_v56 = vadd.f32 %v3385_v1, %v10721_v46  ;;  %4120 = vmatpush.bf16.msrb.mxu3 %v8256_v15  ;;  %v12942_v1 = vld [vmem:[#allocation33_spill] sm:$0xff] }
 0x422   : > { %v5011_v22 = vmax.f32 %v3650_v23, 0.0  ;;  %v3565_v40 = vpop.f32.mrf.mxu0  ;;  %v12943_v23 = vld [vmem:[#allocation65_spill] sm:$0xff] }
 0x423   : > { %v3474_v18 = vpop.f32.mrf.mxu3  ;;  %v3654_v35 = vpop.f32.mrf.mxu1 }
 0x424   : > { %v3475_v48 = vadd.f32 %v3474_v18, %v3386_v56  ;;  %v10870_v13 = vpack.c.bf16 %v5011_v22, %v5007_v49 }
 0x426   : > { %12941 = vst [vmem:[#allocation15_spill] sm:$0xff] %v10870_v13  ;;  %v3564_v21 = vadd.f32 %v3563_v25, %v3475_v48 }
 0x428   : > { %v3653_v45 = vadd.f32 %v3652_v52, %v3564_v21  ;;  %v3387_v10 = vpop.f32.mrf.mxu2 }
 0x429   : > { %v3388_v17 = vadd.f32 %v3387_v10, %v10731_v55 }
 0x42a   : > { %v3568_v14 = vpop.f32.mrf.mxu0  ;;  %v5015_v25 = vmax.f32 %v3653_v45, 0.0  ;;  %v12946_v45 = vld [vmem:[#allocation37_spill] sm:$0xff] }
 0x42b   : > { %v3476_v32 = vpop.f32.mrf.mxu3  ;;  %v3657_v19 = vpop.f32.mrf.mxu1 }
 0x42c   : > { %v3477_v47 = vadd.f32 %v3476_v32, %v3388_v17 }
 0x42d   : > { %3705 = vmatmul.bf16.gmra.mxu2 %v12942_v1  ;;  %3883 = vmatmul.bf16.gmra.mxu0 %v12943_v23  ;;  %v9082_v23 = vld [vmem:[#allocation4 + $0x694] sm:$0xf0] }
 0x42e   : > { %v3566_v46 = vadd.f32 %v3565_v40, %v3477_v47  ;;  %3972 = vmatmul.bf16.gmra.mxu1 %v12870_v44 }
 0x430   : > { %3794 = vmatmul.bf16.gmra.mxu3 %v12944_v36  ;;  %v3655_v9 = vadd.f32 %v3654_v35, %v3566_v46  ;;  %v3390_v57 = vpop.f32.mrf.mxu2  ;;  %v7601_v36 = vld [vmem:[#allocation4 + $0x78] sm:$0xf0] }
 0x431   : > { %v3391_v52 = vadd.f32 %v3390_v57, %v10735_v26  ;;  %v12947_v26 = vld [vmem:[#allocation70_spill] sm:$0xff] }
 0x432   : > { %v5019_v55 = vmax.f32 %v3655_v9, 0.0  ;;  %v3570_v10 = vpop.f32.mrf.mxu0  ;;  %v12948_v9 = vld [vmem:[#allocation39_spill] sm:$0xff] }
 0x433   : > { %v3479_v49 = vpop.f32.mrf.mxu3  ;;  %v3659_v17 = vpop.f32.mrf.mxu1 }
 0x434   : > { %v3480_v56 = vadd.f32 %v3479_v49, %v3391_v52  ;;  %v10878_v18 = vpack.c.bf16 %v5019_v55, %v5015_v25  ;;  %v8111_v25 = vld [vmem:[#allocation4 + $0x468] sm:$0xf] }
 0x436   : > { %12945 = vst [vmem:[#allocation17_spill] sm:$0xff] %v10878_v18  ;;  %v3569_v15 = vadd.f32 %v3568_v14, %v3480_v56  ;;  %v9014_v14 = vld [vmem:[#allocation4 + $0x474] sm:$0xf0] }
 0x437   : > { %v8112_v49 = vor.u32 %v9014_v14, %v8111_v25 }
 0x438   : > { %v3658_v22 = vadd.f32 %v3657_v19, %v3569_v15  ;;  %v3392_v40 = vpop.f32.mrf.mxu2  ;;  %v8239_v19 = vld [vmem:[#allocation4 + $0x568] sm:$0xf] }
 0x439   : > { %v3393_v48 = vadd.f32 %v3392_v40, %v10745_v53  ;;  %v9046_v53 = vld [vmem:[#allocation4 + $0x574] sm:$0xf0]  ;;  %4032 = vmatpush.bf16.msrb.mxu2 %v8112_v49  ;;  %v8431_v49 = vld [vmem:[#allocation4 + $0x6e8] sm:$0xf] }
 0x43a   : > { %v3573_v32 = vpop.f32.mrf.mxu0  ;;  %v5023_v55 = vmax.f32 %v3658_v22, 0.0 }
 0x43b   : > { %v3481_v21 = vpop.f32.mrf.mxu3  ;;  %v3662_v35 = vpop.f32.mrf.mxu1 }
 0x43c   : > { %v3482_v47 = vadd.f32 %v3481_v21, %v3393_v48 }
 0x43d   : > { %3710 = vmatmul.bf16.gmra.mxu2 %v12946_v45  ;;  %3888 = vmatmul.bf16.gmra.mxu0 %v12947_v26 }
 0x43e   : > { %v3571_v46 = vadd.f32 %v3570_v10, %v3482_v47  ;;  %3977 = vmatmul.bf16.gmra.mxu1 %v12874_v39  ;;  %v8240_v10 = vor.u32 %v9046_v53, %v8239_v19  ;;  %v12952_v19 = vld [vmem:[#allocation43_spill] sm:$0xff] }
 0x43f   : > { %v9094_v53 = vld [vmem:[#allocation4 + $0x6f4] sm:$0xf0] }
 0x440   : > { %3799 = vmatmul.bf16.gmra.mxu3 %v12948_v9  ;;  %v3660_v57 = vadd.f32 %v3659_v17, %v3571_v46  ;;  %v3395_v52 = vpop.f32.mrf.mxu2  ;;  %v8383_v9 = vld [vmem:[#allocation4 + $0x688] sm:$0xf] }
 0x441   : > { %v3396_v56 = vadd.f32 %v3395_v52, %v10749_v16  ;;  %4121 = vmatpush.bf16.msrb.mxu3 %v8240_v10  ;;  %v12950_v52 = vld [vmem:[#allocation41_spill] sm:$0xff] }
 0x442   : > { %v5027_v40 = vmax.f32 %v3660_v57, 0.0  ;;  %v3575_v48 = vpop.f32.mrf.mxu0  ;;  %v12951_v57 = vld [vmem:[#allocation76_spill] sm:$0xff] }
 0x443   : > { %v3484_v15 = vpop.f32.mrf.mxu3  ;;  %v3664_v47 = vpop.f32.mrf.mxu1 }
 0x444   : > { %v3485_v21 = vadd.f32 %v3484_v15, %v3396_v56  ;;  %v10886_v18 = vpack.c.bf16 %v5027_v40, %v5023_v55 }
 0x446   : > { %12949 = vst [vmem:[#allocation49_spill] sm:$0xff] %v10886_v18  ;;  %v3574_v17 = vadd.f32 %v3573_v32, %v3485_v21 }
 0x448   : > { %v3663_v46 = vadd.f32 %v3662_v35, %v3574_v17  ;;  %v3397_v13 = vpop.f32.mrf.mxu2  ;;  %v8432_v35 = vor.u32 %v9094_v53, %v8431_v49  ;;  %v8900_v17 = vld [vmem:[#allocation4 + $0xec] sm:$0xf] }
 0x449   : > { %v3398_v26 = vadd.f32 %v3397_v13, %v10759_v5 }
 0x44a   : > { %v3578_v14 = vpop.f32.mrf.mxu0  ;;  %v5031_v56 = vmax.f32 %v3663_v46, 0.0  ;;  %4206 = vmatpush.bf16.msrb.mxu0 %v8432_v35  ;;  %v12955_v35 = vld [vmem:[#allocation82_spill] sm:$0xff] }
 0x44b   : > { %v3486_v25 = vpop.f32.mrf.mxu3  ;;  %v3667_v39 = vpop.f32.mrf.mxu1 }
 0x44c   : > { %v3487_v22 = vadd.f32 %v3486_v25, %v3398_v26  ;;  %v7665_v25 = vld [vmem:[#allocation4 + $0xf8] sm:$0xf0] }
 0x44d   : > { %3715 = vmatmul.bf16.gmra.mxu2 %v12950_v52  ;;  %3893 = vmatmul.bf16.gmra.mxu0 %v12951_v57 }
 0x44e   : > { %v3576_v16 = vadd.f32 %v3575_v48, %v3487_v22  ;;  %3982 = vmatmul.bf16.gmra.mxu1 %v12878_v42  ;;  %v7668_v22 = vor.u32 %v8900_v17, %v7665_v25 }
 0x450   : > { %3804 = vmatmul.bf16.gmra.mxu3 %v12952_v19  ;;  %v3665_v32 = vadd.f32 %v3664_v47, %v3576_v16  ;;  %v3400_v55 = vpop.f32.mrf.mxu2  ;;  %4295 = vmatpush.bf16.msrb.mxu1 %v7668_v22  ;;  %v12967_v19 = vld [vmem:[#allocation30_spill] sm:$0xff] }
 0x451   : > { %v3401_v5 = vadd.f32 %v3400_v55, %v10763_v20  ;;  %v9412_v55 = vld [vmem:[#allocation6] sm:$0xf] }
 0x452   : > { %v5035_v26 = vmax.f32 %v3665_v32, 0.0  ;;  %v3580_v15 = vpop.f32.mrf.mxu0  ;;  %v12954_v32 = vld [vmem:[#allocation14_spill] sm:$0xff] }
 0x453   : > { %v3489_v13 = vpop.f32.mrf.mxu3  ;;  %v3669_v40 = vpop.f32.mrf.mxu1 }
 0x454   : > { %v3490_v10 = vadd.f32 %v3489_v13, %v3401_v5  ;;  %v10894_v48 = vpack.c.bf16 %v5035_v26, %v5031_v56  ;;  %v10899_v56 = vperm.slane %v9412_v55, 2  ;;  %v9010_v5 = vld [vmem:[#allocation4 + $0x454] sm:$0xf0]  ;;  %v8223_v13 = vld [vmem:[#allocation4 + $0x548] sm:$0xf] }
 0x455   : > { %v9042_v26 = vld [vmem:[#allocation4 + $0x554] sm:$0xf0] }
 0x456   : > { %12953 = vst [vmem:[#allocation19_spill] sm:$0xff] %v10894_v48  ;;  %v3579_v21 = vadd.f32 %v3578_v14, %v3490_v10  ;;  %v12956_v14 = vld [vmem:[#allocation16_spill] sm:$0xff] }
 0x458   : > { %v3668_v18 = vadd.f32 %v3667_v39, %v3579_v21  ;;  %v3402_v57 = vpop.f32.mrf.mxu2  ;;  %v8095_v39 = vld [vmem:[#allocation4 + $0x448] sm:$0xf]  ;;  %v8224_v21 = vor.u32 %v9042_v26, %v8223_v13 }
 0x459   : > { %v3403_v47 = vadd.f32 %v3402_v57, %v10773_v29  ;;  %v8096_v57 = vor.u32 %v9010_v5, %v8095_v39 }
 0x45a   : > { %v3859_v16 = vpop.f32.mrf.mxu0  ;;  %4122 = vmatpush.bf16.msrb.mxu3 %v8224_v21  ;;  %v8415_v21 = vld [vmem:[#allocation4 + $0x6c8] sm:$0xf] }
 0x45b   : > { %v3491_v46 = vpop.f32.mrf.mxu3  ;;  %v3948_v49 = vpop.f32.mrf.mxu1  ;;  %4033 = vmatpush.bf16.msrb.mxu2 %v8096_v57  ;;  %v12960_v57 = vld [vmem:[#allocation20_spill] sm:$0xff] }
 0x45c   : > { %v3492_v20 = vadd.f32 %v3491_v46, %v3403_v47 }
 0x45d   : > { %3720 = vmatmul.bf16.gmra.mxu2 %v12954_v32  ;;  %3898 = vmatmul.bf16.gmra.mxu0 %v12955_v35 }
 0x45e   : > { %v3581_v53 = vadd.f32 %v3580_v15, %v3492_v20  ;;  %3987 = vmatmul.bf16.gmra.mxu1 %v12882_v3  ;;  %v5039_v15 = vmax.f32 %v3668_v18, 0.0 }
 0x460   : > { %3809 = vmatmul.bf16.gmra.mxu3 %v12956_v14  ;;  %v3670_v29 = vadd.f32 %v3669_v40, %v3581_v53  ;;  %v3681_v10 = vpop.f32.mrf.mxu2 }
 0x461   : > { %v3682_v17 = vadd.f32 %v3681_v10, %v10899_v56  ;;  %v12958_v10 = vld [vmem:[#allocation18_spill] sm:$0xff] }
 0x462   : > { %v5043_v22 = vmax.f32 %v3670_v29, 0.0  ;;  %v3861_v47 = vpop.f32.mrf.mxu0  ;;  %v12959_v29 = vld [vmem:[#allocation87_spill] sm:$0xff] }
 0x463   : > { %v3770_v25 = vpop.f32.mrf.mxu3  ;;  %v3950_v20 = vpop.f32.mrf.mxu1 }
 0x464   : > { %v3771_v46 = vadd.f32 %v3770_v25, %v3682_v17  ;;  %v10904_v55 = vpack.c.bf16 %v5043_v22, %v5039_v15 }
 0x466   : > { %12957 = vst [vmem:[#allocation21_spill] sm:$0xff] %v10904_v55  ;;  %v3860_v48 = vadd.f32 %v3859_v16, %v3771_v46  ;;  %v9090_v16 = vld [vmem:[#allocation4 + $0x6d4] sm:$0xf0] }
 0x468   : > { %v10906_v35 = vadd.f32 %v3948_v49, %v3860_v48  ;;  %v3683_v40 = vpop.f32.mrf.mxu2  ;;  %v8416_v48 = vor.u32 %v9090_v16, %v8415_v21 }
 0x469   : > { %v3684_v53 = vadd.f32 %v3683_v40, %v10899_v56 }
 0x46a   : > { %v3864_v5 = vpop.f32.mrf.mxu0  ;;  %4207 = vmatpush.bf16.msrb.mxu0 %v8416_v48  ;;  %v12962_v48 = vld [vmem:[#allocation92_spill] sm:$0xff] }
 0x46b   : > { %v3772_v39 = vpop.f32.mrf.mxu3  ;;  %v3953_v13 = vpop.f32.mrf.mxu1 }
 0x46c   : > { %v3773_v18 = vadd.f32 %v3772_v39, %v3684_v53  ;;  %v8896_v53 = vld [vmem:[#allocation4 + $0xcc] sm:$0xf]  ;;  %v7649_v39 = vld [vmem:[#allocation4 + $0xd8] sm:$0xf0] }
 0x46d   : > { %3725 = vmatmul.bf16.gmra.mxu2 %v12958_v10  ;;  %3903 = vmatmul.bf16.gmra.mxu0 %v12959_v29 }
 0x46e   : > { %v3862_v26 = vadd.f32 %v3861_v47, %v3773_v18  ;;  %3992 = vmatmul.bf16.gmra.mxu1 %v12886_v41  ;;  %v7652_v18 = vor.u32 %v8896_v53, %v7649_v39 }
 0x470   : > { %3814 = vmatmul.bf16.gmra.mxu3 %v12960_v57  ;;  %v10913_v49 = vadd.f32 %v3950_v20, %v3862_v26  ;;  %v3686_v15 = vpop.f32.mrf.mxu2  ;;  %4296 = vmatpush.bf16.msrb.mxu1 %v7652_v18  ;;  %v12961_v57 = vld [vmem:[#allocation22_spill] sm:$0xff] }
 0x471   : > { %v3687_v17 = vadd.f32 %v3686_v15, %v10899_v56 }
 0x472   : > { %v3866_v22 = vpop.f32.mrf.mxu0 }
 0x473   : > { %v3775_v25 = vpop.f32.mrf.mxu3  ;;  %v3955_v46 = vpop.f32.mrf.mxu1 }
 0x474   : > { %v3776_v47 = vadd.f32 %v3775_v25, %v3687_v17  ;;  %v12963_v17 = vld [vmem:[#allocation24_spill] sm:$0xff]  ;;  %v8207_v25 = vld [vmem:[#allocation4 + $0x528] sm:$0xf] }
 0x476   : > { %v3865_v40 = vadd.f32 %v3864_v5, %v3776_v47  ;;  %v8079_v5 = vld [vmem:[#allocation4 + $0x428] sm:$0xf] }
 0x478   : > { %v10916_v55 = vadd.f32 %v3953_v13, %v3865_v40  ;;  %v3688_v29 = vpop.f32.mrf.mxu2  ;;  %v9006_v13 = vld [vmem:[#allocation4 + $0x434] sm:$0xf0] }
 0x479   : > { %v3689_v21 = vadd.f32 %v3688_v29, %v10899_v56  ;;  %v8080_v47 = vor.u32 %v9006_v13, %v8079_v5  ;;  %v9038_v40 = vld [vmem:[#allocation4 + $0x534] sm:$0xf0] }
 0x47a   : > { %v3869_v26 = vpop.f32.mrf.mxu0  ;;  %v8208_v39 = vor.u32 %v9038_v40, %v8207_v25  ;;  %v12964_v25 = vld [vmem:[#allocation26_spill] sm:$0xff]  ;;  %v12965_v40 = vld [vmem:[#allocation96_spill] sm:$0xff] }
 0x47b   : > { %v3777_v20 = vpop.f32.mrf.mxu3  ;;  %v3958_v41 = vpop.f32.mrf.mxu1  ;;  %4034 = vmatpush.bf16.msrb.mxu2 %v8080_v47  ;;  %v12966_v47 = vld [vmem:[#allocation28_spill] sm:$0xff] }
 0x47c   : > { %v3778_v16 = vadd.f32 %v3777_v20, %v3689_v21  ;;  %4123 = vmatpush.bf16.msrb.mxu3 %v8208_v39 }
 0x47d   : > { %3730 = vmatmul.bf16.gmra.mxu2 %v12961_v57  ;;  %3908 = vmatmul.bf16.gmra.mxu0 %v12962_v48 }
 0x47e   : > { %v3867_v15 = vadd.f32 %v3866_v22, %v3778_v16  ;;  %3997 = vmatmul.bf16.gmra.mxu1 %v12890_v11 }
 0x480   : > { %3819 = vmatmul.bf16.gmra.mxu3 %v12963_v17  ;;  %v10923_v53 = vadd.f32 %v3955_v46, %v3867_v15  ;;  %v3691_v29 = vpop.f32.mrf.mxu2 }
 0x481   : > { %v3692_v18 = vadd.f32 %v3691_v29, %v10899_v56  ;;  %v8399_v29 = vld [vmem:[#allocation4 + $0x6a8] sm:$0xf] }
 0x482   : > { %v3871_v21 = vpop.f32.mrf.mxu0 }
 0x483   : > { %v3780_v22 = vpop.f32.mrf.mxu3  ;;  %v3960_v16 = vpop.f32.mrf.mxu1 }
 0x484   : > { %v3781_v20 = vadd.f32 %v3780_v22, %v3692_v18 }
 0x486   : > { %v3870_v48 = vadd.f32 %v3869_v26, %v3781_v20  ;;  %v9086_v26 = vld [vmem:[#allocation4 + $0x6b4] sm:$0xf0] }
 0x488   : > { %v10926_v17 = vadd.f32 %v3958_v41, %v3870_v48  ;;  %v3693_v11 = vpop.f32.mrf.mxu2  ;;  %v8400_v41 = vor.u32 %v9086_v26, %v8399_v29 }
 0x489   : > { %v3694_v3 = vadd.f32 %v3693_v11, %v10899_v56 }
 0x48a   : > { %v3874_v13 = vpop.f32.mrf.mxu0  ;;  %4208 = vmatpush.bf16.msrb.mxu0 %v8400_v41  ;;  %v12968_v41 = vld [vmem:[#allocation102_spill] sm:$0xff] }
 0x48b   : > { %v3782_v5 = vpop.f32.mrf.mxu3  ;;  %v3963_v15 = vpop.f32.mrf.mxu1 }
 0x48c   : > { %v3783_v46 = vadd.f32 %v3782_v5, %v3694_v3  ;;  %v8892_v5 = vld [vmem:[#allocation4 + $0xac] sm:$0xf] }
 0x48d   : > { %3735 = vmatmul.bf16.gmra.mxu2 %v12964_v25  ;;  %3913 = vmatmul.bf16.gmra.mxu0 %v12965_v40 }
 0x48e   : > { %v3872_v14 = vadd.f32 %v3871_v21, %v3783_v46  ;;  %4002 = vmatmul.bf16.gmra.mxu1 %v12896_v63  ;;  %v7633_v46 = vld [vmem:[#allocation4 + $0xb8] sm:$0xf0] }
 0x48f   : > { %v7636_v40 = vor.u32 %v8892_v5, %v7633_v46 }
 0x490   : > { %3824 = vmatmul.bf16.gmra.mxu3 %v12966_v47  ;;  %v10933_v48 = vadd.f32 %v3960_v16, %v3872_v14  ;;  %v3696_v39 = vpop.f32.mrf.mxu2 }
 0x491   : > { %v3697_v11 = vadd.f32 %v3696_v39, %v10899_v56  ;;  %4297 = vmatpush.bf16.msrb.mxu1 %v7636_v40  ;;  %v9034_v40 = vld [vmem:[#allocation4 + $0x514] sm:$0xf0] }
 0x492   : > { %v3876_v3 = vpop.f32.mrf.mxu0 }
 0x493   : > { %v3785_v18 = vpop.f32.mrf.mxu3  ;;  %v3965_v21 = vpop.f32.mrf.mxu1 }
 0x494   : > { %v3786_v22 = vadd.f32 %v3785_v18, %v3697_v11  ;;  %v12969_v11 = vld [vmem:[#allocation32_spill] sm:$0xff]  ;;  %v8191_v18 = vld [vmem:[#allocation4 + $0x508] sm:$0xf] }
 0x495   : > { %v8192_v5 = vor.u32 %v9034_v40, %v8191_v18  ;;  %v7617_v18 = vld [vmem:[#allocation4 + $0x98] sm:$0xf0] }
 0x496   : > { %v3875_v20 = vadd.f32 %v3874_v13, %v3786_v22  ;;  %v8063_v13 = vld [vmem:[#allocation4 + $0x408] sm:$0xf] }
 0x497   : > { %4124 = vmatpush.bf16.msrb.mxu3 %v8192_v5  ;;  %v8367_v5 = vld [vmem:[#allocation4 + $0x668] sm:$0xf] }
 0x498   : > { %v10936_v47 = vadd.f32 %v3963_v15, %v3875_v20  ;;  %v3698_v63 = vpop.f32.mrf.mxu2  ;;  %v9002_v15 = vld [vmem:[#allocation4 + $0x414] sm:$0xf0] }
 0x499   : > { %v3699_v29 = vadd.f32 %v3698_v63, %v10899_v56  ;;  %v8064_v22 = vor.u32 %v9002_v15, %v8063_v13  ;;  %v8888_v13 = vld [vmem:[#allocation4 + $0x8c] sm:$0xf]  ;;  %v8384_v15 = vor.u32 %v9082_v23, %v8383_v9 }
 0x49a   : > { %v3879_v16 = vpop.f32.mrf.mxu0 }
 0x49b   : > { %v3787_v14 = vpop.f32.mrf.mxu3  ;;  %v3968_v42 = vpop.f32.mrf.mxu1  ;;  %4035 = vmatpush.bf16.msrb.mxu2 %v8064_v22  ;;  %4209 = vmatpush.bf16.msrb.mxu0 %v8384_v15  ;;  %v8880_v15 = vld [vmem:[#allocation4 + $0x4c] sm:$0xf] }
 0x49c   : > { %v3788_v26 = vadd.f32 %v3787_v14, %v3699_v29 }
 0x49d   : > { %3740 = vmatmul.bf16.gmra.mxu2 %v12967_v19  ;;  %3918 = vmatmul.bf16.gmra.mxu0 %v12968_v41 }
 0x49e   : > { %v3877_v39 = vadd.f32 %v3876_v3, %v3788_v26  ;;  %4007 = vmatmul.bf16.gmra.mxu1 %v12903_v31 }
 0x4a0   : > { %3829 = vmatmul.bf16.gmra.mxu3 %v12969_v11  ;;  %v10943_v20 = vadd.f32 %v3965_v21, %v3877_v39  ;;  %v3701_v63 = vpop.f32.mrf.mxu2 }
 0x4a1   : > { %v3702_v46 = vadd.f32 %v3701_v63, %v10899_v56  ;;  %v7620_v63 = vor.u32 %v8888_v13, %v7617_v18 }
 0x4a2   : > { %v3881_v29 = vpop.f32.mrf.mxu0 }
 0x4a3   : > { %v3790_v3 = vpop.f32.mrf.mxu3  ;;  %v3970_v26 = vpop.f32.mrf.mxu1  ;;  %4298 = vmatpush.bf16.msrb.mxu1 %v7620_v63  ;;  %v7585_v63 = vld [vmem:[#allocation4 + $0x58] sm:$0xf0] }
 0x4a4   : > { %v3791_v14 = vadd.f32 %v3790_v3, %v3702_v46  ;;  %v9078_v46 = vld [vmem:[#allocation4 + $0x674] sm:$0xf0]  ;;  %v12971_v3 = vld [vmem:[#allocation108_spill] sm:$0xff] }
 0x4a6   : > { %v3880_v41 = vadd.f32 %v3879_v16, %v3791_v14  ;;  %v8884_v16 = vld [vmem:[#allocation4 + $0x6c] sm:$0xf]  ;;  %v8368_v14 = vor.u32 %v9078_v46, %v8367_v5  ;;  %v7588_v46 = vor.u32 %v8880_v15, %v7585_v63 }
 0x4a7   : > { %v7604_v23 = vor.u32 %v8884_v16, %v7601_v36  ;;  %v8335_v36 = vld [vmem:[#allocation4 + $0x628] sm:$0xf]  ;;  %v9070_v16 = vld [vmem:[#allocation4 + $0x634] sm:$0xf0] }
 0x4a8   : > { %v10946_v11 = vadd.f32 %v3968_v42, %v3880_v41  ;;  %v3703_v31 = vpop.f32.mrf.mxu2  ;;  %v12970_v41 = vld [vmem:[#allocation34_spill] sm:$0xff]  ;;  %4210 = vmatpush.bf16.msrb.mxu0 %v8368_v14  ;;  %v8336_v14 = vor.u32 %v9070_v16, %v8335_v36  ;;  %v7793_v16 = vld [vmem:[#allocation4 + $0x1f8] sm:$0xf0] }
 0x4a9   : > { %v3704_v21 = vadd.f32 %v3703_v31, %v10899_v56  ;;  %v12972_v31 = vld [vmem:[#allocation36_spill] sm:$0xff]  ;;  %4299 = vmatpush.bf16.msrb.mxu1 %v7604_v23  ;;  %v8932_v36 = vld [vmem:[#allocation4 + $0x1ec] sm:$0xf] }
 0x4aa   : > { %v3884_v40 = vpop.f32.mrf.mxu0  ;;  %v7569_v23 = vld [vmem:[#allocation4 + $0x38] sm:$0xf0] }
 0x4ab   : > { %v3792_v39 = vpop.f32.mrf.mxu3  ;;  %v3973_v22 = vpop.f32.mrf.mxu1 }
 0x4ac   : > { %v3793_v44 = vadd.f32 %v3792_v39, %v3704_v21  ;;  %v8351_v21 = vld [vmem:[#allocation4 + $0x648] sm:$0xf]  ;;  %v9074_v39 = vld [vmem:[#allocation4 + $0x654] sm:$0xf0] }
 0x4ad   : > { %3745 = vmatmul.bf16.gmra.mxu2 %v12970_v41  ;;  %3923 = vmatmul.bf16.gmra.mxu0 %v12971_v3  ;;  %v8352_v18 = vor.u32 %v9074_v39, %v8351_v21  ;;  %v8319_v21 = vld [vmem:[#allocation4 + $0x608] sm:$0xf]  ;;  %v9066_v39 = vld [vmem:[#allocation4 + $0x614] sm:$0xf0] }
 0x4ae   : > { %v3882_v42 = vadd.f32 %v3881_v29, %v3793_v44  ;;  %4012 = vmatmul.bf16.gmra.mxu1 %v12909_v43 }
 0x4af   : > { %4211 = vmatpush.bf16.msrb.mxu0 %v8352_v18  ;;  %4300 = vmatpush.bf16.msrb.mxu1 %v7588_v46  ;;  %v7553_v18 = vld [vmem:[#allocation4 + $0x18] sm:$0xf0] }
 0x4b0   : > { %3834 = vmatmul.bf16.gmra.mxu3 %v12972_v31  ;;  %v10953_v9 = vadd.f32 %v3970_v26, %v3882_v42  ;;  %v3706_v13 = vpop.f32.mrf.mxu2  ;;  %v8876_v26 = vld [vmem:[#allocation4 + $0x2c] sm:$0xf]  ;;  %v7556_v46 = vor.u32 %v8872_v27, %v7553_v18 }
 0x4b1   : > { %v3707_v44 = vadd.f32 %v3706_v13, %v10899_v56  ;;  %v7572_v43 = vor.u32 %v8876_v26, %v7569_v23  ;;  %v8964_v26 = vld [vmem:[#allocation4 + $0x2ec] sm:$0xf] }
 0x4b2   : > { %v3886_v5 = vpop.f32.mrf.mxu0 }
 0x4b3   : > { %v3795_v29 = vpop.f32.mrf.mxu3  ;;  %v3975_v31 = vpop.f32.mrf.mxu1  ;;  %4212 = vmatpush.bf16.msrb.mxu0 %v8336_v14  ;;  %4301 = vmatpush.bf16.msrb.mxu1 %v7572_v43  ;;  %v12974_v43 = vld [vmem:[#allocation40_spill] sm:$0xff] }
 0x4b4   : > { %v3796_v3 = vadd.f32 %v3795_v29, %v3707_v44  ;;  %v8320_v29 = vor.u32 %v9066_v39, %v8319_v21  ;;  %v7921_v14 = vld [vmem:[#allocation4 + $0x2f8] sm:$0xf0] }
 0x4b6   : > { %v3885_v42 = vadd.f32 %v3884_v40, %v3796_v3 }
 0x4b7   : > { %4213 = vmatpush.bf16.msrb.mxu0 %v8320_v29  ;;  %4302 = vmatpush.bf16.msrb.mxu1 %v7556_v46 }
 0x4b8   : > { %v10956_v2 = vadd.f32 %v3973_v22, %v3885_v42  ;;  %v3708_v13 = vpop.f32.mrf.mxu2  ;;  %v12973_v22 = vld [vmem:[#allocation114_spill] sm:$0xff]  ;;  %v7796_v42 = vor.u32 %v8932_v36, %v7793_v16 }
 0x4b9   : > { %v3709_v15 = vadd.f32 %v3708_v13, %v10899_v56  ;;  %v7924_v13 = vor.u32 %v8964_v26, %v7921_v14  ;;  %v12975_v26 = vld [vmem:[#allocation42_spill] sm:$0xff] }
 0x4ba   : > { %v3889_v63 = vpop.f32.mrf.mxu0  ;;  %4384 = vmatpush.bf16.msra.mxu2 %v7796_v42  ;;  %v12976_v14 = vld [vmem:[#allocation118_spill] sm:$0xff]  ;;  %v12977_v42 = vld [vmem:[#allocation44_spill] sm:$0xff] }
 0x4bb   : > { %v3797_v44 = vpop.f32.mrf.mxu3  ;;  %v3978_v40 = vpop.f32.mrf.mxu1  ;;  %4473 = vmatpush.bf16.msra.mxu3 %v7924_v13 }
 0x4bc   : > { %v3798_v38 = vadd.f32 %v3797_v44, %v3709_v15 }
 0x4bd   : > { %3750 = vmatmul.bf16.gmra.mxu2 %v12846_v61  ;;  %3928 = vmatmul.bf16.gmra.mxu0 %v12973_v22 }
 0x4be   : > { %v3887_v3 = vadd.f32 %v3886_v5, %v3798_v38  ;;  %4017 = vmatmul.bf16.gmra.mxu1 %v12914_v28 }
 0x4c0   : > { %3839 = vmatmul.bf16.gmra.mxu3 %v12974_v43  ;;  %v10963_v23 = vadd.f32 %v3975_v31, %v3887_v3  ;;  %v3711_v27 = vpop.f32.mrf.mxu2 }
 0x4c1   : > { %v3712_v21 = vadd.f32 %v3711_v27, %v10899_v56 }
 0x4c2   : > { %v3891_v5 = vpop.f32.mrf.mxu0 }
 0x4c3   : > { %v3800_v38 = vpop.f32.mrf.mxu3  ;;  %v3980_v15 = vpop.f32.mrf.mxu1 }
 0x4c4   : > { %v3801_v39 = vadd.f32 %v3800_v38, %v3712_v21 }
 0x4c6   : > { %v3890_v44 = vadd.f32 %v3889_v63, %v3801_v39 }
 0x4c8   : > { %v10966_v29 = vadd.f32 %v3978_v40, %v3890_v44  ;;  %v3713_v18 = vpop.f32.mrf.mxu2 }
 0x4c9   : > { %v3714_v46 = vadd.f32 %v3713_v18, %v10899_v56 }
 0x4ca   : > { %v3894_v16 = vpop.f32.mrf.mxu0 }
 0x4cb   : > { %v3802_v36 = vpop.f32.mrf.mxu3  ;;  %v3983_v3 = vpop.f32.mrf.mxu1 }
 0x4cc   : > { %v3803_v31 = vadd.f32 %v3802_v36, %v3714_v46 }
 0x4cd   : > { %3755 = vmatmul.bf16.gmra.mxu2 %v12975_v26  ;;  %3933 = vmatmul.bf16.gmra.mxu0 %v12976_v14 }
 0x4ce   : > { %v3892_v22 = vadd.f32 %v3891_v5, %v3803_v31  ;;  %4022 = vmatmul.bf16.gmra.mxu1 %v12918_v37 }
 0x4d0   : > { %3844 = vmatmul.bf16.gmra.mxu3 %v12977_v42  ;;  %v10973_v27 = vadd.f32 %v3980_v15, %v3892_v22  ;;  %v3716_v63 = vpop.f32.mrf.mxu2  ;;  %v12978_v22 = vld [vmem:[#allocation46_spill] sm:$0xff] }
 0x4d1   : > { %v3717_v40 = vadd.f32 %v3716_v63, %v10899_v56  ;;  %v12979_v15 = vld [vmem:[#allocation122_spill] sm:$0xff]  ;;  %v12980_v63 = vld [vmem:[#allocation48_spill] sm:$0xff] }
 0x4d2   : > { %v3896_v21 = vpop.f32.mrf.mxu0 }
 0x4d3   : > { %v3805_v13 = vpop.f32.mrf.mxu3  ;;  %v3985_v39 = vpop.f32.mrf.mxu1 }
 0x4d4   : > { %v3806_v38 = vadd.f32 %v3805_v13, %v3717_v40  ;;  %v8928_v40 = vld [vmem:[#allocation4 + $0x1cc] sm:$0xf] }
 0x4d6   : > { %v3895_v44 = vadd.f32 %v3894_v16, %v3806_v38  ;;  %v7777_v16 = vld [vmem:[#allocation4 + $0x1d8] sm:$0xf0] }
 0x4d7   : > { %v7780_v13 = vor.u32 %v8928_v40, %v7777_v16  ;;  %v7905_v38 = vld [vmem:[#allocation4 + $0x2d8] sm:$0xf0] }
 0x4d8   : > { %v10976_v18 = vadd.f32 %v3983_v3, %v3895_v44  ;;  %v3718_v5 = vpop.f32.mrf.mxu2  ;;  %v8960_v3 = vld [vmem:[#allocation4 + $0x2cc] sm:$0xf] }
 0x4d9   : > { %v3719_v46 = vadd.f32 %v3718_v5, %v10899_v56  ;;  %v7908_v28 = vor.u32 %v8960_v3, %v7905_v38  ;;  %4385 = vmatpush.bf16.msra.mxu2 %v7780_v13  ;;  %v12981_v3 = vld [vmem:[#allocation50_spill] sm:$0xff]  ;;  %v12982_v38 = vld [vmem:[#allocation123_spill] sm:$0xff]  ;;  %v12983_v13 = vld [vmem:[#allocation52_spill] sm:$0xff] }
 0x4da   : > { %v3899_v31 = vpop.f32.mrf.mxu0 }
 0x4db   : > { %v3807_v36 = vpop.f32.mrf.mxu3  ;;  %v3988_v42 = vpop.f32.mrf.mxu1  ;;  %4474 = vmatpush.bf16.msra.mxu3 %v7908_v28 }
 0x4dc   : > { %v3808_v14 = vadd.f32 %v3807_v36, %v3719_v46 }
 0x4dd   : > { %4036 = vmatmul.bf16.vlgmr.msrb.gmra.mxu2 %v12978_v22  ;;  %4214 = vmatmul.bf16.vlgmr.msrb.gmra.mxu0 %v12979_v15 }
 0x4de   : > { %v3897_v37 = vadd.f32 %v3896_v21, %v3808_v14  ;;  %4303 = vmatmul.bf16.vlgmr.msrb.gmra.mxu1 %v12922_v6 }
 0x4e0   : > { %4125 = vmatmul.bf16.vlgmr.msrb.gmra.mxu3 %v12980_v63  ;;  %v10983_v44 = vadd.f32 %v3985_v39, %v3897_v37  ;;  %v3721_v5 = vpop.f32.mrf.mxu2 }
 0x4e1   : > { %v3722_v46 = vadd.f32 %v3721_v5, %v10899_v56 }
 0x4e2   : > { %v3901_v21 = vpop.f32.mrf.mxu0 }
 0x4e3   : > { %v3810_v14 = vpop.f32.mrf.mxu3  ;;  %v3990_v15 = vpop.f32.mrf.mxu1 }
 0x4e4   : > { %v3811_v36 = vadd.f32 %v3810_v14, %v3722_v46 }
 0x4e6   : > { %v3900_v63 = vadd.f32 %v3899_v31, %v3811_v36 }
 0x4e8   : > { %v10986_v43 = vadd.f32 %v3988_v42, %v3900_v63  ;;  %v3723_v6 = vpop.f32.mrf.mxu2 }
 0x4e9   : > { %v3724_v7 = vadd.f32 %v3723_v6, %v10899_v56 }
 0x4ea   : > { %v3904_v16 = vpop.f32.mrf.mxu0 }
 0x4eb   : > { %v3812_v40 = vpop.f32.mrf.mxu3  ;;  %v3993_v39 = vpop.f32.mrf.mxu1 }
 0x4ec   : > { %v3813_v37 = vadd.f32 %v3812_v40, %v3724_v7 }
 0x4ed   : > { %4041 = vmatmul.bf16.gmra.mxu2 %v12981_v3  ;;  %4219 = vmatmul.bf16.gmra.mxu0 %v12982_v38 }
 0x4ee   : > { %v3902_v8 = vadd.f32 %v3901_v21, %v3813_v37  ;;  %4308 = vmatmul.bf16.gmra.mxu1 %v12926_v58 }
 0x4f0   : > { %4130 = vmatmul.bf16.gmra.mxu3 %v12983_v13  ;;  %v10993_v28 = vadd.f32 %v3990_v15, %v3902_v8  ;;  %v3726_v42 = vpop.f32.mrf.mxu2  ;;  %v12985_v8 = vld [vmem:[#allocation54_spill] sm:$0xff]  ;;  %v12986_v15 = vld [vmem:[#allocation124_spill] sm:$0xff] }
 0x4f1   : > { %v3727_v31 = vadd.f32 %v3726_v42, %v10899_v56  ;;  %v12987_v42 = vld [vmem:[#allocation56_spill] sm:$0xff] }
 0x4f2   : > { %v3906_v5 = vpop.f32.mrf.mxu0 }
 0x4f3   : > { %v3815_v63 = vpop.f32.mrf.mxu3  ;;  %v3995_v14 = vpop.f32.mrf.mxu1 }
 0x4f4   : > { %v3816_v46 = vadd.f32 %v3815_v63, %v3727_v31  ;;  %v8924_v31 = vld [vmem:[#allocation4 + $0x1ac] sm:$0xf] }
 0x4f6   : > { %v3905_v7 = vadd.f32 %v3904_v16, %v3816_v46  ;;  %v7761_v16 = vld [vmem:[#allocation4 + $0x1b8] sm:$0xf0] }
 0x4f7   : > { %v7764_v63 = vor.u32 %v8924_v31, %v7761_v16  ;;  %v7889_v46 = vld [vmem:[#allocation4 + $0x2b8] sm:$0xf0] }
 0x4f8   : > { %v10996_v36 = vadd.f32 %v3993_v39, %v3905_v7  ;;  %v3728_v21 = vpop.f32.mrf.mxu2  ;;  %v8956_v39 = vld [vmem:[#allocation4 + $0x2ac] sm:$0xf] }
 0x4f9   : > { %v3729_v6 = vadd.f32 %v3728_v21, %v10899_v56  ;;  %4386 = vmatpush.bf16.msra.mxu2 %v7764_v63  ;;  %v12991_v63 = vld [vmem:[#allocation60_spill] sm:$0xff] }
 0x4fa   : > { %12984 = vst [vmem:[#allocation25_spill] sm:$0xff] %v10996_v36  ;;  %v3909_v37 = vpop.f32.mrf.mxu0  ;;  %v7892_v36 = vor.u32 %v8956_v39, %v7889_v46  ;;  %v12989_v39 = vld [vmem:[#allocation58_spill] sm:$0xff]  ;;  %v12990_v46 = vld [vmem:[#allocation125_spill] sm:$0xff] }
 0x4fb   : > { %v3817_v40 = vpop.f32.mrf.mxu3  ;;  %v3998_v13 = vpop.f32.mrf.mxu1 }
 0x4fc   : > { %v3818_v38 = vadd.f32 %v3817_v40, %v3729_v6  ;;  %4475 = vmatpush.bf16.msra.mxu3 %v7892_v36 }
 0x4fd   : > { %4046 = vmatmul.bf16.gmra.mxu2 %v12985_v8  ;;  %4224 = vmatmul.bf16.gmra.mxu0 %v12986_v15 }
 0x4fe   : > { %v3907_v58 = vadd.f32 %v3906_v5, %v3818_v38  ;;  %4313 = vmatmul.bf16.gmra.mxu1 %v12930_v0 }
 0x500   : > { %4135 = vmatmul.bf16.gmra.mxu3 %v12987_v42  ;;  %v11003_v7 = vadd.f32 %v3995_v14, %v3907_v58  ;;  %v3731_v21 = vpop.f32.mrf.mxu2 }
 0x501   : > { %v3732_v6 = vadd.f32 %v3731_v21, %v10899_v56 }
 0x502   : > { %12988 = vst [vmem:[#allocation29_spill] sm:$0xff] %v11003_v7  ;;  %v3911_v5 = vpop.f32.mrf.mxu0 }
 0x503   : > { %v3820_v38 = vpop.f32.mrf.mxu3  ;;  %v4000_v15 = vpop.f32.mrf.mxu1 }
 0x504   : > { %v3821_v40 = vadd.f32 %v3820_v38, %v3732_v6 }
 0x506   : > { %v3910_v42 = vadd.f32 %v3909_v37, %v3821_v40 }
 0x508   : > { %v11006_v8 = vadd.f32 %v3998_v13, %v3910_v42  ;;  %v3733_v0 = vpop.f32.mrf.mxu2 }
 0x509   : > { %v3734_v3 = vadd.f32 %v3733_v0, %v10899_v56 }
 0x50a   : > { %v3914_v16 = vpop.f32.mrf.mxu0 }
 0x50b   : > { %v3822_v31 = vpop.f32.mrf.mxu3  ;;  %v4003_v58 = vpop.f32.mrf.mxu1 }
 0x50c   : > { %v3823_v14 = vadd.f32 %v3822_v31, %v3734_v3 }
 0x50d   : > { %4051 = vmatmul.bf16.gmra.mxu2 %v12989_v39  ;;  %4229 = vmatmul.bf16.gmra.mxu0 %v12990_v46 }
 0x50e   : > { %v3912_v7 = vadd.f32 %v3911_v5, %v3823_v14  ;;  %4318 = vmatmul.bf16.gmra.mxu1 %v12934_v50 }
 0x510   : > { %4140 = vmatmul.bf16.gmra.mxu3 %v12991_v63  ;;  %v11013_v36 = vadd.f32 %v4000_v15, %v3912_v7  ;;  %v3736_v13 = vpop.f32.mrf.mxu2  ;;  %v12993_v15 = vld [vmem:[#allocation62_spill] sm:$0xff] }
 0x511   : > { %v3737_v37 = vadd.f32 %v3736_v13, %v10899_v56  ;;  %v12994_v7 = vld [vmem:[#allocation126_spill] sm:$0xff]  ;;  %v12995_v13 = vld [vmem:[#allocation64_spill] sm:$0xff] }
 0x512   : > { %v3916_v21 = vpop.f32.mrf.mxu0 }
 0x513   : > { %v3825_v42 = vpop.f32.mrf.mxu3  ;;  %v4005_v38 = vpop.f32.mrf.mxu1 }
 0x514   : > { %v3826_v6 = vadd.f32 %v3825_v42, %v3737_v37  ;;  %v8920_v37 = vld [vmem:[#allocation4 + $0x18c] sm:$0xf] }
 0x516   : > { %v3915_v3 = vadd.f32 %v3914_v16, %v3826_v6  ;;  %v7745_v16 = vld [vmem:[#allocation4 + $0x198] sm:$0xf0] }
 0x517   : > { %v7748_v42 = vor.u32 %v8920_v37, %v7745_v16  ;;  %v7873_v6 = vld [vmem:[#allocation4 + $0x298] sm:$0xf0] }
 0x518   : > { %v11016_v40 = vadd.f32 %v4003_v58, %v3915_v3  ;;  %v3738_v5 = vpop.f32.mrf.mxu2  ;;  %v8952_v58 = vld [vmem:[#allocation4 + $0x28c] sm:$0xf] }
 0x519   : > { %v3739_v0 = vadd.f32 %v3738_v5, %v10899_v56  ;;  %4387 = vmatpush.bf16.msra.mxu2 %v7748_v42  ;;  %v12999_v42 = vld [vmem:[#allocation68_spill] sm:$0xff] }
 0x51a   : > { %12992 = vst [vmem:[#allocation33_spill] sm:$0xff] %v11016_v40  ;;  %v3919_v14 = vpop.f32.mrf.mxu0  ;;  %v7876_v40 = vor.u32 %v8952_v58, %v7873_v6  ;;  %v12997_v58 = vld [vmem:[#allocation66_spill] sm:$0xff]  ;;  %v12998_v6 = vld [vmem:[#allocation127_spill] sm:$0xff] }
 0x51b   : > { %v3827_v31 = vpop.f32.mrf.mxu3  ;;  %v4008_v63 = vpop.f32.mrf.mxu1 }
 0x51c   : > { %v3828_v46 = vadd.f32 %v3827_v31, %v3739_v0  ;;  %4476 = vmatpush.bf16.msra.mxu3 %v7876_v40 }
 0x51d   : > { %4056 = vmatmul.bf16.gmra.mxu2 %v12993_v15  ;;  %4234 = vmatmul.bf16.gmra.mxu0 %v12994_v7 }
 0x51e   : > { %v3917_v50 = vadd.f32 %v3916_v21, %v3828_v46  ;;  %4323 = vmatmul.bf16.gmra.mxu1 %v12938_v62 }
 0x520   : > { %4145 = vmatmul.bf16.gmra.mxu3 %v12995_v13  ;;  %v11023_v3 = vadd.f32 %v4005_v38, %v3917_v50  ;;  %v3741_v5 = vpop.f32.mrf.mxu2 }
 0x521   : > { %v3742_v0 = vadd.f32 %v3741_v5, %v10899_v56 }
 0x522   : > { %12996 = vst [vmem:[#allocation37_spill] sm:$0xff] %v11023_v3  ;;  %v3921_v21 = vpop.f32.mrf.mxu0 }
 0x523   : > { %v3830_v46 = vpop.f32.mrf.mxu3  ;;  %v4010_v7 = vpop.f32.mrf.mxu1 }
 0x524   : > { %v3831_v31 = vadd.f32 %v3830_v46, %v3742_v0 }
 0x526   : > { %v3920_v13 = vadd.f32 %v3919_v14, %v3831_v31 }
 0x528   : > { %v11026_v15 = vadd.f32 %v4008_v63, %v3920_v13  ;;  %v3743_v62 = vpop.f32.mrf.mxu2 }
 0x529   : > { %v3744_v39 = vadd.f32 %v3743_v62, %v10899_v56 }
 0x52a   : > { %v3924_v16 = vpop.f32.mrf.mxu0 }
 0x52b   : > { %v3832_v37 = vpop.f32.mrf.mxu3  ;;  %v4013_v50 = vpop.f32.mrf.mxu1 }
 0x52c   : > { %v3833_v38 = vadd.f32 %v3832_v37, %v3744_v39 }
 0x52d   : > { %4061 = vmatmul.bf16.gmra.mxu2 %v12997_v58  ;;  %4239 = vmatmul.bf16.gmra.mxu0 %v12998_v6 }
 0x52e   : > { %v3922_v3 = vadd.f32 %v3921_v21, %v3833_v38  ;;  %4328 = vmatmul.bf16.gmra.mxu1 %v12942_v1 }
 0x530   : > { %4150 = vmatmul.bf16.gmra.mxu3 %v12999_v42  ;;  %v11033_v40 = vadd.f32 %v4010_v7, %v3922_v3  ;;  %v3746_v63 = vpop.f32.mrf.mxu2  ;;  %v13001_v7 = vld [vmem:[#allocation71_spill] sm:$0xff]  ;;  %v13002_v3 = vld [vmem:[#allocation69_spill] sm:$0xff] }
 0x531   : > { %v3747_v14 = vadd.f32 %v3746_v63, %v10899_v56  ;;  %v13003_v63 = vld [vmem:[#allocation73_spill] sm:$0xff] }
 0x532   : > { %v3926_v5 = vpop.f32.mrf.mxu0 }
 0x533   : > { %v3835_v13 = vpop.f32.mrf.mxu3  ;;  %v4015_v46 = vpop.f32.mrf.mxu1 }
 0x534   : > { %v3836_v0 = vadd.f32 %v3835_v13, %v3747_v14  ;;  %v8916_v14 = vld [vmem:[#allocation4 + $0x16c] sm:$0xf] }
 0x536   : > { %v3925_v39 = vadd.f32 %v3924_v16, %v3836_v0  ;;  %v7729_v16 = vld [vmem:[#allocation4 + $0x178] sm:$0xf0] }
 0x537   : > { %v7732_v13 = vor.u32 %v8916_v14, %v7729_v16  ;;  %v7857_v0 = vld [vmem:[#allocation4 + $0x278] sm:$0xf0] }
 0x538   : > { %v11036_v31 = vadd.f32 %v4013_v50, %v3925_v39  ;;  %v3748_v21 = vpop.f32.mrf.mxu2  ;;  %v8948_v50 = vld [vmem:[#allocation4 + $0x26c] sm:$0xf] }
 0x539   : > { %v3749_v62 = vadd.f32 %v3748_v21, %v10899_v56  ;;  %4388 = vmatpush.bf16.msra.mxu2 %v7732_v13  ;;  %v13008_v13 = vld [vmem:[#allocation79_spill] sm:$0xff] }
 0x53a   : > { %13000 = vst [vmem:[#allocation41_spill] sm:$0xff] %v11036_v31  ;;  %v3929_v38 = vpop.f32.mrf.mxu0  ;;  %v7860_v31 = vor.u32 %v8948_v50, %v7857_v0  ;;  %v13006_v50 = vld [vmem:[#allocation77_spill] sm:$0xff]  ;;  %v13007_v0 = vld [vmem:[#allocation74_spill] sm:$0xff] }
 0x53b   : > { %v3837_v37 = vpop.f32.mrf.mxu3  ;;  %v4018_v42 = vpop.f32.mrf.mxu1 }
 0x53c   : > { %v3838_v6 = vadd.f32 %v3837_v37, %v3749_v62  ;;  %4477 = vmatpush.bf16.msra.mxu3 %v7860_v31 }
 0x53d   : > { %4066 = vmatmul.bf16.gmra.mxu2 %v13001_v7  ;;  %4244 = vmatmul.bf16.gmra.mxu0 %v13002_v3 }
 0x53e   : > { %v3927_v1 = vadd.f32 %v3926_v5, %v3838_v6  ;;  %4333 = vmatmul.bf16.gmra.mxu1 %v12946_v45 }
 0x540   : > { %4155 = vmatmul.bf16.gmra.mxu3 %v13003_v63  ;;  %v11043_v39 = vadd.f32 %v4015_v46, %v3927_v1  ;;  %v3751_v21 = vpop.f32.mrf.mxu2 }
 0x541   : > { %v3752_v62 = vadd.f32 %v3751_v21, %v10899_v56  ;;  %v8996_v21 = vld [vmem:[#allocation4 + $0x3ec] sm:$0xf] }
 0x542   : > { %13004 = vst [vmem:[#allocation14_spill] sm:$0xff] %v11043_v39  ;;  %v3931_v5 = vpop.f32.mrf.mxu0 }
 0x543   : > { %v3840_v6 = vpop.f32.mrf.mxu3  ;;  %v4020_v3 = vpop.f32.mrf.mxu1 }
 0x544   : > { %v3841_v37 = vadd.f32 %v3840_v6, %v3752_v62  ;;  %v8049_v62 = vld [vmem:[#allocation4 + $0x3f8] sm:$0xf0] }
 0x546   : > { %v3930_v63 = vadd.f32 %v3929_v38, %v3841_v37 }
 0x548   : > { %v11046_v7 = vadd.f32 %v4018_v42, %v3930_v63  ;;  %v3753_v45 = vpop.f32.mrf.mxu2 }
 0x549   : > { %v3754_v58 = vadd.f32 %v3753_v45, %v10899_v56 }
 0x54a   : > { %13005 = vst [vmem:[#allocation18_spill] sm:$0xff] %v11046_v7  ;;  %v3934_v16 = vpop.f32.mrf.mxu0 }
 0x54b   : > { %v3842_v14 = vpop.f32.mrf.mxu3  ;;  %v4023_v1 = vpop.f32.mrf.mxu1 }
 0x54c   : > { %v3843_v46 = vadd.f32 %v3842_v14, %v3754_v58  ;;  %v8052_v58 = vor.u32 %v8996_v21, %v8049_v62  ;;  %v9028_v14 = vld [vmem:[#allocation4 + $0x4ec] sm:$0xf]  ;;  %v13010_v21 = vld [vmem:[#allocation83_spill] sm:$0xff] }
 0x54d   : > { %4071 = vmatmul.bf16.gmra.mxu2 %v13006_v50  ;;  %4249 = vmatmul.bf16.gmra.mxu0 %v13007_v0  ;;  %v8944_v62 = vld [vmem:[#allocation4 + $0x24c] sm:$0xf] }
 0x54e   : > { %v3932_v39 = vadd.f32 %v3931_v5, %v3843_v46  ;;  %4338 = vmatmul.bf16.gmra.mxu1 %v12950_v52  ;;  %4562 = vmatpush.bf16.msra.mxu0 %v8052_v58  ;;  %v8177_v46 = vld [vmem:[#allocation4 + $0x4f8] sm:$0xf0] }
 0x54f   : > { %v8180_v52 = vor.u32 %v9028_v14, %v8177_v46 }
 0x550   : > { %4160 = vmatmul.bf16.gmra.mxu3 %v13008_v13  ;;  %v11053_v31 = vadd.f32 %v4020_v3, %v3932_v39  ;;  %v3756_v42 = vpop.f32.mrf.mxu2 }
 0x551   : > { %v3757_v38 = vadd.f32 %v3756_v42, %v10899_v56  ;;  %4651 = vmatpush.bf16.msra.mxu1 %v8180_v52 }
 0x552   : > { %13009 = vst [vmem:[#allocation22_spill] sm:$0xff] %v11053_v31  ;;  %v3936_v6 = vpop.f32.mrf.mxu0 }
 0x553   : > { %v3845_v63 = vpop.f32.mrf.mxu3  ;;  %v4025_v5 = vpop.f32.mrf.mxu1 }
 0x554   : > { %v3846_v37 = vadd.f32 %v3845_v63, %v3757_v38  ;;  %v13011_v38 = vld [vmem:[#allocation75_spill] sm:$0xff]  ;;  %v7713_v63 = vld [vmem:[#allocation4 + $0x158] sm:$0xf0] }
 0x556   : > { %v3935_v45 = vadd.f32 %v3934_v16, %v3846_v37  ;;  %v13012_v16 = vld [vmem:[#allocation85_spill] sm:$0xff]  ;;  %v7841_v37 = vld [vmem:[#allocation4 + $0x258] sm:$0xf0] }
 0x558   : > { %v11056_v0 = vadd.f32 %v4023_v1, %v3935_v45  ;;  %v3758_v13 = vpop.f32.mrf.mxu2  ;;  %v8912_v1 = vld [vmem:[#allocation4 + $0x14c] sm:$0xf] }
 0x559   : > { %v3759_v3 = vadd.f32 %v3758_v13, %v10899_v56  ;;  %v7716_v13 = vor.u32 %v8912_v1, %v7713_v63  ;;  %v13014_v63 = vld [vmem:[#allocation88_spill] sm:$0xff] }
 0x55a   : > { %v4215_v50 = vpop.f32.mrf.mxu0 }
 0x55b   : > { %v3847_v39 = vpop.f32.mrf.mxu3  ;;  %v11059_v31 = vpop.f32.mrf.mxu1  ;;  %4389 = vmatpush.bf16.msra.mxu2 %v7716_v13 }
 0x55c   : > { %v3848_v42 = vadd.f32 %v3847_v39, %v3759_v3 }
 0x55d   : > { %4076 = vmatmul.bf16.gmra.mxu2 %v13010_v21  ;;  %4254 = vmatmul.bf16.gmra.mxu0 %v13011_v38 }
 0x55e   : > { %v3937_v7 = vadd.f32 %v3936_v6, %v3848_v42  ;;  %4343 = vmatmul.bf16.gmra.mxu1 %v12954_v32  ;;  %v7844_v6 = vor.u32 %v8944_v62, %v7841_v37  ;;  %v13016_v62 = vld [vmem:[#allocation90_spill] sm:$0xff]  ;;  %v8033_v37 = vld [vmem:[#allocation4 + $0x3d8] sm:$0xf0] }
 0x560   : > { %4165 = vmatmul.bf16.gmra.mxu3 %v13012_v16  ;;  %v11065_v58 = vadd.f32 %v4025_v5, %v3937_v7  ;;  %v4037_v56 = vpop.f32.mrf.mxu2 }
 0x561   : > { %v4038_v45 = vadd.f32 %v4037_v56, %v10906_v35  ;;  %4478 = vmatpush.bf16.msra.mxu3 %v7844_v6  ;;  %v13015_v35 = vld [vmem:[#allocation80_spill] sm:$0xff] }
 0x562   : > { %v4217_v46 = vpop.f32.mrf.mxu0 }
 0x563   : > { %v4126_v14 = vpop.f32.mrf.mxu3  ;;  %v11068_v3 = vpop.f32.mrf.mxu1 }
 0x564   : > { %v4127_v52 = vadd.f32 %v4126_v14, %v4038_v45 }
 0x566   : > { %v4216_v39 = vadd.f32 %v4215_v50, %v4127_v52  ;;  %v8992_v50 = vld [vmem:[#allocation4 + $0x3cc] sm:$0xf] }
 0x568   : > { %v4039_v32 = vpop.f32.mrf.mxu2  ;;  %v4920_v56 = vmax.f32 %v4216_v39, 0.0 }
 0x569   : > { %v4040_v42 = vadd.f32 %v4039_v32, %v10913_v49  ;;  %v8036_v49 = vor.u32 %v8992_v50, %v8033_v37  ;;  %v13018_v50 = vld [vmem:[#allocation93_spill] sm:$0xff]  ;;  %v13019_v37 = vld [vmem:[#allocation86_spill] sm:$0xff] }
 0x56a   : > { %v4220_v7 = vpop.f32.mrf.mxu0 }
 0x56b   : > { %v4128_v38 = vpop.f32.mrf.mxu3  ;;  %v11071_v16 = vpop.f32.mrf.mxu1  ;;  %4563 = vmatpush.bf16.msra.mxu0 %v8036_v49 }
 0x56c   : > { %v4129_v5 = vadd.f32 %v4128_v38, %v4040_v42  ;;  %13013 = vst [vmem:[#allocation26_spill] sm:$0xff] %v11071_v16 }
 0x56d   : > { %4081 = vmatmul.bf16.gmra.mxu2 %v13014_v63  ;;  %4259 = vmatmul.bf16.gmra.mxu0 %v13015_v35  ;;  %v8161_v35 = vld [vmem:[#allocation4 + $0x4d8] sm:$0xf0] }
 0x56e   : > { %v4218_v1 = vadd.f32 %v4217_v46, %v4129_v5  ;;  %4348 = vmatmul.bf16.gmra.mxu1 %v12958_v10  ;;  %v9024_v5 = vld [vmem:[#allocation4 + $0x4cc] sm:$0xf] }
 0x56f   : > { %v8164_v39 = vor.u32 %v9024_v5, %v8161_v35  ;;  %v8908_v35 = vld [vmem:[#allocation4 + $0x12c] sm:$0xf]  ;;  %v7825_v5 = vld [vmem:[#allocation4 + $0x238] sm:$0xf0] }
 0x570   : > { %4170 = vmatmul.bf16.gmra.mxu3 %v13016_v62  ;;  %v4924_v13 = vmax.f32 %v4218_v1, 0.0  ;;  %v4042_v45 = vpop.f32.mrf.mxu2 }
 0x571   : > { %v4043_v38 = vadd.f32 %v4042_v45, %v10916_v55  ;;  %4652 = vmatpush.bf16.msra.mxu1 %v8164_v39  ;;  %v13020_v45 = vld [vmem:[#allocation95_spill] sm:$0xff] }
 0x572   : > { %v11077_v14 = vpack.c.bf16 %v4924_v13, %v4920_v56  ;;  %v4222_v46 = vpop.f32.mrf.mxu0 }
 0x573   : > { %v4131_v6 = vpop.f32.mrf.mxu3  ;;  %v11080_v32 = vpop.f32.mrf.mxu1 }
 0x574   : > { %13017 = vst [vmem:[#allocation30_spill] sm:$0xff] %v11077_v14  ;;  %v4132_v52 = vadd.f32 %v4131_v6, %v4043_v38  ;;  %v7697_v38 = vld [vmem:[#allocation4 + $0x138] sm:$0xf0] }
 0x575   : > { %v7700_v6 = vor.u32 %v8908_v35, %v7697_v38 }
 0x576   : > { %v4221_v42 = vadd.f32 %v4220_v7, %v4132_v52  ;;  %v8940_v52 = vld [vmem:[#allocation4 + $0x22c] sm:$0xf] }
 0x577   : > { %4390 = vmatpush.bf16.msra.mxu2 %v7700_v6 }
 0x578   : > { %v4044_v10 = vpop.f32.mrf.mxu2  ;;  %v4928_v7 = vmax.f32 %v4221_v42, 0.0 }
 0x579   : > { %v4045_v1 = vadd.f32 %v4044_v10, %v10923_v53 }
 0x57a   : > { %v4225_v16 = vpop.f32.mrf.mxu0 }
 0x57b   : > { %v4133_v62 = vpop.f32.mrf.mxu3  ;;  %v11083_v13 = vpop.f32.mrf.mxu1 }
 0x57c   : > { %v4134_v56 = vadd.f32 %v4133_v62, %v4045_v1 }
 0x57d   : > { %4086 = vmatmul.bf16.gmra.mxu2 %v13018_v50  ;;  %4264 = vmatmul.bf16.gmra.mxu0 %v13019_v37 }
 0x57e   : > { %v4223_v55 = vadd.f32 %v4222_v46, %v4134_v56  ;;  %4353 = vmatmul.bf16.gmra.mxu1 %v12961_v57  ;;  %v7828_v46 = vor.u32 %v8940_v52, %v7825_v5  ;;  %v8017_v5 = vld [vmem:[#allocation4 + $0x3b8] sm:$0xf0] }
 0x580   : > { %4175 = vmatmul.bf16.gmra.mxu3 %v13020_v45  ;;  %v4932_v49 = vmax.f32 %v4223_v55, 0.0  ;;  %v4047_v53 = vpop.f32.mrf.mxu2 }
 0x581   : > { %v4048_v62 = vadd.f32 %v4047_v53, %v10926_v17  ;;  %4479 = vmatpush.bf16.msra.mxu3 %v7828_v46  ;;  %v13022_v53 = vld [vmem:[#allocation97_spill] sm:$0xff] }
 0x582   : > { %v11090_v39 = vpack.c.bf16 %v4932_v49, %v4928_v7  ;;  %v4227_v1 = vpop.f32.mrf.mxu0  ;;  %v13023_v7 = vld [vmem:[#allocation100_spill] sm:$0xff]  ;;  %v13024_v49 = vld [vmem:[#allocation99_spill] sm:$0xff] }
 0x583   : > { %v4136_v10 = vpop.f32.mrf.mxu3  ;;  %v11092_v14 = vpop.f32.mrf.mxu1 }
 0x584   : > { %13021 = vst [vmem:[#allocation34_spill] sm:$0xff] %v11090_v39  ;;  %v4137_v56 = vadd.f32 %v4136_v10, %v4048_v62  ;;  %v8145_v39 = vld [vmem:[#allocation4 + $0x4b8] sm:$0xf0] }
 0x586   : > { %v4226_v57 = vadd.f32 %v4225_v16, %v4137_v56  ;;  %v8988_v16 = vld [vmem:[#allocation4 + $0x3ac] sm:$0xf] }
 0x588   : > { %v4049_v42 = vpop.f32.mrf.mxu2  ;;  %v4936_v6 = vmax.f32 %v4226_v57, 0.0 }
 0x589   : > { %v4050_v55 = vadd.f32 %v4049_v42, %v10933_v48  ;;  %v8020_v48 = vor.u32 %v8988_v16, %v8017_v5  ;;  %v13028_v5 = vld [vmem:[#allocation106_spill] sm:$0xff] }
 0x58a   : > { %v4230_v35 = vpop.f32.mrf.mxu0 }
 0x58b   : > { %v4138_v37 = vpop.f32.mrf.mxu3  ;;  %v11095_v45 = vpop.f32.mrf.mxu1  ;;  %4564 = vmatpush.bf16.msra.mxu0 %v8020_v48 }
 0x58c   : > { %v4139_v38 = vadd.f32 %v4138_v37, %v4050_v55 }
 0x58d   : > { %4091 = vmatmul.bf16.gmra.mxu2 %v13022_v53  ;;  %4269 = vmatmul.bf16.gmra.mxu0 %v13023_v7 }
 0x58e   : > { %v4228_v17 = vadd.f32 %v4227_v1, %v4139_v38  ;;  %4358 = vmatmul.bf16.gmra.mxu1 %v12964_v25  ;;  %v9020_v38 = vld [vmem:[#allocation4 + $0x4ac] sm:$0xf] }
 0x58f   : > { %v8148_v57 = vor.u32 %v9020_v38, %v8145_v39  ;;  %v8904_v39 = vld [vmem:[#allocation4 + $0x10c] sm:$0xf]  ;;  %v7809_v38 = vld [vmem:[#allocation4 + $0x218] sm:$0xf0] }
 0x590   : > { %4180 = vmatmul.bf16.gmra.mxu3 %v13024_v49  ;;  %v4940_v52 = vmax.f32 %v4228_v17, 0.0  ;;  %v4052_v62 = vpop.f32.mrf.mxu2 }
 0x591   : > { %v4053_v10 = vadd.f32 %v4052_v62, %v10936_v47  ;;  %4653 = vmatpush.bf16.msra.mxu1 %v8148_v57  ;;  %v13029_v62 = vld [vmem:[#allocation105_spill] sm:$0xff] }
 0x592   : > { %v11102_v46 = vpack.c.bf16 %v4940_v52, %v4936_v6  ;;  %v4232_v1 = vpop.f32.mrf.mxu0  ;;  %v13027_v52 = vld [vmem:[#allocation103_spill] sm:$0xff] }
 0x593   : > { %v4141_v37 = vpop.f32.mrf.mxu3  ;;  %v11104_v42 = vpop.f32.mrf.mxu1 }
 0x594   : > { %13025 = vst [vmem:[#allocation42_spill] sm:$0xff] %v11102_v46  ;;  %v4142_v56 = vadd.f32 %v4141_v37, %v4053_v10  ;;  %v7681_v10 = vld [vmem:[#allocation4 + $0x118] sm:$0xf0] }
 0x595   : > { %v7684_v37 = vor.u32 %v8904_v39, %v7681_v10 }
 0x596   : > { %v4231_v55 = vadd.f32 %v4230_v35, %v4142_v56  ;;  %v8936_v56 = vld [vmem:[#allocation4 + $0x20c] sm:$0xf] }
 0x597   : > { %4391 = vmatpush.bf16.msra.mxu2 %v7684_v37  ;;  %v8980_v37 = vld [vmem:[#allocation4 + $0x36c] sm:$0xf] }
 0x598   : > { %v4054_v25 = vpop.f32.mrf.mxu2  ;;  %v4944_v35 = vmax.f32 %v4231_v55, 0.0 }
 0x599   : > { %v4055_v17 = vadd.f32 %v4054_v25, %v10943_v20 }
 0x59a   : > { %v4235_v49 = vpop.f32.mrf.mxu0 }
 0x59b   : > { %v4143_v7 = vpop.f32.mrf.mxu3  ;;  %v11107_v47 = vpop.f32.mrf.mxu1 }
 0x59c   : > { %v4144_v16 = vadd.f32 %v4143_v7, %v4055_v17  ;;  %13026 = vst [vmem:[#allocation46_spill] sm:$0xff] %v11107_v47 }
 0x59d   : > { %4096 = vmatmul.bf16.gmra.mxu2 %v13027_v52  ;;  %4274 = vmatmul.bf16.gmra.mxu0 %v13028_v5  ;;  %v8001_v5 = vld [vmem:[#allocation4 + $0x398] sm:$0xf0] }
 0x59e   : > { %v4233_v6 = vadd.f32 %v4232_v1, %v4144_v16  ;;  %4363 = vmatmul.bf16.gmra.mxu1 %v12967_v19  ;;  %v7812_v1 = vor.u32 %v8936_v56, %v7809_v38  ;;  %v7985_v38 = vld [vmem:[#allocation4 + $0x378] sm:$0xf0] }
 0x5a0   : > { %4185 = vmatmul.bf16.gmra.mxu3 %v13029_v62  ;;  %v4948_v48 = vmax.f32 %v4233_v6, 0.0  ;;  %v4057_v20 = vpop.f32.mrf.mxu2  ;;  %v8984_v6 = vld [vmem:[#allocation4 + $0x38c] sm:$0xf] }
 0x5a1   : > { %v4058_v7 = vadd.f32 %v4057_v20, %v10946_v11  ;;  %4480 = vmatpush.bf16.msra.mxu3 %v7812_v1  ;;  %v9016_v62 = vld [vmem:[#allocation4 + $0x48c] sm:$0xf]  ;;  %v8004_v47 = vor.u32 %v8984_v6, %v8001_v5  ;;  %v8129_v11 = vld [vmem:[#allocation4 + $0x498] sm:$0xf0] }
 0x5a2   : > { %v11114_v57 = vpack.c.bf16 %v4948_v48, %v4944_v35  ;;  %v4237_v17 = vpop.f32.mrf.mxu0  ;;  %v8132_v56 = vor.u32 %v9016_v62, %v8129_v11  ;;  %v13033_v1 = vld [vmem:[#allocation112_spill] sm:$0xff]  ;;  %v9008_v11 = vld [vmem:[#allocation4 + $0x44c] sm:$0xf] }
 0x5a3   : > { %v4146_v25 = vpop.f32.mrf.mxu3  ;;  %v11116_v46 = vpop.f32.mrf.mxu1  ;;  %4565 = vmatpush.bf16.msra.mxu0 %v8004_v47 }
 0x5a4   : > { %13030 = vst [vmem:[#allocation83_spill] sm:$0xff] %v11114_v57  ;;  %v4147_v16 = vadd.f32 %v4146_v25, %v4058_v7  ;;  %4654 = vmatpush.bf16.msra.mxu1 %v8132_v56  ;;  %v9012_v7 = vld [vmem:[#allocation4 + $0x46c] sm:$0xf]  ;;  %v13032_v25 = vld [vmem:[#allocation109_spill] sm:$0xff]  ;;  %v8097_v57 = vld [vmem:[#allocation4 + $0x458] sm:$0xf0] }
 0x5a6   : > { %v4236_v19 = vadd.f32 %v4235_v49, %v4147_v16  ;;  %v7988_v16 = vor.u32 %v8980_v37, %v7985_v38 }
 0x5a8   : > { %v4059_v55 = vpop.f32.mrf.mxu2  ;;  %v4952_v62 = vmax.f32 %v4236_v19, 0.0  ;;  %4566 = vmatpush.bf16.msra.mxu0 %v7988_v16  ;;  %v8972_v19 = vld [vmem:[#allocation4 + $0x32c] sm:$0xf] }
 0x5a9   : > { %v4060_v39 = vadd.f32 %v4059_v55, %v10953_v9  ;;  %v8113_v9 = vld [vmem:[#allocation4 + $0x478] sm:$0xf0]  ;;  %v13034_v55 = vld [vmem:[#allocation111_spill] sm:$0xff] }
 0x5aa   : > { %v4240_v20 = vpop.f32.mrf.mxu0  ;;  %v8116_v5 = vor.u32 %v9012_v7, %v8113_v9  ;;  %v7953_v7 = vld [vmem:[#allocation4 + $0x338] sm:$0xf0] }
 0x5ab   : > { %v4148_v10 = vpop.f32.mrf.mxu3  ;;  %v11119_v48 = vpop.f32.mrf.mxu1  ;;  %v7956_v9 = vor.u32 %v8972_v19, %v7953_v7  ;;  %v8305_v19 = vld [vmem:[#allocation4 + $0x5f8] sm:$0xf0] }
 0x5ac   : > { %v4149_v35 = vadd.f32 %v4148_v10, %v4060_v39  ;;  %13031 = vst [vmem:[#allocation88_spill] sm:$0xff] %v11119_v48  ;;  %4655 = vmatpush.bf16.msra.mxu1 %v8116_v5  ;;  %v8976_v39 = vld [vmem:[#allocation4 + $0x34c] sm:$0xf]  ;;  %v7969_v10 = vld [vmem:[#allocation4 + $0x358] sm:$0xf0] }
 0x5ad   : > { %4101 = vmatmul.bf16.gmra.mxu2 %v13032_v25  ;;  %4279 = vmatmul.bf16.gmra.mxu0 %v13033_v1  ;;  %v8100_v1 = vor.u32 %v9008_v11, %v8097_v57  ;;  %v8081_v5 = vld [vmem:[#allocation4 + $0x438] sm:$0xf0] }
 0x5ae   : > { %v4238_v49 = vadd.f32 %v4237_v17, %v4149_v35  ;;  %4368 = vmatmul.bf16.gmra.mxu1 %v12970_v41  ;;  %v7972_v35 = vor.u32 %v8976_v39, %v7969_v10  ;;  %v8065_v11 = vld [vmem:[#allocation4 + $0x418] sm:$0xf0] }
 0x5b0   : > { %4190 = vmatmul.bf16.gmra.mxu3 %v13034_v55  ;;  %v4956_v6 = vmax.f32 %v4238_v49, 0.0  ;;  %v4062_v47 = vpop.f32.mrf.mxu2  ;;  %4567 = vmatpush.bf16.msra.mxu0 %v7972_v35  ;;  %v9004_v49 = vld [vmem:[#allocation4 + $0x42c] sm:$0xf] }
 0x5b1   : > { %v4063_v17 = vadd.f32 %v4062_v47, %v10956_v2  ;;  %4656 = vmatpush.bf16.msra.mxu1 %v8100_v1  ;;  %v8084_v48 = vor.u32 %v9004_v49, %v8081_v5  ;;  %v8968_v47 = vld [vmem:[#allocation4 + $0x30c] sm:$0xf]  ;;  %v8433_v5 = vld [vmem:[#allocation4 + $0x6f8] sm:$0xf0] }
 0x5b2   : > { %v11126_v37 = vpack.c.bf16 %v4956_v6, %v4952_v62  ;;  %v4242_v38 = vpop.f32.mrf.mxu0  ;;  %v7937_v62 = vld [vmem:[#allocation4 + $0x318] sm:$0xf0]  ;;  %v9000_v6 = vld [vmem:[#allocation4 + $0x40c] sm:$0xf] }
 0x5b3   : > { %v4151_v56 = vpop.f32.mrf.mxu3  ;;  %v11128_v41 = vpop.f32.mrf.mxu1  ;;  %v7940_v10 = vor.u32 %v8968_v47, %v7937_v62  ;;  %v8068_v1 = vor.u32 %v9000_v6, %v8065_v11 }
 0x5b4   : > { %13035 = vst [vmem:[#allocation93_spill] sm:$0xff] %v11126_v37  ;;  %v4152_v55 = vadd.f32 %v4151_v56, %v4063_v17  ;;  %4568 = vmatpush.bf16.msra.mxu0 %v7956_v9  ;;  %v9092_v9 = vld [vmem:[#allocation4 + $0x6ec] sm:$0xf] }
 0x5b5   : > { %4657 = vmatpush.bf16.msra.mxu1 %v8084_v48 }
 0x5b6   : > { %v4241_v16 = vadd.f32 %v4240_v20, %v4152_v55  ;;  %v9060_v55 = vld [vmem:[#allocation4 + $0x5ec] sm:$0xf] }
 0x5b7   : > { %v8308_v49 = vor.u32 %v9060_v55, %v8305_v19 }
 0x5b8   : > { %v4064_v2 = vpop.f32.mrf.mxu2  ;;  %4569 = vmatpush.bf16.msra.mxu0 %v7940_v10 }
 0x5b9   : > { %v4065_v57 = vadd.f32 %v4064_v2, %v10963_v23  ;;  %4658 = vmatpush.bf16.msra.mxu1 %v8068_v1  ;;  %v4960_v23 = vmax.f32 %v4241_v16, 0.0  ;;  %4740 = vmatpush.bf16.msrb.mxu2 %v8308_v49 }
 0x5ba   : > { %v4245_v17 = vpop.f32.mrf.mxu0 }
 0x5bb   : > { %v4153_v39 = vpop.f32.mrf.mxu3  ;;  %v11131_v35 = vpop.f32.mrf.mxu1 }
 0x5bc   : > { %v4154_v56 = vadd.f32 %v4153_v39, %v4065_v57 }
 0x5bd   : > { %4106 = vmatmul.bf16.gmra.mxu2 %v12916_v30  ;;  %4284 = vmatmul.bf16.gmra.mxu0 %v10620_v4 }
 0x5be   : > { %v4243_v20 = vadd.f32 %v4242_v38, %v4154_v56  ;;  %4373 = vmatmul.bf16.gmra.mxu1 %v12846_v61  ;;  %v8436_v38 = vor.u32 %v9092_v9, %v8433_v5 }
 0x5c0   : > { %4195 = vmatmul.bf16.gmra.mxu3 %v12915_v60  ;;  %v4964_v48 = vmax.f32 %v4243_v20, 0.0  ;;  %v4067_v7 = vpop.f32.mrf.mxu2 }
 0x5c1   : > { %v4068_v2 = vadd.f32 %v4067_v7, %v10966_v29  ;;  %4829 = vmatpush.bf16.msrb.mxu3 %v8436_v38 }
 0x5c2   : > { %v11138_v62 = vpack.c.bf16 %v4964_v48, %v4960_v23  ;;  %v4247_v6 = vpop.f32.mrf.mxu0 }
 0x5c3   : > { %v4156_v47 = vpop.f32.mrf.mxu3  ;;  %v11140_v39 = vpop.f32.mrf.mxu1 }
 0x5c4   : > { %13036 = vst [vmem:[#allocation97_spill] sm:$0xff] %v11138_v62  ;;  %v4157_v57 = vadd.f32 %v4156_v47, %v4068_v2 }
 0x5c6   : > { %v4246_v61 = vadd.f32 %v4245_v17, %v4157_v57 }
 0x5c8   : > { %v4069_v16 = vpop.f32.mrf.mxu2  ;;  %v4968_v23 = vmax.f32 %v4246_v61, 0.0 }
 0x5c9   : > { %v4070_v10 = vadd.f32 %v4069_v16, %v10973_v27  ;;  %v13039_v16 = vld [vmem:[#allocation45_spill] sm:$0xff] }
 0x5ca   : > { %v4250_v1 = vpop.f32.mrf.mxu0 }
 0x5cb   : > { %v4158_v11 = vpop.f32.mrf.mxu3  ;;  %v11143_v20 = vpop.f32.mrf.mxu1 }
 0x5cc   : > { %v4159_v56 = vadd.f32 %v4158_v11, %v4070_v10 }
 0x5cd   : > { %4111 = vmatmul.bf16.gmra.mxu2 %v12920_v33  ;;  %4289 = vmatmul.bf16.gmra.mxu0 %v10638_v51 }
 0x5ce   : > { %v4248_v29 = vadd.f32 %v4247_v6, %v4159_v56  ;;  %4378 = vmatmul.bf16.gmra.mxu1 %v12975_v26  ;;  %v8289_v56 = vld [vmem:[#allocation4 + $0x5d8] sm:$0xf0] }
 0x5d0   : > { %4200 = vmatmul.bf16.gmra.mxu3 %v12919_v24  ;;  %v4972_v48 = vmax.f32 %v4248_v29, 0.0  ;;  %v4072_v17 = vpop.f32.mrf.mxu2 }
 0x5d1   : > { %v4073_v55 = vadd.f32 %v4072_v17, %v10976_v18  ;;  %v13038_v18 = vld [vmem:[#allocation47_spill] sm:$0xff] }
 0x5d2   : > { %v11150_v19 = vpack.c.bf16 %v4972_v48, %v4968_v23  ;;  %v4252_v7 = vpop.f32.mrf.mxu0  ;;  %v9088_v23 = vld [vmem:[#allocation4 + $0x6cc] sm:$0xf]  ;;  %v8417_v48 = vld [vmem:[#allocation4 + $0x6d8] sm:$0xf0] }
 0x5d3   : > { %v4161_v27 = vpop.f32.mrf.mxu3  ;;  %v11152_v9 = vpop.f32.mrf.mxu1 }
 0x5d4   : > { %13037 = vst [vmem:[#allocation103_spill] sm:$0xff] %v11150_v19  ;;  %v4162_v49 = vadd.f32 %v4161_v27, %v4073_v55  ;;  %v8420_v27 = vor.u32 %v9088_v23, %v8417_v48 }
 0x5d6   : > { %v4251_v5 = vadd.f32 %v4250_v1, %v4162_v49  ;;  %v9056_v1 = vld [vmem:[#allocation4 + $0x5cc] sm:$0xf]  ;;  %4830 = vmatpush.bf16.msrb.mxu3 %v8420_v27 }
 0x5d8   : > { %v4074_v2 = vpop.f32.mrf.mxu2  ;;  %v4976_v10 = vmax.f32 %v4251_v5, 0.0 }
 0x5d9   : > { %v4075_v47 = vadd.f32 %v4074_v2, %v10983_v44  ;;  %v8292_v44 = vor.u32 %v9056_v1, %v8289_v56  ;;  %v13042_v1 = vld [vmem:[#allocation25_spill] sm:$0xff] }
 0x5da   : > { %v4255_v6 = vpop.f32.mrf.mxu0 }
 0x5db   : > { %v4163_v38 = vpop.f32.mrf.mxu3  ;;  %v11155_v26 = vpop.f32.mrf.mxu1  ;;  %4741 = vmatpush.bf16.msrb.mxu2 %v8292_v44 }
 0x5dc   : > { %v4164_v57 = vadd.f32 %v4163_v38, %v4075_v47 }
 0x5dd   : > { %4392 = vmatmul.bf16.vlgmr.msra.gmra.mxu2 %v12924_v54  ;;  %4570 = vmatmul.bf16.vlgmr.msra.gmra.mxu0 %v13038_v18 }
 0x5de   : > { %v4253_v61 = vadd.f32 %v4252_v7, %v4164_v57  ;;  %4659 = vmatmul.bf16.vlgmr.msra.gmra.mxu1 %v12978_v22 }
 0x5e0   : > { %4481 = vmatmul.bf16.vlgmr.msra.gmra.mxu3 %v13039_v16  ;;  %v4980_v11 = vmax.f32 %v4253_v61, 0.0  ;;  %v4077_v29 = vpop.f32.mrf.mxu2  ;;  %v13041_v16 = vld [vmem:[#allocation50_spill] sm:$0xff] }
 0x5e1   : > { %v4078_v17 = vadd.f32 %v4077_v29, %v10986_v43 }
 0x5e2   : > { %v11162_v7 = vpack.c.bf16 %v4980_v11, %v4976_v10  ;;  %v4257_v54 = vpop.f32.mrf.mxu0 }
 0x5e3   : > { %v4166_v55 = vpop.f32.mrf.mxu3  ;;  %v11164_v2 = vpop.f32.mrf.mxu1 }
 0x5e4   : > { %13040 = vst [vmem:[#allocation109_spill] sm:$0xff] %v11162_v7  ;;  %v4167_v49 = vadd.f32 %v4166_v55, %v4078_v17  ;;  %v13044_v55 = vld [vmem:[#allocation29_spill] sm:$0xff] }
 0x5e6   : > { %v4256_v22 = vadd.f32 %v4255_v6, %v4167_v49 }
 0x5e8   : > { %v4079_v5 = vpop.f32.mrf.mxu2  ;;  %v4984_v10 = vmax.f32 %v4256_v22, 0.0 }
 0x5e9   : > { %v4080_v47 = vadd.f32 %v4079_v5, %v10993_v28  ;;  %v13045_v5 = vld [vmem:[#allocation23_spill] sm:$0xff] }
 0x5ea   : > { %v4260_v57 = vpop.f32.mrf.mxu0 }
 0x5eb   : > { %v4168_v38 = vpop.f32.mrf.mxu3  ;;  %v11167_v18 = vpop.f32.mrf.mxu1 }
 0x5ec   : > { %v4169_v61 = vadd.f32 %v4168_v38, %v4080_v47  ;;  %v13046_v47 = vld [vmem:[#allocation55_spill] sm:$0xff]  ;;  %v13047_v38 = vld [vmem:[#allocation53_spill] sm:$0xff] }
 0x5ed   : > { %4397 = vmatmul.bf16.gmra.mxu2 %v12928_v34  ;;  %4575 = vmatmul.bf16.gmra.mxu0 %v12854_v59 }
 0x5ee   : > { %v4258_v43 = vadd.f32 %v4257_v54, %v4169_v61  ;;  %4664 = vmatmul.bf16.gmra.mxu1 %v13041_v16  ;;  %v13048_v61 = vld [vmem:[#allocation54_spill] sm:$0xff] }
 0x5f0   : > { %4486 = vmatmul.bf16.gmra.mxu3 %v12927_v12  ;;  %v4988_v11 = vmax.f32 %v4258_v43, 0.0  ;;  %v4082_v6 = vpop.f32.mrf.mxu2 }
 0x5f1   : > { %v4083_v56 = vadd.f32 %v4082_v6, %v13042_v1  ;;  %v9084_v1 = vld [vmem:[#allocation4 + $0x6ac] sm:$0xf] }
 0x5f2   : > { %v11174_v29 = vpack.c.bf16 %v4988_v11, %v4984_v10  ;;  %v4262_v44 = vpop.f32.mrf.mxu0  ;;  %v8273_v10 = vld [vmem:[#allocation4 + $0x5b8] sm:$0xf0] }
 0x5f3   : > { %v4171_v28 = vpop.f32.mrf.mxu3  ;;  %v11176_v48 = vpop.f32.mrf.mxu1 }
 0x5f4   : > { %13043 = vst [vmem:[#allocation47_spill] sm:$0xff] %v11174_v29  ;;  %v4172_v23 = vadd.f32 %v4171_v28, %v4083_v56  ;;  %v8401_v56 = vld [vmem:[#allocation4 + $0x6b8] sm:$0xf0] }
 0x5f6   : > { %v4261_v17 = vadd.f32 %v4260_v57, %v4172_v23  ;;  %v9052_v57 = vld [vmem:[#allocation4 + $0x5ac] sm:$0xf] }
 0x5f7   : > { %v8276_v6 = vor.u32 %v9052_v57, %v8273_v10  ;;  %v13050_v57 = vld [vmem:[#allocation27_spill] sm:$0xff]  ;;  %v13053_v10 = vld [vmem:[#allocation58_spill] sm:$0xff] }
 0x5f8   : > { %v4084_v34 = vpop.f32.mrf.mxu2  ;;  %v4992_v43 = vmax.f32 %v4261_v17, 0.0 }
 0x5f9   : > { %v4085_v59 = vadd.f32 %v4084_v34, %v13044_v55  ;;  %4742 = vmatpush.bf16.msrb.mxu2 %v8276_v6 }
 0x5fa   : > { %v4265_v12 = vpop.f32.mrf.mxu0 }
 0x5fb   : > { %v4173_v27 = vpop.f32.mrf.mxu3  ;;  %v11179_v49 = vpop.f32.mrf.mxu1 }
 0x5fc   : > { %v4174_v54 = vadd.f32 %v4173_v27, %v4085_v59 }
 0x5fd   : > { %4402 = vmatmul.bf16.gmra.mxu2 %v13045_v5  ;;  %4580 = vmatmul.bf16.gmra.mxu0 %v13046_v47 }
 0x5fe   : > { %v4263_v22 = vadd.f32 %v4262_v44, %v4174_v54  ;;  %4669 = vmatmul.bf16.gmra.mxu1 %v13048_v61  ;;  %v8404_v44 = vor.u32 %v9084_v1, %v8401_v56  ;;  %v13054_v1 = vld [vmem:[#allocation33_spill] sm:$0xff] }
 0x600   : > { %4491 = vmatmul.bf16.gmra.mxu3 %v13047_v38  ;;  %v4996_v16 = vmax.f32 %v4263_v22, 0.0  ;;  %v4087_v11 = vpop.f32.mrf.mxu2 }
 0x601   : > { %v4088_v28 = vadd.f32 %v4087_v11, %v11006_v8  ;;  %4831 = vmatpush.bf16.msrb.mxu3 %v8404_v44 }
 0x602   : > { %v11186_v34 = vpack.c.bf16 %v4996_v16, %v4992_v43  ;;  %v4267_v55 = vpop.f32.mrf.mxu0  ;;  %v13051_v43 = vld [vmem:[#allocation59_spill] sm:$0xff]  ;;  %v13052_v16 = vld [vmem:[#allocation57_spill] sm:$0xff] }
 0x603   : > { %v4176_v23 = vpop.f32.mrf.mxu3  ;;  %v11188_v27 = vpop.f32.mrf.mxu1 }
 0x604   : > { %13049 = vst [vmem:[#allocation45_spill] sm:$0xff] %v11186_v34  ;;  %v4177_v59 = vadd.f32 %v4176_v23, %v4088_v28 }
 0x606   : > { %v4266_v17 = vadd.f32 %v4265_v12, %v4177_v59 }
 0x608   : > { %v4089_v54 = vpop.f32.mrf.mxu2  ;;  %v5000_v11 = vmax.f32 %v4266_v17, 0.0 }
 0x609   : > { %v4090_v22 = vadd.f32 %v4089_v54, %v11013_v36 }
 0x60a   : > { %v4270_v47 = vpop.f32.mrf.mxu0 }
 0x60b   : > { %v4178_v5 = vpop.f32.mrf.mxu3  ;;  %v11191_v61 = vpop.f32.mrf.mxu1 }
 0x60c   : > { %v4179_v38 = vadd.f32 %v4178_v5, %v4090_v22  ;;  %v13056_v22 = vld [vmem:[#allocation37_spill] sm:$0xff] }
 0x60d   : > { %4407 = vmatmul.bf16.gmra.mxu2 %v13050_v57  ;;  %4585 = vmatmul.bf16.gmra.mxu0 %v13051_v43 }
 0x60e   : > { %v4268_v8 = vadd.f32 %v4267_v55, %v4179_v38  ;;  %4674 = vmatmul.bf16.gmra.mxu1 %v13053_v10  ;;  %v13058_v10 = vld [vmem:[#allocation63_spill] sm:$0xff] }
 0x610   : > { %4496 = vmatmul.bf16.gmra.mxu3 %v13052_v16  ;;  %v5004_v6 = vmax.f32 %v4268_v8, 0.0  ;;  %v4092_v12 = vpop.f32.mrf.mxu2  ;;  %v13057_v8 = vld [vmem:[#allocation31_spill] sm:$0xff] }
 0x611   : > { %v4093_v56 = vadd.f32 %v4092_v12, %v13054_v1 }
 0x612   : > { %v11198_v28 = vpack.c.bf16 %v5004_v6, %v5000_v11  ;;  %v4272_v23 = vpop.f32.mrf.mxu0  ;;  %v13059_v11 = vld [vmem:[#allocation61_spill] sm:$0xff]  ;;  %v13060_v6 = vld [vmem:[#allocation62_spill] sm:$0xff] }
 0x613   : > { %v4181_v36 = vpop.f32.mrf.mxu3  ;;  %v11200_v59 = vpop.f32.mrf.mxu1 }
 0x614   : > { %13055 = vst [vmem:[#allocation50_spill] sm:$0xff] %v11198_v28  ;;  %v4182_v44 = vadd.f32 %v4181_v36, %v4093_v56  ;;  %v8257_v56 = vld [vmem:[#allocation4 + $0x598] sm:$0xf0] }
 0x616   : > { %v4271_v55 = vadd.f32 %v4270_v47, %v4182_v44  ;;  %v9048_v47 = vld [vmem:[#allocation4 + $0x58c] sm:$0xf] }
 0x617   : > { %v8260_v44 = vor.u32 %v9048_v47, %v8257_v56 }
 0x618   : > { %v4094_v54 = vpop.f32.mrf.mxu2  ;;  %v5008_v12 = vmax.f32 %v4271_v55, 0.0 }
 0x619   : > { %v4095_v5 = vadd.f32 %v4094_v54, %v13056_v22  ;;  %v9080_v54 = vld [vmem:[#allocation4 + $0x68c] sm:$0xf]  ;;  %v8385_v22 = vld [vmem:[#allocation4 + $0x698] sm:$0xf0]  ;;  %4743 = vmatpush.bf16.msrb.mxu2 %v8260_v44 }
 0x61a   : > { %v4275_v57 = vpop.f32.mrf.mxu0  ;;  %v13065_v44 = vld [vmem:[#allocation66_spill] sm:$0xff] }
 0x61b   : > { %v4183_v38 = vpop.f32.mrf.mxu3  ;;  %v11203_v16 = vpop.f32.mrf.mxu1 }
 0x61c   : > { %v4184_v43 = vadd.f32 %v4183_v38, %v4095_v5 }
 0x61d   : > { %4412 = vmatmul.bf16.gmra.mxu2 %v13057_v8  ;;  %4590 = vmatmul.bf16.gmra.mxu0 %v13058_v10 }
 0x61e   : > { %v4273_v17 = vadd.f32 %v4272_v23, %v4184_v43  ;;  %4679 = vmatmul.bf16.gmra.mxu1 %v13060_v6  ;;  %v8388_v23 = vor.u32 %v9080_v54, %v8385_v22 }
 0x620   : > { %4501 = vmatmul.bf16.gmra.mxu3 %v13059_v11  ;;  %v5012_v1 = vmax.f32 %v4273_v17, 0.0  ;;  %v4097_v36 = vpop.f32.mrf.mxu2 }
 0x621   : > { %v4098_v5 = vadd.f32 %v4097_v36, %v11026_v15  ;;  %4832 = vmatpush.bf16.msrb.mxu3 %v8388_v23  ;;  %v13062_v36 = vld [vmem:[#allocation35_spill] sm:$0xff] }
 0x622   : > { %v11210_v43 = vpack.c.bf16 %v5012_v1, %v5008_v12  ;;  %v4277_v8 = vpop.f32.mrf.mxu0  ;;  %v13063_v12 = vld [vmem:[#allocation67_spill] sm:$0xff]  ;;  %v13064_v1 = vld [vmem:[#allocation65_spill] sm:$0xff] }
 0x623   : > { %v4186_v38 = vpop.f32.mrf.mxu3  ;;  %v11212_v11 = vpop.f32.mrf.mxu1 }
 0x624   : > { %13061 = vst [vmem:[#allocation25_spill] sm:$0xff] %v11210_v43  ;;  %v4187_v10 = vadd.f32 %v4186_v38, %v4098_v5  ;;  %v13066_v5 = vld [vmem:[#allocation41_spill] sm:$0xff] }
 0x626   : > { %v4276_v55 = vadd.f32 %v4275_v57, %v4187_v10 }
 0x628   : > { %v4099_v17 = vpop.f32.mrf.mxu2  ;;  %v5016_v54 = vmax.f32 %v4276_v55, 0.0 }
 0x629   : > { %v4100_v6 = vadd.f32 %v4099_v17, %v11033_v40 }
 0x62a   : > { %v4280_v47 = vpop.f32.mrf.mxu0 }
 0x62b   : > { %v4188_v28 = vpop.f32.mrf.mxu3  ;;  %v11215_v34 = vpop.f32.mrf.mxu1 }
 0x62c   : > { %v4189_v56 = vadd.f32 %v4188_v28, %v4100_v6 }
 0x62d   : > { %4417 = vmatmul.bf16.gmra.mxu2 %v13062_v36  ;;  %4595 = vmatmul.bf16.gmra.mxu0 %v13063_v12 }
 0x62e   : > { %v4278_v15 = vadd.f32 %v4277_v8, %v4189_v56  ;;  %4684 = vmatmul.bf16.gmra.mxu1 %v13065_v44  ;;  %v13068_v56 = vld [vmem:[#allocation14_spill] sm:$0xff] }
 0x630   : > { %4506 = vmatmul.bf16.gmra.mxu3 %v13064_v1  ;;  %v5020_v22 = vmax.f32 %v4278_v15, 0.0  ;;  %v4102_v57 = vpop.f32.mrf.mxu2  ;;  %v13069_v15 = vld [vmem:[#allocation39_spill] sm:$0xff] }
 0x631   : > { %v4103_v38 = vadd.f32 %v4102_v57, %v13066_v5  ;;  %v13070_v57 = vld [vmem:[#allocation72_spill] sm:$0xff] }
 0x632   : > { %v11222_v23 = vpack.c.bf16 %v5020_v22, %v5016_v54  ;;  %v4282_v28 = vpop.f32.mrf.mxu0  ;;  %v13071_v54 = vld [vmem:[#allocation70_spill] sm:$0xff]  ;;  %v13072_v22 = vld [vmem:[#allocation71_spill] sm:$0xff] }
 0x633   : > { %v4191_v40 = vpop.f32.mrf.mxu3  ;;  %v11224_v17 = vpop.f32.mrf.mxu1 }
 0x634   : > { %13067 = vst [vmem:[#allocation29_spill] sm:$0xff] %v11222_v23  ;;  %v4192_v10 = vadd.f32 %v4191_v40, %v4103_v38  ;;  %v8241_v40 = vld [vmem:[#allocation4 + $0x578] sm:$0xf0] }
 0x635   : > { %v8369_v23 = vld [vmem:[#allocation4 + $0x678] sm:$0xf0] }
 0x636   : > { %v4281_v8 = vadd.f32 %v4280_v47, %v4192_v10  ;;  %v9044_v47 = vld [vmem:[#allocation4 + $0x56c] sm:$0xf] }
 0x638   : > { %v4104_v6 = vpop.f32.mrf.mxu2  ;;  %v5024_v5 = vmax.f32 %v4281_v8, 0.0 }
 0x639   : > { %v4105_v36 = vadd.f32 %v4104_v6, %v13068_v56  ;;  %v8244_v6 = vor.u32 %v9044_v47, %v8241_v40  ;;  %v9076_v56 = vld [vmem:[#allocation4 + $0x66c] sm:$0xf] }
 0x63a   : > { %v4285_v1 = vpop.f32.mrf.mxu0 }
 0x63b   : > { %v4193_v12 = vpop.f32.mrf.mxu3  ;;  %v11227_v44 = vpop.f32.mrf.mxu1  ;;  %4744 = vmatpush.bf16.msrb.mxu2 %v8244_v6  ;;  %v9110_v6 = vld [vmem:[#allocation7 + $0x74] sm:$0xf0] }
 0x63c   : > { %v4194_v43 = vadd.f32 %v4193_v12, %v4105_v36  ;;  %v13073_v36 = vld [vmem:[#allocation18_spill] sm:$0xff] }
 0x63d   : > { %4422 = vmatmul.bf16.gmra.mxu2 %v13069_v15  ;;  %4600 = vmatmul.bf16.gmra.mxu0 %v13070_v57 }
 0x63e   : > { %v4283_v55 = vadd.f32 %v4282_v28, %v4194_v43  ;;  %4689 = vmatmul.bf16.gmra.mxu1 %v13072_v22  ;;  %v8372_v43 = vor.u32 %v9076_v56, %v8369_v23  ;;  %v13075_v22 = vld [vmem:[#allocation22_spill] sm:$0xff] }
 0x63f   : > { %v13077_v23 = vld [vmem:[#allocation78_spill] sm:$0xff] }
 0x640   : > { %4511 = vmatmul.bf16.gmra.mxu3 %v13071_v54  ;;  %v5028_v38 = vmax.f32 %v4283_v55, 0.0  ;;  %v4107_v10 = vpop.f32.mrf.mxu2 }
 0x641   : > { %v4108_v12 = vadd.f32 %v4107_v10, %v13073_v36  ;;  %4833 = vmatpush.bf16.msrb.mxu3 %v8372_v43  ;;  %v13076_v36 = vld [vmem:[#allocation43_spill] sm:$0xff] }
 0x642   : > { %v11234_v28 = vpack.c.bf16 %v5028_v38, %v5024_v5  ;;  %v4287_v15 = vpop.f32.mrf.mxu0  ;;  %v13078_v5 = vld [vmem:[#allocation76_spill] sm:$0xff]  ;;  %v8495_v38 = vld [vmem:[#allocation7 + $0x70] sm:$0xf] }
 0x643   : > { %v4196_v29 = vpop.f32.mrf.mxu3  ;;  %v11236_v54 = vpop.f32.mrf.mxu1 }
 0x644   : > { %13074 = vst [vmem:[#allocation23_spill] sm:$0xff] %v11234_v28  ;;  %v4197_v57 = vadd.f32 %v4196_v29, %v4108_v12  ;;  %v13079_v29 = vld [vmem:[#allocation77_spill] sm:$0xff]  ;;  %v8496_v12 = vor.u32 %v9110_v6, %v8495_v38  ;;  %v9413_v6 = vld [vmem:[#allocation6] sm:$0xf] }
 0x646   : > { %v4286_v8 = vadd.f32 %v4285_v1, %v4197_v57  ;;  %5500 = vmatpush.bf16.msrb.mxu0 %v8496_v12 }
 0x648   : > { %v4109_v55 = vpop.f32.mrf.mxu2  ;;  %v5032_v1 = vmax.f32 %v4286_v8, 0.0 }
 0x649   : > { %v4110_v7 = vadd.f32 %v4109_v55, %v13075_v22 }
 0x64a   : > { %v4290_v47 = vpop.f32.mrf.mxu0 }
 0x64b   : > { %v4198_v19 = vpop.f32.mrf.mxu3  ;;  %v11239_v62 = vpop.f32.mrf.mxu1 }
 0x64c   : > { %v4199_v40 = vadd.f32 %v4198_v19, %v4110_v7 }
 0x64d   : > { %4427 = vmatmul.bf16.gmra.mxu2 %v13076_v36  ;;  %4605 = vmatmul.bf16.gmra.mxu0 %v13077_v23  ;;  %v8559_v36 = vld [vmem:[#allocation7 + $0xf0] sm:$0xf]  ;;  %v9126_v23 = vld [vmem:[#allocation7 + $0xf4] sm:$0xf0] }
 0x64e   : > { %v4288_v10 = vadd.f32 %v4287_v15, %v4199_v40  ;;  %4694 = vmatmul.bf16.gmra.mxu1 %v13079_v29 }
 0x650   : > { %4516 = vmatmul.bf16.gmra.mxu3 %v13078_v5  ;;  %v5036_v56 = vmax.f32 %v4288_v10, 0.0  ;;  %v4112_v43 = vpop.f32.mrf.mxu2  ;;  %v8560_v5 = vor.u32 %v9126_v23, %v8559_v36  ;;  %v9072_v36 = vld [vmem:[#allocation4 + $0x64c] sm:$0xf] }
 0x651   : > { %v4113_v57 = vadd.f32 %v4112_v43, %v11056_v0  ;;  %v11251_v0 = vperm.slane %v9413_v6, 3  ;;  %v13081_v43 = vld [vmem:[#allocation16_spill] sm:$0xff] }
 0x652   : > { %v11246_v7 = vpack.c.bf16 %v5036_v56, %v5032_v1  ;;  %v4292_v15 = vpop.f32.mrf.mxu0  ;;  %5589 = vmatpush.bf16.msrb.mxu1 %v8560_v5 }
 0x653   : > { %v4201_v19 = vpop.f32.mrf.mxu3  ;;  %v11248_v22 = vpop.f32.mrf.mxu1  ;;  %v4307_v28 = vadd.f32 %v11068_v3, %v11251_v0  ;;  %v13088_v3 = vld [vmem:[#allocation26_spill] sm:$0xff] }
 0x654   : > { %13080 = vst [vmem:[#allocation55_spill] sm:$0xff] %v11246_v7  ;;  %v4202_v55 = vadd.f32 %v4201_v19, %v4113_v57  ;;  %v13082_v57 = vld [vmem:[#allocation84_spill] sm:$0xff]  ;;  %v9040_v19 = vld [vmem:[#allocation4 + $0x54c] sm:$0xf] }
 0x656   : > { %v4291_v40 = vadd.f32 %v4290_v47, %v4202_v55  ;;  %v13083_v47 = vld [vmem:[#allocation82_spill] sm:$0xff]  ;;  %v8225_v55 = vld [vmem:[#allocation4 + $0x558] sm:$0xf0] }
 0x658   : > { %v4114_v29 = vpop.f32.mrf.mxu2  ;;  %v5040_v23 = vmax.f32 %v4291_v40, 0.0 }
 0x659   : > { %v4115_v8 = vadd.f32 %v4114_v29, %v11065_v58  ;;  %v4305_v58 = vadd.f32 %v11059_v31, %v11251_v0  ;;  %v8228_v29 = vor.u32 %v9040_v19, %v8225_v55 }
 0x65a   : > { %v4571_v38 = vpop.f32.mrf.mxu0 }
 0x65b   : > { %v4203_v10 = vpop.f32.mrf.mxu3  ;;  %v4660_v1 = vpop.f32.mrf.mxu1  ;;  %4745 = vmatpush.bf16.msrb.mxu2 %v8228_v29  ;;  %v13085_v29 = vld [vmem:[#allocation20_spill] sm:$0xff] }
 0x65c   : > { %v4204_v12 = vadd.f32 %v4203_v10, %v4115_v8  ;;  %v8353_v8 = vld [vmem:[#allocation4 + $0x658] sm:$0xf0] }
 0x65d   : > { %4432 = vmatmul.bf16.gmra.mxu2 %v13081_v43  ;;  %4610 = vmatmul.bf16.gmra.mxu0 %v13082_v57 }
 0x65e   : > { %v4293_v56 = vadd.f32 %v4292_v15, %v4204_v12  ;;  %4699 = vmatmul.bf16.gmra.mxu1 %v13010_v21  ;;  %v8356_v15 = vor.u32 %v9072_v36, %v8353_v8 }
 0x660   : > { %4521 = vmatmul.bf16.gmra.mxu3 %v13083_v47  ;;  %v5044_v5 = vmax.f32 %v4293_v56, 0.0  ;;  %v4393_v10 = vpop.f32.mrf.mxu2 }
 0x661   : > { %v4394_v6 = vadd.f32 %v4393_v10, %v4305_v58  ;;  %4834 = vmatpush.bf16.msrb.mxu3 %v8356_v15  ;;  %v9108_v10 = vld [vmem:[#allocation7 + $0x64] sm:$0xf0] }
 0x662   : > { %v11259_v43 = vpack.c.bf16 %v5044_v5, %v5040_v23  ;;  %v4573_v57 = vpop.f32.mrf.mxu0  ;;  %v13086_v23 = vld [vmem:[#allocation89_spill] sm:$0xff]  ;;  %v13087_v5 = vld [vmem:[#allocation87_spill] sm:$0xff] }
 0x663   : > { %v4482_v12 = vpop.f32.mrf.mxu3  ;;  %v4662_v47 = vpop.f32.mrf.mxu1 }
 0x664   : > { %13084 = vst [vmem:[#allocation53_spill] sm:$0xff] %v11259_v43  ;;  %v4483_v21 = vadd.f32 %v4482_v12, %v4394_v6 }
 0x666   : > { %v4572_v7 = vadd.f32 %v4571_v38, %v4483_v21  ;;  %v8487_v38 = vld [vmem:[#allocation7 + $0x60] sm:$0xf] }
 0x668   : > { %v11263_v31 = vadd.f32 %v4660_v1, %v4572_v7  ;;  %v4395_v40 = vpop.f32.mrf.mxu2  ;;  %v4310_v7 = vadd.f32 %v13088_v3, %v11251_v0  ;;  %v8488_v1 = vor.u32 %v9108_v10, %v8487_v38 }
 0x669   : > { %v4396_v56 = vadd.f32 %v4395_v40, %v4307_v28 }
 0x66a   : > { %v4576_v55 = vpop.f32.mrf.mxu0  ;;  %5501 = vmatpush.bf16.msrb.mxu0 %v8488_v1  ;;  %v13089_v1 = vld [vmem:[#allocation24_spill] sm:$0xff] }
 0x66b   : > { %v4484_v19 = vpop.f32.mrf.mxu3  ;;  %v4665_v58 = vpop.f32.mrf.mxu1 }
 0x66c   : > { %v4485_v36 = vadd.f32 %v4484_v19, %v4396_v56  ;;  %v8551_v19 = vld [vmem:[#allocation7 + $0xe0] sm:$0xf] }
 0x66d   : > { %4437 = vmatmul.bf16.gmra.mxu2 %v13085_v29  ;;  %4615 = vmatmul.bf16.gmra.mxu0 %v13086_v23 }
 0x66e   : > { %v4574_v8 = vadd.f32 %v4573_v57, %v4485_v36  ;;  %4704 = vmatmul.bf16.gmra.mxu1 %v13014_v63  ;;  %v9124_v36 = vld [vmem:[#allocation7 + $0xe4] sm:$0xf0]  ;;  %v4312_v63 = vadd.f32 %v11080_v32, %v11251_v0  ;;  %v8209_v32 = vld [vmem:[#allocation4 + $0x538] sm:$0xf0] }
 0x66f   : > { %v8552_v29 = vor.u32 %v9124_v36, %v8551_v19 }
 0x670   : > { %4526 = vmatmul.bf16.gmra.mxu3 %v13087_v5  ;;  %v11271_v28 = vadd.f32 %v4662_v47, %v4574_v8  ;;  %v4398_v15 = vpop.f32.mrf.mxu2 }
 0x671   : > { %v4399_v6 = vadd.f32 %v4398_v15, %v4310_v7  ;;  %5590 = vmatpush.bf16.msrb.mxu1 %v8552_v29  ;;  %v13090_v15 = vld [vmem:[#allocation94_spill] sm:$0xff] }
 0x672   : > { %v4578_v57 = vpop.f32.mrf.mxu0 }
 0x673   : > { %v4487_v12 = vpop.f32.mrf.mxu3  ;;  %v4667_v40 = vpop.f32.mrf.mxu1 }
 0x674   : > { %v4488_v21 = vadd.f32 %v4487_v12, %v4399_v6  ;;  %v9036_v6 = vld [vmem:[#allocation4 + $0x52c] sm:$0xf]  ;;  %v4315_v12 = vadd.f32 %v11083_v13, %v11251_v0 }
 0x676   : > { %v4577_v56 = vadd.f32 %v4576_v55, %v4488_v21  ;;  %v13091_v55 = vld [vmem:[#allocation92_spill] sm:$0xff]  ;;  %v8212_v21 = vor.u32 %v9036_v6, %v8209_v32 }
 0x678   : > { %v11275_v23 = vadd.f32 %v4665_v58, %v4577_v56  ;;  %v4400_v5 = vpop.f32.mrf.mxu2  ;;  %v9068_v58 = vld [vmem:[#allocation4 + $0x62c] sm:$0xf]  ;;  %v8337_v56 = vld [vmem:[#allocation4 + $0x638] sm:$0xf0]  ;;  %4746 = vmatpush.bf16.msrb.mxu2 %v8212_v21 }
 0x679   : > { %v4401_v47 = vadd.f32 %v4400_v5, %v4312_v63  ;;  %v13094_v21 = vld [vmem:[#allocation96_spill] sm:$0xff] }
 0x67a   : > { %v4581_v38 = vpop.f32.mrf.mxu0 }
 0x67b   : > { %v4489_v8 = vpop.f32.mrf.mxu3  ;;  %v4670_v3 = vpop.f32.mrf.mxu1 }
 0x67c   : > { %v4490_v10 = vadd.f32 %v4489_v8, %v4401_v47 }
 0x67d   : > { %4442 = vmatmul.bf16.gmra.mxu2 %v13089_v1  ;;  %4620 = vmatmul.bf16.gmra.mxu0 %v13090_v15 }
 0x67e   : > { %v4579_v7 = vadd.f32 %v4578_v57, %v4490_v10  ;;  %4709 = vmatmul.bf16.gmra.mxu1 %v13018_v50  ;;  %v8340_v57 = vor.u32 %v9068_v58, %v8337_v56  ;;  %v4317_v10 = vadd.f32 %v11092_v14, %v11251_v0  ;;  %v13092_v58 = vld [vmem:[#allocation28_spill] sm:$0xff]  ;;  %v4320_v14 = vadd.f32 %v11095_v45, %v11251_v0 }
 0x67f   : > { %v9106_v56 = vld [vmem:[#allocation7 + $0x54] sm:$0xf0] }
 0x680   : > { %4531 = vmatmul.bf16.gmra.mxu3 %v13091_v55  ;;  %v11283_v19 = vadd.f32 %v4667_v40, %v4579_v7  ;;  %v4403_v36 = vpop.f32.mrf.mxu2 }
 0x681   : > { %v4404_v29 = vadd.f32 %v4403_v36, %v4315_v12  ;;  %4835 = vmatpush.bf16.msrb.mxu3 %v8340_v57  ;;  %v13093_v12 = vld [vmem:[#allocation98_spill] sm:$0xff] }
 0x682   : > { %v4583_v5 = vpop.f32.mrf.mxu0 }
 0x683   : > { %v4492_v63 = vpop.f32.mrf.mxu3  ;;  %v4672_v8 = vpop.f32.mrf.mxu1 }
 0x684   : > { %v4493_v47 = vadd.f32 %v4492_v63, %v4404_v29 }
 0x686   : > { %v4582_v50 = vadd.f32 %v4581_v38, %v4493_v47  ;;  %v8479_v38 = vld [vmem:[#allocation7 + $0x50] sm:$0xf] }
 0x688   : > { %v11287_v1 = vadd.f32 %v4670_v3, %v4582_v50  ;;  %v4405_v13 = vpop.f32.mrf.mxu2  ;;  %v8480_v3 = vor.u32 %v9106_v56, %v8479_v38  ;;  %v13095_v56 = vld [vmem:[#allocation32_spill] sm:$0xff] }
 0x689   : > { %v4406_v15 = vadd.f32 %v4405_v13, %v4317_v10  ;;  %v8543_v13 = vld [vmem:[#allocation7 + $0xd0] sm:$0xf] }
 0x68a   : > { %v4586_v40 = vpop.f32.mrf.mxu0  ;;  %5502 = vmatpush.bf16.msrb.mxu0 %v8480_v3  ;;  %v9032_v3 = vld [vmem:[#allocation4 + $0x50c] sm:$0xf] }
 0x68b   : > { %v4494_v55 = vpop.f32.mrf.mxu3  ;;  %v4675_v6 = vpop.f32.mrf.mxu1 }
 0x68c   : > { %v4495_v7 = vadd.f32 %v4494_v55, %v4406_v15  ;;  %v9122_v15 = vld [vmem:[#allocation7 + $0xd4] sm:$0xf0] }
 0x68d   : > { %4447 = vmatmul.bf16.gmra.mxu2 %v13092_v58  ;;  %4625 = vmatmul.bf16.gmra.mxu0 %v13093_v12  ;;  %v8544_v55 = vor.u32 %v9122_v15, %v8543_v13 }
 0x68e   : > { %v4584_v32 = vadd.f32 %v4583_v5, %v4495_v7  ;;  %4714 = vmatmul.bf16.gmra.mxu1 %v13022_v53  ;;  %v4322_v53 = vadd.f32 %v11104_v42, %v11251_v0  ;;  %v8193_v42 = vld [vmem:[#allocation4 + $0x518] sm:$0xf0] }
 0x68f   : > { %5591 = vmatpush.bf16.msrb.mxu1 %v8544_v55 }
 0x690   : > { %4536 = vmatmul.bf16.gmra.mxu3 %v13094_v21  ;;  %v11295_v36 = vadd.f32 %v4672_v8, %v4584_v32  ;;  %v4408_v57 = vpop.f32.mrf.mxu2 }
 0x691   : > { %v4409_v29 = vadd.f32 %v4408_v57, %v4320_v14  ;;  %v13096_v14 = vld [vmem:[#allocation104_spill] sm:$0xff]  ;;  %v13098_v57 = vld [vmem:[#allocation46_spill] sm:$0xff] }
 0x692   : > { %v4588_v5 = vpop.f32.mrf.mxu0 }
 0x693   : > { %v4497_v63 = vpop.f32.mrf.mxu3  ;;  %v4677_v50 = vpop.f32.mrf.mxu1 }
 0x694   : > { %v4498_v47 = vadd.f32 %v4497_v63, %v4409_v29  ;;  %v4325_v29 = vadd.f32 %v13098_v57, %v11251_v0  ;;  %v8196_v63 = vor.u32 %v9032_v3, %v8193_v42 }
 0x696   : > { %v4587_v10 = vadd.f32 %v4586_v40, %v4498_v47  ;;  %v13097_v40 = vld [vmem:[#allocation102_spill] sm:$0xff]  ;;  %v8321_v47 = vld [vmem:[#allocation4 + $0x618] sm:$0xf0]  ;;  %4747 = vmatpush.bf16.msrb.mxu2 %v8196_v63 }
 0x698   : > { %v11299_v7 = vadd.f32 %v4675_v6, %v4587_v10  ;;  %v4410_v45 = vpop.f32.mrf.mxu2  ;;  %v9064_v6 = vld [vmem:[#allocation4 + $0x60c] sm:$0xf] }
 0x699   : > { %v4411_v8 = vadd.f32 %v4410_v45, %v4322_v53 }
 0x69a   : > { %v4591_v58 = vpop.f32.mrf.mxu0 }
 0x69b   : > { %v4499_v32 = vpop.f32.mrf.mxu3  ;;  %v4680_v21 = vpop.f32.mrf.mxu1 }
 0x69c   : > { %v4500_v12 = vadd.f32 %v4499_v32, %v4411_v8  ;;  %v4327_v32 = vadd.f32 %v11116_v46, %v11251_v0 }
 0x69d   : > { %4452 = vmatmul.bf16.gmra.mxu2 %v13095_v56  ;;  %4630 = vmatmul.bf16.gmra.mxu0 %v13096_v14  ;;  %v8471_v14 = vld [vmem:[#allocation7 + $0x40] sm:$0xf] }
 0x69e   : > { %v4589_v38 = vadd.f32 %v4588_v5, %v4500_v12  ;;  %4719 = vmatmul.bf16.gmra.mxu1 %v13027_v52  ;;  %v8324_v5 = vor.u32 %v9064_v6, %v8321_v47  ;;  %v9120_v6 = vld [vmem:[#allocation7 + $0xc4] sm:$0xf0] }
 0x6a0   : > { %4541 = vmatmul.bf16.gmra.mxu3 %v13097_v40  ;;  %v11307_v10 = vadd.f32 %v4677_v50, %v4589_v38  ;;  %v4413_v13 = vpop.f32.mrf.mxu2  ;;  %v9104_v40 = vld [vmem:[#allocation7 + $0x44] sm:$0xf0]  ;;  %v8535_v50 = vld [vmem:[#allocation7 + $0xc0] sm:$0xf] }
 0x6a1   : > { %v4414_v15 = vadd.f32 %v4413_v13, %v4325_v29  ;;  %4836 = vmatpush.bf16.msrb.mxu3 %v8324_v5  ;;  %v8472_v42 = vor.u32 %v9104_v40, %v8471_v14  ;;  %v8536_v29 = vor.u32 %v9120_v6, %v8535_v50  ;;  %v9102_v13 = vld [vmem:[#allocation7 + $0x34] sm:$0xf0]  ;;  %v8527_v5 = vld [vmem:[#allocation7 + $0xb0] sm:$0xf] }
 0x6a2   : > { %v4593_v53 = vpop.f32.mrf.mxu0 }
 0x6a3   : > { %v4502_v55 = vpop.f32.mrf.mxu3  ;;  %v4682_v8 = vpop.f32.mrf.mxu1  ;;  %5503 = vmatpush.bf16.msrb.mxu0 %v8472_v42  ;;  %5592 = vmatpush.bf16.msrb.mxu1 %v8536_v29 }
 0x6a4   : > { %v4503_v45 = vadd.f32 %v4502_v55, %v4414_v15  ;;  %v13100_v15 = vld [vmem:[#allocation110_spill] sm:$0xff] }
 0x6a6   : > { %v4592_v52 = vadd.f32 %v4591_v58, %v4503_v45  ;;  %v8463_v58 = vld [vmem:[#allocation7 + $0x30] sm:$0xf]  ;;  %v9118_v45 = vld [vmem:[#allocation7 + $0xb4] sm:$0xf0] }
 0x6a7   : > { %v8464_v55 = vor.u32 %v9102_v13, %v8463_v58 }
 0x6a8   : > { %v11311_v12 = vadd.f32 %v4680_v21, %v4592_v52  ;;  %v4415_v56 = vpop.f32.mrf.mxu2  ;;  %v13099_v21 = vld [vmem:[#allocation36_spill] sm:$0xff] }
 0x6a9   : > { %v4416_v38 = vadd.f32 %v4415_v56, %v4327_v32  ;;  %v13101_v52 = vld [vmem:[#allocation108_spill] sm:$0xff]  ;;  %v8528_v32 = vor.u32 %v9118_v45, %v8527_v5  ;;  %5504 = vmatpush.bf16.msrb.mxu0 %v8464_v55  ;;  %v8447_v5 = vld [vmem:[#allocation7 + $0x10] sm:$0xf] }
 0x6aa   : > { %v4596_v57 = vpop.f32.mrf.mxu0  ;;  %v13102_v56 = vld [vmem:[#allocation88_spill] sm:$0xff]  ;;  %v8511_v55 = vld [vmem:[#allocation7 + $0x90] sm:$0xf] }
 0x6ab   : > { %v4504_v3 = vpop.f32.mrf.mxu3  ;;  %v4685_v47 = vpop.f32.mrf.mxu1  ;;  %v4330_v14 = vadd.f32 %v13102_v56, %v11251_v0  ;;  %5593 = vmatpush.bf16.msrb.mxu1 %v8528_v32  ;;  %v9114_v45 = vld [vmem:[#allocation7 + $0x94] sm:$0xf0]  ;;  %v4332_v32 = vadd.f32 %v11128_v41, %v11251_v0 }
 0x6ac   : > { %v4505_v63 = vadd.f32 %v4504_v3, %v4416_v38  ;;  %v9100_v38 = vld [vmem:[#allocation7 + $0x24] sm:$0xf0]  ;;  %v8519_v3 = vld [vmem:[#allocation7 + $0xa0] sm:$0xf]  ;;  %v13103_v41 = vld [vmem:[#allocation40_spill] sm:$0xff] }
 0x6ad   : > { %4457 = vmatmul.bf16.gmra.mxu2 %v13099_v21  ;;  %4635 = vmatmul.bf16.gmra.mxu0 %v13100_v15  ;;  %v9098_v15 = vld [vmem:[#allocation7 + $0x14] sm:$0xf0] }
 0x6ae   : > { %v4594_v46 = vadd.f32 %v4593_v53, %v4505_v63  ;;  %4724 = vmatmul.bf16.gmra.mxu1 %v13032_v25  ;;  %v8455_v53 = vld [vmem:[#allocation7 + $0x20] sm:$0xf]  ;;  %v9116_v63 = vld [vmem:[#allocation7 + $0xa4] sm:$0xf0] }
 0x6af   : > { %v8456_v29 = vor.u32 %v9100_v38, %v8455_v53  ;;  %v8520_v13 = vor.u32 %v9116_v63, %v8519_v3  ;;  %v9096_v53 = vld [vmem:[#allocation7 + $0x4] sm:$0xf0]  ;;  %v8503_v38 = vld [vmem:[#allocation7 + $0x80] sm:$0xf] }
 0x6b0   : > { %4546 = vmatmul.bf16.gmra.mxu3 %v13101_v52  ;;  %v11319_v40 = vadd.f32 %v4682_v8, %v4594_v46  ;;  %v4418_v50 = vpop.f32.mrf.mxu2  ;;  %v8448_v46 = vor.u32 %v9098_v15, %v8447_v5  ;;  %v8512_v52 = vor.u32 %v9114_v45, %v8511_v55  ;;  %v13105_v15 = vld [vmem:[#allocation114_spill] sm:$0xff]  ;;  %v8623_v55 = vld [vmem:[#allocation7 + $0x170] sm:$0xf]  ;;  %v4335_v45 = vadd.f32 %v11131_v35, %v11251_v0 }
 0x6b1   : > { %v4419_v42 = vadd.f32 %v4418_v50, %v4330_v14  ;;  %5505 = vmatpush.bf16.msrb.mxu0 %v8456_v29  ;;  %5594 = vmatpush.bf16.msrb.mxu1 %v8520_v13  ;;  %v8439_v50 = vld [vmem:[#allocation7] sm:$0xf]  ;;  %v9112_v29 = vld [vmem:[#allocation7 + $0x84] sm:$0xf0] }
 0x6b2   : > { %v4598_v58 = vpop.f32.mrf.mxu0 }
 0x6b3   : > { %v4507_v6 = vpop.f32.mrf.mxu3  ;;  %v4687_v25 = vpop.f32.mrf.mxu1 }
 0x6b4   : > { %v4508_v21 = vadd.f32 %v4507_v6, %v4419_v42  ;;  %v8440_v6 = vor.u32 %v9096_v53, %v8439_v50 }
 0x6b5   : > { %5506 = vmatpush.bf16.msrb.mxu0 %v8448_v46  ;;  %5595 = vmatpush.bf16.msrb.mxu1 %v8512_v52  ;;  %v8687_v46 = vld [vmem:[#allocation7 + $0x1f0] sm:$0xf] }
 0x6b6   : > { %v4597_v8 = vadd.f32 %v4596_v57, %v4508_v21  ;;  %v8504_v57 = vor.u32 %v9112_v29, %v8503_v38  ;;  %v4337_v29 = vadd.f32 %v11140_v39, %v11251_v0  ;;  %v4340_v39 = vadd.f32 %v11143_v20, %v11251_v0 }
 0x6b8   : > { %v11323_v56 = vadd.f32 %v4685_v47, %v4597_v8  ;;  %v4420_v14 = vpop.f32.mrf.mxu2  ;;  %v13104_v47 = vld [vmem:[#allocation116_spill] sm:$0xff] }
 0x6b9   : > { %v4421_v3 = vadd.f32 %v4420_v14, %v4332_v32  ;;  %5507 = vmatpush.bf16.msrb.mxu0 %v8440_v6  ;;  %5596 = vmatpush.bf16.msrb.mxu1 %v8504_v57  ;;  %v9142_v8 = vld [vmem:[#allocation7 + $0x174] sm:$0xf0] }
 0x6ba   : > { %v4601_v63 = vpop.f32.mrf.mxu0  ;;  %v8624_v52 = vor.u32 %v9142_v8, %v8623_v55  ;;  %v9158_v32 = vld [vmem:[#allocation7 + $0x1f4] sm:$0xf0] }
 0x6bb   : > { %v4509_v42 = vpop.f32.mrf.mxu3  ;;  %v4690_v21 = vpop.f32.mrf.mxu1  ;;  %v13106_v55 = vld [vmem:[#allocation44_spill] sm:$0xff] }
 0x6bc   : > { %v4510_v13 = vadd.f32 %v4509_v42, %v4421_v3  ;;  %5678 = vmatpush.bf16.msra.mxu2 %v8624_v52  ;;  %v13107_v8 = vld [vmem:[#allocation120_spill] sm:$0xff] }
 0x6bd   : > { %4462 = vmatmul.bf16.gmra.mxu2 %v13103_v41  ;;  %4640 = vmatmul.bf16.gmra.mxu0 %v13104_v47 }
 0x6be   : > { %v4599_v5 = vadd.f32 %v4598_v58, %v4510_v13  ;;  %4729 = vmatmul.bf16.gmra.mxu1 %v12916_v30  ;;  %v8688_v58 = vor.u32 %v9158_v32, %v8687_v46  ;;  %v13108_v46 = vld [vmem:[#allocation118_spill] sm:$0xff] }
 0x6c0   : > { %4551 = vmatmul.bf16.gmra.mxu3 %v13105_v15  ;;  %v11331_v14 = vadd.f32 %v4687_v25, %v4599_v5  ;;  %v4423_v50 = vpop.f32.mrf.mxu2 }
 0x6c1   : > { %v4424_v53 = vadd.f32 %v4423_v50, %v4335_v45  ;;  %5767 = vmatpush.bf16.msra.mxu3 %v8688_v58 }
 0x6c2   : > { %v4603_v3 = vpop.f32.mrf.mxu0 }
 0x6c3   : > { %v4512_v38 = vpop.f32.mrf.mxu3  ;;  %v4692_v6 = vpop.f32.mrf.mxu1 }
 0x6c4   : > { %v4513_v42 = vadd.f32 %v4512_v38, %v4424_v53  ;;  %v4342_v38 = vadd.f32 %v11152_v9, %v11251_v0  ;;  %v8679_v9 = vld [vmem:[#allocation7 + $0x1e0] sm:$0xf] }
 0x6c6   : > { %v4602_v30 = vadd.f32 %v4601_v63, %v4513_v42 }
 0x6c8   : > { %v11335_v57 = vadd.f32 %v4690_v21, %v4602_v30  ;;  %v4425_v35 = vpop.f32.mrf.mxu2 }
 0x6c9   : > { %v4426_v13 = vadd.f32 %v4425_v35, %v4337_v29 }
 0x6ca   : > { %v4606_v25 = vpop.f32.mrf.mxu0 }
 0x6cb   : > { %v4514_v41 = vpop.f32.mrf.mxu3  ;;  %v4695_v47 = vpop.f32.mrf.mxu1 }
 0x6cc   : > { %v4515_v5 = vadd.f32 %v4514_v41, %v4426_v13  ;;  %v13109_v13 = vld [vmem:[#allocation48_spill] sm:$0xff]  ;;  %v13110_v41 = vld [vmem:[#allocation81_spill] sm:$0xff] }
 0x6cd   : > { %4467 = vmatmul.bf16.gmra.mxu2 %v13106_v55  ;;  %4645 = vmatmul.bf16.gmra.mxu0 %v13107_v8  ;;  %v9140_v55 = vld [vmem:[#allocation7 + $0x164] sm:$0xf0] }
 0x6ce   : > { %v4604_v15 = vadd.f32 %v4603_v3, %v4515_v5  ;;  %4734 = vmatmul.bf16.gmra.mxu1 %v12920_v33  ;;  %v13111_v5 = vld [vmem:[#allocation122_spill] sm:$0xff] }
 0x6d0   : > { %4556 = vmatmul.bf16.gmra.mxu3 %v13108_v46  ;;  %v11343_v63 = vadd.f32 %v4692_v6, %v4604_v15  ;;  %v4428_v21 = vpop.f32.mrf.mxu2  ;;  %v13112_v15 = vld [vmem:[#allocation142_spill] sm:$0xff] }
 0x6d1   : > { %v4429_v45 = vadd.f32 %v4428_v21, %v4340_v39  ;;  %v9156_v46 = vld [vmem:[#allocation7 + $0x1e4] sm:$0xf0] }
 0x6d2   : > { %v4608_v32 = vpop.f32.mrf.mxu0 }
 0x6d3   : > { %v4517_v52 = vpop.f32.mrf.mxu3  ;;  %v4697_v58 = vpop.f32.mrf.mxu1 }
 0x6d4   : > { %v4518_v50 = vadd.f32 %v4517_v52, %v4429_v45  ;;  %v8680_v45 = vor.u32 %v9156_v46, %v8679_v9  ;;  %v13114_v9 = vld [vmem:[#allocation91_spill] sm:$0xff] }
 0x6d6   : > { %v4607_v53 = vadd.f32 %v4606_v25, %v4518_v50  ;;  %v8615_v25 = vld [vmem:[#allocation7 + $0x160] sm:$0xf]  ;;  %5768 = vmatpush.bf16.msra.mxu3 %v8680_v45 }
 0x6d7   : > { %v8616_v8 = vor.u32 %v9140_v55, %v8615_v25  ;;  %v13113_v55 = vld [vmem:[#allocation52_spill] sm:$0xff] }
 0x6d8   : > { %v11347_v3 = vadd.f32 %v4695_v47, %v4607_v53  ;;  %v4430_v42 = vpop.f32.mrf.mxu2  ;;  %v4345_v47 = vadd.f32 %v11155_v26, %v11251_v0 }
 0x6d9   : > { %v4431_v30 = vadd.f32 %v4430_v42, %v4342_v38  ;;  %5679 = vmatpush.bf16.msra.mxu2 %v8616_v8  ;;  %v13116_v8 = vld [vmem:[#allocation128_spill] sm:$0xff] }
 0x6da   : > { %v4611_v29 = vpop.f32.mrf.mxu0 }
 0x6db   : > { %v4519_v33 = vpop.f32.mrf.mxu3  ;;  %v4700_v20 = vpop.f32.mrf.mxu1 }
 0x6dc   : > { %v4520_v35 = vadd.f32 %v4519_v33, %v4431_v30  ;;  %v4347_v30 = vadd.f32 %v11164_v2, %v11251_v0  ;;  %v4350_v2 = vadd.f32 %v11167_v18, %v11251_v0 }
 0x6dd   : > { %4748 = vmatmul.bf16.vlgmr.msrb.gmra.mxu2 %v13109_v13  ;;  %5508 = vmatmul.bf16.vlgmr.msrb.gmra.mxu0 %v13110_v41 }
 0x6de   : > { %v4609_v6 = vadd.f32 %v4608_v32, %v4520_v35  ;;  %5597 = vmatmul.bf16.vlgmr.msrb.gmra.mxu1 %v13112_v15 }
 0x6e0   : > { %4837 = vmatmul.bf16.vlgmr.msrb.gmra.mxu3 %v13111_v5  ;;  %v11355_v39 = vadd.f32 %v4697_v58, %v4609_v6  ;;  %v4433_v21 = vpop.f32.mrf.mxu2 }
 0x6e1   : > { %v4434_v52 = vadd.f32 %v4433_v21, %v4345_v47  ;;  %v13115_v47 = vld [vmem:[#allocation123_spill] sm:$0xff] }
 0x6e2   : > { %v4613_v50 = vpop.f32.mrf.mxu0 }
 0x6e3   : > { %v4522_v32 = vpop.f32.mrf.mxu3  ;;  %v4702_v38 = vpop.f32.mrf.mxu1 }
 0x6e4   : > { %v4523_v53 = vadd.f32 %v4522_v32, %v4434_v52 }
 0x6e6   : > { %v4612_v42 = vadd.f32 %v4611_v29, %v4523_v53  ;;  %v4352_v53 = vadd.f32 %v11176_v48, %v11251_v0  ;;  %v8671_v48 = vld [vmem:[#allocation7 + $0x1d0] sm:$0xf] }
 0x6e8   : > { %v11359_v33 = vadd.f32 %v4700_v20, %v4612_v42  ;;  %v4435_v26 = vpop.f32.mrf.mxu2 }
 0x6e9   : > { %v4436_v35 = vadd.f32 %v4435_v26, %v4347_v30 }
 0x6ea   : > { %v4616_v58 = vpop.f32.mrf.mxu0 }
 0x6eb   : > { %v4524_v13 = vpop.f32.mrf.mxu3  ;;  %v4705_v5 = vpop.f32.mrf.mxu1 }
 0x6ec   : > { %v4525_v6 = vadd.f32 %v4524_v13, %v4436_v35 }
 0x6ed   : > { %4753 = vmatmul.bf16.gmra.mxu2 %v13113_v55  ;;  %5513 = vmatmul.bf16.gmra.mxu0 %v13114_v9  ;;  %v13118_v55 = vld [vmem:[#allocation129_spill] sm:$0xff] }
 0x6ee   : > { %v4614_v25 = vadd.f32 %v4613_v50, %v4525_v6  ;;  %5602 = vmatmul.bf16.gmra.mxu1 %v13116_v8 }
 0x6f0   : > { %4842 = vmatmul.bf16.gmra.mxu3 %v13115_v47  ;;  %v11367_v29 = vadd.f32 %v4702_v38, %v4614_v25  ;;  %v4438_v20 = vpop.f32.mrf.mxu2  ;;  %v13117_v25 = vld [vmem:[#allocation56_spill] sm:$0xff] }
 0x6f1   : > { %v4439_v46 = vadd.f32 %v4438_v20, %v4350_v2  ;;  %v13119_v47 = vld [vmem:[#allocation124_spill] sm:$0xff]  ;;  %v13120_v2 = vld [vmem:[#allocation130_spill] sm:$0xff] }
 0x6f2   : > { %v4618_v45 = vpop.f32.mrf.mxu0  ;;  %v9138_v20 = vld [vmem:[#allocation7 + $0x154] sm:$0xf0] }
 0x6f3   : > { %v4527_v21 = vpop.f32.mrf.mxu3  ;;  %v4707_v32 = vpop.f32.mrf.mxu1 }
 0x6f4   : > { %v4528_v52 = vadd.f32 %v4527_v21, %v4439_v46  ;;  %v9154_v21 = vld [vmem:[#allocation7 + $0x1d4] sm:$0xf0] }
 0x6f6   : > { %v4617_v50 = vadd.f32 %v4616_v58, %v4528_v52  ;;  %v8607_v58 = vld [vmem:[#allocation7 + $0x150] sm:$0xf] }
 0x6f7   : > { %v8608_v46 = vor.u32 %v9138_v20, %v8607_v58 }
 0x6f8   : > { %v11371_v42 = vadd.f32 %v4705_v5, %v4617_v50  ;;  %v4440_v30 = vpop.f32.mrf.mxu2  ;;  %v4355_v5 = vadd.f32 %v11179_v49, %v11251_v0 }
 0x6f9   : > { %v4441_v26 = vadd.f32 %v4440_v30, %v4352_v53  ;;  %5680 = vmatpush.bf16.msra.mxu2 %v8608_v46  ;;  %v13122_v46 = vld [vmem:[#allocation131_spill] sm:$0xff] }
 0x6fa   : > { %v4621_v13 = vpop.f32.mrf.mxu0 }
 0x6fb   : > { %v4529_v35 = vpop.f32.mrf.mxu3  ;;  %v4710_v18 = vpop.f32.mrf.mxu1 }
 0x6fc   : > { %v4530_v6 = vadd.f32 %v4529_v35, %v4441_v26 }
 0x6fd   : > { %4758 = vmatmul.bf16.gmra.mxu2 %v13117_v25  ;;  %5518 = vmatmul.bf16.gmra.mxu0 %v13118_v55 }
 0x6fe   : > { %v4619_v38 = vadd.f32 %v4618_v45, %v4530_v6  ;;  %5607 = vmatmul.bf16.gmra.mxu1 %v13120_v2  ;;  %v8672_v45 = vor.u32 %v9154_v21, %v8671_v48  ;;  %v13123_v21 = vld [vmem:[#allocation125_spill] sm:$0xff] }
 0x700   : > { %4847 = vmatmul.bf16.gmra.mxu3 %v13119_v47  ;;  %v11379_v52 = vadd.f32 %v4707_v32, %v4619_v38  ;;  %v4443_v50 = vpop.f32.mrf.mxu2  ;;  %v4357_v47 = vadd.f32 %v11188_v27, %v11251_v0  ;;  %v4360_v27 = vadd.f32 %v11191_v61, %v11251_v0 }
 0x701   : > { %v4444_v53 = vadd.f32 %v4443_v50, %v4355_v5  ;;  %5769 = vmatpush.bf16.msra.mxu3 %v8672_v45  ;;  %v13121_v5 = vld [vmem:[#allocation60_spill] sm:$0xff]  ;;  %v13124_v50 = vld [vmem:[#allocation101_spill] sm:$0xff] }
 0x702   : > { %v4623_v26 = vpop.f32.mrf.mxu0 }
 0x703   : > { %v4532_v30 = vpop.f32.mrf.mxu3  ;;  %v4712_v6 = vpop.f32.mrf.mxu1 }
 0x704   : > { %v4533_v35 = vadd.f32 %v4532_v30, %v4444_v53 }
 0x706   : > { %v4622_v25 = vadd.f32 %v4621_v13, %v4533_v35 }
 0x708   : > { %v11383_v43 = vadd.f32 %v4710_v18, %v4622_v25  ;;  %v4445_v49 = vpop.f32.mrf.mxu2 }
 0x709   : > { %v4446_v58 = vadd.f32 %v4445_v49, %v4357_v47  ;;  %v4362_v47 = vadd.f32 %v11200_v59, %v11251_v0  ;;  %v8663_v59 = vld [vmem:[#allocation7 + $0x1c0] sm:$0xf] }
 0x70a   : > { %v4626_v32 = vpop.f32.mrf.mxu0 }
 0x70b   : > { %v4534_v20 = vpop.f32.mrf.mxu3  ;;  %v4715_v37 = vpop.f32.mrf.mxu1 }
 0x70c   : > { %v4535_v38 = vadd.f32 %v4534_v20, %v4446_v58 }
 0x70d   : > { %4763 = vmatmul.bf16.gmra.mxu2 %v13121_v5  ;;  %5523 = vmatmul.bf16.gmra.mxu0 %v13122_v46 }
 0x70e   : > { %v4624_v48 = vadd.f32 %v4623_v26, %v4535_v38  ;;  %5612 = vmatmul.bf16.gmra.mxu1 %v13124_v50 }
 0x710   : > { %4852 = vmatmul.bf16.gmra.mxu3 %v13123_v21  ;;  %v11391_v13 = vadd.f32 %v4712_v6, %v4624_v48  ;;  %v4448_v18 = vpop.f32.mrf.mxu2  ;;  %v13126_v48 = vld [vmem:[#allocation64_spill] sm:$0xff] }
 0x711   : > { %v4449_v45 = vadd.f32 %v4448_v18, %v4360_v27  ;;  %v13127_v27 = vld [vmem:[#allocation133_spill] sm:$0xff]  ;;  %v13128_v18 = vld [vmem:[#allocation126_spill] sm:$0xff] }
 0x712   : > { %v4628_v30 = vpop.f32.mrf.mxu0 }
 0x713   : > { %v4537_v53 = vpop.f32.mrf.mxu3  ;;  %v4717_v25 = vpop.f32.mrf.mxu1 }
 0x714   : > { %v4538_v35 = vadd.f32 %v4537_v53, %v4449_v45  ;;  %v13129_v45 = vld [vmem:[#allocation132_spill] sm:$0xff]  ;;  %v9136_v53 = vld [vmem:[#allocation7 + $0x144] sm:$0xf0] }
 0x716   : > { %v4627_v26 = vadd.f32 %v4626_v32, %v4538_v35  ;;  %v8599_v32 = vld [vmem:[#allocation7 + $0x140] sm:$0xf] }
 0x717   : > { %v8600_v35 = vor.u32 %v9136_v53, %v8599_v32 }
 0x718   : > { %v11395_v49 = vadd.f32 %v4715_v37, %v4627_v26  ;;  %v4450_v58 = vpop.f32.mrf.mxu2  ;;  %v4365_v37 = vadd.f32 %v11203_v16, %v11251_v0  ;;  %v9152_v26 = vld [vmem:[#allocation7 + $0x1c4] sm:$0xf0] }
 0x719   : > { %v4451_v20 = vadd.f32 %v4450_v58, %v4362_v47  ;;  %5681 = vmatpush.bf16.msra.mxu2 %v8600_v35  ;;  %v13132_v35 = vld [vmem:[#allocation113_spill] sm:$0xff] }
 0x71a   : > { %13125 = vst [vmem:[#allocation54_spill] sm:$0xff] %v11395_v49  ;;  %v4631_v5 = vpop.f32.mrf.mxu0 }
 0x71b   : > { %v4539_v38 = vpop.f32.mrf.mxu3  ;;  %v4720_v61 = vpop.f32.mrf.mxu1 }
 0x71c   : > { %v4540_v21 = vadd.f32 %v4539_v38, %v4451_v20 }
 0x71d   : > { %4768 = vmatmul.bf16.gmra.mxu2 %v13126_v48  ;;  %5528 = vmatmul.bf16.gmra.mxu0 %v13127_v27  ;;  %v4367_v27 = vadd.f32 %v11212_v11, %v11251_v0  ;;  %v4370_v11 = vadd.f32 %v11215_v34, %v11251_v0 }
 0x71e   : > { %v4629_v6 = vadd.f32 %v4628_v30, %v4540_v21  ;;  %5617 = vmatmul.bf16.gmra.mxu1 %v13129_v45  ;;  %v8664_v30 = vor.u32 %v9152_v26, %v8663_v59  ;;  %v13133_v26 = vld [vmem:[#allocation127_spill] sm:$0xff] }
 0x720   : > { %4857 = vmatmul.bf16.gmra.mxu3 %v13128_v18  ;;  %v11403_v47 = vadd.f32 %v4717_v25, %v4629_v6  ;;  %v4453_v58 = vpop.f32.mrf.mxu2 }
 0x721   : > { %v4454_v20 = vadd.f32 %v4453_v58, %v4365_v37  ;;  %5770 = vmatpush.bf16.msra.mxu3 %v8664_v30  ;;  %v13131_v37 = vld [vmem:[#allocation68_spill] sm:$0xff]  ;;  %v13134_v58 = vld [vmem:[#allocation107_spill] sm:$0xff] }
 0x722   : > { %13130 = vst [vmem:[#allocation27_spill] sm:$0xff] %v11403_v47  ;;  %v4633_v21 = vpop.f32.mrf.mxu0 }
 0x723   : > { %v4542_v38 = vpop.f32.mrf.mxu3  ;;  %v4722_v18 = vpop.f32.mrf.mxu1 }
 0x724   : > { %v4543_v48 = vadd.f32 %v4542_v38, %v4454_v20 }
 0x726   : > { %v4632_v45 = vadd.f32 %v4631_v5, %v4543_v48  ;;  %v4372_v48 = vadd.f32 %v11224_v17, %v11251_v0  ;;  %v8655_v17 = vld [vmem:[#allocation7 + $0x1b0] sm:$0xf] }
 0x728   : > { %v11407_v49 = vadd.f32 %v4720_v61, %v4632_v45  ;;  %v4455_v16 = vpop.f32.mrf.mxu2 }
 0x729   : > { %v4456_v32 = vadd.f32 %v4455_v16, %v4367_v27 }
 0x72a   : > { %v4636_v25 = vpop.f32.mrf.mxu0 }
 0x72b   : > { %v4544_v53 = vpop.f32.mrf.mxu3  ;;  %v4725_v47 = vpop.f32.mrf.mxu1 }
 0x72c   : > { %v4545_v6 = vadd.f32 %v4544_v53, %v4456_v32 }
 0x72d   : > { %4773 = vmatmul.bf16.gmra.mxu2 %v13131_v37  ;;  %5533 = vmatmul.bf16.gmra.mxu0 %v13132_v35 }
 0x72e   : > { %v4634_v59 = vadd.f32 %v4633_v21, %v4545_v6  ;;  %5622 = vmatmul.bf16.gmra.mxu1 %v13134_v58 }
 0x730   : > { %4862 = vmatmul.bf16.gmra.mxu3 %v13133_v26  ;;  %v11415_v5 = vadd.f32 %v4722_v18, %v4634_v59  ;;  %v4458_v61 = vpop.f32.mrf.mxu2  ;;  %v13136_v59 = vld [vmem:[#allocation73_spill] sm:$0xff] }
 0x731   : > { %v4459_v27 = vadd.f32 %v4458_v61, %v4370_v11  ;;  %v13137_v11 = vld [vmem:[#allocation38_spill] sm:$0xff]  ;;  %v13138_v61 = vld [vmem:[#allocation69_spill] sm:$0xff] }
 0x732   : > { %v4638_v30 = vpop.f32.mrf.mxu0 }
 0x733   : > { %v4547_v45 = vpop.f32.mrf.mxu3  ;;  %v4727_v38 = vpop.f32.mrf.mxu1 }
 0x734   : > { %v4548_v20 = vadd.f32 %v4547_v45, %v4459_v27  ;;  %v13139_v27 = vld [vmem:[#allocation117_spill] sm:$0xff]  ;;  %v9134_v45 = vld [vmem:[#allocation7 + $0x134] sm:$0xf0] }
 0x736   : > { %v4637_v21 = vadd.f32 %v4636_v25, %v4548_v20  ;;  %v8591_v25 = vld [vmem:[#allocation7 + $0x130] sm:$0xf] }
 0x737   : > { %v8592_v20 = vor.u32 %v9134_v45, %v8591_v25 }
 0x738   : > { %v11419_v16 = vadd.f32 %v4725_v47, %v4637_v21  ;;  %v4460_v32 = vpop.f32.mrf.mxu2  ;;  %v4375_v47 = vadd.f32 %v11227_v44, %v11251_v0  ;;  %v9150_v21 = vld [vmem:[#allocation7 + $0x1b4] sm:$0xf0] }
 0x739   : > { %v4461_v53 = vadd.f32 %v4460_v32, %v4372_v48  ;;  %5682 = vmatpush.bf16.msra.mxu2 %v8592_v20  ;;  %v13142_v20 = vld [vmem:[#allocation134_spill] sm:$0xff] }
 0x73a   : > { %13135 = vst [vmem:[#allocation59_spill] sm:$0xff] %v11419_v16  ;;  %v4641_v37 = vpop.f32.mrf.mxu0 }
 0x73b   : > { %v4549_v6 = vpop.f32.mrf.mxu3  ;;  %v4730_v34 = vpop.f32.mrf.mxu1 }
 0x73c   : > { %v4550_v26 = vadd.f32 %v4549_v6, %v4461_v53 }
 0x73d   : > { %4778 = vmatmul.bf16.gmra.mxu2 %v13136_v59  ;;  %5538 = vmatmul.bf16.gmra.mxu0 %v13137_v11  ;;  %v4377_v11 = vadd.f32 %v11236_v54, %v11251_v0  ;;  %v4380_v54 = vadd.f32 %v11239_v62, %v11251_v0  ;;  %v8561_v62 = vld [vmem:[#allocation7 + $0xf8] sm:$0xf0] }
 0x73e   : > { %v4639_v18 = vadd.f32 %v4638_v30, %v4550_v26  ;;  %5627 = vmatmul.bf16.gmra.mxu1 %v13139_v27  ;;  %v8656_v30 = vor.u32 %v9150_v21, %v8655_v17  ;;  %v13143_v21 = vld [vmem:[#allocation74_spill] sm:$0xff] }
 0x740   : > { %4867 = vmatmul.bf16.gmra.mxu3 %v13138_v61  ;;  %v11427_v48 = vadd.f32 %v4727_v38, %v4639_v18  ;;  %v4463_v32 = vpop.f32.mrf.mxu2 }
 0x741   : > { %v4464_v53 = vadd.f32 %v4463_v32, %v4375_v47  ;;  %5771 = vmatpush.bf16.msra.mxu3 %v8656_v30  ;;  %v13141_v47 = vld [vmem:[#allocation79_spill] sm:$0xff] }
 0x742   : > { %13140 = vst [vmem:[#allocation57_spill] sm:$0xff] %v11427_v48  ;;  %v4643_v26 = vpop.f32.mrf.mxu0  ;;  %v13144_v32 = vld [vmem:[#allocation115_spill] sm:$0xff] }
 0x743   : > { %v4552_v6 = vpop.f32.mrf.mxu3  ;;  %v4732_v61 = vpop.f32.mrf.mxu1 }
 0x744   : > { %v4553_v59 = vadd.f32 %v4552_v6, %v4464_v53 }
 0x746   : > { %v4642_v27 = vadd.f32 %v4641_v37, %v4553_v59  ;;  %v9109_v37 = vld [vmem:[#allocation7 + $0x74] sm:$0xf] }
 0x748   : > { %v11431_v16 = vadd.f32 %v4730_v34, %v4642_v27  ;;  %v4465_v44 = vpop.f32.mrf.mxu2  ;;  %v8497_v34 = vld [vmem:[#allocation7 + $0x78] sm:$0xf0] }
 0x749   : > { %v4466_v25 = vadd.f32 %v4465_v44, %v4377_v11  ;;  %v8500_v30 = vor.u32 %v9109_v37, %v8497_v34 }
 0x74a   : > { %v4646_v38 = vpop.f32.mrf.mxu0 }
 0x74b   : > { %v4554_v45 = vpop.f32.mrf.mxu3  ;;  %v4735_v48 = vpop.f32.mrf.mxu1  ;;  %5856 = vmatpush.bf16.msra.mxu0 %v8500_v30 }
 0x74c   : > { %v4555_v18 = vadd.f32 %v4554_v45, %v4466_v25  ;;  %v11444_v25 = vld [vmem:[%s12372_s4] sm:$0x3] }
 0x74d   : > { %4783 = vmatmul.bf16.gmra.mxu2 %v13141_v47  ;;  %5543 = vmatmul.bf16.gmra.mxu0 %v13142_v20 }
 0x74e   : > { %v4644_v17 = vadd.f32 %v4643_v26, %v4555_v18  ;;  %5632 = vmatmul.bf16.gmra.mxu1 %v13144_v32  ;;  %v9125_v18 = vld [vmem:[#allocation7 + $0xf4] sm:$0xf] }
 0x74f   : > { %v8564_v47 = vor.u32 %v9125_v18, %v8561_v62  ;;  %v13146_v18 = vld [vmem:[#allocation85_spill] sm:$0xff]  ;;  %v9132_v62 = vld [vmem:[#allocation7 + $0x124] sm:$0xf0] }
 0x750   : > { %4872 = vmatmul.bf16.gmra.mxu3 %v13143_v21  ;;  %v11439_v27 = vadd.f32 %v4732_v61, %v4644_v17  ;;  %v4468_v11 = vpop.f32.mrf.mxu2  ;;  %v4382_v61 = vadd.f32 %v11248_v22, %v11251_v0  ;;  %v11449_v17 = vperm.slane %v11444_v25, 0  ;;  %v13147_v22 = vld [vmem:[#allocation51_spill] sm:$0xff] }
 0x751   : > { %v4469_v53 = vadd.f32 %v4468_v11, %v4380_v54  ;;  %5945 = vmatpush.bf16.msra.mxu1 %v8564_v47  ;;  %v13148_v0 = vld [vmem:[#allocation75_spill] sm:$0xff]  ;;  %v8647_v47 = vld [vmem:[#allocation7 + $0x1a0] sm:$0xf] }
 0x752   : > { %v4648_v26 = vpop.f32.mrf.mxu0 }
 0x753   : > { %v4557_v6 = vpop.f32.mrf.mxu3  ;;  %v4737_v44 = vpop.f32.mrf.mxu1 }
 0x754   : > { %v4558_v59 = vadd.f32 %v4557_v6, %v4469_v53 }
 0x756   : > { %v4647_v45 = vadd.f32 %v4646_v38, %v4558_v59 }
 0x758   : > { %v11451_v21 = vadd.f32 %v4735_v48, %v4647_v45  ;;  %v4470_v54 = vpop.f32.mrf.mxu2  ;;  %v13149_v48 = vld [vmem:[#allocation121_spill] sm:$0xff] }
 0x759   : > { %v4471_v37 = vadd.f32 %v4470_v54, %v4382_v61  ;;  %v8583_v45 = vld [vmem:[#allocation7 + $0x120] sm:$0xf]  ;;  %v9148_v54 = vld [vmem:[#allocation7 + $0x1a4] sm:$0xf0] }
 0x75a   : > { %v5509_v11 = vpop.f32.mrf.mxu0  ;;  %v8584_v61 = vor.u32 %v9132_v62, %v8583_v45 }
 0x75b   : > { %v4559_v34 = vpop.f32.mrf.mxu3  ;;  %v5510_v53 = vadd.f32 %v5509_v11, %v11449_v17  ;;  %v5598_v38 = vpop.f32.mrf.mxu1  ;;  %v8648_v11 = vor.u32 %v9148_v54, %v8647_v47 }
 0x75c   : > { %v4560_v30 = vadd.f32 %v4559_v34, %v4471_v37  ;;  %5683 = vmatpush.bf16.msra.mxu2 %v8584_v61 }
 0x75d   : > { %v11454_v59 = vadd.f32 %v5598_v38, %v5510_v53  ;;  %4788 = vmatmul.bf16.gmra.mxu2 %v13146_v18  ;;  %5548 = vmatmul.bf16.gmra.mxu0 %v13147_v22 }
 0x75e   : > { %v4649_v6 = vadd.f32 %v4648_v26, %v4560_v30  ;;  %5637 = vmatmul.bf16.gmra.mxu1 %v13149_v48  ;;  %5772 = vmatpush.bf16.msra.mxu3 %v8648_v11  ;;  %v13151_v11 = vld [vmem:[#allocation90_spill] sm:$0xff] }
 0x75f   : > { %13145 = vst [vmem:[#allocation58_spill] sm:$0xff] %v11454_v59 }
 0x760   : > { %4877 = vmatmul.bf16.gmra.mxu3 %v13148_v0  ;;  %v11460_v37 = vadd.f32 %v4737_v44, %v4649_v6  ;;  %v4749_v34 = vpop.f32.mrf.mxu2 }
 0x761   : > { %v4750_v26 = vadd.f32 %v4749_v34, %v11263_v31 }
 0x762   : > { %v5511_v53 = vpop.f32.mrf.mxu0 }
 0x763   : > { %v4838_v30 = vpop.f32.mrf.mxu3  ;;  %v5512_v18 = vadd.f32 %v5511_v53, %v11449_v17  ;;  %v5600_v0 = vpop.f32.mrf.mxu1  ;;  %v13154_v53 = vld [vmem:[#allocation119_spill] sm:$0xff] }
 0x764   : > { %v4839_v38 = vadd.f32 %v4838_v30, %v4750_v26  ;;  %v13152_v26 = vld [vmem:[#allocation135_spill] sm:$0xff]  ;;  %v13153_v30 = vld [vmem:[#allocation80_spill] sm:$0xff] }
 0x765   : > { %v11464_v59 = vadd.f32 %v5600_v0, %v5512_v18  ;;  %v9107_v18 = vld [vmem:[#allocation7 + $0x64] sm:$0xf] }
 0x766   : > { %v4921_v31 = vmax.f32 %v4839_v38, 0.0 }
 0x768   : > { %v4751_v48 = vpop.f32.mrf.mxu2 }
 0x769   : > { %v4752_v45 = vadd.f32 %v4751_v48, %v11271_v28  ;;  %v8489_v28 = vld [vmem:[#allocation7 + $0x68] sm:$0xf0] }
 0x76a   : > { %v5514_v44 = vpop.f32.mrf.mxu0  ;;  %v8492_v0 = vor.u32 %v9107_v18, %v8489_v28 }
 0x76b   : > { %v4840_v62 = vpop.f32.mrf.mxu3  ;;  %v5515_v47 = vadd.f32 %v5514_v44, %v11449_v17  ;;  %v5603_v54 = vpop.f32.mrf.mxu1 }
 0x76c   : > { %v4841_v6 = vadd.f32 %v4840_v62, %v4752_v45  ;;  %5857 = vmatpush.bf16.msra.mxu0 %v8492_v0 }
 0x76d   : > { %v11468_v61 = vadd.f32 %v5603_v54, %v5515_v47  ;;  %4793 = vmatmul.bf16.gmra.mxu2 %v13151_v11  ;;  %5553 = vmatmul.bf16.gmra.mxu0 %v13152_v26 }
 0x76e   : > { %v4925_v34 = vmax.f32 %v4841_v6, 0.0  ;;  %5642 = vmatmul.bf16.gmra.mxu1 %v13154_v53 }
 0x76f   : > { %13150 = vst [vmem:[#allocation33_spill] sm:$0xff] %v11468_v61  ;;  %v8553_v61 = vld [vmem:[#allocation7 + $0xe8] sm:$0xf0] }
 0x770   : > { %4882 = vmatmul.bf16.gmra.mxu3 %v13153_v30  ;;  %v11474_v48 = vpack.c.bf16 %v4925_v34, %v4921_v31  ;;  %v4754_v45 = vpop.f32.mrf.mxu2  ;;  %v9123_v30 = vld [vmem:[#allocation7 + $0xe4] sm:$0xf] }
 0x771   : > { %v4755_v62 = vadd.f32 %v4754_v45, %v11275_v23  ;;  %v8556_v53 = vor.u32 %v9123_v30, %v8553_v61  ;;  %v13160_v61 = vld [vmem:[#allocation13_spill] sm:$0xff] }
 0x772   : > { %v5516_v44 = vpop.f32.mrf.mxu0 }
 0x773   : > { %v4843_v38 = vpop.f32.mrf.mxu3  ;;  %v5517_v47 = vadd.f32 %v5516_v44, %v11449_v17  ;;  %v5605_v54 = vpop.f32.mrf.mxu1  ;;  %5946 = vmatpush.bf16.msra.mxu1 %v8556_v53  ;;  %v13157_v44 = vld [vmem:[#allocation95_spill] sm:$0xff] }
 0x774   : > { %v4844_v6 = vadd.f32 %v4843_v38, %v4755_v62  ;;  %v8575_v53 = vld [vmem:[#allocation7 + $0x110] sm:$0xf] }
 0x775   : > { %v11478_v11 = vadd.f32 %v5605_v54, %v5517_v47  ;;  %v13158_v47 = vld [vmem:[#allocation136_spill] sm:$0xff]  ;;  %v13159_v54 = vld [vmem:[#allocation86_spill] sm:$0xff] }
 0x776   : > { %v4929_v45 = vmax.f32 %v4844_v6, 0.0 }
 0x777   : > { %13155 = vst [vmem:[#allocation37_spill] sm:$0xff] %v11478_v11  ;;  %v13175_v11 = vld [vmem:[#allocation111_spill] sm:$0xff] }
 0x778   : > { %v4756_v26 = vpop.f32.mrf.mxu2 }
 0x779   : > { %v4757_v31 = vadd.f32 %v4756_v26, %v11283_v19  ;;  %v9130_v19 = vld [vmem:[#allocation7 + $0x114] sm:$0xf0]  ;;  %v8639_v26 = vld [vmem:[#allocation7 + $0x190] sm:$0xf] }
 0x77a   : > { %v5519_v18 = vpop.f32.mrf.mxu0  ;;  %v8576_v30 = vor.u32 %v9130_v19, %v8575_v53 }
 0x77b   : > { %v4845_v34 = vpop.f32.mrf.mxu3  ;;  %v5520_v23 = vadd.f32 %v5519_v18, %v11449_v17  ;;  %v5608_v0 = vpop.f32.mrf.mxu1 }
 0x77c   : > { %v4846_v28 = vadd.f32 %v4845_v34, %v4757_v31  ;;  %v9146_v31 = vld [vmem:[#allocation7 + $0x194] sm:$0xf0]  ;;  %5684 = vmatpush.bf16.msra.mxu2 %v8576_v30 }
 0x77d   : > { %v11482_v38 = vadd.f32 %v5608_v0, %v5520_v23  ;;  %4798 = vmatmul.bf16.gmra.mxu2 %v13157_v44  ;;  %5558 = vmatmul.bf16.gmra.mxu0 %v13158_v47  ;;  %v8640_v6 = vor.u32 %v9146_v31, %v8639_v26 }
 0x77e   : > { %v4933_v62 = vmax.f32 %v4846_v28, 0.0  ;;  %5647 = vmatmul.bf16.gmra.mxu1 %v13160_v61 }
 0x77f   : > { %13156 = vst [vmem:[#allocation31_spill] sm:$0xff] %v11482_v38  ;;  %5773 = vmatpush.bf16.msra.mxu3 %v8640_v6  ;;  %v13163_v6 = vld [vmem:[#allocation99_spill] sm:$0xff] }
 0x780   : > { %4887 = vmatmul.bf16.gmra.mxu3 %v13159_v54  ;;  %v11488_v34 = vpack.c.bf16 %v4933_v62, %v4929_v45  ;;  %v4759_v18 = vpop.f32.mrf.mxu2 }
 0x781   : > { %v4760_v28 = vadd.f32 %v4759_v18, %v11287_v1 }
 0x782   : > { %v5521_v0 = vpop.f32.mrf.mxu0 }
 0x783   : > { %v4848_v23 = vpop.f32.mrf.mxu3  ;;  %v5522_v54 = vadd.f32 %v5521_v0, %v11449_v17  ;;  %v5610_v38 = vpop.f32.mrf.mxu1  ;;  %v9105_v0 = vld [vmem:[#allocation7 + $0x54] sm:$0xf] }
 0x784   : > { %v4849_v44 = vadd.f32 %v4848_v23, %v4760_v28  ;;  %v13164_v28 = vld [vmem:[#allocation137_spill] sm:$0xff]  ;;  %v13165_v23 = vld [vmem:[#allocation100_spill] sm:$0xff] }
 0x785   : > { %v11492_v61 = vadd.f32 %v5610_v38, %v5522_v54  ;;  %v13166_v38 = vld [vmem:[#allocation15_spill] sm:$0xff] }
 0x786   : > { %v4937_v1 = vmax.f32 %v4849_v44, 0.0 }
 0x787   : > { %13161 = vst [vmem:[#allocation63_spill] sm:$0xff] %v11492_v61 }
 0x788   : > { %v4761_v47 = vpop.f32.mrf.mxu2 }
 0x789   : > { %v4762_v53 = vadd.f32 %v4761_v47, %v11295_v36  ;;  %v8481_v36 = vld [vmem:[#allocation7 + $0x58] sm:$0xf0] }
 0x78a   : > { %v5524_v45 = vpop.f32.mrf.mxu0  ;;  %v8484_v47 = vor.u32 %v9105_v0, %v8481_v36 }
 0x78b   : > { %v4850_v19 = vpop.f32.mrf.mxu3  ;;  %v5525_v26 = vadd.f32 %v5524_v45, %v11449_v17  ;;  %v5613_v31 = vpop.f32.mrf.mxu1 }
 0x78c   : > { %v4851_v62 = vadd.f32 %v4850_v19, %v4762_v53  ;;  %5858 = vmatpush.bf16.msra.mxu0 %v8484_v47 }
 0x78d   : > { %v11496_v30 = vadd.f32 %v5613_v31, %v5525_v26  ;;  %4803 = vmatmul.bf16.gmra.mxu2 %v13163_v6  ;;  %5563 = vmatmul.bf16.gmra.mxu0 %v13164_v28 }
 0x78e   : > { %v4941_v18 = vmax.f32 %v4851_v62, 0.0  ;;  %5652 = vmatmul.bf16.gmra.mxu1 %v13166_v38 }
 0x78f   : > { %13162 = vst [vmem:[#allocation61_spill] sm:$0xff] %v11496_v30  ;;  %v8545_v30 = vld [vmem:[#allocation7 + $0xd8] sm:$0xf0] }
 0x790   : > { %4892 = vmatmul.bf16.gmra.mxu3 %v13165_v23  ;;  %v11502_v54 = vpack.c.bf16 %v4941_v18, %v4937_v1  ;;  %v4764_v53 = vpop.f32.mrf.mxu2  ;;  %v9121_v23 = vld [vmem:[#allocation7 + $0xd4] sm:$0xf] }
 0x791   : > { %v4765_v19 = vadd.f32 %v4764_v53, %v11299_v7  ;;  %v8548_v38 = vor.u32 %v9121_v23, %v8545_v30  ;;  %v13172_v30 = vld [vmem:[#allocation17_spill] sm:$0xff] }
 0x792   : > { %v5526_v45 = vpop.f32.mrf.mxu0 }
 0x793   : > { %v4853_v44 = vpop.f32.mrf.mxu3  ;;  %v5527_v26 = vadd.f32 %v5526_v45, %v11449_v17  ;;  %v5615_v31 = vpop.f32.mrf.mxu1  ;;  %5947 = vmatpush.bf16.msra.mxu1 %v8548_v38  ;;  %v13169_v45 = vld [vmem:[#allocation105_spill] sm:$0xff] }
 0x794   : > { %v4854_v62 = vadd.f32 %v4853_v44, %v4765_v19  ;;  %v8567_v38 = vld [vmem:[#allocation7 + $0x100] sm:$0xf] }
 0x795   : > { %v11506_v6 = vadd.f32 %v5615_v31, %v5527_v26  ;;  %v13170_v26 = vld [vmem:[#allocation138_spill] sm:$0xff] }
 0x796   : > { %v4945_v53 = vmax.f32 %v4854_v62, 0.0  ;;  %v13171_v31 = vld [vmem:[#allocation106_spill] sm:$0xff] }
 0x797   : > { %13167 = vst [vmem:[#allocation62_spill] sm:$0xff] %v11506_v6  ;;  %v9103_v6 = vld [vmem:[#allocation7 + $0x44] sm:$0xf] }
 0x798   : > { %v4766_v28 = vpop.f32.mrf.mxu2 }
 0x799   : > { %v4767_v1 = vadd.f32 %v4766_v28, %v11307_v10  ;;  %v9128_v10 = vld [vmem:[#allocation7 + $0x104] sm:$0xf0]  ;;  %v8631_v28 = vld [vmem:[#allocation7 + $0x180] sm:$0xf] }
 0x79a   : > { %v5529_v0 = vpop.f32.mrf.mxu0  ;;  %v8568_v23 = vor.u32 %v9128_v10, %v8567_v38  ;;  %v8473_v38 = vld [vmem:[#allocation7 + $0x48] sm:$0xf0]  ;;  %v9119_v10 = vld [vmem:[#allocation7 + $0xc4] sm:$0xf] }
 0x79b   : > { %v4855_v18 = vpop.f32.mrf.mxu3  ;;  %v5530_v7 = vadd.f32 %v5529_v0, %v11449_v17  ;;  %v5618_v47 = vpop.f32.mrf.mxu1 }
 0x79c   : > { %v4856_v36 = vadd.f32 %v4855_v18, %v4767_v1  ;;  %v9144_v1 = vld [vmem:[#allocation7 + $0x184] sm:$0xf0]  ;;  %5685 = vmatpush.bf16.msra.mxu2 %v8568_v23 }
 0x79d   : > { %v11510_v44 = vadd.f32 %v5618_v47, %v5530_v7  ;;  %4808 = vmatmul.bf16.gmra.mxu2 %v13169_v45  ;;  %5568 = vmatmul.bf16.gmra.mxu0 %v13170_v26  ;;  %v8632_v62 = vor.u32 %v9144_v1, %v8631_v28  ;;  %v8476_v28 = vor.u32 %v9103_v6, %v8473_v38  ;;  %v8537_v1 = vld [vmem:[#allocation7 + $0xc8] sm:$0xf0]  ;;  %v13177_v38 = vld [vmem:[#allocation112_spill] sm:$0xff] }
 0x79e   : > { %v4949_v19 = vmax.f32 %v4856_v36, 0.0  ;;  %5657 = vmatmul.bf16.gmra.mxu1 %v13172_v30 }
 0x79f   : > { %13168 = vst [vmem:[#allocation35_spill] sm:$0xff] %v11510_v44  ;;  %5774 = vmatpush.bf16.msra.mxu3 %v8632_v62  ;;  %5859 = vmatpush.bf16.msra.mxu0 %v8476_v28 }
 0x7a0   : > { %4897 = vmatmul.bf16.gmra.mxu3 %v13171_v31  ;;  %v11516_v18 = vpack.c.bf16 %v4949_v19, %v4945_v53  ;;  %v4769_v0 = vpop.f32.mrf.mxu2 }
 0x7a1   : > { %v4770_v36 = vadd.f32 %v4769_v0, %v11311_v12  ;;  %v8540_v0 = vor.u32 %v9119_v10, %v8537_v1  ;;  %v13178_v10 = vld [vmem:[#allocation49_spill] sm:$0xff]  ;;  %v8457_v1 = vld [vmem:[#allocation7 + $0x28] sm:$0xf0] }
 0x7a2   : > { %v5531_v47 = vpop.f32.mrf.mxu0 }
 0x7a3   : > { %v4858_v7 = vpop.f32.mrf.mxu3  ;;  %v5532_v31 = vadd.f32 %v5531_v47, %v11449_v17  ;;  %v5620_v44 = vpop.f32.mrf.mxu1  ;;  %5948 = vmatpush.bf16.msra.mxu1 %v8540_v0  ;;  %v9117_v47 = vld [vmem:[#allocation7 + $0xb4] sm:$0xf] }
 0x7a4   : > { %v4859_v45 = vadd.f32 %v4858_v7, %v4770_v36  ;;  %v9101_v7 = vld [vmem:[#allocation7 + $0x34] sm:$0xf] }
 0x7a5   : > { %v11520_v30 = vadd.f32 %v5620_v44, %v5532_v31  ;;  %v8465_v44 = vld [vmem:[#allocation7 + $0x38] sm:$0xf0] }
 0x7a6   : > { %v4953_v31 = vmax.f32 %v4859_v45, 0.0  ;;  %v8468_v6 = vor.u32 %v9101_v7, %v8465_v44  ;;  %v9099_v45 = vld [vmem:[#allocation7 + $0x24] sm:$0xf] }
 0x7a7   : > { %13173 = vst [vmem:[#allocation67_spill] sm:$0xff] %v11520_v30 }
 0x7a8   : > { %v4771_v26 = vpop.f32.mrf.mxu2  ;;  %5860 = vmatpush.bf16.msra.mxu0 %v8468_v6 }
 0x7a9   : > { %v4772_v53 = vadd.f32 %v4771_v26, %v11319_v40  ;;  %v13176_v40 = vld [vmem:[#allocation139_spill] sm:$0xff]  ;;  %v8529_v26 = vld [vmem:[#allocation7 + $0xb8] sm:$0xf0] }
 0x7aa   : > { %v5534_v12 = vpop.f32.mrf.mxu0 }
 0x7ab   : > { %v4860_v19 = vpop.f32.mrf.mxu3  ;;  %v5535_v62 = vadd.f32 %v5534_v12, %v11449_v17  ;;  %v5623_v36 = vpop.f32.mrf.mxu1  ;;  %v9115_v12 = vld [vmem:[#allocation7 + $0xa4] sm:$0xf] }
 0x7ac   : > { %v4861_v23 = vadd.f32 %v4860_v19, %v4772_v53  ;;  %v8532_v53 = vor.u32 %v9117_v47, %v8529_v26  ;;  %v8449_v47 = vld [vmem:[#allocation7 + $0x18] sm:$0xf0] }
 0x7ad   : > { %v11524_v61 = vadd.f32 %v5623_v36, %v5535_v62  ;;  %4813 = vmatmul.bf16.gmra.mxu2 %v13175_v11  ;;  %5573 = vmatmul.bf16.gmra.mxu0 %v13176_v40  ;;  %v8521_v62 = vld [vmem:[#allocation7 + $0xa8] sm:$0xf0] }
 0x7ae   : > { %v4957_v30 = vmax.f32 %v4861_v23, 0.0  ;;  %5662 = vmatmul.bf16.gmra.mxu1 %v13178_v10  ;;  %v8460_v23 = vor.u32 %v9099_v45, %v8457_v1  ;;  %v8524_v7 = vor.u32 %v9115_v12, %v8521_v62  ;;  %v8441_v45 = vld [vmem:[#allocation7 + $0x8] sm:$0xf0]  ;;  %v9111_v1 = vld [vmem:[#allocation7 + $0x84] sm:$0xf] }
 0x7af   : > { %13174 = vst [vmem:[#allocation65_spill] sm:$0xff] %v11524_v61  ;;  %5949 = vmatpush.bf16.msra.mxu1 %v8532_v53  ;;  %v8513_v53 = vld [vmem:[#allocation7 + $0x98] sm:$0xf0] }
 0x7b0   : > { %4902 = vmatmul.bf16.gmra.mxu3 %v13177_v38  ;;  %v11530_v19 = vpack.c.bf16 %v4957_v30, %v4953_v31  ;;  %v4774_v28 = vpop.f32.mrf.mxu2  ;;  %5861 = vmatpush.bf16.msra.mxu0 %v8460_v23  ;;  %v9097_v30 = vld [vmem:[#allocation7 + $0x14] sm:$0xf]  ;;  %v8505_v23 = vld [vmem:[#allocation7 + $0x88] sm:$0xf0] }
 0x7b1   : > { %v4775_v0 = vadd.f32 %v4774_v28, %v11323_v56  ;;  %v9113_v31 = vld [vmem:[#allocation7 + $0x94] sm:$0xf]  ;;  %v8452_v26 = vor.u32 %v9097_v30, %v8449_v47  ;;  %v9095_v28 = vld [vmem:[#allocation7 + $0x4] sm:$0xf] }
 0x7b2   : > { %13179 = vst [vmem:[#allocation66_spill] sm:$0xff] %v11530_v19  ;;  %v5536_v36 = vpop.f32.mrf.mxu0  ;;  %v8516_v10 = vor.u32 %v9113_v31, %v8513_v53  ;;  %v8625_v53 = vld [vmem:[#allocation7 + $0x178] sm:$0xf0] }
 0x7b3   : > { %v4863_v11 = vpop.f32.mrf.mxu3  ;;  %v5537_v38 = vadd.f32 %v5536_v36, %v11449_v17  ;;  %v5625_v61 = vpop.f32.mrf.mxu1  ;;  %5950 = vmatpush.bf16.msra.mxu1 %v8524_v7  ;;  %v8508_v36 = vor.u32 %v9111_v1, %v8505_v23 }
 0x7b4   : > { %v4864_v44 = vadd.f32 %v4863_v11, %v4775_v0  ;;  %5862 = vmatpush.bf16.msra.mxu0 %v8452_v26  ;;  %v8444_v11 = vor.u32 %v9095_v28, %v8441_v45  ;;  %v9141_v26 = vld [vmem:[#allocation7 + $0x174] sm:$0xf]  ;;  %v8689_v45 = vld [vmem:[#allocation7 + $0x1f8] sm:$0xf0] }
 0x7b5   : > { %v11534_v6 = vadd.f32 %v5625_v61, %v5537_v38  ;;  %v8628_v28 = vor.u32 %v9141_v26, %v8625_v53 }
 0x7b6   : > { %v4961_v30 = vmax.f32 %v4864_v44, 0.0 }
 0x7b7   : > { %5951 = vmatpush.bf16.msra.mxu1 %v8516_v10  ;;  %v13180_v10 = vld [vmem:[#allocation140_spill] sm:$0xff]  ;;  %6034 = vmatpush.bf16.msrb.mxu2 %v8628_v28 }
 0x7b8   : > { %v4776_v56 = vpop.f32.mrf.mxu2  ;;  %5863 = vmatpush.bf16.msra.mxu0 %v8444_v11 }
 0x7b9   : > { %v4777_v12 = vadd.f32 %v4776_v56, %v11331_v14  ;;  %v13181_v14 = vld [vmem:[#allocation19_spill] sm:$0xff] }
 0x7ba   : > { %v5539_v62 = vpop.f32.mrf.mxu0  ;;  %v9157_v56 = vld [vmem:[#allocation7 + $0x1f4] sm:$0xf] }
 0x7bb   : > { %v4865_v0 = vpop.f32.mrf.mxu3  ;;  %v5540_v61 = vadd.f32 %v5539_v62, %v11449_v17  ;;  %v5628_v38 = vpop.f32.mrf.mxu1  ;;  %5952 = vmatpush.bf16.msra.mxu1 %v8508_v36  ;;  %v8692_v44 = vor.u32 %v9157_v56, %v8689_v45  ;;  %v13183_v45 = vld [vmem:[#allocation141_spill] sm:$0xff] }
 0x7bc   : > { %v4866_v7 = vadd.f32 %v4865_v0, %v4777_v12 }
 0x7bd   : > { %v11538_v31 = vadd.f32 %v5628_v38, %v5540_v61  ;;  %4818 = vmatmul.bf16.gmra.mxu2 %v12915_v60  ;;  %5578 = vmatmul.bf16.gmra.mxu0 %v13180_v10 }
 0x7be   : > { %v4965_v47 = vmax.f32 %v4866_v7, 0.0  ;;  %5667 = vmatmul.bf16.gmra.mxu1 %v13181_v14  ;;  %6123 = vmatpush.bf16.msrb.mxu3 %v8692_v44 }
 0x7c0   : > { %4907 = vmatmul.bf16.gmra.mxu3 %v10620_v4  ;;  %v11544_v1 = vpack.c.bf16 %v4965_v47, %v4961_v30  ;;  %v4779_v12 = vpop.f32.mrf.mxu2 }
 0x7c1   : > { %v4780_v0 = vadd.f32 %v4779_v12, %v11335_v57  ;;  %v13184_v12 = vld [vmem:[#allocation21_spill] sm:$0xff] }
 0x7c2   : > { %13182 = vst [vmem:[#allocation41_spill] sm:$0xff] %v11544_v1  ;;  %v5541_v60 = vpop.f32.mrf.mxu0 }
 0x7c3   : > { %v4868_v11 = vpop.f32.mrf.mxu3  ;;  %v5542_v4 = vadd.f32 %v5541_v60, %v11449_v17  ;;  %v5630_v62 = vpop.f32.mrf.mxu1 }
 0x7c4   : > { %v4869_v23 = vadd.f32 %v4868_v11, %v4780_v0 }
 0x7c5   : > { %v11548_v36 = vadd.f32 %v5630_v62, %v5542_v4 }
 0x7c6   : > { %v4969_v57 = vmax.f32 %v4869_v23, 0.0 }
 0x7c8   : > { %v4781_v7 = vpop.f32.mrf.mxu2 }
 0x7c9   : > { %v4782_v61 = vadd.f32 %v4781_v7, %v11343_v63 }
 0x7ca   : > { %v5544_v30 = vpop.f32.mrf.mxu0 }
 0x7cb   : > { %v4870_v38 = vpop.f32.mrf.mxu3  ;;  %v5545_v26 = vadd.f32 %v5544_v30, %v11449_v17  ;;  %v5633_v53 = vpop.f32.mrf.mxu1 }
 0x7cc   : > { %v4871_v47 = vadd.f32 %v4870_v38, %v4782_v61 }
 0x7cd   : > { %v11552_v28 = vadd.f32 %v5633_v53, %v5545_v26  ;;  %4823 = vmatmul.bf16.gmra.mxu2 %v12919_v24  ;;  %5583 = vmatmul.bf16.gmra.mxu0 %v13183_v45 }
 0x7ce   : > { %v4973_v56 = vmax.f32 %v4871_v47, 0.0  ;;  %5672 = vmatmul.bf16.gmra.mxu1 %v13184_v12 }
 0x7d0   : > { %4912 = vmatmul.bf16.gmra.mxu3 %v10638_v51  ;;  %v11558_v44 = vpack.c.bf16 %v4973_v56, %v4969_v57  ;;  %v4784_v63 = vpop.f32.mrf.mxu2  ;;  %v13186_v56 = vld [vmem:[#allocation30_spill] sm:$0xff] }
 0x7d1   : > { %v4785_v0 = vadd.f32 %v4784_v63, %v11347_v3  ;;  %v9139_v63 = vld [vmem:[#allocation7 + $0x164] sm:$0xf] }
 0x7d2   : > { %13185 = vst [vmem:[#allocation14_spill] sm:$0xff] %v11558_v44  ;;  %v5546_v60 = vpop.f32.mrf.mxu0 }
 0x7d3   : > { %v4873_v11 = vpop.f32.mrf.mxu3  ;;  %v5547_v23 = vadd.f32 %v5546_v60, %v11449_v17  ;;  %v5635_v62 = vpop.f32.mrf.mxu1  ;;  %v8681_v60 = vld [vmem:[#allocation7 + $0x1e8] sm:$0xf0] }
 0x7d4   : > { %v4874_v4 = vadd.f32 %v4873_v11, %v4785_v0  ;;  %v9155_v0 = vld [vmem:[#allocation7 + $0x1e4] sm:$0xf] }
 0x7d5   : > { %v11562_v7 = vadd.f32 %v5635_v62, %v5547_v23 }
 0x7d6   : > { %v4977_v53 = vmax.f32 %v4874_v4, 0.0  ;;  %v8684_v4 = vor.u32 %v9155_v0, %v8681_v60 }
 0x7d8   : > { %v4786_v24 = vpop.f32.mrf.mxu2  ;;  %6124 = vmatpush.bf16.msrb.mxu3 %v8684_v4 }
 0x7d9   : > { %v4787_v61 = vadd.f32 %v4786_v24, %v11355_v39  ;;  %v8617_v39 = vld [vmem:[#allocation7 + $0x168] sm:$0xf0] }
 0x7da   : > { %v5549_v51 = vpop.f32.mrf.mxu0  ;;  %v8620_v11 = vor.u32 %v9139_v63, %v8617_v39 }
 0x7db   : > { %v4875_v38 = vpop.f32.mrf.mxu3  ;;  %v5550_v47 = vadd.f32 %v5549_v51, %v11449_v17  ;;  %v5638_v26 = vpop.f32.mrf.mxu1 }
 0x7dc   : > { %v4876_v30 = vadd.f32 %v4875_v38, %v4787_v61  ;;  %6035 = vmatpush.bf16.msrb.mxu2 %v8620_v11 }
 0x7dd   : > { %v11566_v3 = vadd.f32 %v5638_v26, %v5550_v47  ;;  %5686 = vmatmul.bf16.vlgmr.msra.gmra.mxu2 %v13186_v56  ;;  %5864 = vmatmul.bf16.vlgmr.msra.gmra.mxu0 %v13110_v41 }
 0x7de   : > { %v4981_v57 = vmax.f32 %v4876_v30, 0.0  ;;  %5953 = vmatmul.bf16.vlgmr.msra.gmra.mxu1 %v13112_v15 }
 0x7e0   : > { %5775 = vmatmul.bf16.vlgmr.msra.gmra.mxu3 %v11474_v48  ;;  %v11572_v23 = vpack.c.bf16 %v4981_v57, %v4977_v53  ;;  %v4789_v62 = vpop.f32.mrf.mxu2 }
 0x7e1   : > { %v4790_v24 = vadd.f32 %v4789_v62, %v11359_v33  ;;  %v13187_v62 = vld [vmem:[#allocation34_spill] sm:$0xff] }
 0x7e2   : > { %v5551_v38 = vpop.f32.mrf.mxu0 }
 0x7e3   : > { %v4878_v61 = vpop.f32.mrf.mxu3  ;;  %v5552_v51 = vadd.f32 %v5551_v38, %v11449_v17  ;;  %v5640_v30 = vpop.f32.mrf.mxu1 }
 0x7e4   : > { %v4879_v41 = vadd.f32 %v4878_v61, %v4790_v24 }
 0x7e5   : > { %v11576_v15 = vadd.f32 %v5640_v30, %v5552_v51 }
 0x7e6   : > { %v4985_v33 = vmax.f32 %v4879_v41, 0.0 }
 0x7e8   : > { %v4791_v47 = vpop.f32.mrf.mxu2 }
 0x7e9   : > { %v4792_v26 = vadd.f32 %v4791_v47, %v11367_v29 }
 0x7ea   : > { %v5554_v53 = vpop.f32.mrf.mxu0 }
 0x7eb   : > { %v4880_v63 = vpop.f32.mrf.mxu3  ;;  %v5555_v39 = vadd.f32 %v5554_v53, %v11449_v17  ;;  %v5643_v0 = vpop.f32.mrf.mxu1 }
 0x7ec   : > { %v4881_v57 = vadd.f32 %v4880_v63, %v4792_v26 }
 0x7ed   : > { %v11580_v11 = vadd.f32 %v5643_v0, %v5555_v39  ;;  %5691 = vmatmul.bf16.gmra.mxu2 %v13187_v62  ;;  %5869 = vmatmul.bf16.gmra.mxu0 %v13114_v9 }
 0x7ee   : > { %v4989_v60 = vmax.f32 %v4881_v57, 0.0  ;;  %5958 = vmatmul.bf16.gmra.mxu1 %v13116_v8 }
 0x7f0   : > { %5780 = vmatmul.bf16.gmra.mxu3 %v11488_v34  ;;  %v11586_v4 = vpack.c.bf16 %v4989_v60, %v4985_v33  ;;  %v4794_v29 = vpop.f32.mrf.mxu2  ;;  %v13188_v60 = vld [vmem:[#allocation42_spill] sm:$0xff] }
 0x7f1   : > { %v4795_v24 = vadd.f32 %v4794_v29, %v11371_v42  ;;  %v9137_v29 = vld [vmem:[#allocation7 + $0x154] sm:$0xf] }
 0x7f2   : > { %v5556_v38 = vpop.f32.mrf.mxu0 }
 0x7f3   : > { %v4883_v61 = vpop.f32.mrf.mxu3  ;;  %v5557_v41 = vadd.f32 %v5556_v38, %v11449_v17  ;;  %v5645_v30 = vpop.f32.mrf.mxu1  ;;  %v8673_v38 = vld [vmem:[#allocation7 + $0x1d8] sm:$0xf0] }
 0x7f4   : > { %v4884_v51 = vadd.f32 %v4883_v61, %v4795_v24  ;;  %v9153_v24 = vld [vmem:[#allocation7 + $0x1d4] sm:$0xf] }
 0x7f5   : > { %v11590_v47 = vadd.f32 %v5645_v30, %v5557_v41 }
 0x7f6   : > { %v4993_v0 = vmax.f32 %v4884_v51, 0.0  ;;  %v8676_v51 = vor.u32 %v9153_v24, %v8673_v38 }
 0x7f8   : > { %v4796_v26 = vpop.f32.mrf.mxu2  ;;  %6125 = vmatpush.bf16.msrb.mxu3 %v8676_v51 }
 0x7f9   : > { %v4797_v9 = vadd.f32 %v4796_v26, %v11379_v52  ;;  %v8609_v52 = vld [vmem:[#allocation7 + $0x158] sm:$0xf0] }
 0x7fa   : > { %v5559_v53 = vpop.f32.mrf.mxu0  ;;  %v8612_v61 = vor.u32 %v9137_v29, %v8609_v52 }
 0x7fb   : > { %v4885_v63 = vpop.f32.mrf.mxu3  ;;  %v5560_v8 = vadd.f32 %v5559_v53, %v11449_v17  ;;  %v5648_v39 = vpop.f32.mrf.mxu1 }
 0x7fc   : > { %v4886_v57 = vadd.f32 %v4885_v63, %v4797_v9  ;;  %6036 = vmatpush.bf16.msrb.mxu2 %v8612_v61 }
 0x7fd   : > { %v11594_v42 = vadd.f32 %v5648_v39, %v5560_v8  ;;  %5696 = vmatmul.bf16.gmra.mxu2 %v13188_v60  ;;  %5874 = vmatmul.bf16.gmra.mxu0 %v13118_v55 }
 0x7fe   : > { %v4997_v33 = vmax.f32 %v4886_v57, 0.0  ;;  %5963 = vmatmul.bf16.gmra.mxu1 %v13120_v2 }
 0x800   : > { %5785 = vmatmul.bf16.gmra.mxu3 %v11502_v54  ;;  %v11600_v41 = vpack.c.bf16 %v4997_v33, %v4993_v0  ;;  %v4799_v30 = vpop.f32.mrf.mxu2 }
 0x801   : > { %v4800_v26 = vadd.f32 %v4799_v30, %v11383_v43  ;;  %v13191_v30 = vld [vmem:[#allocation83_spill] sm:$0xff] }
 0x802   : > { %13189 = vst [vmem:[#allocation39_spill] sm:$0xff] %v11600_v41  ;;  %v5561_v63 = vpop.f32.mrf.mxu0 }
 0x803   : > { %v4888_v9 = vpop.f32.mrf.mxu3  ;;  %v5562_v53 = vadd.f32 %v5561_v63, %v11449_v17  ;;  %v5650_v57 = vpop.f32.mrf.mxu1 }
 0x804   : > { %v4889_v55 = vadd.f32 %v4888_v9, %v4800_v26  ;;  %v13193_v26 = vld [vmem:[#allocation54_spill] sm:$0xff] }
 0x805   : > { %v11604_v2 = vadd.f32 %v5650_v57, %v5562_v53 }
 0x806   : > { %v5001_v43 = vmax.f32 %v4889_v55, 0.0 }
 0x808   : > { %v4801_v8 = vpop.f32.mrf.mxu2 }
 0x809   : > { %v4802_v39 = vadd.f32 %v4801_v8, %v11391_v13 }
 0x80a   : > { %v5564_v0 = vpop.f32.mrf.mxu0 }
 0x80b   : > { %v4890_v29 = vpop.f32.mrf.mxu3  ;;  %v5565_v52 = vadd.f32 %v5564_v0, %v11449_v17  ;;  %v5653_v24 = vpop.f32.mrf.mxu1  ;;  %v13194_v0 = vld [vmem:[#allocation27_spill] sm:$0xff] }
 0x80c   : > { %v4891_v33 = vadd.f32 %v4890_v29, %v4802_v39 }
 0x80d   : > { %v11608_v61 = vadd.f32 %v5653_v24, %v5565_v52  ;;  %5701 = vmatmul.bf16.gmra.mxu2 %v13191_v30  ;;  %5879 = vmatmul.bf16.gmra.mxu0 %v13122_v46 }
 0x80e   : > { %v5005_v38 = vmax.f32 %v4891_v33, 0.0  ;;  %5968 = vmatmul.bf16.gmra.mxu1 %v13124_v50 }
 0x80f   : > { %13190 = vst [vmem:[#allocation72_spill] sm:$0xff] %v11608_v61 }
 0x810   : > { %5790 = vmatmul.bf16.gmra.mxu3 %v11516_v18  ;;  %v11614_v51 = vpack.c.bf16 %v5005_v38, %v5001_v43  ;;  %v4804_v13 = vpop.f32.mrf.mxu2 }
 0x811   : > { %v4805_v9 = vadd.f32 %v4804_v13, %v13193_v26  ;;  %v13196_v26 = vld [vmem:[#allocation93_spill] sm:$0xff] }
 0x812   : > { %13192 = vst [vmem:[#allocation70_spill] sm:$0xff] %v11614_v51  ;;  %v5566_v53 = vpop.f32.mrf.mxu0 }
 0x813   : > { %v4893_v63 = vpop.f32.mrf.mxu3  ;;  %v5567_v55 = vadd.f32 %v5566_v53, %v11449_v17  ;;  %v5655_v8 = vpop.f32.mrf.mxu1  ;;  %v9135_v53 = vld [vmem:[#allocation7 + $0x144] sm:$0xf] }
 0x814   : > { %v4894_v57 = vadd.f32 %v4893_v63, %v4805_v9  ;;  %v13197_v9 = vld [vmem:[#allocation133_spill] sm:$0xff]  ;;  %v13198_v63 = vld [vmem:[#allocation132_spill] sm:$0xff] }
 0x815   : > { %v11618_v39 = vadd.f32 %v5655_v8, %v5567_v55  ;;  %v8601_v55 = vld [vmem:[#allocation7 + $0x148] sm:$0xf0]  ;;  %v9151_v8 = vld [vmem:[#allocation7 + $0x1c4] sm:$0xf] }
 0x816   : > { %v5009_v38 = vmax.f32 %v4894_v57, 0.0 }
 0x818   : > { %v4806_v29 = vpop.f32.mrf.mxu2 }
 0x819   : > { %v4807_v46 = vadd.f32 %v4806_v29, %v13194_v0  ;;  %v8604_v29 = vor.u32 %v9135_v53, %v8601_v55  ;;  %v8665_v0 = vld [vmem:[#allocation7 + $0x1c8] sm:$0xf0] }
 0x81a   : > { %v5569_v52 = vpop.f32.mrf.mxu0  ;;  %v8668_v57 = vor.u32 %v9151_v8, %v8665_v0 }
 0x81b   : > { %v4895_v33 = vpop.f32.mrf.mxu3  ;;  %v5570_v50 = vadd.f32 %v5569_v52, %v11449_v17  ;;  %v5658_v43 = vpop.f32.mrf.mxu1  ;;  %6037 = vmatpush.bf16.msrb.mxu2 %v8604_v29 }
 0x81c   : > { %v4896_v24 = vadd.f32 %v4895_v33, %v4807_v46  ;;  %6126 = vmatpush.bf16.msrb.mxu3 %v8668_v57  ;;  %v13201_v57 = vld [vmem:[#allocation97_spill] sm:$0xff] }
 0x81d   : > { %v11622_v13 = vadd.f32 %v5658_v43, %v5570_v50  ;;  %5706 = vmatmul.bf16.gmra.mxu2 %v13196_v26  ;;  %5884 = vmatmul.bf16.gmra.mxu0 %v13197_v9 }
 0x81e   : > { %v5013_v61 = vmax.f32 %v4896_v24, 0.0  ;;  %5973 = vmatmul.bf16.gmra.mxu1 %v13198_v63 }
 0x81f   : > { %13195 = vst [vmem:[#allocation71_spill] sm:$0xff] %v11622_v13 }
 0x820   : > { %5795 = vmatmul.bf16.gmra.mxu3 %v11530_v19  ;;  %v11628_v46 = vpack.c.bf16 %v5013_v61, %v5009_v38  ;;  %v4809_v33 = vpop.f32.mrf.mxu2 }
 0x821   : > { %v4810_v52 = vadd.f32 %v4809_v33, %v11407_v49 }
 0x822   : > { %13199 = vst [vmem:[#allocation18_spill] sm:$0xff] %v11628_v46  ;;  %v5571_v50 = vpop.f32.mrf.mxu0 }
 0x823   : > { %v4898_v24 = vpop.f32.mrf.mxu3  ;;  %v5572_v9 = vadd.f32 %v5571_v50, %v11449_v17  ;;  %v5660_v13 = vpop.f32.mrf.mxu1 }
 0x824   : > { %v4899_v43 = vadd.f32 %v4898_v24, %v4810_v52 }
 0x825   : > { %v11632_v63 = vadd.f32 %v5660_v13, %v5572_v9 }
 0x826   : > { %v5017_v49 = vmax.f32 %v4899_v43, 0.0 }
 0x828   : > { %v4811_v19 = vpop.f32.mrf.mxu2 }
 0x829   : > { %v4812_v53 = vadd.f32 %v4811_v19, %v11415_v5  ;;  %v13203_v19 = vld [vmem:[#allocation59_spill] sm:$0xff] }
 0x82a   : > { %v5574_v61 = vpop.f32.mrf.mxu0 }
 0x82b   : > { %v4900_v55 = vpop.f32.mrf.mxu3  ;;  %v5575_v8 = vadd.f32 %v5574_v61, %v11449_v17  ;;  %v5663_v0 = vpop.f32.mrf.mxu1 }
 0x82c   : > { %v4901_v38 = vadd.f32 %v4900_v55, %v4812_v53 }
 0x82d   : > { %v11636_v29 = vadd.f32 %v5663_v0, %v5575_v8  ;;  %5711 = vmatmul.bf16.gmra.mxu2 %v13201_v57  ;;  %5889 = vmatmul.bf16.gmra.mxu0 %v13132_v35 }
 0x82e   : > { %v5021_v33 = vmax.f32 %v4901_v38, 0.0  ;;  %5978 = vmatmul.bf16.gmra.mxu1 %v13134_v58  ;;  %v13204_v38 = vld [vmem:[#allocation57_spill] sm:$0xff] }
 0x82f   : > { %13200 = vst [vmem:[#allocation22_spill] sm:$0xff] %v11636_v29 }
 0x830   : > { %5800 = vmatmul.bf16.gmra.mxu3 %v11544_v1  ;;  %v11642_v13 = vpack.c.bf16 %v5021_v33, %v5017_v49  ;;  %v4814_v5 = vpop.f32.mrf.mxu2 }
 0x831   : > { %v4815_v52 = vadd.f32 %v4814_v5, %v13203_v19  ;;  %v13206_v19 = vld [vmem:[#allocation103_spill] sm:$0xff] }
 0x832   : > { %13202 = vst [vmem:[#allocation43_spill] sm:$0xff] %v11642_v13  ;;  %v5576_v50 = vpop.f32.mrf.mxu0 }
 0x833   : > { %v4903_v24 = vpop.f32.mrf.mxu3  ;;  %v5577_v43 = vadd.f32 %v5576_v50, %v11449_v17  ;;  %v5665_v53 = vpop.f32.mrf.mxu1  ;;  %v9133_v50 = vld [vmem:[#allocation7 + $0x134] sm:$0xf] }
 0x834   : > { %v4904_v9 = vadd.f32 %v4903_v24, %v4815_v52  ;;  %v13207_v52 = vld [vmem:[#allocation38_spill] sm:$0xff]  ;;  %v13208_v24 = vld [vmem:[#allocation117_spill] sm:$0xff] }
 0x835   : > { %v11646_v55 = vadd.f32 %v5665_v53, %v5577_v43  ;;  %v8593_v43 = vld [vmem:[#allocation7 + $0x138] sm:$0xf0]  ;;  %v9149_v53 = vld [vmem:[#allocation7 + $0x1b4] sm:$0xf] }
 0x836   : > { %v5025_v33 = vmax.f32 %v4904_v9, 0.0 }
 0x838   : > { %v4816_v61 = vpop.f32.mrf.mxu2 }
 0x839   : > { %v4817_v35 = vadd.f32 %v4816_v61, %v13204_v38  ;;  %v8596_v61 = vor.u32 %v9133_v50, %v8593_v43  ;;  %v8657_v38 = vld [vmem:[#allocation7 + $0x1b8] sm:$0xf0] }
 0x83a   : > { %v5579_v0 = vpop.f32.mrf.mxu0  ;;  %v8660_v9 = vor.u32 %v9149_v53, %v8657_v38 }
 0x83b   : > { %v4905_v8 = vpop.f32.mrf.mxu3  ;;  %v5580_v58 = vadd.f32 %v5579_v0, %v11449_v17  ;;  %v5668_v49 = vpop.f32.mrf.mxu1  ;;  %6038 = vmatpush.bf16.msrb.mxu2 %v8596_v61 }
 0x83c   : > { %v4906_v29 = vadd.f32 %v4905_v8, %v4817_v35  ;;  %6127 = vmatpush.bf16.msrb.mxu3 %v8660_v9  ;;  %v13209_v9 = vld [vmem:[#allocation109_spill] sm:$0xff] }
 0x83d   : > { %v11650_v5 = vadd.f32 %v5668_v49, %v5580_v58  ;;  %5716 = vmatmul.bf16.gmra.mxu2 %v13206_v19  ;;  %5894 = vmatmul.bf16.gmra.mxu0 %v13207_v52 }
 0x83e   : > { %v5029_v1 = vmax.f32 %v4906_v29, 0.0  ;;  %5983 = vmatmul.bf16.gmra.mxu1 %v13208_v24 }
 0x83f   : > { %13205 = vst [vmem:[#allocation78_spill] sm:$0xff] %v11650_v5 }
 0x840   : > { %5805 = vmatmul.bf16.gmra.mxu3 %v11558_v44  ;;  %v11656_v35 = vpack.c.bf16 %v5029_v1, %v5025_v33  ;;  %v4819_v8 = vpop.f32.mrf.mxu2 }
 0x841   : > { %v4820_v29 = vadd.f32 %v4819_v8, %v11431_v16 }
 0x842   : > { %v5581_v58 = vpop.f32.mrf.mxu0 }
 0x843   : > { %v4908_v0 = vpop.f32.mrf.mxu3  ;;  %v5582_v52 = vadd.f32 %v5581_v58, %v11449_v17  ;;  %v5670_v5 = vpop.f32.mrf.mxu1 }
 0x844   : > { %v4909_v49 = vadd.f32 %v4908_v0, %v4820_v29 }
 0x845   : > { %v11660_v24 = vadd.f32 %v5670_v5, %v5582_v52  ;;  %v9166_v5 = vld [vmem:[#allocation9 + $0x38] sm:$0xff] }
 0x846   : > { %v5033_v16 = vmax.f32 %v4909_v49, 0.0  ;;  %6440 = vmatpush.bf16.msrb.mxu0 %v9166_v5 }
 0x848   : > { %v4821_v44 = vpop.f32.mrf.mxu2 }
 0x849   : > { %v4822_v50 = vadd.f32 %v4821_v44, %v11439_v27 }
 0x84a   : > { %v5584_v1 = vpop.f32.mrf.mxu0 }
 0x84b   : > { %v4910_v43 = vpop.f32.mrf.mxu3  ;;  %v5585_v53 = vadd.f32 %v5584_v1, %v11449_v17  ;;  %v5673_v38 = vpop.f32.mrf.mxu1  ;;  %v11677_v1 = vperm.slane %v11444_v25, 1  ;;  %v13212_v25 = vld [vmem:[#allocation121_spill] sm:$0xff] }
 0x84c   : > { %v4911_v33 = vadd.f32 %v4910_v43, %v4822_v50 }
 0x84d   : > { %v11664_v61 = vadd.f32 %v5673_v38, %v5585_v53  ;;  %5721 = vmatmul.bf16.gmra.mxu2 %v13209_v9  ;;  %5899 = vmatmul.bf16.gmra.mxu0 %v13142_v20  ;;  %v9174_v20 = vld [vmem:[#allocation9 + $0x78] sm:$0xff] }
 0x84e   : > { %v5037_v8 = vmax.f32 %v4911_v33, 0.0  ;;  %5988 = vmatmul.bf16.gmra.mxu1 %v13144_v32 }
 0x84f   : > { %6529 = vmatpush.bf16.msrb.mxu1 %v9174_v20 }
 0x850   : > { %5810 = vmatmul.bf16.gmra.mxu3 %v11572_v23  ;;  %v11670_v27 = vpack.c.bf16 %v5037_v8, %v5033_v16  ;;  %v4824_v44 = vpop.f32.mrf.mxu2 }
 0x851   : > { %v4825_v29 = vadd.f32 %v4824_v44, %v11451_v21 }
 0x852   : > { %v5586_v58 = vpop.f32.mrf.mxu0 }
 0x853   : > { %v4913_v0 = vpop.f32.mrf.mxu3  ;;  %v5587_v52 = vadd.f32 %v5586_v58, %v11449_v17  ;;  %v5675_v50 = vpop.f32.mrf.mxu1  ;;  %v9147_v58 = vld [vmem:[#allocation7 + $0x1a4] sm:$0xf] }
 0x854   : > { %v4914_v49 = vadd.f32 %v4913_v0, %v4825_v29  ;;  %v13211_v29 = vld [vmem:[#allocation47_spill] sm:$0xff]  ;;  %v9131_v0 = vld [vmem:[#allocation7 + $0x124] sm:$0xf] }
 0x855   : > { %v11674_v43 = vadd.f32 %v5675_v50, %v5587_v52  ;;  %v8649_v50 = vld [vmem:[#allocation7 + $0x1a8] sm:$0xf0] }
 0x856   : > { %v5041_v5 = vmax.f32 %v4914_v49, 0.0  ;;  %v8652_v49 = vor.u32 %v9147_v58, %v8649_v50 }
 0x858   : > { %v4826_v32 = vpop.f32.mrf.mxu2  ;;  %6128 = vmatpush.bf16.msrb.mxu3 %v8652_v49  ;;  %v13216_v49 = vld [vmem:[#allocation45_spill] sm:$0xff] }
 0x859   : > { %v4827_v33 = vadd.f32 %v4826_v32, %v11460_v37  ;;  %v8585_v37 = vld [vmem:[#allocation7 + $0x128] sm:$0xf0] }
 0x85a   : > { %v5865_v38 = vpop.f32.mrf.mxu0  ;;  %v8588_v52 = vor.u32 %v9131_v0, %v8585_v37 }
 0x85b   : > { %v4915_v53 = vpop.f32.mrf.mxu3  ;;  %v5866_v16 = vadd.f32 %v5865_v38, %v11677_v1  ;;  %v5954_v8 = vpop.f32.mrf.mxu1 }
 0x85c   : > { %v4916_v21 = vadd.f32 %v4915_v53, %v4827_v33  ;;  %v13213_v33 = vld [vmem:[#allocation58_spill] sm:$0xff]  ;;  %6039 = vmatpush.bf16.msrb.mxu2 %v8588_v52 }
 0x85d   : > { %v11681_v17 = vadd.f32 %v5954_v8, %v5866_v16  ;;  %5726 = vmatmul.bf16.gmra.mxu2 %v13211_v29  ;;  %5904 = vmatmul.bf16.gmra.mxu0 %v13147_v22 }
 0x85e   : > { %v5045_v44 = vmax.f32 %v4916_v21, 0.0  ;;  %5993 = vmatmul.bf16.gmra.mxu1 %v13212_v25 }
 0x85f   : > { %13210 = vst [vmem:[#allocation76_spill] sm:$0xff] %v11681_v17 }
 0x860   : > { %5815 = vmatmul.bf16.gmra.mxu3 %v11586_v4  ;;  %v11687_v20 = vpack.c.bf16 %v5045_v44, %v5041_v5  ;;  %v5687_v32 = vpop.f32.mrf.mxu2 }
 0x861   : > { %v5688_v53 = vadd.f32 %v5687_v32, %v13213_v33 }
 0x862   : > { %v5867_v21 = vpop.f32.mrf.mxu0 }
 0x863   : > { %v5776_v38 = vpop.f32.mrf.mxu3  ;;  %v5868_v16 = vadd.f32 %v5867_v21, %v11677_v1  ;;  %v5956_v8 = vpop.f32.mrf.mxu1  ;;  %v9165_v21 = vld [vmem:[#allocation9 + $0x30] sm:$0xff] }
 0x864   : > { %v5777_v22 = vadd.f32 %v5776_v38, %v5688_v53  ;;  %v13217_v53 = vld [vmem:[#allocation135_spill] sm:$0xff]  ;;  %6441 = vmatpush.bf16.msrb.mxu0 %v9165_v21 }
 0x865   : > { %v11691_v25 = vadd.f32 %v5956_v8, %v5868_v16  ;;  %v13218_v38 = vld [vmem:[#allocation119_spill] sm:$0xff]  ;;  %v13219_v16 = vld [vmem:[#allocation33_spill] sm:$0xff] }
 0x866   : > { %v6212_v32 = vmax.f32 %v5777_v22, 0.0 }
 0x867   : > { %13214 = vst [vmem:[#allocation77_spill] sm:$0xff] %v11691_v25 }
 0x868   : > { %v5689_v17 = vpop.f32.mrf.mxu2 }
 0x869   : > { %v5690_v0 = vadd.f32 %v5689_v17, %v11464_v59 }
 0x86a   : > { %v5870_v5 = vpop.f32.mrf.mxu0 }
 0x86b   : > { %v5778_v37 = vpop.f32.mrf.mxu3  ;;  %v5871_v58 = vadd.f32 %v5870_v5, %v11677_v1  ;;  %v5959_v50 = vpop.f32.mrf.mxu1 }
 0x86c   : > { %v5779_v44 = vadd.f32 %v5778_v37, %v5690_v0 }
 0x86d   : > { %v11695_v52 = vadd.f32 %v5959_v50, %v5871_v58  ;;  %5731 = vmatmul.bf16.gmra.mxu2 %v13216_v49  ;;  %5909 = vmatmul.bf16.gmra.mxu0 %v13217_v53  ;;  %v9173_v50 = vld [vmem:[#allocation9 + $0x70] sm:$0xff] }
 0x86e   : > { %v6214_v33 = vmax.f32 %v5779_v44, 0.0  ;;  %5998 = vmatmul.bf16.gmra.mxu1 %v13218_v38 }
 0x86f   : > { %13215 = vst [vmem:[#allocation16_spill] sm:$0xff] %v11695_v52  ;;  %6530 = vmatpush.bf16.msrb.mxu1 %v9173_v50  ;;  %v13221_v52 = vld [vmem:[#allocation37_spill] sm:$0xff] }
 0x870   : > { %5820 = vmatmul.bf16.gmra.mxu3 %v11600_v41  ;;  %v11701_v59 = vpack.c.bf16 %v6214_v33, %v6212_v32  ;;  %v5692_v17 = vpop.f32.mrf.mxu2 }
 0x871   : > { %v5693_v8 = vadd.f32 %v5692_v17, %v13219_v16 }
 0x872   : > { %v5872_v22 = vpop.f32.mrf.mxu0 }
 0x873   : > { %v5781_v0 = vpop.f32.mrf.mxu3  ;;  %v5873_v5 = vadd.f32 %v5872_v22, %v11677_v1  ;;  %v5961_v44 = vpop.f32.mrf.mxu1  ;;  %v13225_v22 = vld [vmem:[#allocation13_spill] sm:$0xff] }
 0x874   : > { %v5782_v37 = vadd.f32 %v5781_v0, %v5693_v8  ;;  %v13223_v8 = vld [vmem:[#allocation50_spill] sm:$0xff]  ;;  %v13224_v0 = vld [vmem:[#allocation136_spill] sm:$0xff] }
 0x875   : > { %v11705_v58 = vadd.f32 %v5961_v44, %v5873_v5  ;;  %v9129_v5 = vld [vmem:[#allocation7 + $0x114] sm:$0xf] }
 0x876   : > { %v6216_v17 = vmax.f32 %v5782_v37, 0.0  ;;  %v9145_v44 = vld [vmem:[#allocation7 + $0x194] sm:$0xf] }
 0x877   : > { %13220 = vst [vmem:[#allocation84_spill] sm:$0xff] %v11705_v58  ;;  %v13228_v58 = vld [vmem:[#allocation63_spill] sm:$0xff] }
 0x878   : > { %v5694_v53 = vpop.f32.mrf.mxu2 }
 0x879   : > { %v5695_v38 = vadd.f32 %v5694_v53, %v13221_v52  ;;  %v8577_v52 = vld [vmem:[#allocation7 + $0x118] sm:$0xf0] }
 0x87a   : > { %v5875_v32 = vpop.f32.mrf.mxu0  ;;  %v8580_v50 = vor.u32 %v9129_v5, %v8577_v52 }
 0x87b   : > { %v5783_v41 = vpop.f32.mrf.mxu3  ;;  %v5876_v21 = vadd.f32 %v5875_v32, %v11677_v1  ;;  %v5964_v49 = vpop.f32.mrf.mxu1  ;;  %v13226_v32 = vld [vmem:[#allocation31_spill] sm:$0xff] }
 0x87c   : > { %v5784_v33 = vadd.f32 %v5783_v41, %v5695_v38  ;;  %v8641_v41 = vld [vmem:[#allocation7 + $0x198] sm:$0xf0]  ;;  %6040 = vmatpush.bf16.msrb.mxu2 %v8580_v50 }
 0x87d   : > { %v11709_v25 = vadd.f32 %v5964_v49, %v5876_v21  ;;  %5736 = vmatmul.bf16.gmra.mxu2 %v13223_v8  ;;  %5914 = vmatmul.bf16.gmra.mxu0 %v13224_v0  ;;  %v8644_v37 = vor.u32 %v9145_v44, %v8641_v41 }
 0x87e   : > { %v6218_v16 = vmax.f32 %v5784_v33, 0.0  ;;  %6003 = vmatmul.bf16.gmra.mxu1 %v13225_v22 }
 0x87f   : > { %13222 = vst [vmem:[#allocation82_spill] sm:$0xff] %v11709_v25  ;;  %6129 = vmatpush.bf16.msrb.mxu3 %v8644_v37  ;;  %v13230_v37 = vld [vmem:[#allocation25_spill] sm:$0xff] }
 0x880   : > { %5825 = vmatmul.bf16.gmra.mxu3 %v11614_v51  ;;  %v11715_v53 = vpack.c.bf16 %v6218_v16, %v6216_v17  ;;  %v5697_v38 = vpop.f32.mrf.mxu2 }
 0x881   : > { %v5698_v49 = vadd.f32 %v5697_v38, %v13226_v32 }
 0x882   : > { %v5877_v21 = vpop.f32.mrf.mxu0 }
 0x883   : > { %v5786_v33 = vpop.f32.mrf.mxu3  ;;  %v5878_v25 = vadd.f32 %v5877_v21, %v11677_v1  ;;  %v5966_v51 = vpop.f32.mrf.mxu1 }
 0x884   : > { %v5787_v0 = vadd.f32 %v5786_v33, %v5698_v49  ;;  %v13231_v49 = vld [vmem:[#allocation137_spill] sm:$0xff] }
 0x885   : > { %v11719_v22 = vadd.f32 %v5966_v51, %v5878_v25  ;;  %v13232_v51 = vld [vmem:[#allocation15_spill] sm:$0xff]  ;;  %v9164_v25 = vld [vmem:[#allocation9 + $0x28] sm:$0xff]  ;;  %v13233_v33 = vld [vmem:[#allocation61_spill] sm:$0xff] }
 0x886   : > { %v6220_v38 = vmax.f32 %v5787_v0, 0.0  ;;  %6442 = vmatpush.bf16.msrb.mxu0 %v9164_v25 }
 0x887   : > { %13227 = vst [vmem:[#allocation20_spill] sm:$0xff] %v11719_v22 }
 0x888   : > { %v5699_v8 = vpop.f32.mrf.mxu2 }
 0x889   : > { %v5700_v5 = vadd.f32 %v5699_v8, %v13228_v58 }
 0x88a   : > { %v5880_v17 = vpop.f32.mrf.mxu0 }
 0x88b   : > { %v5788_v52 = vpop.f32.mrf.mxu3  ;;  %v5881_v44 = vadd.f32 %v5880_v17, %v11677_v1  ;;  %v5969_v41 = vpop.f32.mrf.mxu1 }
 0x88c   : > { %v5789_v16 = vadd.f32 %v5788_v52, %v5700_v5 }
 0x88d   : > { %v11723_v50 = vadd.f32 %v5969_v41, %v5881_v44  ;;  %5741 = vmatmul.bf16.gmra.mxu2 %v13230_v37  ;;  %5919 = vmatmul.bf16.gmra.mxu0 %v13231_v49  ;;  %v9172_v41 = vld [vmem:[#allocation9 + $0x68] sm:$0xff] }
 0x88e   : > { %v6222_v32 = vmax.f32 %v5789_v16, 0.0  ;;  %6008 = vmatmul.bf16.gmra.mxu1 %v13232_v51 }
 0x88f   : > { %13229 = vst [vmem:[#allocation89_spill] sm:$0xff] %v11723_v50  ;;  %6531 = vmatpush.bf16.msrb.mxu1 %v9172_v41  ;;  %v13235_v50 = vld [vmem:[#allocation62_spill] sm:$0xff] }
 0x890   : > { %5830 = vmatmul.bf16.gmra.mxu3 %v11628_v46  ;;  %v11729_v58 = vpack.c.bf16 %v6222_v32, %v6220_v38  ;;  %v5702_v8 = vpop.f32.mrf.mxu2 }
 0x891   : > { %v5703_v21 = vadd.f32 %v5702_v8, %v13233_v33 }
 0x892   : > { %v5882_v0 = vpop.f32.mrf.mxu0 }
 0x893   : > { %v5791_v5 = vpop.f32.mrf.mxu3  ;;  %v5883_v17 = vadd.f32 %v5882_v0, %v11677_v1  ;;  %v5971_v16 = vpop.f32.mrf.mxu1  ;;  %v13239_v0 = vld [vmem:[#allocation17_spill] sm:$0xff] }
 0x894   : > { %v5792_v52 = vadd.f32 %v5791_v5, %v5703_v21  ;;  %v13237_v21 = vld [vmem:[#allocation29_spill] sm:$0xff]  ;;  %v13238_v5 = vld [vmem:[#allocation138_spill] sm:$0xff] }
 0x895   : > { %v11733_v44 = vadd.f32 %v5971_v16, %v5883_v17  ;;  %v9127_v17 = vld [vmem:[#allocation7 + $0x104] sm:$0xf] }
 0x896   : > { %v6224_v8 = vmax.f32 %v5792_v52, 0.0  ;;  %v9143_v16 = vld [vmem:[#allocation7 + $0x184] sm:$0xf] }
 0x897   : > { %13234 = vst [vmem:[#allocation87_spill] sm:$0xff] %v11733_v44 }
 0x898   : > { %v5704_v49 = vpop.f32.mrf.mxu2 }
 0x899   : > { %v5705_v51 = vadd.f32 %v5704_v49, %v13235_v50  ;;  %v8569_v50 = vld [vmem:[#allocation7 + $0x108] sm:$0xf0] }
 0x89a   : > { %v5885_v38 = vpop.f32.mrf.mxu0  ;;  %v8572_v41 = vor.u32 %v9127_v17, %v8569_v50  ;;  %v9163_v17 = vld [vmem:[#allocation9 + $0x20] sm:$0xff] }
 0x89b   : > { %v5793_v46 = vpop.f32.mrf.mxu3  ;;  %v5886_v25 = vadd.f32 %v5885_v38, %v11677_v1  ;;  %v5974_v37 = vpop.f32.mrf.mxu1  ;;  %v13240_v38 = vld [vmem:[#allocation35_spill] sm:$0xff]  ;;  %6443 = vmatpush.bf16.msrb.mxu0 %v9163_v17 }
 0x89c   : > { %v5794_v32 = vadd.f32 %v5793_v46, %v5705_v51  ;;  %v8633_v46 = vld [vmem:[#allocation7 + $0x188] sm:$0xf0]  ;;  %6041 = vmatpush.bf16.msrb.mxu2 %v8572_v41 }
 0x89d   : > { %v11737_v22 = vadd.f32 %v5974_v37, %v5886_v25  ;;  %5746 = vmatmul.bf16.gmra.mxu2 %v13237_v21  ;;  %5924 = vmatmul.bf16.gmra.mxu0 %v13238_v5  ;;  %v8636_v52 = vor.u32 %v9143_v16, %v8633_v46 }
 0x89e   : > { %v6226_v33 = vmax.f32 %v5794_v32, 0.0  ;;  %6013 = vmatmul.bf16.gmra.mxu1 %v13239_v0 }
 0x89f   : > { %13236 = vst [vmem:[#allocation26_spill] sm:$0xff] %v11737_v22  ;;  %6130 = vmatpush.bf16.msrb.mxu3 %v8636_v52  ;;  %v9162_v52 = vld [vmem:[#allocation9 + $0x18] sm:$0xff] }
 0x8a0   : > { %5835 = vmatmul.bf16.gmra.mxu3 %v11642_v13  ;;  %v11743_v49 = vpack.c.bf16 %v6226_v33, %v6224_v8  ;;  %v5707_v51 = vpop.f32.mrf.mxu2  ;;  %v13241_v13 = vld [vmem:[#allocation67_spill] sm:$0xff]  ;;  %6444 = vmatpush.bf16.msrb.mxu0 %v9162_v52 }
 0x8a1   : > { %v5708_v37 = vadd.f32 %v5707_v51, %v13240_v38  ;;  %v13243_v38 = vld [vmem:[#allocation23_spill] sm:$0xff] }
 0x8a2   : > { %v11746_v25 = vpop.f32.mrf.mxu0 }
 0x8a3   : > { %v5796_v32 = vpop.f32.mrf.mxu3  ;;  %v11748_v22 = vpop.f32.mrf.mxu1 }
 0x8a4   : > { %v5797_v5 = vadd.f32 %v5796_v32, %v5708_v37 }
 0x8a6   : > { %v6228_v46 = vmax.f32 %v5797_v5, 0.0  ;;  %v9161_v5 = vld [vmem:[#allocation9 + $0x10] sm:$0xff] }
 0x8a7   : > { %6445 = vmatpush.bf16.msrb.mxu0 %v9161_v5  ;;  %v13248_v5 = vld [vmem:[#allocation55_spill] sm:$0xff] }
 0x8a8   : > { %v5709_v0 = vpop.f32.mrf.mxu2 }
 0x8a9   : > { %v5710_v21 = vadd.f32 %v5709_v0, %v13241_v13  ;;  %v13244_v13 = vld [vmem:[#allocation49_spill] sm:$0xff] }
 0x8aa   : > { %v5890_v50 = vpop.f32.mrf.mxu0 }
 0x8ab   : > { %v5798_v44 = vpop.f32.mrf.mxu3  ;;  %v5891_v33 = vadd.f32 %v5890_v50, %v11677_v1  ;;  %v5979_v16 = vpop.f32.mrf.mxu1 }
 0x8ac   : > { %v5799_v8 = vadd.f32 %v5798_v44, %v5710_v21  ;;  %v13245_v21 = vld [vmem:[#allocation65_spill] sm:$0xff] }
 0x8ad   : > { %v11752_v41 = vadd.f32 %v5979_v16, %v5891_v33  ;;  %5751 = vmatmul.bf16.gmra.mxu2 %v13243_v38  ;;  %5929 = vmatmul.bf16.gmra.mxu0 %v13176_v40  ;;  %v9171_v40 = vld [vmem:[#allocation9 + $0x60] sm:$0xff]  ;;  %v9160_v33 = vld [vmem:[#allocation9 + $0x8] sm:$0xff] }
 0x8ae   : > { %v6230_v51 = vmax.f32 %v5799_v8, 0.0  ;;  %6018 = vmatmul.bf16.gmra.mxu1 %v13244_v13  ;;  %6446 = vmatpush.bf16.msrb.mxu0 %v9160_v33 }
 0x8af   : > { %13242 = vst [vmem:[#allocation24_spill] sm:$0xff] %v11752_v41  ;;  %6532 = vmatpush.bf16.msrb.mxu1 %v9171_v40 }
 0x8b0   : > { %5840 = vmatmul.bf16.gmra.mxu3 %v11656_v35  ;;  %v11758_v37 = vpack.c.bf16 %v6230_v51, %v6228_v46  ;;  %v5712_v44 = vpop.f32.mrf.mxu2  ;;  %v9159_v51 = vld [vmem:[#allocation9] sm:$0xff] }
 0x8b1   : > { %v5713_v32 = vadd.f32 %v5712_v44, %v13245_v21 }
 0x8b2   : > { %v11761_v17 = vpop.f32.mrf.mxu0  ;;  %6447 = vmatpush.bf16.msrb.mxu0 %v9159_v51 }
 0x8b3   : > { %v5801_v0 = vpop.f32.mrf.mxu3  ;;  %13246 = vst [vmem:[#allocation94_spill] sm:$0xff] %v11761_v17  ;;  %v11763_v8 = vpop.f32.mrf.mxu1 }
 0x8b4   : > { %v5802_v50 = vadd.f32 %v5801_v0, %v5713_v32 }
 0x8b6   : > { %v6232_v17 = vmax.f32 %v5802_v50, 0.0 }
 0x8b8   : > { %v5714_v16 = vpop.f32.mrf.mxu2 }
 0x8b9   : > { %v5715_v52 = vadd.f32 %v5714_v16, %v11534_v6 }
 0x8ba   : > { %v5895_v13 = vpop.f32.mrf.mxu0 }
 0x8bb   : > { %v5803_v46 = vpop.f32.mrf.mxu3  ;;  %v5896_v44 = vadd.f32 %v5895_v13, %v11677_v1  ;;  %v5984_v21 = vpop.f32.mrf.mxu1 }
 0x8bc   : > { %v5804_v41 = vadd.f32 %v5803_v46, %v5715_v52 }
 0x8bd   : > { %v11767_v0 = vadd.f32 %v5984_v21, %v5896_v44  ;;  %5756 = vmatmul.bf16.gmra.mxu2 %v13248_v5  ;;  %5934 = vmatmul.bf16.gmra.mxu0 %v13180_v10 }
 0x8be   : > { %v6234_v32 = vmax.f32 %v5804_v41, 0.0  ;;  %6023 = vmatmul.bf16.gmra.mxu1 %v13181_v14 }
 0x8bf   : > { %13247 = vst [vmem:[#allocation92_spill] sm:$0xff] %v11767_v0 }
 0x8c0   : > { %5845 = vmatmul.bf16.gmra.mxu3 %v11670_v27  ;;  %v11773_v6 = vpack.c.bf16 %v6234_v32, %v6232_v17  ;;  %v5717_v40 = vpop.f32.mrf.mxu2 }
 0x8c1   : > { %v5718_v33 = vadd.f32 %v5717_v40, %v11538_v31  ;;  %v13250_v31 = vld [vmem:[#allocation53_spill] sm:$0xff] }
 0x8c2   : > { %v11776_v52 = vpop.f32.mrf.mxu0 }
 0x8c3   : > { %v5806_v16 = vpop.f32.mrf.mxu3  ;;  %v11778_v41 = vpop.f32.mrf.mxu1 }
 0x8c4   : > { %v5807_v50 = vadd.f32 %v5806_v16, %v5718_v33 }
 0x8c6   : > { %v6236_v17 = vmax.f32 %v5807_v50, 0.0 }
 0x8c8   : > { %v5719_v46 = vpop.f32.mrf.mxu2 }
 0x8c9   : > { %v5720_v51 = vadd.f32 %v5719_v46, %v11548_v36 }
 0x8ca   : > { %v5900_v10 = vpop.f32.mrf.mxu0 }
 0x8cb   : > { %v5808_v13 = vpop.f32.mrf.mxu3  ;;  %v5901_v21 = vadd.f32 %v5900_v10, %v11677_v1  ;;  %v5989_v14 = vpop.f32.mrf.mxu1 }
 0x8cc   : > { %v5809_v44 = vadd.f32 %v5808_v13, %v5720_v51  ;;  %v9170_v13 = vld [vmem:[#allocation9 + $0x58] sm:$0xff] }
 0x8cd   : > { %v11782_v0 = vadd.f32 %v5989_v14, %v5901_v21  ;;  %5761 = vmatmul.bf16.gmra.mxu2 %v13250_v31  ;;  %5939 = vmatmul.bf16.gmra.mxu0 %v13183_v45 }
 0x8ce   : > { %v6238_v32 = vmax.f32 %v5809_v44, 0.0  ;;  %6028 = vmatmul.bf16.gmra.mxu1 %v13184_v12 }
 0x8cf   : > { %13249 = vst [vmem:[#allocation28_spill] sm:$0xff] %v11782_v0  ;;  %6533 = vmatpush.bf16.msrb.mxu1 %v9170_v13 }
 0x8d0   : > { %5850 = vmatmul.bf16.gmra.mxu3 %v11687_v20  ;;  %v11788_v40 = vpack.c.bf16 %v6238_v32, %v6236_v17  ;;  %v5722_v36 = vpop.f32.mrf.mxu2 }
 0x8d1   : > { %v5723_v33 = vadd.f32 %v5722_v36, %v11552_v28 }
 0x8d2   : > { %v11791_v46 = vpop.f32.mrf.mxu0 }
 0x8d3   : > { %v5811_v16 = vpop.f32.mrf.mxu3  ;;  %v11793_v51 = vpop.f32.mrf.mxu1 }
 0x8d4   : > { %v5812_v50 = vadd.f32 %v5811_v16, %v5723_v33 }
 0x8d6   : > { %v6240_v32 = vmax.f32 %v5812_v50, 0.0 }
 0x8d8   : > { %v5724_v10 = vpop.f32.mrf.mxu2 }
 0x8d9   : > { %v5725_v45 = vadd.f32 %v5724_v10, %v11562_v7 }
 0x8da   : > { %v5905_v21 = vpop.f32.mrf.mxu0 }
 0x8db   : > { %v5813_v44 = vpop.f32.mrf.mxu3  ;;  %v5906_v12 = vadd.f32 %v5905_v21, %v11677_v1  ;;  %v5994_v17 = vpop.f32.mrf.mxu1 }
 0x8dc   : > { %v5814_v14 = vadd.f32 %v5813_v44, %v5725_v45 }
 0x8dd   : > { %v11797_v28 = vadd.f32 %v5994_v17, %v5906_v12  ;;  %6042 = vmatmul.bf16.vlgmr.msrb.gmra.mxu2 %v13186_v56  ;;  %6448 = vmatmul.bf16.vlgmr.msrb.gmra.mxu0 %v11701_v59 }
 0x8de   : > { %v6242_v0 = vmax.f32 %v5814_v14, 0.0 }
 0x8e0   : > { %6131 = vmatmul.bf16.vlgmr.msrb.gmra.mxu3 %v11474_v48  ;;  %v11802_v36 = vpack.c.bf16 %v6242_v0, %v6240_v32  ;;  %v5727_v33 = vpop.f32.mrf.mxu2 }
 0x8e1   : > { %v5728_v7 = vadd.f32 %v5727_v33, %v11566_v3 }
 0x8e2   : > { %v11805_v13 = vpop.f32.mrf.mxu0 }
 0x8e3   : > { %v5816_v16 = vpop.f32.mrf.mxu3  ;;  %v11807_v45 = vpop.f32.mrf.mxu1 }
 0x8e4   : > { %v5817_v10 = vadd.f32 %v5816_v16, %v5728_v7 }
 0x8e6   : > { %v6244_v0 = vmax.f32 %v5817_v10, 0.0  ;;  %v9169_v10 = vld [vmem:[#allocation9 + $0x50] sm:$0xff] }
 0x8e7   : > { %6534 = vmatpush.bf16.msrb.mxu1 %v9169_v10 }
 0x8e8   : > { %v5729_v50 = vpop.f32.mrf.mxu2 }
 0x8e9   : > { %v5730_v44 = vadd.f32 %v5729_v50, %v11576_v15 }
 0x8ea   : > { %v5910_v56 = vpop.f32.mrf.mxu0 }
 0x8eb   : > { %v5818_v21 = vpop.f32.mrf.mxu3  ;;  %v5911_v59 = vadd.f32 %v5910_v56, %v11677_v1  ;;  %v5999_v48 = vpop.f32.mrf.mxu1 }
 0x8ec   : > { %v5819_v14 = vadd.f32 %v5818_v21, %v5730_v44 }
 0x8ed   : > { %v11811_v17 = vadd.f32 %v5999_v48, %v5911_v59  ;;  %6047 = vmatmul.bf16.gmra.mxu2 %v13187_v62  ;;  %6453 = vmatmul.bf16.gmra.mxu0 %v11715_v53 }
 0x8ee   : > { %v6246_v12 = vmax.f32 %v5819_v14, 0.0 }
 0x8f0   : > { %6136 = vmatmul.bf16.gmra.mxu3 %v11488_v34  ;;  %v11816_v3 = vpack.c.bf16 %v6246_v12, %v6244_v0  ;;  %v5732_v32 = vpop.f32.mrf.mxu2 }
 0x8f1   : > { %v5733_v15 = vadd.f32 %v5732_v32, %v11580_v11 }
 0x8f2   : > { %v11819_v7 = vpop.f32.mrf.mxu0 }
 0x8f3   : > { %v5821_v33 = vpop.f32.mrf.mxu3  ;;  %v11821_v50 = vpop.f32.mrf.mxu1 }
 0x8f4   : > { %v5822_v16 = vadd.f32 %v5821_v33, %v5733_v15 }
 0x8f6   : > { %v6248_v59 = vmax.f32 %v5822_v16, 0.0 }
 0x8f8   : > { %v5734_v44 = vpop.f32.mrf.mxu2 }
 0x8f9   : > { %v5735_v62 = vadd.f32 %v5734_v44, %v11590_v47 }
 0x8fa   : > { %v5915_v53 = vpop.f32.mrf.mxu0 }
 0x8fb   : > { %v5823_v21 = vpop.f32.mrf.mxu3  ;;  %v5916_v34 = vadd.f32 %v5915_v53, %v11677_v1  ;;  %v6004_v14 = vpop.f32.mrf.mxu1 }
 0x8fc   : > { %v5824_v56 = vadd.f32 %v5823_v21, %v5735_v62 }
 0x8fd   : > { %v11825_v11 = vadd.f32 %v6004_v14, %v5916_v34  ;;  %6052 = vmatmul.bf16.gmra.mxu2 %v13188_v60  ;;  %6458 = vmatmul.bf16.gmra.mxu0 %v11729_v58 }
 0x8fe   : > { %v6250_v48 = vmax.f32 %v5824_v56, 0.0 }
 0x900   : > { %6141 = vmatmul.bf16.gmra.mxu3 %v11502_v54  ;;  %v11830_v0 = vpack.c.bf16 %v6250_v48, %v6248_v59  ;;  %v5737_v12 = vpop.f32.mrf.mxu2 }
 0x901   : > { %v5738_v47 = vadd.f32 %v5737_v12, %v11594_v42 }
 0x902   : > { %v11833_v15 = vpop.f32.mrf.mxu0 }
 0x903   : > { %v5826_v32 = vpop.f32.mrf.mxu3  ;;  %v11835_v10 = vpop.f32.mrf.mxu1 }
 0x904   : > { %v5827_v33 = vadd.f32 %v5826_v32, %v5738_v47 }
 0x906   : > { %v6252_v53 = vmax.f32 %v5827_v33, 0.0  ;;  %v9168_v33 = vld [vmem:[#allocation9 + $0x48] sm:$0xff] }
 0x907   : > { %6535 = vmatpush.bf16.msrb.mxu1 %v9168_v33 }
 0x908   : > { %v5739_v16 = vpop.f32.mrf.mxu2 }
 0x909   : > { %v5740_v44 = vadd.f32 %v5739_v16, %v11604_v2  ;;  %v13251_v2 = vld [vmem:[#allocation72_spill] sm:$0xff] }
 0x90a   : > { %v5920_v60 = vpop.f32.mrf.mxu0 }
 0x90b   : > { %v5828_v62 = vpop.f32.mrf.mxu3  ;;  %v5921_v58 = vadd.f32 %v5920_v60, %v11677_v1  ;;  %v6009_v54 = vpop.f32.mrf.mxu1 }
 0x90c   : > { %v5829_v21 = vadd.f32 %v5828_v62, %v5740_v44 }
 0x90d   : > { %v11839_v34 = vadd.f32 %v6009_v54, %v5921_v58  ;;  %6057 = vmatmul.bf16.gmra.mxu2 %v13191_v30  ;;  %6463 = vmatmul.bf16.gmra.mxu0 %v11743_v49 }
 0x90e   : > { %v6254_v56 = vmax.f32 %v5829_v21, 0.0 }
 0x910   : > { %6146 = vmatmul.bf16.gmra.mxu3 %v11516_v18  ;;  %v11844_v42 = vpack.c.bf16 %v6254_v56, %v6252_v53  ;;  %v5742_v14 = vpop.f32.mrf.mxu2  ;;  %v13252_v53 = vld [vmem:[#allocation66_spill] sm:$0xff] }
 0x911   : > { %v5743_v59 = vadd.f32 %v5742_v14, %v13251_v2 }
 0x912   : > { %v11847_v12 = vpop.f32.mrf.mxu0 }
 0x913   : > { %v5831_v48 = vpop.f32.mrf.mxu3  ;;  %v11849_v32 = vpop.f32.mrf.mxu1 }
 0x914   : > { %v5832_v47 = vadd.f32 %v5831_v48, %v5743_v59 }
 0x916   : > { %v6256_v21 = vmax.f32 %v5832_v47, 0.0 }
 0x918   : > { %v5744_v16 = vpop.f32.mrf.mxu2 }
 0x919   : > { %v5745_v30 = vadd.f32 %v5744_v16, %v11618_v39  ;;  %v13253_v39 = vld [vmem:[#allocation71_spill] sm:$0xff] }
 0x91a   : > { %v5925_v49 = vpop.f32.mrf.mxu0 }
 0x91b   : > { %v5833_v44 = vpop.f32.mrf.mxu3  ;;  %v5926_v18 = vadd.f32 %v5925_v49, %v11677_v1  ;;  %v6014_v60 = vpop.f32.mrf.mxu1 }
 0x91c   : > { %v5834_v62 = vadd.f32 %v5833_v44, %v5745_v30 }
 0x91d   : > { %v11853_v54 = vadd.f32 %v6014_v60, %v5926_v18  ;;  %6062 = vmatmul.bf16.gmra.mxu2 %v13196_v26  ;;  %6468 = vmatmul.bf16.gmra.mxu0 %v11758_v37 }
 0x91e   : > { %v6258_v58 = vmax.f32 %v5834_v62, 0.0 }
 0x920   : > { %6151 = vmatmul.bf16.gmra.mxu3 %v13252_v53  ;;  %v11858_v56 = vpack.c.bf16 %v6258_v58, %v6256_v21  ;;  %v5747_v14 = vpop.f32.mrf.mxu2  ;;  %v13254_v58 = vld [vmem:[#allocation41_spill] sm:$0xff] }
 0x921   : > { %v5748_v2 = vadd.f32 %v5747_v14, %v13253_v39 }
 0x922   : > { %v11861_v48 = vpop.f32.mrf.mxu0 }
 0x923   : > { %v5836_v59 = vpop.f32.mrf.mxu3  ;;  %v11863_v16 = vpop.f32.mrf.mxu1 }
 0x924   : > { %v5837_v33 = vadd.f32 %v5836_v59, %v5748_v2 }
 0x926   : > { %v6260_v18 = vmax.f32 %v5837_v33, 0.0  ;;  %v9167_v33 = vld [vmem:[#allocation9 + $0x40] sm:$0xff] }
 0x927   : > { %6536 = vmatpush.bf16.msrb.mxu1 %v9167_v33 }
 0x928   : > { %v5749_v47 = vpop.f32.mrf.mxu2 }
 0x929   : > { %v5750_v30 = vadd.f32 %v5749_v47, %v11632_v63  ;;  %v13255_v63 = vld [vmem:[#allocation22_spill] sm:$0xff] }
 0x92a   : > { %v5930_v26 = vpop.f32.mrf.mxu0 }
 0x92b   : > { %v5838_v44 = vpop.f32.mrf.mxu3  ;;  %v5931_v37 = vadd.f32 %v5930_v26, %v11677_v1  ;;  %v6019_v62 = vpop.f32.mrf.mxu1 }
 0x92c   : > { %v5839_v49 = vadd.f32 %v5838_v44, %v5750_v30 }
 0x92d   : > { %v11867_v21 = vadd.f32 %v6019_v62, %v5931_v37  ;;  %6067 = vmatmul.bf16.gmra.mxu2 %v13201_v57  ;;  %6473 = vmatmul.bf16.gmra.mxu0 %v11773_v6 }
 0x92e   : > { %v6262_v60 = vmax.f32 %v5839_v49, 0.0 }
 0x930   : > { %6156 = vmatmul.bf16.gmra.mxu3 %v13254_v58  ;;  %v11872_v53 = vpack.c.bf16 %v6262_v60, %v6260_v18  ;;  %v5752_v14 = vpop.f32.mrf.mxu2 }
 0x931   : > { %v5753_v39 = vadd.f32 %v5752_v14, %v13255_v63  ;;  %v13256_v14 = vld [vmem:[#allocation14_spill] sm:$0xff] }
 0x932   : > { %v11875_v59 = vpop.f32.mrf.mxu0 }
 0x933   : > { %v5841_v2 = vpop.f32.mrf.mxu3  ;;  %v11877_v30 = vpop.f32.mrf.mxu1 }
 0x934   : > { %v5842_v47 = vadd.f32 %v5841_v2, %v5753_v39 }
 0x936   : > { %v6264_v18 = vmax.f32 %v5842_v47, 0.0 }
 0x938   : > { %v5754_v44 = vpop.f32.mrf.mxu2 }
 0x939   : > { %v5755_v57 = vadd.f32 %v5754_v44, %v11646_v55  ;;  %v13257_v55 = vld [vmem:[#allocation78_spill] sm:$0xff] }
 0x93a   : > { %v5935_v6 = vpop.f32.mrf.mxu0 }
 0x93b   : > { %v5843_v26 = vpop.f32.mrf.mxu3  ;;  %v5936_v37 = vadd.f32 %v5935_v6, %v11677_v1  ;;  %v6024_v62 = vpop.f32.mrf.mxu1 }
 0x93c   : > { %v5844_v49 = vadd.f32 %v5843_v26, %v5755_v57 }
 0x93d   : > { %v11881_v58 = vadd.f32 %v6024_v62, %v5936_v37  ;;  %6072 = vmatmul.bf16.gmra.mxu2 %v13206_v19  ;;  %6478 = vmatmul.bf16.gmra.mxu0 %v11788_v40 }
 0x93e   : > { %v6266_v60 = vmax.f32 %v5844_v49, 0.0 }
 0x940   : > { %6161 = vmatmul.bf16.gmra.mxu3 %v13256_v14  ;;  %v11886_v63 = vpack.c.bf16 %v6266_v60, %v6264_v18  ;;  %v5757_v39 = vpop.f32.mrf.mxu2 }
 0x941   : > { %v5758_v2 = vadd.f32 %v5757_v39, %v13257_v55 }
 0x942   : > { %v11889_v44 = vpop.f32.mrf.mxu0 }
 0x943   : > { %v5846_v33 = vpop.f32.mrf.mxu3  ;;  %v11891_v26 = vpop.f32.mrf.mxu1 }
 0x944   : > { %v5847_v57 = vadd.f32 %v5846_v33, %v5758_v2 }
 0x946   : > { %v6268_v18 = vmax.f32 %v5847_v57, 0.0 }
 0x948   : > { %v5759_v47 = vpop.f32.mrf.mxu2 }
 0x949   : > { %v5760_v6 = vadd.f32 %v5759_v47, %v11660_v24 }
 0x94a   : > { %v5940_v19 = vpop.f32.mrf.mxu0 }
 0x94b   : > { %v5848_v49 = vpop.f32.mrf.mxu3  ;;  %v5941_v40 = vadd.f32 %v5940_v19, %v11677_v1  ;;  %v6029_v62 = vpop.f32.mrf.mxu1 }
 0x94c   : > { %v5849_v37 = vadd.f32 %v5848_v49, %v5760_v6 }
 0x94d   : > { %v11895_v14 = vadd.f32 %v6029_v62, %v5941_v40  ;;  %6077 = vmatmul.bf16.gmra.mxu2 %v13209_v9  ;;  %6483 = vmatmul.bf16.gmra.mxu0 %v11802_v36 }
 0x94e   : > { %v6270_v60 = vmax.f32 %v5849_v37, 0.0 }
 0x950   : > { %6166 = vmatmul.bf16.gmra.mxu3 %v11572_v23  ;;  %v11900_v39 = vpack.c.bf16 %v6270_v60, %v6268_v18  ;;  %v5762_v55 = vpop.f32.mrf.mxu2  ;;  %v13259_v60 = vld [vmem:[#allocation77_spill] sm:$0xff] }
 0x951   : > { %v5763_v24 = vadd.f32 %v5762_v55, %v11664_v61  ;;  %v13258_v61 = vld [vmem:[#allocation76_spill] sm:$0xff] }
 0x953   : > { %v5851_v2 = vpop.f32.mrf.mxu3 }
 0x954   : > { %v5852_v33 = vadd.f32 %v5851_v2, %v5763_v24 }
 0x956   : > { %v6272_v19 = vmax.f32 %v5852_v33, 0.0 }
 0x958   : > { %v5764_v47 = vpop.f32.mrf.mxu2 }
 0x959   : > { %v5765_v6 = vadd.f32 %v5764_v47, %v11674_v43  ;;  %v13260_v47 = vld [vmem:[#allocation45_spill] sm:$0xff] }
 0x95b   : > { %v5853_v57 = vpop.f32.mrf.mxu3 }
 0x95c   : > { %v5854_v49 = vadd.f32 %v5853_v57, %v5765_v6  ;;  %v13262_v57 = vld [vmem:[#allocation16_spill] sm:$0xff] }
 0x95d   : > { %6082 = vmatmul.bf16.gmra.mxu2 %v13211_v29  ;;  %6488 = vmatmul.bf16.gmra.mxu0 %v11816_v3  ;;  %v13261_v29 = vld [vmem:[#allocation39_spill] sm:$0xff] }
 0x95e   : > { %v6274_v37 = vmax.f32 %v5854_v49, 0.0 }
 0x960   : > { %6171 = vmatmul.bf16.gmra.mxu3 %v11586_v4  ;;  %v11907_v23 = vpack.c.bf16 %v6274_v37, %v6272_v19  ;;  %v6043_v9 = vpop.f32.mrf.mxu2 }
 0x961   : > { %v6044_v40 = vadd.f32 %v6043_v9, %v13258_v61  ;;  %v13263_v9 = vld [vmem:[#allocation84_spill] sm:$0xff] }
 0x963   : > { %v6132_v36 = vpop.f32.mrf.mxu3 }
 0x964   : > { %v6133_v18 = vadd.f32 %v6132_v36, %v6044_v40 }
 0x966   : > { %v6213_v2 = vmax.f32 %v6133_v18, 0.0 }
 0x968   : > { %v6045_v62 = vpop.f32.mrf.mxu2 }
 0x969   : > { %v6046_v43 = vadd.f32 %v6045_v62, %v13259_v60  ;;  %v11916_v62 = vpop.f32.mrf.mxu0 }
 0x96b   : > { %v6134_v55 = vpop.f32.mrf.mxu3 }
 0x96c   : > { %v6135_v24 = vadd.f32 %v6134_v55, %v6046_v43  ;;  %v13264_v43 = vld [vmem:[#allocation50_spill] sm:$0xff] }
 0x96d   : > { %6087 = vmatmul.bf16.gmra.mxu2 %v13260_v47  ;;  %6493 = vmatmul.bf16.gmra.mxu0 %v11830_v0  ;;  %v13265_v0 = vld [vmem:[#allocation70_spill] sm:$0xff] }
 0x96e   : > { %v6215_v33 = vmax.f32 %v6135_v24, 0.0 }
 0x970   : > { %6176 = vmatmul.bf16.gmra.mxu3 %v13261_v29  ;;  %v6277_v4 = vpack.c.bf16 %v6215_v33, %v6213_v2  ;;  %v6048_v3 = vpop.f32.mrf.mxu2  ;;  %v13266_v33 = vld [vmem:[#allocation82_spill] sm:$0xff] }
 0x971   : > { %v6049_v49 = vadd.f32 %v6048_v3, %v13262_v57  ;;  %v11922_v29 = vpop.f32.mrf.mxu0 }
 0x972   : > { %6537 = vmatmul.bf16.vlgmr.msrb.gmra.mxu1 %v6277_v4 }
 0x973   : > { %v6137_v6 = vpop.f32.mrf.mxu3 }
 0x974   : > { %v6138_v37 = vadd.f32 %v6137_v6, %v6049_v49  ;;  %v13267_v6 = vld [vmem:[#allocation20_spill] sm:$0xff] }
 0x976   : > { %v6217_v18 = vmax.f32 %v6138_v37, 0.0 }
 0x978   : > { %v6050_v19 = vpop.f32.mrf.mxu2 }
 0x979   : > { %v6051_v36 = vadd.f32 %v6050_v19, %v13263_v9 }
 0x97b   : > { %v6139_v61 = vpop.f32.mrf.mxu3 }
 0x97c   : > { %v6140_v40 = vadd.f32 %v6139_v61, %v6051_v36  ;;  %v13268_v36 = vld [vmem:[#allocation25_spill] sm:$0xff] }
 0x97d   : > { %6092 = vmatmul.bf16.gmra.mxu2 %v13264_v43  ;;  %6498 = vmatmul.bf16.gmra.mxu0 %v11844_v42  ;;  %v13269_v42 = vld [vmem:[#allocation18_spill] sm:$0xff]  ;;  %v13270_v43 = vld [vmem:[#allocation89_spill] sm:$0xff] }
 0x97e   : > { %v6219_v60 = vmax.f32 %v6140_v40, 0.0 }
 0x980   : > { %6181 = vmatmul.bf16.gmra.mxu3 %v13265_v0  ;;  %v6279_v55 = vpack.c.bf16 %v6219_v60, %v6217_v18  ;;  %v6053_v24 = vpop.f32.mrf.mxu2  ;;  %v11928_v18 = vpop.f32.mrf.mxu0 }
 0x981   : > { %v6054_v47 = vadd.f32 %v6053_v24, %v13266_v33 }
 0x982   : > { %6542 = vmatmul.bf16.gmra.mxu1 %v6279_v55 }
 0x983   : > { %v6142_v2 = vpop.f32.mrf.mxu3 }
 0x984   : > { %v6143_v3 = vadd.f32 %v6142_v2, %v6054_v47  ;;  %v13271_v2 = vld [vmem:[#allocation87_spill] sm:$0xff] }
 0x986   : > { %v6221_v37 = vmax.f32 %v6143_v3, 0.0 }
 0x988   : > { %v6055_v4 = vpop.f32.mrf.mxu2 }
 0x989   : > { %v6056_v57 = vadd.f32 %v6055_v4, %v13267_v6  ;;  %v11932_v4 = vpop.f32.mrf.mxu0 }
 0x98b   : > { %v6144_v49 = vpop.f32.mrf.mxu3 }
 0x98c   : > { %v6145_v19 = vadd.f32 %v6144_v49, %v6056_v57  ;;  %v13272_v57 = vld [vmem:[#allocation29_spill] sm:$0xff]  ;;  %v13273_v49 = vld [vmem:[#allocation43_spill] sm:$0xff] }
 0x98d   : > { %6097 = vmatmul.bf16.gmra.mxu2 %v13268_v36  ;;  %6503 = vmatmul.bf16.gmra.mxu0 %v11858_v56  ;;  %v5888_v36 = vadd.f32 %v11746_v25, %v11677_v1 }
 0x98e   : > { %v6223_v9 = vmax.f32 %v6145_v19, 0.0 }
 0x990   : > { %6186 = vmatmul.bf16.gmra.mxu3 %v13269_v42  ;;  %v6281_v61 = vpack.c.bf16 %v6223_v9, %v6221_v37  ;;  %v6058_v40 = vpop.f32.mrf.mxu2 }
 0x991   : > { %v6059_v0 = vadd.f32 %v6058_v40, %v13270_v43  ;;  %v11939_v42 = vpop.f32.mrf.mxu0 }
 0x992   : > { %6547 = vmatmul.bf16.gmra.mxu1 %v6281_v61  ;;  %v13274_v61 = vld [vmem:[#allocation26_spill] sm:$0xff] }
 0x993   : > { %v6147_v60 = vpop.f32.mrf.mxu3 }
 0x994   : > { %v6148_v24 = vadd.f32 %v6147_v60, %v6059_v0  ;;  %v5977_v60 = vadd.f32 %v11748_v22, %v5888_v36  ;;  %v13275_v22 = vld [vmem:[#allocation94_spill] sm:$0xff] }
 0x996   : > { %v6225_v6 = vmax.f32 %v6148_v24, 0.0 }
 0x998   : > { %v6060_v55 = vpop.f32.mrf.mxu2 }
 0x999   : > { %v6061_v33 = vadd.f32 %v6060_v55, %v13271_v2  ;;  %v11946_v25 = vpop.f32.mrf.mxu0 }
 0x99b   : > { %v6149_v47 = vpop.f32.mrf.mxu3 }
 0x99c   : > { %v6150_v3 = vadd.f32 %v6149_v47, %v6061_v33 }
 0x99d   : > { %6102 = vmatmul.bf16.gmra.mxu2 %v13272_v57  ;;  %6508 = vmatmul.bf16.gmra.mxu0 %v11872_v53  ;;  %v13276_v57 = vld [vmem:[#allocation24_spill] sm:$0xff] }
 0x99e   : > { %v6227_v56 = vmax.f32 %v6150_v3, 0.0 }
 0x9a0   : > { %6191 = vmatmul.bf16.gmra.mxu3 %v13273_v49  ;;  %v6283_v19 = vpack.c.bf16 %v6227_v56, %v6225_v6  ;;  %v6063_v37 = vpop.f32.mrf.mxu2  ;;  %v5893_v56 = vadd.f32 %v13275_v22, %v11677_v1 }
 0x9a1   : > { %v6064_v40 = vadd.f32 %v6063_v37, %v13274_v61 }
 0x9a2   : > { %6552 = vmatmul.bf16.gmra.mxu1 %v6283_v19  ;;  %v5982_v19 = vadd.f32 %v11763_v8, %v5893_v56  ;;  %v5898_v8 = vadd.f32 %v11776_v52, %v11677_v1 }
 0x9a3   : > { %v6152_v9 = vpop.f32.mrf.mxu3 }
 0x9a4   : > { %v6153_v0 = vadd.f32 %v6152_v9, %v6064_v40  ;;  %v11952_v9 = vpop.f32.mrf.mxu0 }
 0x9a6   : > { %v6229_v2 = vmax.f32 %v6153_v0, 0.0 }
 0x9a8   : > { %v6065_v43 = vpop.f32.mrf.mxu2 }
 0x9a9   : > { %v6066_v55 = vadd.f32 %v6065_v43, %v5977_v60 }
 0x9ab   : > { %v6154_v24 = vpop.f32.mrf.mxu3 }
 0x9ac   : > { %v6155_v53 = vadd.f32 %v6154_v24, %v6066_v55  ;;  %v11959_v55 = vpop.f32.mrf.mxu0  ;;  %v13277_v24 = vld [vmem:[#allocation92_spill] sm:$0xff] }
 0x9ad   : > { %6107 = vmatmul.bf16.gmra.mxu2 %v13243_v38  ;;  %6513 = vmatmul.bf16.gmra.mxu0 %v11886_v63 }
 0x9ae   : > { %v6231_v33 = vmax.f32 %v6155_v53, 0.0 }
 0x9b0   : > { %6196 = vmatmul.bf16.gmra.mxu3 %v11656_v35  ;;  %v6285_v47 = vpack.c.bf16 %v6231_v33, %v6229_v2  ;;  %v6068_v3 = vpop.f32.mrf.mxu2  ;;  %v5987_v2 = vadd.f32 %v11778_v41, %v5898_v8  ;;  %v5903_v41 = vadd.f32 %v11791_v46, %v11677_v1 }
 0x9b1   : > { %v6069_v49 = vadd.f32 %v6068_v3, %v13276_v57 }
 0x9b2   : > { %6557 = vmatmul.bf16.gmra.mxu1 %v6285_v47 }
 0x9b3   : > { %v6157_v6 = vpop.f32.mrf.mxu3 }
 0x9b4   : > { %v6158_v38 = vadd.f32 %v6157_v6, %v6069_v49  ;;  %v11963_v6 = vpop.f32.mrf.mxu0  ;;  %v13278_v49 = vld [vmem:[#allocation28_spill] sm:$0xff] }
 0x9b6   : > { %v6233_v61 = vmax.f32 %v6158_v38, 0.0 }
 0x9b8   : > { %v6070_v37 = vpop.f32.mrf.mxu2 }
 0x9b9   : > { %v6071_v63 = vadd.f32 %v6070_v37, %v5982_v19  ;;  %v5992_v37 = vadd.f32 %v11793_v51, %v5903_v41 }
 0x9bb   : > { %v6159_v36 = vpop.f32.mrf.mxu3 }
 0x9bc   : > { %v6160_v35 = vadd.f32 %v6159_v36, %v6071_v63 }
 0x9bd   : > { %6112 = vmatmul.bf16.gmra.mxu2 %v13248_v5  ;;  %6518 = vmatmul.bf16.gmra.mxu0 %v11900_v39 }
 0x9be   : > { %v6235_v40 = vmax.f32 %v6160_v35, 0.0 }
 0x9c0   : > { %6201 = vmatmul.bf16.gmra.mxu3 %v11670_v27  ;;  %v6287_v60 = vpack.c.bf16 %v6235_v40, %v6233_v61  ;;  %v6073_v43 = vpop.f32.mrf.mxu2 }
 0x9c1   : > { %v6074_v53 = vadd.f32 %v6073_v43, %v13277_v24  ;;  %v5908_v43 = vadd.f32 %v11805_v13, %v11677_v1  ;;  %v11981_v24 = vld [vmem:[%s12374_s6] ss:$0 sm:$0xff] }
 0x9c2   : > { %6562 = vmatmul.bf16.gmra.mxu1 %v6287_v60 }
 0x9c3   : > { %v6162_v0 = vpop.f32.mrf.mxu3  ;;  %v5997_v51 = vadd.f32 %v11807_v45, %v5908_v43 }
 0x9c4   : > { %v6163_v47 = vadd.f32 %v6162_v0, %v6074_v53  ;;  %v11975_v0 = vpop.f32.mrf.mxu1 }
 0x9c6   : > { %v6237_v27 = vmax.f32 %v6163_v47, 0.0 }
 0x9c8   : > { %v6075_v33 = vpop.f32.mrf.mxu2 }
 0x9c9   : > { %v6076_v5 = vadd.f32 %v6075_v33, %v5987_v2 }
 0x9cb   : > { %v6164_v3 = vpop.f32.mrf.mxu3 }
 0x9cc   : > { %v6165_v39 = vadd.f32 %v6164_v3, %v6076_v5  ;;  %v6450_v5 = vadd.f32 %v11981_v24, %v11922_v29 }
 0x9cd   : > { %6117 = vmatmul.bf16.gmra.mxu2 %v13250_v31  ;;  %6523 = vmatmul.bf16.gmra.mxu0 %v11907_v23 }
 0x9ce   : > { %v6239_v22 = vmax.f32 %v6165_v39, 0.0 }
 0x9d0   : > { %6206 = vmatmul.bf16.gmra.mxu3 %v11687_v20  ;;  %v6289_v52 = vpack.c.bf16 %v6239_v22, %v6237_v27  ;;  %v6078_v56 = vpop.f32.mrf.mxu2 }
 0x9d1   : > { %v6079_v19 = vadd.f32 %v6078_v56, %v13278_v49  ;;  %v6452_v56 = vadd.f32 %v11981_v24, %v11928_v18 }
 0x9d2   : > { %6567 = vmatmul.bf16.gmra.mxu1 %v6289_v52  ;;  %v5913_v52 = vadd.f32 %v11819_v7, %v11677_v1  ;;  %v6455_v7 = vadd.f32 %v11981_v24, %v11932_v4 }
 0x9d3   : > { %v6167_v57 = vpop.f32.mrf.mxu3 }
 0x9d4   : > { %v6168_v63 = vadd.f32 %v6167_v57, %v6079_v19  ;;  %v6002_v41 = vadd.f32 %v11821_v50, %v5913_v52  ;;  %v6462_v52 = vadd.f32 %v11981_v24, %v11952_v9 }
 0x9d6   : > { %v6241_v61 = vmax.f32 %v6168_v63, 0.0 }
 0x9d8   : > { %v6080_v38 = vpop.f32.mrf.mxu2 }
 0x9d9   : > { %v6081_v36 = vadd.f32 %v6080_v38, %v5992_v37 }
 0x9db   : > { %v6169_v35 = vpop.f32.mrf.mxu3 }
 0x9dc   : > { %v6170_v31 = vadd.f32 %v6169_v35, %v6081_v36  ;;  %v11997_v35 = vpop.f32.mrf.mxu0 }
 0x9de   : > { %v6243_v23 = vmax.f32 %v6170_v31, 0.0 }
 0x9e0   : > { %v6291_v40 = vpack.c.bf16 %v6243_v23, %v6241_v61  ;;  %v6083_v20 = vpop.f32.mrf.mxu2 }
 0x9e1   : > { %v6084_v46 = vadd.f32 %v6083_v20, %v11797_v28  ;;  %v5918_v20 = vadd.f32 %v11833_v15, %v11677_v1  ;;  %v6460_v15 = vadd.f32 %v11981_v24, %v11946_v25 }
 0x9e2   : > { %6572 = vmatmul.bf16.gmra.mxu1 %v6291_v40 }
 0x9e3   : > { %v6172_v60 = vpop.f32.mrf.mxu3 }
 0x9e4   : > { %v6173_v53 = vadd.f32 %v6172_v60, %v6084_v46  ;;  %v6457_v60 = vadd.f32 %v11981_v24, %v11939_v42  ;;  %v12009_v4 = vpop.f32.mrf.mxu0 }
 0x9e6   : > { %v6245_v13 = vmax.f32 %v6173_v53, 0.0 }
 0x9e8   : > { %v6085_v8 = vpop.f32.mrf.mxu2 }
 0x9e9   : > { %v6086_v2 = vadd.f32 %v6085_v8, %v5997_v51  ;;  %v6007_v51 = vadd.f32 %v11835_v10, %v5918_v20 }
 0x9eb   : > { %v6174_v33 = vpop.f32.mrf.mxu3 }
 0x9ec   : > { %v6175_v47 = vadd.f32 %v6174_v33, %v6086_v2 }
 0x9ee   : > { %v6247_v3 = vmax.f32 %v6175_v47, 0.0 }
 0x9ef   : > { %v6538_v28 = vpop.f32.mrf.mxu1 }
 0x9f0   : > { %v6293_v39 = vpack.c.bf16 %v6247_v3, %v6245_v13  ;;  %v11985_v27 = vadd.f32 %v6538_v28, %v6450_v5  ;;  %v6088_v45 = vpop.f32.mrf.mxu2 }
 0x9f1   : > { %v6089_v57 = vadd.f32 %v6088_v45, %v11811_v17 }
 0x9f2   : > { %6577 = vmatmul.bf16.gmra.mxu1 %v6293_v39  ;;  %6618 = vmax.xlane.f32.xlu0 %v11985_v27  ;;  %v12019_v39 = vpop.f32.mrf.mxu0 }
 0x9f3   : > { %v6177_v22 = vpop.f32.mrf.mxu3 }
 0x9f4   : > { %v6178_v37 = vadd.f32 %v6177_v22, %v6089_v57  ;;  %v5923_v22 = vadd.f32 %v11847_v12, %v11677_v1  ;;  %v6465_v12 = vadd.f32 %v11981_v24, %v11959_v55 }
 0x9f6   : > { %v6249_v18 = vmax.f32 %v6178_v37, 0.0  ;;  %v6012_v57 = vadd.f32 %v11849_v32, %v5923_v22 }
 0x9f7   : > { %v6540_v29 = vpop.f32.mrf.mxu1 }
 0x9f8   : > { %v11994_v49 = vadd.f32 %v6540_v29, %v6452_v56  ;;  %v6090_v19 = vpop.f32.mrf.mxu2 }
 0x9f9   : > { %v6091_v38 = vadd.f32 %v6090_v19, %v6002_v41 }
 0x9fa   : > { %6620 = vmax.xlane.f32.xlu0 %v11994_v49 }
 0x9fb   : > { %v6179_v63 = vpop.f32.mrf.mxu3 }
 0x9fc   : > { %v6180_v36 = vadd.f32 %v6179_v63, %v6091_v38  ;;  %v6476_v63 = vpop.f32.mrf.mxu0 }
 0x9fe   : > { %v6251_v31 = vmax.f32 %v6180_v36, 0.0 }
 0x9ff   : > { %v6543_v17 = vpop.f32.mrf.mxu1 }
 0xa00   : > { %v6295_v61 = vpack.c.bf16 %v6251_v31, %v6249_v18  ;;  %v12001_v23 = vadd.f32 %v6543_v17, %v6455_v7  ;;  %v6093_v50 = vpop.f32.mrf.mxu2 }
 0xa01   : > { %v6094_v43 = vadd.f32 %v6093_v50, %v11825_v11 }
 0xa02   : > { %6582 = vmatmul.bf16.gmra.mxu1 %v6295_v61  ;;  %6622 = vmax.xlane.f32.xlu1 %v12001_v23  ;;  %v5928_v61 = vadd.f32 %v11861_v48, %v11677_v1  ;;  %v6470_v48 = vadd.f32 %v11981_v24, %v11997_v35 }
 0xa03   : > { %v6182_v40 = vpop.f32.mrf.mxu3 }
 0xa04   : > { %v6183_v2 = vadd.f32 %v6182_v40, %v6094_v43  ;;  %v6479_v50 = vpop.f32.mrf.mxu0  ;;  %v6467_v40 = vadd.f32 %v11981_v24, %v11963_v6 }
 0xa06   : > { %v6253_v42 = vmax.f32 %v6183_v2, 0.0 }
 0xa07   : > { %v6545_v46 = vpop.f32.mrf.mxu1 }
 0xa08   : > { %v12012_v8 = vadd.f32 %v6545_v46, %v6457_v60  ;;  %v6095_v53 = vpop.f32.mrf.mxu2  ;;  %v6017_v60 = vadd.f32 %v11863_v16, %v5928_v61 }
 0xa09   : > { %v6096_v33 = vadd.f32 %v6095_v53, %v6007_v51 }
 0xa0a   : > { %6624 = vmax.xlane.f32.xlu1 %v12012_v8 }
 0xa0b   : > { %v6184_v47 = vpop.f32.mrf.mxu3 }
 0xa0c   : > { %v6185_v5 = vadd.f32 %v6184_v47, %v6096_v33  ;;  %v6481_v6 = vpop.f32.mrf.mxu0 }
 0xa0e   : > { %v6255_v13 = vmax.f32 %v6185_v5, 0.0 }
 0xa0f   : > { %v6548_v11 = vpop.f32.mrf.mxu1 }
 0xa10   : > { %v6297_v3 = vpack.c.bf16 %v6255_v13, %v6253_v42  ;;  %v12017_v28 = vadd.f32 %v6548_v11, %v6460_v15  ;;  %v6098_v10 = vpop.f32.mrf.mxu2  ;;  %v5933_v11 = vadd.f32 %v11875_v59, %v11677_v1  ;;  %v6475_v59 = vadd.f32 %v11981_v24, %v12019_v39 }
 0xa11   : > { %v6099_v25 = vadd.f32 %v6098_v10, %v11839_v34 }
 0xa12   : > { %6587 = vmatmul.bf16.gmra.mxu1 %v6297_v3  ;;  %6626 = vmax.xlane.f32.xlu2 %v12017_v28  ;;  %v6472_v3 = vadd.f32 %v11981_v24, %v12009_v4 }
 0xa13   : > { %v6187_v45 = vpop.f32.mrf.mxu3 }
 0xa14   : > { %v6188_v19 = vadd.f32 %v6187_v45, %v6099_v25  ;;  %v6022_v45 = vadd.f32 %v11877_v30, %v5933_v11 }
 0xa16   : > { %v6257_v7 = vmax.f32 %v6188_v19, 0.0 }
 0xa17   : > { %v6550_v56 = vpop.f32.mrf.mxu1 }
 0xa18   : > { %v12028_v29 = vadd.f32 %v6550_v56, %v6462_v52  ;;  %v6100_v41 = vpop.f32.mrf.mxu2  ;;  %v6484_v52 = vpop.f32.mrf.mxu0 }
 0xa19   : > { %v6101_v37 = vadd.f32 %v6100_v41, %v6012_v57 }
 0xa1a   : > { %6628 = vmax.xlane.f32.xlu2 %v12028_v29 }
 0xa1b   : > { %v6189_v38 = vpop.f32.mrf.mxu3 }
 0xa1c   : > { %v6190_v36 = vadd.f32 %v6189_v38, %v6101_v37 }
 0xa1e   : > { %v6259_v9 = vmax.f32 %v6190_v36, 0.0 }
 0xa1f   : > { %v6553_v18 = vpop.f32.mrf.mxu1 }
 0xa20   : > { %v6299_v34 = vpack.c.bf16 %v6259_v9, %v6257_v7  ;;  %v12033_v31 = vadd.f32 %v6553_v18, %v6465_v12  ;;  %v6103_v32 = vpop.f32.mrf.mxu2  ;;  %v6486_v7 = vpop.f32.mrf.mxu0  ;;  %v5938_v9 = vadd.f32 %v11889_v44, %v11677_v1  ;;  %v6477_v18 = vadd.f32 %v11981_v24, %v6476_v63 }
 0xa21   : > { %v6104_v55 = vadd.f32 %v6103_v32, %v11853_v54 }
 0xa22   : > { %6592 = vmatmul.bf16.gmra.mxu1 %v6299_v34  ;;  %6630 = vmax.xlane.f32.xlu0 %v12033_v31  ;;  %v6027_v32 = vadd.f32 %v11891_v26, %v5938_v9 }
 0xa23   : > { %v6192_v17 = vpop.f32.mrf.mxu3 }
 0xa24   : > { %v6193_v51 = vadd.f32 %v6192_v17, %v6104_v55 }
 0xa26   : > { %v6261_v47 = vmax.f32 %v6193_v51, 0.0  ;;  %v6480_v51 = vadd.f32 %v11981_v24, %v6479_v50 }
 0xa27   : > { %v6555_v20 = vpop.f32.mrf.mxu1 }
 0xa28   : > { %v12042_v43 = vadd.f32 %v6555_v20, %v6467_v40  ;;  %v6105_v46 = vpop.f32.mrf.mxu2 }
 0xa29   : > { %v6106_v53 = vadd.f32 %v6105_v46, %v6017_v60  ;;  %v6489_v46 = vpop.f32.mrf.mxu0 }
 0xa2a   : > { %6632 = vmax.xlane.f32.xlu1 %v12042_v43 }
 0xa2b   : > { %v6194_v2 = vpop.f32.mrf.mxu3 }
 0xa2c   : > { %v6195_v33 = vadd.f32 %v6194_v2, %v6106_v53 }
 0xa2e   : > { %v6263_v5 = vmax.f32 %v6195_v33, 0.0 }
 0xa2f   : > { %v6558_v15 = vpop.f32.mrf.mxu1 }
 0xa30   : > { %v6301_v54 = vpack.c.bf16 %v6263_v5, %v6261_v47  ;;  %v12047_v42 = vadd.f32 %v6558_v15, %v6470_v48  ;;  %v6108_v16 = vpop.f32.mrf.mxu2  ;;  %v5943_v48 = vadd.f32 %v11916_v62, %v11677_v1  ;;  %v6482_v47 = vadd.f32 %v11981_v24, %v6481_v6 }
 0xa31   : > { %v6109_v35 = vadd.f32 %v6108_v16, %v11867_v21  ;;  %v6491_v15 = vpop.f32.mrf.mxu0 }
 0xa32   : > { %6597 = vmatmul.bf16.gmra.mxu1 %v6301_v54  ;;  %6634 = vmax.xlane.f32.xlu2 %v12047_v42  ;;  %v6032_v54 = vadd.f32 %v11975_v0, %v5943_v48 }
 0xa33   : > { %v6197_v13 = vpop.f32.mrf.mxu3 }
 0xa34   : > { %v6198_v56 = vadd.f32 %v6197_v13, %v6109_v35 }
 0xa36   : > { %v6265_v37 = vmax.f32 %v6198_v56, 0.0 }
 0xa37   : > { %v6560_v10 = vpop.f32.mrf.mxu1 }
 0xa38   : > { %v12056_v22 = vadd.f32 %v6560_v10, %v6472_v3  ;;  %v6110_v25 = vpop.f32.mrf.mxu2 }
 0xa39   : > { %v6111_v57 = vadd.f32 %v6110_v25, %v6022_v45  ;;  %v6485_v45 = vadd.f32 %v11981_v24, %v6484_v52  ;;  %v6494_v56 = vpop.f32.mrf.mxu0 }
 0xa3a   : > { %6636 = vmax.xlane.f32.xlu0 %v12056_v22 }
 0xa3b   : > { %v6199_v41 = vpop.f32.mrf.mxu3 }
 0xa3c   : > { %v6200_v19 = vadd.f32 %v6199_v41, %v6111_v57  ;;  %v6487_v57 = vadd.f32 %v11981_v24, %v6486_v7 }
 0xa3e   : > { %v6267_v4 = vmax.f32 %v6200_v19, 0.0 }
 0xa3f   : > { %v6563_v38 = vpop.f32.mrf.mxu1 }
 0xa40   : > { %v6303_v21 = vpack.c.bf16 %v6267_v4, %v6265_v37  ;;  %v12061_v36 = vadd.f32 %v6563_v38, %v6475_v59  ;;  %v6113_v30 = vpop.f32.mrf.mxu2  ;;  %v6490_v38 = vadd.f32 %v11981_v24, %v6489_v46 }
 0xa41   : > { %v6114_v34 = vadd.f32 %v6113_v30, %v11881_v58  ;;  %v6496_v37 = vpop.f32.mrf.mxu0 }
 0xa42   : > { %6602 = vmatmul.bf16.gmra.mxu1 %v6303_v21  ;;  %6638 = vmax.xlane.f32.xlu1 %v12061_v36 }
 0xa43   : > { %v6202_v12 = vpop.f32.mrf.mxu3 }
 0xa44   : > { %v6203_v40 = vadd.f32 %v6202_v12, %v6114_v34  ;;  %v6492_v34 = vadd.f32 %v11981_v24, %v6491_v15 }
 0xa46   : > { %v6269_v44 = vmax.f32 %v6203_v40, 0.0 }
 0xa47   : > { %v6565_v39 = vpop.f32.mrf.mxu1 }
 0xa48   : > { %v12069_v17 = vadd.f32 %v6565_v39, %v6477_v18  ;;  %v6115_v61 = vpop.f32.mrf.mxu2 }
 0xa49   : > { %v6116_v55 = vadd.f32 %v6115_v61, %v6027_v32  ;;  %v6499_v9 = vpop.f32.mrf.mxu0 }
 0xa4a   : > { %6640 = vmax.xlane.f32.xlu2 %v12069_v17 }
 0xa4b   : > { %v6204_v20 = vpop.f32.mrf.mxu3 }
 0xa4c   : > { %v6205_v60 = vadd.f32 %v6204_v20, %v6116_v55  ;;  %v6495_v20 = vadd.f32 %v11981_v24, %v6494_v56 }
 0xa4e   : > { %v6271_v53 = vmax.f32 %v6205_v60, 0.0 }
 0xa4f   : > { %v6568_v63 = vpop.f32.mrf.mxu1 }
 0xa50   : > { %v6305_v2 = vpack.c.bf16 %v6271_v53, %v6269_v44  ;;  %v12073_v58 = vadd.f32 %v6568_v63, %v6480_v51  ;;  %v6118_v33 = vpop.f32.mrf.mxu2 }
 0xa51   : > { %v6119_v5 = vadd.f32 %v6118_v33, %v11895_v14  ;;  %v6501_v46 = vpop.f32.mrf.mxu0 }
 0xa52   : > { %6607 = vmatmul.bf16.gmra.mxu1 %v6305_v2  ;;  %6642 = vmax.xlane.f32.xlu0 %v12073_v58  ;;  %v6497_v2 = vadd.f32 %v11981_v24, %v6496_v37 }
 0xa53   : > { %v6207_v26 = vpop.f32.mrf.mxu3 }
 0xa54   : > { %v6208_v11 = vadd.f32 %v6207_v26, %v6119_v5 }
 0xa56   : > { %v6273_v1 = vmax.f32 %v6208_v11, 0.0 }
 0xa57   : > { %v6570_v50 = vpop.f32.mrf.mxu1 }
 0xa58   : > { %v12081_v16 = vadd.f32 %v6570_v50, %v6482_v47  ;;  %v6120_v13 = vpop.f32.mrf.mxu2  ;;  %v6500_v50 = vadd.f32 %v11981_v24, %v6499_v9 }
 0xa59   : > { %v6121_v3 = vadd.f32 %v6120_v13, %v6032_v54  ;;  %v6504_v5 = vpop.f32.mrf.mxu0 }
 0xa5a   : > { %6644 = vmax.xlane.f32.xlu1 %v12081_v16 }
 0xa5b   : > { %v6209_v35 = vpop.f32.mrf.mxu3 }
 0xa5c   : > { %v6210_v10 = vadd.f32 %v6209_v35, %v6121_v3 }
 0xa5e   : > { %v6275_v62 = vmax.f32 %v6210_v10, 0.0 }
 0xa5f   : > { %v6573_v6 = vpop.f32.mrf.mxu1 }
 0xa60   : > { %v6307_v25 = vpack.c.bf16 %v6275_v62, %v6273_v1  ;;  %v12085_v14 = vadd.f32 %v6573_v6, %v6485_v45  ;;  %v6502_v45 = vadd.f32 %v11981_v24, %v6501_v46 }
 0xa61   : > { %v6506_v35 = vpop.f32.mrf.mxu0 }
 0xa62   : > { %6612 = vmatmul.bf16.gmra.mxu1 %v6307_v25  ;;  %6646 = vmax.xlane.f32.xlu2 %v12085_v14 }
 0xa65   : > { %v6619_v0 = vpop.xlane.xlu0 %6618 }
 0xa66   : > { %v12090_v41 = vsub.f32 %v11985_v27, %v6619_v0 }
 0xa67   : > { %v6575_v19 = vpop.f32.mrf.mxu1 }
 0xa68   : > { %v6714_v59 = vmul.f32 1.442695, %v12090_v41  ;;  %v12093_v52 = vadd.f32 %v6575_v19, %v6487_v57  ;;  %v6505_v57 = vadd.f32 %v11981_v24, %v6504_v5 }
 0xa69   : > { %v6509_v56 = vpop.f32.mrf.mxu0 }
 0xa6a   : > { %9283 = vpow2.f32 %v6714_v59  ;;  %6648 = vmax.xlane.f32.xlu0 %v12093_v52 }
 0xa6d   : > { %v6621_v4 = vpop.xlane.xlu0 %6620 }
 0xa6e   : > { %v12098_v21 = vsub.f32 %v11994_v49, %v6621_v4 }
 0xa6f   : > { %v6578_v30 = vpop.f32.mrf.mxu1 }
 0xa70   : > { %v9284_v12 = vpop.eup %9283  ;;  %v6716_v27 = vmul.f32 1.442695, %v12098_v21  ;;  %v12101_v7 = vadd.f32 %v6578_v30, %v6490_v38  ;;  %v6507_v30 = vadd.f32 %v11981_v24, %v6506_v35 }
 0xa71   : > { %6778 = vadd.xlane.f32.xlu2 %v9284_v12 }
 0xa72   : > { %9285 = vpow2.f32 %v6716_v27  ;;  %6650 = vmax.xlane.f32.xlu1 %v12101_v7  ;;  %v6511_v27 = vpop.f32.mrf.mxu0 }
 0xa75   : > { %v6623_v18 = vpop.xlane.xlu1 %6622 }
 0xa76   : > { %v12106_v39 = vsub.f32 %v12001_v23, %v6623_v18 }
 0xa77   : > { %v6580_v32 = vpop.f32.mrf.mxu1 }
 0xa78   : > { %v9286_v49 = vpop.eup %9285  ;;  %v6718_v61 = vmul.f32 1.442695, %v12106_v39  ;;  %v12109_v40 = vadd.f32 %v6580_v32, %v6492_v34 }
 0xa79   : > { %6780 = vadd.xlane.f32.xlu0 %v9286_v49  ;;  %v6510_v49 = vadd.f32 %v11981_v24, %v6509_v56 }
 0xa7a   : > { %9287 = vpow2.f32 %v6718_v61  ;;  %6652 = vmax.xlane.f32.xlu2 %v12109_v40 }
 0xa7d   : > { %v6625_v55 = vpop.xlane.xlu1 %6624 }
 0xa7e   : > { %v12114_v60 = vsub.f32 %v12012_v8, %v6625_v55 }
 0xa7f   : > { %v6583_v51 = vpop.f32.mrf.mxu1 }
 0xa80   : > { %v9288_v23 = vpop.eup %9287  ;;  %v6720_v44 = vmul.f32 1.442695, %v12114_v60  ;;  %v12117_v53 = vadd.f32 %v6583_v51, %v6495_v20  ;;  %v6514_v51 = vpop.f32.mrf.mxu0 }
 0xa81   : > { %6782 = vadd.xlane.f32.xlu1 %v9288_v23  ;;  %v6515_v5 = vadd.f32 %v11981_v24, %v6514_v51 }
 0xa82   : > { %9289 = vpow2.f32 %v6720_v44  ;;  %6654 = vmax.xlane.f32.xlu0 %v12117_v53  ;;  %v6512_v44 = vadd.f32 %v11981_v24, %v6511_v27 }
 0xa85   : > { %v6627_v63 = vpop.xlane.xlu2 %6626 }
 0xa86   : > { %v12122_v33 = vsub.f32 %v12017_v28, %v6627_v63 }
 0xa87   : > { %v6585_v26 = vpop.f32.mrf.mxu1 }
 0xa88   : > { %v9290_v8 = vpop.eup %9289  ;;  %v6722_v48 = vmul.f32 1.442695, %v12122_v33  ;;  %v12125_v47 = vadd.f32 %v6585_v26, %v6497_v2 }
 0xa89   : > { %6784 = vadd.xlane.f32.xlu2 %v9290_v8 }
 0xa8a   : > { %9291 = vpow2.f32 %v6722_v48  ;;  %6656 = vmax.xlane.f32.xlu1 %v12125_v47  ;;  %v6516_v48 = vpop.f32.mrf.mxu0 }
 0xa8d   : > { %v6629_v15 = vpop.xlane.xlu2 %6628 }
 0xa8e   : > { %v12130_v54 = vsub.f32 %v12028_v29, %v6629_v15 }
 0xa8f   : > { %v6588_v13 = vpop.f32.mrf.mxu1 }
 0xa90   : > { %v9292_v28 = vpop.eup %9291  ;;  %v6724_v11 = vmul.f32 1.442695, %v12130_v54  ;;  %v12133_v3 = vadd.f32 %v6588_v13, %v6500_v50 }
 0xa91   : > { %6786 = vadd.xlane.f32.xlu0 %v9292_v28  ;;  %v6517_v28 = vadd.f32 %v11981_v24, %v6516_v48 }
 0xa92   : > { %9293 = vpow2.f32 %v6724_v11  ;;  %6658 = vmax.xlane.f32.xlu2 %v12133_v3 }
 0xa95   : > { %v6631_v10 = vpop.xlane.xlu0 %6630 }
 0xa96   : > { %v12138_v1 = vsub.f32 %v12033_v31, %v6631_v10 }
 0xa97   : > { %v6590_v62 = vpop.f32.mrf.mxu1 }
 0xa98   : > { %v9294_v29 = vpop.eup %9293  ;;  %v6726_v6 = vmul.f32 1.442695, %v12138_v1  ;;  %v12141_v25 = vadd.f32 %v6590_v62, %v6502_v45 }
 0xa99   : > { %6788 = vadd.xlane.f32.xlu1 %v9294_v29 }
 0xa9a   : > { %9295 = vpow2.f32 %v6726_v6  ;;  %6660 = vmax.xlane.f32.xlu0 %v12141_v25 }
 0xa9d   : > { %v6633_v0 = vpop.xlane.xlu1 %6632 }
 0xa9e   : > { %v12146_v19 = vsub.f32 %v12042_v43, %v6633_v0 }
 0xa9f   : > { %v6593_v59 = vpop.f32.mrf.mxu1 }
 0xaa0   : > { %v9296_v31 = vpop.eup %9295  ;;  %v6728_v37 = vmul.f32 1.442695, %v12146_v19  ;;  %v12149_v4 = vadd.f32 %v6593_v59, %v6505_v57 }
 0xaa1   : > { %6790 = vadd.xlane.f32.xlu2 %v9296_v31 }
 0xaa2   : > { %9297 = vpow2.f32 %v6728_v37  ;;  %6662 = vmax.xlane.f32.xlu1 %v12149_v4 }
 0xaa5   : > { %v6635_v38 = vpop.xlane.xlu2 %6634 }
 0xaa6   : > { %v12154_v12 = vsub.f32 %v12047_v42, %v6635_v38 }
 0xaa7   : > { %v6595_v9 = vpop.f32.mrf.mxu1 }
 0xaa8   : > { %v9298_v43 = vpop.eup %9297  ;;  %v6730_v18 = vmul.f32 1.442695, %v12154_v12  ;;  %v12157_v34 = vadd.f32 %v6595_v9, %v6507_v30 }
 0xaa9   : > { %6792 = vadd.xlane.f32.xlu0 %v9298_v43 }
 0xaaa   : > { %9299 = vpow2.f32 %v6730_v18  ;;  %6664 = vmax.xlane.f32.xlu2 %v12157_v34 }
 0xaad   : > { %v6637_v32 = vpop.xlane.xlu0 %6636 }
 0xaae   : > { %v12162_v61 = vsub.f32 %v12056_v22, %v6637_v32 }
 0xaaf   : > { %v6598_v55 = vpop.f32.mrf.mxu1 }
 0xab0   : > { %v9300_v42 = vpop.eup %9299  ;;  %v6732_v20 = vmul.f32 1.442695, %v12162_v61  ;;  %v12165_v46 = vadd.f32 %v6598_v55, %v6510_v49 }
 0xab1   : > { %6794 = vadd.xlane.f32.xlu1 %v9300_v42 }
 0xab2   : > { %9301 = vpow2.f32 %v6732_v20  ;;  %6666 = vmax.xlane.f32.xlu0 %v12165_v46 }
 0xab5   : > { %v6639_v23 = vpop.xlane.xlu1 %6638 }
 0xab6   : > { %v12170_v63 = vsub.f32 %v12061_v36, %v6639_v23  ;;  %v6519_v36 = vpop.f32.mrf.mxu0 }
 0xab7   : > { %v6600_v2 = vpop.f32.mrf.mxu1  ;;  %v6520_v10 = vadd.f32 %v11981_v24, %v6519_v36 }
 0xab8   : > { %v9302_v22 = vpop.eup %9301  ;;  %v6734_v26 = vmul.f32 1.442695, %v12170_v63  ;;  %v12173_v8 = vadd.f32 %v6600_v2, %v6512_v44 }
 0xab9   : > { %6796 = vadd.xlane.f32.xlu2 %v9302_v22 }
 0xaba   : > { %9303 = vpow2.f32 %v6734_v26  ;;  %6668 = vmax.xlane.f32.xlu1 %v12173_v8 }
 0xabd   : > { %v6641_v0 = vpop.xlane.xlu2 %6640 }
 0xabe   : > { %v6521_v45 = vpop.f32.mrf.mxu0  ;;  %v12211_v51 = vsub.f32 %v12069_v17, %v6641_v0 }
 0xabf   : > { %v6603_v15 = vpop.f32.mrf.mxu1  ;;  %v6522_v57 = vadd.f32 %v11981_v24, %v6521_v45 }
 0xac0   : > { %v9304_v50 = vpop.eup %9303  ;;  %v12177_v13 = vadd.f32 %v6603_v15, %v6515_v5  ;;  %v6736_v22 = vmul.f32 1.442695, %v12211_v51 }
 0xac1   : > { %6798 = vadd.xlane.f32.xlu0 %v9304_v50 }
 0xac2   : > { %6670 = vmax.xlane.f32.xlu2 %v12177_v13 }
 0xac5   : > { %v6643_v29 = vpop.xlane.xlu0 %6642 }
 0xac6   : > { %v12189_v56 = vsub.f32 %v12073_v58, %v6643_v29  ;;  %v6524_v30 = vpop.f32.mrf.mxu0 }
 0xac7   : > { %v6605_v11 = vpop.f32.mrf.mxu1  ;;  %v6525_v43 = vadd.f32 %v11981_v24, %v6524_v30 }
 0xac8   : > { %v12181_v35 = vadd.f32 %v6605_v11, %v6517_v28  ;;  %v6738_v59 = vmul.f32 1.442695, %v12189_v56 }
 0xaca   : > { %6672 = vmax.xlane.f32.xlu0 %v12181_v35  ;;  %9305 = vpow2.f32 %v6738_v59 }
 0xacd   : > { %v6645_v37 = vpop.xlane.xlu1 %6644 }
 0xace   : > { %v12197_v27 = vsub.f32 %v12081_v16, %v6645_v37  ;;  %v6526_v16 = vpop.f32.mrf.mxu0 }
 0xacf   : > { %v6608_v62 = vpop.f32.mrf.mxu1  ;;  %v6527_v44 = vadd.f32 %v11981_v24, %v6526_v16 }
 0xad0   : > { %v12185_v6 = vadd.f32 %v6608_v62, %v6520_v10  ;;  %v6740_v32 = vmul.f32 1.442695, %v12197_v27  ;;  %v9306_v20 = vpop.eup %9305 }
 0xad2   : > { %6674 = vmax.xlane.f32.xlu1 %v12185_v6 }
 0xad5   : > { %v6647_v9 = vpop.xlane.xlu2 %6646 }
 0xad6   : > { %v12223_v24 = vsub.f32 %v12085_v14, %v6647_v9 }
 0xad7   : > { %v6610_v31 = vpop.f32.mrf.mxu1 }
 0xad8   : > { %v12193_v38 = vadd.f32 %v6610_v31, %v6522_v57  ;;  %v6742_v11 = vmul.f32 1.442695, %v12223_v24 }
 0xada   : > { %6676 = vmax.xlane.f32.xlu2 %v12193_v38 }
 0xadd   : > { %v6649_v58 = vpop.xlane.xlu0 %6648 }
 0xade   : > { %v12201_v18 = vsub.f32 %v12093_v52, %v6649_v58 }
 0xadf   : > { %v6613_v49 = vpop.f32.mrf.mxu1 }
 0xae0   : > { %v6744_v55 = vmul.f32 1.442695, %v12201_v18  ;;  %v12207_v42 = vadd.f32 %v6613_v49, %v6525_v43 }
 0xae2   : > { %9307 = vpow2.f32 %v6744_v55  ;;  %6678 = vmax.xlane.f32.xlu0 %v12207_v42  ;;  %6802 = vadd.xlane.f32.xlu2 %v9306_v20 }
 0xae3   : > { %9309 = vpow2.f32 %v6740_v32 }
 0xae4   : > { %v6779_v52 = vpop.xlane.xlu2 %6778 }
 0xae5   : > { %9311 = vlog2.f32 %v6779_v52  ;;  %v6651_v23 = vpop.xlane.xlu1 %6650 }
 0xae6   : > { %v12215_v2 = vsub.f32 %v12101_v7, %v6651_v23 }
 0xae7   : > { %v6615_v26 = vpop.f32.mrf.mxu1 }
 0xae8   : > { %v9308_v48 = vpop.eup %9307  ;;  %v6746_v5 = vmul.f32 1.442695, %v12215_v2  ;;  %v12219_v15 = vadd.f32 %v6615_v26, %v6527_v44 }
 0xae9   : > { %v9310_v17 = vpop.eup %9309 }
 0xaea   : > { %9313 = vpow2.f32 %v6746_v5  ;;  %6680 = vmax.xlane.f32.xlu1 %v12219_v15  ;;  %6804 = vadd.xlane.f32.xlu0 %v9310_v17 }
 0xaeb   : > { %v9312_v50 = vpop.eup %9311  ;;  %9315 = vpow2.f32 %v6736_v22  ;;  %6808 = vadd.xlane.f32.xlu2 %v9308_v48 }
 0xaec   : > { %v6843_v7 = vmul.f32 0.6931472, %v9312_v50  ;;  %v6781_v36 = vpop.xlane.xlu0 %6780 }
 0xaed   : > { %9317 = vlog2.f32 %v6781_v36  ;;  %v6653_v45 = vpop.xlane.xlu2 %6652 }
 0xaee   : > { %v6906_v28 = vsub.f32 %v12090_v41, %v6843_v7  ;;  %9319 = vpow2.f32 %v6742_v11  ;;  %v12234_v29 = vsub.f32 %v12109_v40, %v6653_v45 }
 0xaf0   : > { %v9314_v10 = vpop.eup %9313  ;;  %6938 = vst [vmem:[%s12228_s20] sm:$0xff] %v6906_v28  ;;  %v6748_v37 = vmul.f32 1.442695, %v12234_v29 }
 0xaf1   : > { %v9316_v14 = vpop.eup %9315 }
 0xaf2   : > { %6800 = vadd.xlane.f32.xlu1 %v9316_v14  ;;  %6810 = vadd.xlane.f32.xlu0 %v9314_v10 }
 0xaf3   : > { %v9318_v62 = vpop.eup %9317 }
 0xaf4   : > { %v6845_v0 = vmul.f32 0.6931472, %v9318_v62  ;;  %v6783_v57 = vpop.xlane.xlu1 %6782  ;;  %v9320_v9 = vpop.eup %9319 }
 0xaf5   : > { %9321 = vlog2.f32 %v6783_v57  ;;  %v6655_v59 = vpop.xlane.xlu0 %6654 }
 0xaf6   : > { %v6907_v41 = vsub.f32 %v12098_v21, %v6845_v0  ;;  %v12238_v31 = vsub.f32 %v12117_v53, %v6655_v59 }
 0xaf8   : > { %6939 = vst [vmem:[%s12228_s20 + $0x8] sm:$0xff] %v6907_v41  ;;  %v6750_v30 = vmul.f32 1.442695, %v12238_v31 }
 0xafa   : > { %9323 = vpow2.f32 %v6750_v30  ;;  %6806 = vadd.xlane.f32.xlu1 %v9320_v9 }
 0xafb   : > { %v9322_v40 = vpop.eup %9321  ;;  %9325 = vpow2.f32 %v6748_v37 }
 0xafc   : > { %v6847_v58 = vmul.f32 0.6931472, %v9322_v40  ;;  %v6785_v43 = vpop.xlane.xlu2 %6784 }
 0xafd   : > { %9327 = vlog2.f32 %v6785_v43  ;;  %v6657_v32 = vpop.xlane.xlu1 %6656 }
 0xafe   : > { %v6908_v21 = vsub.f32 %v12106_v39, %v6847_v58  ;;  %v12245_v53 = vsub.f32 %v12125_v47, %v6657_v32 }
 0xb00   : > { %v9324_v49 = vpop.eup %9323  ;;  %6940 = vst [vmem:[%s12228_s20 + $0x10] sm:$0xff] %v6908_v21  ;;  %v6752_v55 = vmul.f32 1.442695, %v12245_v53 }
 0xb01   : > { %v9326_v20 = vpop.eup %9325  ;;  %6814 = vadd.xlane.f32.xlu2 %v9324_v49 }
 0xb02   : > { %9329 = vpow2.f32 %v6752_v55  ;;  %6812 = vadd.xlane.f32.xlu1 %v9326_v20 }
 0xb03   : > { %v9328_v16 = vpop.eup %9327 }
 0xb04   : > { %v6849_v52 = vmul.f32 0.6931472, %v9328_v16  ;;  %v6787_v23 = vpop.xlane.xlu0 %6786 }
 0xb05   : > { %9331 = vlog2.f32 %v6787_v23  ;;  %v6659_v44 = vpop.xlane.xlu2 %6658 }
 0xb06   : > { %v6909_v39 = vsub.f32 %v12114_v60, %v6849_v52  ;;  %v12251_v47 = vsub.f32 %v12133_v3, %v6659_v44 }
 0xb08   : > { %v9330_v22 = vpop.eup %9329  ;;  %6941 = vst [vmem:[%s12228_s20 + $0x18] sm:$0xff] %v6909_v39  ;;  %v6754_v26 = vmul.f32 1.442695, %v12251_v47 }
 0xb09   : > { %6816 = vadd.xlane.f32.xlu0 %v9330_v22 }
 0xb0a   : > { %9333 = vpow2.f32 %v6754_v26 }
 0xb0b   : > { %v9332_v48 = vpop.eup %9331 }
 0xb0c   : > { %v6851_v5 = vmul.f32 0.6931472, %v9332_v48  ;;  %v6789_v17 = vpop.xlane.xlu1 %6788 }
 0xb0d   : > { %9335 = vlog2.f32 %v6789_v17  ;;  %v6661_v50 = vpop.xlane.xlu0 %6660 }
 0xb0e   : > { %v6910_v7 = vsub.f32 %v12122_v33, %v6851_v5  ;;  %v12257_v36 = vsub.f32 %v12141_v25, %v6661_v50 }
 0xb10   : > { %v9334_v60 = vpop.eup %9333  ;;  %6942 = vst [vmem:[%s12228_s20 + $0x20] sm:$0xff] %v6910_v7  ;;  %v6756_v3 = vmul.f32 1.442695, %v12257_v36 }
 0xb11   : > { %6818 = vadd.xlane.f32.xlu1 %v9334_v60 }
 0xb12   : > { %9337 = vpow2.f32 %v6756_v3 }
 0xb13   : > { %v9336_v28 = vpop.eup %9335 }
 0xb14   : > { %v6853_v11 = vmul.f32 0.6931472, %v9336_v28  ;;  %v6791_v10 = vpop.xlane.xlu2 %6790 }
 0xb15   : > { %9339 = vlog2.f32 %v6791_v10  ;;  %v6663_v45 = vpop.xlane.xlu1 %6662 }
 0xb16   : > { %v6911_v14 = vsub.f32 %v12130_v54, %v6853_v11  ;;  %v12263_v62 = vsub.f32 %v12149_v4, %v6663_v45 }
 0xb18   : > { %v9338_v33 = vpop.eup %9337  ;;  %6943 = vst [vmem:[%s12228_s20 + $0x28] sm:$0xff] %v6911_v14  ;;  %v6758_v25 = vmul.f32 1.442695, %v12263_v62 }
 0xb19   : > { %6820 = vadd.xlane.f32.xlu2 %v9338_v33 }
 0xb1a   : > { %9341 = vpow2.f32 %v6758_v25 }
 0xb1b   : > { %v9340_v0 = vpop.eup %9339 }
 0xb1c   : > { %v6855_v57 = vmul.f32 0.6931472, %v9340_v0  ;;  %v6793_v59 = vpop.xlane.xlu0 %6792 }
 0xb1d   : > { %9343 = vlog2.f32 %v6793_v59  ;;  %v6665_v41 = vpop.xlane.xlu2 %6664 }
 0xb1e   : > { %v6912_v37 = vsub.f32 %v12138_v1, %v6855_v57  ;;  %v12269_v30 = vsub.f32 %v12157_v34, %v6665_v41 }
 0xb20   : > { %v9342_v54 = vpop.eup %9341  ;;  %6944 = vst [vmem:[%s12228_s20 + $0x30] sm:$0xff] %v6912_v37  ;;  %v6760_v4 = vmul.f32 1.442695, %v12269_v30 }
 0xb21   : > { %6822 = vadd.xlane.f32.xlu0 %v9342_v54 }
 0xb22   : > { %9345 = vpow2.f32 %v6760_v4 }
 0xb23   : > { %v9344_v9 = vpop.eup %9343 }
 0xb24   : > { %v6857_v40 = vmul.f32 0.6931472, %v9344_v9  ;;  %v6795_v58 = vpop.xlane.xlu1 %6794 }
 0xb25   : > { %9347 = vlog2.f32 %v6795_v58  ;;  %v6667_v43 = vpop.xlane.xlu0 %6666 }
 0xb26   : > { %v6913_v32 = vsub.f32 %v12146_v19, %v6857_v40  ;;  %v12275_v21 = vsub.f32 %v12165_v46, %v6667_v43 }
 0xb28   : > { %v9346_v1 = vpop.eup %9345  ;;  %6945 = vst [vmem:[%s12228_s20 + $0x38] sm:$0xff] %v6913_v32  ;;  %v6762_v34 = vmul.f32 1.442695, %v12275_v21 }
 0xb29   : > { %6824 = vadd.xlane.f32.xlu1 %v9346_v1 }
 0xb2a   : > { %9349 = vpow2.f32 %v6762_v34 }
 0xb2b   : > { %v9348_v49 = vpop.eup %9347 }
 0xb2c   : > { %v6859_v55 = vmul.f32 0.6931472, %v9348_v49  ;;  %v6797_v20 = vpop.xlane.xlu2 %6796 }
 0xb2d   : > { %9351 = vlog2.f32 %v6797_v20  ;;  %v6669_v16 = vpop.xlane.xlu1 %6668 }
 0xb2e   : > { %v6914_v52 = vsub.f32 %v12154_v12, %v6859_v55  ;;  %v12281_v23 = vsub.f32 %v12173_v8, %v6669_v16 }
 0xb30   : > { %v9350_v19 = vpop.eup %9349  ;;  %6946 = vst [vmem:[%s12228_s20 + $0x40] sm:$0xff] %v6914_v52  ;;  %v6764_v46 = vmul.f32 1.442695, %v12281_v23 }
 0xb31   : > { %6826 = vadd.xlane.f32.xlu2 %v9350_v19 }
 0xb32   : > { %9353 = vpow2.f32 %v6764_v46 }
 0xb33   : > { %v9352_v44 = vpop.eup %9351 }
 0xb34   : > { %v6861_v39 = vmul.f32 0.6931472, %v9352_v44  ;;  %v6799_v22 = vpop.xlane.xlu0 %6798 }
 0xb35   : > { %9355 = vlog2.f32 %v6799_v22  ;;  %v6671_v26 = vpop.xlane.xlu2 %6670 }
 0xb36   : > { %v6915_v48 = vsub.f32 %v12162_v61, %v6861_v39  ;;  %v12287_v5 = vsub.f32 %v12177_v13, %v6671_v26 }
 0xb38   : > { %v9354_v12 = vpop.eup %9353  ;;  %6947 = vst [vmem:[%s12228_s20 + $0x48] sm:$0xff] %v6915_v48  ;;  %v6766_v8 = vmul.f32 1.442695, %v12287_v5 }
 0xb39   : > { %6828 = vadd.xlane.f32.xlu0 %v9354_v12 }
 0xb3a   : > { %9357 = vpow2.f32 %v6766_v8 }
 0xb3b   : > { %v9356_v17 = vpop.eup %9355 }
 0xb3c   : > { %v6863_v50 = vmul.f32 0.6931472, %v9356_v17 }
 0xb3d   : > { %v6673_v7 = vpop.xlane.xlu0 %6672 }
 0xb3e   : > { %v6916_v60 = vsub.f32 %v12170_v63, %v6863_v50  ;;  %v12293_v3 = vsub.f32 %v12181_v35, %v6673_v7 }
 0xb40   : > { %v9358_v28 = vpop.eup %9357  ;;  %6948 = vst [vmem:[%s12228_s20 + $0x50] sm:$0xff] %v6916_v60  ;;  %v6768_v61 = vmul.f32 1.442695, %v12293_v3 }
 0xb41   : > { %6830 = vadd.xlane.f32.xlu1 %v9358_v28 }
 0xb42   : > { %9359 = vpow2.f32 %v6768_v61 }
 0xb45   : > { %v6675_v13 = vpop.xlane.xlu1 %6674 }
 0xb46   : > { %v12298_v11 = vsub.f32 %v12185_v6, %v6675_v13 }
 0xb48   : > { %v9360_v10 = vpop.eup %9359  ;;  %v6770_v45 = vmul.f32 1.442695, %v12298_v11 }
 0xb49   : > { %6832 = vadd.xlane.f32.xlu2 %v9360_v10 }
 0xb4a   : > { %9361 = vpow2.f32 %v6770_v45 }
 0xb4d   : > { %v6677_v14 = vpop.xlane.xlu2 %6676 }
 0xb4e   : > { %v12302_v63 = vsub.f32 %v12193_v38, %v6677_v14 }
 0xb50   : > { %v9362_v35 = vpop.eup %9361  ;;  %v6772_v33 = vmul.f32 1.442695, %v12302_v63 }
 0xb51   : > { %6834 = vadd.xlane.f32.xlu0 %v9362_v35 }
 0xb52   : > { %9363 = vpow2.f32 %v6772_v33 }
 0xb55   : > { %v6803_v25 = vpop.xlane.xlu2 %6802  ;;  %v6679_v0 = vpop.xlane.xlu0 %6678 }
 0xb56   : > { %9365 = vlog2.f32 %v6803_v25  ;;  %v12306_v6 = vsub.f32 %v12207_v42, %v6679_v0 }
 0xb58   : > { %v9364_v57 = vpop.eup %9363  ;;  %v6774_v59 = vmul.f32 1.442695, %v12306_v6 }
 0xb59   : > { %6836 = vadd.xlane.f32.xlu1 %v9364_v57 }
 0xb5a   : > { %9367 = vpow2.f32 %v6774_v59 }
 0xb5c   : > { %v9366_v41 = vpop.eup %9365 }
 0xb5d   : > { %v6867_v38 = vmul.f32 0.6931472, %v9366_v41  ;;  %v6681_v37 = vpop.xlane.xlu1 %6680  ;;  %v6805_v54 = vpop.xlane.xlu0 %6804 }
 0xb5e   : > { %v12310_v4 = vsub.f32 %v12219_v15, %v6681_v37  ;;  %v6809_v9 = vpop.xlane.xlu2 %6808  ;;  %9369 = vlog2.f32 %v6805_v54 }
 0xb5f   : > { %v6918_v40 = vsub.f32 %v12189_v56, %v6867_v38  ;;  %9371 = vlog2.f32 %v6809_v9 }
 0xb60   : > { %v9368_v42 = vpop.eup %9367  ;;  %v6776_v58 = vmul.f32 1.442695, %v12310_v4 }
 0xb61   : > { %6950 = vst [vmem:[%s12228_s20 + $0x60] sm:$0xff] %v6918_v40  ;;  %6838 = vadd.xlane.f32.xlu2 %v9368_v42 }
 0xb62   : > { %9373 = vpow2.f32 %v6776_v58 }
 0xb64   : > { %v9370_v43 = vpop.eup %9369 }
 0xb65   : > { %v9372_v32 = vpop.eup %9371  ;;  %v6869_v1 = vmul.f32 0.6931472, %v9370_v43  ;;  %v6801_v34 = vpop.xlane.xlu1 %6800 }
 0xb66   : > { %v6811_v49 = vpop.xlane.xlu0 %6810  ;;  %v6873_v15 = vmul.f32 0.6931472, %v9372_v32  ;;  %9375 = vlog2.f32 %v6801_v34 }
 0xb67   : > { %v6919_v55 = vsub.f32 %v12197_v27, %v6869_v1  ;;  %9377 = vlog2.f32 %v6811_v49 }
 0xb68   : > { %v9374_v56 = vpop.eup %9373  ;;  %v6921_v20 = vsub.f32 %v12201_v18, %v6873_v15 }
 0xb69   : > { %6951 = vst [vmem:[%s12228_s20 + $0x68] sm:$0xff] %v6919_v55  ;;  %6840 = vadd.xlane.f32.xlu0 %v9374_v56 }
 0xb6a   : > { %6953 = vst [vmem:[%s12228_s20 + $0x78] sm:$0xff] %v6921_v20 }
 0xb6c   : > { %v9376_v16 = vpop.eup %9375 }
 0xb6d   : > { %v9378_v52 = vpop.eup %9377  ;;  %v6865_v19 = vmul.f32 0.6931472, %v9376_v16  ;;  %v6807_v46 = vpop.xlane.xlu1 %6806 }
 0xb6e   : > { %v6875_v44 = vmul.f32 0.6931472, %v9378_v52  ;;  %9379 = vlog2.f32 %v6807_v46 }
 0xb6f   : > { %v6917_v39 = vsub.f32 %v12211_v51, %v6865_v19 }
 0xb70   : > { %v6922_v22 = vsub.f32 %v12215_v2, %v6875_v44 }
 0xb71   : > { %6949 = vst [vmem:[%s12228_s20 + $0x58] sm:$0xff] %v6917_v39 }
 0xb72   : > { %6954 = vst [vmem:[%s12228_s20 + $0x80] sm:$0xff] %v6922_v22 }
 0xb74   : > { %v9380_v27 = vpop.eup %9379  ;;  %v6815_v26 = vpop.xlane.xlu2 %6814 }
 0xb75   : > { %v6871_v18 = vmul.f32 0.6931472, %v9380_v27  ;;  %9381 = vlog2.f32 %v6815_v26  ;;  %v6813_v48 = vpop.xlane.xlu1 %6812 }
 0xb76   : > { %9383 = vlog2.f32 %v6813_v48 }
 0xb77   : > { %v6920_v12 = vsub.f32 %v12223_v24, %v6871_v18 }
 0xb79   : > { %6952 = vst [vmem:[%s12228_s20 + $0x70] sm:$0xff] %v6920_v12 }
 0xb7b   : > { %v9382_v8 = vpop.eup %9381 }
 0xb7c   : > { %v9384_v17 = vpop.eup %9383  ;;  %v6879_v50 = vmul.f32 0.6931472, %v9382_v8  ;;  %v6817_v51 = vpop.xlane.xlu0 %6816 }
 0xb7d   : > { %v6877_v7 = vmul.f32 0.6931472, %v9384_v17  ;;  %9385 = vlog2.f32 %v6817_v51 }
 0xb7e   : > { %v6924_v2 = vsub.f32 %v12238_v31, %v6879_v50 }
 0xb7f   : > { %v6923_v60 = vsub.f32 %v12234_v29, %v6877_v7 }
 0xb80   : > { %6956 = vst [vmem:[%s12228_s20 + $0x90] sm:$0xff] %v6924_v2 }
 0xb81   : > { %6955 = vst [vmem:[%s12228_s20 + $0x88] sm:$0xff] %v6923_v60 }
 0xb83   : > { %v9386_v28 = vpop.eup %9385 }
 0xb84   : > { %v6881_v61 = vmul.f32 0.6931472, %v9386_v28  ;;  %v6819_v13 = vpop.xlane.xlu1 %6818 }
 0xb85   : > { %9387 = vlog2.f32 %v6819_v13 }
 0xb86   : > { %v6925_v24 = vsub.f32 %v12245_v53, %v6881_v61 }
 0xb88   : > { %6957 = vst [vmem:[%s12228_s20 + $0x98] sm:$0xff] %v6925_v24 }
 0xb8b   : > { %v9388_v10 = vpop.eup %9387 }
 0xb8c   : > { %v6883_v45 = vmul.f32 0.6931472, %v9388_v10  ;;  %v6821_v14 = vpop.xlane.xlu2 %6820 }
 0xb8d   : > { %9389 = vlog2.f32 %v6821_v14 }
 0xb8e   : > { %v6926_v35 = vsub.f32 %v12251_v47, %v6883_v45 }
 0xb90   : > { %6958 = vst [vmem:[%s12228_s20 + $0xa0] sm:$0xff] %v6926_v35 }
 0xb93   : > { %v9390_v31 = vpop.eup %9389 }
 0xb94   : > { %v6885_v29 = vmul.f32 0.6931472, %v9390_v31  ;;  %v6823_v33 = vpop.xlane.xlu0 %6822 }
 0xb95   : > { %9391 = vlog2.f32 %v6823_v33 }
 0xb96   : > { %v6927_v25 = vsub.f32 %v12257_v36, %v6885_v29 }
 0xb98   : > { %6959 = vst [vmem:[%s12228_s20 + $0xa8] sm:$0xff] %v6927_v25 }
 0xb9b   : > { %v9392_v0 = vpop.eup %9391 }
 0xb9c   : > { %v6887_v57 = vmul.f32 0.6931472, %v9392_v0  ;;  %v6825_v53 = vpop.xlane.xlu1 %6824 }
 0xb9d   : > { %9393 = vlog2.f32 %v6825_v53 }
 0xb9e   : > { %v6928_v59 = vsub.f32 %v12263_v62, %v6887_v57 }
 0xba0   : > { %6960 = vst [vmem:[%s12228_s20 + $0xb0] sm:$0xff] %v6928_v59 }
 0xba3   : > { %v9394_v41 = vpop.eup %9393 }
 0xba4   : > { %v6889_v38 = vmul.f32 0.6931472, %v9394_v41  ;;  %v6827_v47 = vpop.xlane.xlu2 %6826 }
 0xba5   : > { %9395 = vlog2.f32 %v6827_v47 }
 0xba6   : > { %v6929_v37 = vsub.f32 %v12269_v30, %v6889_v38 }
 0xba8   : > { %6961 = vst [vmem:[%s12228_s20 + $0xb8] sm:$0xff] %v6929_v37 }
 0xbab   : > { %v9396_v54 = vpop.eup %9395 }
 0xbac   : > { %v6891_v9 = vmul.f32 0.6931472, %v9396_v54  ;;  %v6829_v36 = vpop.xlane.xlu0 %6828 }
 0xbad   : > { %9397 = vlog2.f32 %v6829_v36 }
 0xbae   : > { %v6930_v40 = vsub.f32 %v12275_v21, %v6891_v9 }
 0xbb0   : > { %6962 = vst [vmem:[%s12228_s20 + $0xc0] sm:$0xff] %v6930_v40 }
 0xbb3   : > { %v9398_v42 = vpop.eup %9397 }
 0xbb4   : > { %v6893_v58 = vmul.f32 0.6931472, %v9398_v42  ;;  %v6831_v62 = vpop.xlane.xlu1 %6830 }
 0xbb5   : > { %9399 = vlog2.f32 %v6831_v62 }
 0xbb6   : > { %v6931_v43 = vsub.f32 %v12281_v23, %v6893_v58 }
 0xbb8   : > { %6963 = vst [vmem:[%s12228_s20 + $0xc8] sm:$0xff] %v6931_v43 }
 0xbbb   : > { %v9400_v32 = vpop.eup %9399 }
 0xbbc   : > { %v6895_v1 = vmul.f32 0.6931472, %v9400_v32  ;;  %v6833_v30 = vpop.xlane.xlu2 %6832 }
 0xbbd   : > { %9401 = vlog2.f32 %v6833_v30 }
 0xbbe   : > { %v6932_v34 = vsub.f32 %v12287_v5, %v6895_v1 }
 0xbc0   : > { %6964 = vst [vmem:[%s12228_s20 + $0xd0] sm:$0xff] %v6932_v34 }
 0xbc3   : > { %v9402_v49 = vpop.eup %9401 }
 0xbc4   : > { %v6897_v15 = vmul.f32 0.6931472, %v9402_v49  ;;  %v6835_v21 = vpop.xlane.xlu0 %6834 }
 0xbc5   : > { %9403 = vlog2.f32 %v6835_v21 }
 0xbc6   : > { %v6933_v55 = vsub.f32 %v12293_v3, %v6897_v15 }
 0xbc8   : > { %6965 = vst [vmem:[%s12228_s20 + $0xd8] sm:$0xff] %v6933_v55 }
 0xbcb   : > { %v9404_v56 = vpop.eup %9403 }
 0xbcc   : > { %v6899_v20 = vmul.f32 0.6931472, %v9404_v56  ;;  %v6837_v23 = vpop.xlane.xlu1 %6836 }
 0xbcd   : > { %9405 = vlog2.f32 %v6837_v23 }
 0xbce   : > { %v6934_v16 = vsub.f32 %v12298_v11, %v6899_v20 }
 0xbd0   : > { %6966 = vst [vmem:[%s12228_s20 + $0xe0] sm:$0xff] %v6934_v16 }
 0xbd3   : > { %v9406_v52 = vpop.eup %9405 }
 0xbd4   : > { %v6901_v5 = vmul.f32 0.6931472, %v9406_v52  ;;  %v6839_v19 = vpop.xlane.xlu2 %6838 }
 0xbd5   : > { %9407 = vlog2.f32 %v6839_v19 }
 0xbd6   : > { %v6935_v46 = vsub.f32 %v12302_v63, %v6901_v5 }
 0xbd8   : > { %6967 = vst [vmem:[%s12228_s20 + $0xe8] sm:$0xff] %v6935_v46 }
 0xbdb   : > { %v9408_v44 = vpop.eup %9407 }
 0xbdc   : > { %v6903_v39 = vmul.f32 0.6931472, %v9408_v44  ;;  %v6841_v3 = vpop.xlane.xlu0 %6840 }
 0xbdd   : > { %9409 = vlog2.f32 %v6841_v3 }
 0xbde   : > { %v6936_v22 = vsub.f32 %v12306_v6, %v6903_v39 }
 0xbe0   : > { %6968 = vst [vmem:[%s12228_s20 + $0xf0] sm:$0xff] %v6936_v22 }
 0xbe3   : > { %v9410_v27 = vpop.eup %9409 }
 0xbe4   : > { %v6905_v26 = vmul.f32 0.6931472, %v9410_v27 }
 0xbe6   : > { %v6937_v11 = vsub.f32 %v12310_v4, %v6905_v26 }
 0xbe8   : > { %6969 = vst [vmem:[%s12228_s20 + $0xf8] sm:$0xff] %v6937_v11 }
 0xbe9 PF: > { %s13280_s22 = smov %s9736_s24  ;;  %p19_p4 = scmp.ge.s32.totalorder %s9727_s21, 4  }
 0xbea   : > { %s13281_s24 = smov %s9598_s25  ;;  %s13282_s25 = smov %s9602_s26 }
 0xbeb   : > { %s13283_s26 = smov %s13280_s22  ;;  %s13284_s27 = smov %s9727_s21 }
 0xbec   :  { %21 = sbr.rel (!%p19_p4) target bundleno = 5 (0x5), region = 104 }
 0xbf1   :  { %6992 = vsyncpa [#allocation3], 1 }
 0xbf2   :  { %6994 = vsyncpa [#allocation3 + $0x1], 1 }
 0xbf3   :  { %6995 = vsyncpa [#allocation5], 1 }
 0xbf4   :  { %6996 = vsyncpa [#allocation8], 1 }

</bundles_post_ra>
